<compile_context>
chip_gen: v5e
topology: v5e:2x2
jax: 0.10.0
libtpu: 0.0.40
codegen_flags: <defaults>
</compile_context>

<pallas_src>
import math

import jax
import jax.numpy as jnp
from jax.experimental import pallas as pl
from jax.experimental.pallas import tpu as pltpu

# ---------------- model dims implied by the PyTorch module ----------------
C_IN = 5
C1, K1, S1 = 64, 16, 3          # conv1 (out=64, k=16, stride=3)
C2, K2 = 128, 6                 # conv2 (out=128, k=6, stride=1)
D_MODEL = 256                   # 128 * 2 after channel-concat of batch halves
N_HEAD = 4
D_HEAD = D_MODEL // N_HEAD
D_FF = 256
N_LAYERS = 3
SEQ = 5                         # fc expects 1280 = 5 * 256  ->  seq len is 5
LN_EPS = 1e-5
ATTN_SCALE = 1.0 / math.sqrt(D_HEAD)

P1 = 15                         # pooled conv1 length required to reach SEQ=5
NE = 8                          # even pooled-conv1 positions (0,2,...,14)
NO = 7                          # odd  pooled-conv1 positions (1,3,...,13)
ROWS1 = 16                      # NE + NO padded to an 8-sublane multiple
PATCH1 = K1 * C_IN              # 80


# ====================== fused per-pair forward kernel =======================
def _fused_pair_kernel(pe_ref, po_ref,
                       w1_ref, b1_ref, w2_ref, b2_ref,
                       wq_ref, bq_ref, wk_ref, bk_ref, wv_ref, bv_ref,
                       wo_ref, bo_ref, ln1_ref,
                       wf1_ref, bf1_ref, wf2_ref, bf2_ref, ln2_ref,
                       fcw_ref, fcb_ref, o_ref):
    f32 = jnp.float32
    bf16 = jnp.bfloat16

    # ---------- conv1 + ReLU + MaxPool1d(2,2) ----------
    # row layout per sequence: [8 even pooled positions | 7 odd | 1 pad]
    w1 = w1_ref[...]                                    # (80, 64) bf16
    b1 = b1_ref[...]                                    # (1, 64)  f32
    ye = jnp.dot(pe_ref[0], w1, preferred_element_type=f32) + b1
    yo = jnp.dot(po_ref[0], w1, preferred_element_type=f32) + b1
    h1 = jnp.maximum(jnp.maximum(ye, 0.0), jnp.maximum(yo, 0.0))   # (32, 64) f32

    # conv2 weights: DMA'd as bf16, widened once in VMEM (MXU is idle anyway)
    w2 = w2_ref[...].astype(f32)                        # (K2, 64, 128)
    b2 = b2_ref[...]                                    # (1, 128)

    # ---------- conv2 (sum over taps) + ReLU + MaxPool1d(2,2) ----------
    h2 = []
    for s in range(2):                                  # the two sequences of the pair
        base = s * ROWS1
        he = h1[base:base + NE]                         # (8, 64) even pooled positions
        ho = h1[base + NE:base + NE + NO]               # (7, 64) odd  pooled positions
        ce = jnp.zeros((SEQ, C2), f32)
        co = jnp.zeros((SEQ, C2), f32)
        for k in range(K2):
            w2k = w2[k]
            if k % 2 == 0:
                ce = ce + jnp.dot(he[k // 2:k // 2 + SEQ], w2k,
                                  preferred_element_type=f32)
                co = co + jnp.dot(ho[k // 2:k // 2 + SEQ], w2k,
                                  preferred_element_type=f32)
            else:
                ce = ce + jnp.dot(ho[k // 2:k // 2 + SEQ], w2k,
                                  preferred_element_type=f32)
                co = co + jnp.dot(he[(k + 1) // 2:(k + 1) // 2 + SEQ], w2k,
                                  preferred_element_type=f32)
        ce = jnp.maximum(ce + b2, 0.0)
        co = jnp.maximum(co + b2, 0.0)
        h2.append(jnp.maximum(ce, co))                  # (SEQ, 128)

    # channel-concat of the pair == torch.cat(dim=1) + permute(0,2,1)
    x = jnp.concatenate(h2, axis=-1)                    # (SEQ, 256) f32 tokens

    def layer_norm(z, ln):                              # single-pass statistics, f32
        mu = jnp.mean(z, axis=-1, keepdims=True)
        ms = jnp.mean(z * z, axis=-1, keepdims=True)
        inv = jax.lax.rsqrt(ms - mu * mu + LN_EPS)
        return (z - mu) * inv * ln[0:1, :] + ln[1:2, :]

    # ---------- 3 x TransformerEncoderLayer (post-LN, relu, eval mode) ----------
    # TODO(synk): dropout (p=0.3) omitted -- eval/inference semantics.
    for li in range(N_LAYERS):
        xb = x.astype(bf16)
        attn = jnp.zeros((SEQ, D_MODEL), f32)
        for h in range(N_HEAD):
            # per-head projections from pre-sliced weights (no column slicing)
            qh = jnp.dot(xb, wq_ref[li, h], preferred_element_type=f32) + bq_ref[li, h]
            kh = jnp.dot(xb, wk_ref[li, h], preferred_element_type=f32) + bk_ref[li, h]
            vh = jnp.dot(xb, wv_ref[li, h], preferred_element_type=f32) + bv_ref[li, h]
            # 1/sqrt(d_head) already folded into wq/bq on the host
            s = jnp.einsum("qd,kd->qk", qh, kh, preferred_element_type=f32)   # (5,5)
            s = s - jnp.max(s, axis=-1, keepdims=True)
            p = jnp.exp(s)
            p = p / jnp.sum(p, axis=-1, keepdims=True)  # exact softmax (f32)
            oh = jnp.dot(p, vh, preferred_element_type=f32)                   # (5,64)
            # head-combine accumulated straight through the out-proj slice
            attn = attn + jnp.dot(oh.astype(bf16), wo_ref[li, h],
                                  preferred_element_type=f32)
        attn = attn + bo_ref[li]

        x = layer_norm(x + attn, ln1_ref[li])
        xb = x.astype(bf16)
        hid = jnp.maximum(
            jnp.dot(xb, wf1_ref[li], preferred_element_type=f32) + bf1_ref[li], 0.0)
        ff = (jnp.dot(hid.astype(bf16), wf2_ref[li], preferred_element_type=f32)
              + bf2_ref[li])
        x = layer_norm(x + ff, ln2_ref[li])

    # ---------- flatten + fc(1280 -> 1): multiply + reduce ----------
    val = jnp.sum(x * fcw_ref[...], axis=-1, keepdims=True)        # (SEQ, 1)
    val = jnp.sum(val, axis=0, keepdims=True) + fcb_ref[...]       # (1, 1)
    o_ref[...] = jnp.broadcast_to(val, (1, 8, 128))                # lane-dense store


# =============================== parameters =================================
def init_params(key):
    """Parameters in (stacked) PyTorch-native layouts."""
    ks = jax.random.split(key, 14)

    def nrm(k, shape, scale=0.05):
        return scale * jax.random.normal(k, shape, dtype=jnp.float32)

    return {
        "conv1_w": nrm(ks[0], (C1, C_IN, K1)),             # (Cout, Cin, K)
        "conv1_b": nrm(ks[1], (C1,)),
        "conv2_w": nrm(ks[2], (C2, C1, K2)),
        "conv2_b": nrm(ks[3], (C2,)),
        "in_proj_w": nrm(ks[4], (N_LAYERS, 3 * D_MODEL, D_MODEL)),  # [Wq; Wk; Wv]
        "in_proj_b": nrm(ks[5], (N_LAYERS, 3 * D_MODEL)),
        "out_proj_w": nrm(ks[6], (N_LAYERS, D_MODEL, D_MODEL)),
        "out_proj_b": nrm(ks[7], (N_LAYERS, D_MODEL)),
        "ln1_w": jnp.ones((N_LAYERS, D_MODEL), jnp.float32),
        "ln1_b": jnp.zeros((N_LAYERS, D_MODEL), jnp.float32),
        "lin1_w": nrm(ks[8], (N_LAYERS, D_FF, D_MODEL)),
        "lin1_b": nrm(ks[9], (N_LAYERS, D_FF)),
        "lin2_w": nrm(ks[10], (N_LAYERS, D_MODEL, D_FF)),
        "lin2_b": nrm(ks[11], (N_LAYERS, D_MODEL)),
        "ln2_w": jnp.ones((N_LAYERS, D_MODEL), jnp.float32),
        "ln2_b": jnp.zeros((N_LAYERS, D_MODEL), jnp.float32),
        "fc_w": nrm(ks[12], (1, SEQ * D_MODEL)),           # Linear(1280, 1).weight
        "fc_b": nrm(ks[13], (1,)),
    }


def _prepare_weights(p):
    """PyTorch layouts -> kernel layouts (bf16 matmul weights, f32 biases/LN)."""
    bf16, f32 = jnp.bfloat16, jnp.float32

    w1 = jnp.transpose(p["conv1_w"], (2, 1, 0)).reshape(PATCH1, C1).astype(bf16)
    b1 = p["conv1_b"].reshape(1, C1).astype(f32)
    w2 = jnp.transpose(p["conv2_w"], (2, 1, 0)).astype(bf16)        # (K2, C1, C2)
    b2 = p["conv2_b"].reshape(1, C2).astype(f32)

    ipw, ipb = p["in_proj_w"], p["in_proj_b"]

    def heads(wm, scale=1.0):           # (L, 256, 256) -> (L, H, 256, 64)
        return (jnp.transpose(wm.reshape(N_LAYERS, N_HEAD, D_HEAD, D_MODEL),
                              (0, 1, 3, 2)) * scale).astype(bf16)

    def head_bias(bm, scale=1.0):       # (L, 256) -> (L, H, 1, 64)
        return (bm.reshape(N_LAYERS, N_HEAD, 1, D_HEAD) * scale).astype(f32)

    wq = heads(ipw[:, 0:D_MODEL, :], ATTN_SCALE)          # scale folded into Q
    wk = heads(ipw[:, D_MODEL:2 * D_MODEL, :])
    wv = heads(ipw[:, 2 * D_MODEL:, :])
    bq = head_bias(ipb[:, 0:D_MODEL], ATTN_SCALE)
    bk = head_bias(ipb[:, D_MODEL:2 * D_MODEL])
    bv = head_bias(ipb[:, 2 * D_MODEL:])

    # concat_h(o_h) @ Wo^T  ==  sum_h o_h @ Wo[:, h*64:(h+1)*64]^T
    wo = jnp.transpose(p["out_proj_w"].reshape(N_LAYERS, D_MODEL, N_HEAD, D_HEAD),
                       (0, 2, 3, 1)).astype(bf16)         # (L, H, 64, 256)
    bo = p["out_proj_b"].reshape(N_LAYERS, 1, D_MODEL).astype(f32)

    ln1 = jnp.stack([p["ln1_w"], p["ln1_b"]], axis=1).astype(f32)   # (L, 2, 256)
    ln2 = jnp.stack([p["ln2_w"], p["ln2_b"]], axis=1).astype(f32)

    wf1 = jnp.transpose(p["lin1_w"], (0, 2, 1)).astype(bf16)        # (L, 256, 256)
    bf1 = p["lin1_b"].reshape(N_LAYERS, 1, D_FF).astype(f32)
    wf2 = jnp.transpose(p["lin2_w"], (0, 2, 1)).astype(bf16)
    bf2 = p["lin2_b"].reshape(N_LAYERS, 1, D_MODEL).astype(f32)

    # torch.flatten of (seq=5, d_model=256) tokens is seq-major, channel-minor
    fcw = p["fc_w"].reshape(SEQ, D_MODEL).astype(f32)
    fcb = p["fc_b"].reshape(1, 1).astype(f32)

    return (w1, b1, w2, b2, wq, bq, wk, bk, wv, bv, wo, bo, ln1,
            wf1, bf1, wf2, bf2, ln2, fcw, fcb)


# ============================== host-side prep ==============================
def _conv1_patches(x):
    """(B, 5, L) -> even/odd-tap conv1 patch tensors (B, ROWS1, 80),
    pooled positions parity-ordered [evens(8) | odds(7) | pad(1)]."""
    B = x.shape[0]
    xt = jnp.transpose(x, (0, 2, 1))          # (B, L, C_IN)
    step = 4 * S1                             # input stride between same-parity windows

    def group(first_conv_pos, n_rows):
        start0 = first_conv_pos * S1
        cols = [xt[:, start0 + k: start0 + k + step * (n_rows - 1) + 1: step, :]
                for k in range(K1)]
        return jnp.concatenate(cols, axis=-1)  # (B, n_rows, 80), col = k*C_IN + ci

    pad = jnp.zeros((B, ROWS1 - NE - NO, PATCH1), x.dtype)
    pe = jnp.concatenate([group(0, NE), group(2, NO), pad], axis=1)  # 1st tap of window
    po = jnp.concatenate([group(1, NE), group(3, NO), pad], axis=1)  # 2nd tap
    return pe, po


# ================================ forward ===================================
@jax.jit
def promoter_net_forward(x, params):
    # x: (B, 5, L), B must be even (the model pairs sample i with i + B/2)
    B, cin, L = x.shape
    assert cin == C_IN and B % 2 == 0
    half = B // 2
    L1 = (L - K1) // S1 + 1
    assert L1 == 2 * P1, "input length must give conv1 length 30 (fc expects 1280)"

    pe, po = _conv1_patches(x)                           # (B, 16, 80) each

    def pair(a):  # pair g = (sample g, sample g + half): (half, 32, 80) bf16
        return jnp.stack([a[:half], a[half:]], axis=1) \
                  .reshape(half, 2 * ROWS1, PATCH1).astype(jnp.bfloat16)

    pe_pairs, po_pairs = pair(pe), pair(po)
    weights = _prepare_weights(params)

    def const_spec(a):                                   # weight resident across grid
        zeros = (0,) * a.ndim
        return pl.BlockSpec(a.shape, lambda i: zeros)

    act_spec = pl.BlockSpec((1, 2 * ROWS1, PATCH1), lambda i: (i, 0, 0))
    in_specs = [act_spec, act_spec] + [const_spec(w) for w in weights]

    out = pl.pallas_call(
        _fused_pair_kernel,
        out_shape=jax.ShapeDtypeStruct((half, 8, 128), jnp.float32),
        grid=(half,),
        in_specs=in_specs,
        out_specs=pl.BlockSpec((1, 8, 128), lambda i: (i, 0, 0)),
        compiler_params=pltpu.CompilerParams(
            dimension_semantics=("parallel",),
            vmem_limit_bytes=32 * 1024 * 1024),
    )(pe_pairs, po_pairs, *weights)

    return out[:, 0, 0]                                   # torch.squeeze -> (half,)


if __name__ == "__main__":
    B = 4
    L = 103  # conv/pool stack -> seq len 5 -> 5*256 = 1280 for fc
    key = jax.random.PRNGKey(0)
    kx, kp = jax.random.split(key)
    x = jax.random.normal(kx, (B, C_IN, L), dtype=jnp.float32)
    params = init_params(kp)

    out = jax.block_until_ready(promoter_net_forward(x, params))
    assert out.shape == (B // 2,), out.shape
    assert bool(jnp.all(jnp.isfinite(out)))
    print("KERNEL_OK")
</pallas_src>

<mosaic_0001>
module attributes {stable_mosaic.version = 11 : i64} {
  func.func @_fused_pair_kernel(%arg0: i32, %arg1: memref<1x32x80xbf16, #tpu.memory_space<vmem>>, %arg2: memref<1x32x80xbf16, #tpu.memory_space<vmem>>, %arg3: memref<80x64xbf16, #tpu.memory_space<vmem>>, %arg4: memref<1x64xf32, #tpu.memory_space<vmem>>, %arg5: memref<6x64x128xbf16, #tpu.memory_space<vmem>>, %arg6: memref<1x128xf32, #tpu.memory_space<vmem>>, %arg7: memref<3x4x256x64xbf16, #tpu.memory_space<vmem>>, %arg8: memref<3x4x1x64xf32, #tpu.memory_space<vmem>>, %arg9: memref<3x4x256x64xbf16, #tpu.memory_space<vmem>>, %arg10: memref<3x4x1x64xf32, #tpu.memory_space<vmem>>, %arg11: memref<3x4x256x64xbf16, #tpu.memory_space<vmem>>, %arg12: memref<3x4x1x64xf32, #tpu.memory_space<vmem>>, %arg13: memref<3x4x64x256xbf16, #tpu.memory_space<vmem>>, %arg14: memref<3x1x256xf32, #tpu.memory_space<vmem>>, %arg15: memref<3x2x256xf32, #tpu.memory_space<vmem>>, %arg16: memref<3x256x256xbf16, #tpu.memory_space<vmem>>, %arg17: memref<3x1x256xf32, #tpu.memory_space<vmem>>, %arg18: memref<3x256x256xbf16, #tpu.memory_space<vmem>>, %arg19: memref<3x1x256xf32, #tpu.memory_space<vmem>>, %arg20: memref<3x2x256xf32, #tpu.memory_space<vmem>>, %arg21: memref<5x256xf32, #tpu.memory_space<vmem>>, %arg22: memref<1x1xf32, #tpu.memory_space<vmem>>, %arg23: memref<1x8x128xf32, #tpu.memory_space<vmem>>) attributes {dimension_semantics = [#tpu.dimension_semantics<parallel>], iteration_bounds = array<i64: 2>, scalar_prefetch = 0 : i64, scratch_operands = 0 : i64, tpu.core_type = #tpu.core_type<tc>, window_params = [{transform_indices = @transform_0, window_bounds = array<i64: 1, 32, 80>}, {transform_indices = @transform_1, window_bounds = array<i64: 1, 32, 80>}, {pipeline_mode = #tpu.pipeline_mode<synchronous>, transform_indices = @transform_2, window_bounds = array<i64: 80, 64>}, {pipeline_mode = #tpu.pipeline_mode<synchronous>, transform_indices = @transform_3, window_bounds = array<i64: 1, 64>}, {pipeline_mode = #tpu.pipeline_mode<synchronous>, transform_indices = @transform_4, window_bounds = array<i64: 6, 64, 128>}, {pipeline_mode = #tpu.pipeline_mode<synchronous>, transform_indices = @transform_5, window_bounds = array<i64: 1, 128>}, {pipeline_mode = #tpu.pipeline_mode<synchronous>, transform_indices = @transform_6, window_bounds = array<i64: 3, 4, 256, 64>}, {pipeline_mode = #tpu.pipeline_mode<synchronous>, transform_indices = @transform_7, window_bounds = array<i64: 3, 4, 1, 64>}, {pipeline_mode = #tpu.pipeline_mode<synchronous>, transform_indices = @transform_8, window_bounds = array<i64: 3, 4, 256, 64>}, {pipeline_mode = #tpu.pipeline_mode<synchronous>, transform_indices = @transform_9, window_bounds = array<i64: 3, 4, 1, 64>}, {pipeline_mode = #tpu.pipeline_mode<synchronous>, transform_indices = @transform_10, window_bounds = array<i64: 3, 4, 256, 64>}, {pipeline_mode = #tpu.pipeline_mode<synchronous>, transform_indices = @transform_11, window_bounds = array<i64: 3, 4, 1, 64>}, {pipeline_mode = #tpu.pipeline_mode<synchronous>, transform_indices = @transform_12, window_bounds = array<i64: 3, 4, 64, 256>}, {pipeline_mode = #tpu.pipeline_mode<synchronous>, transform_indices = @transform_13, window_bounds = array<i64: 3, 1, 256>}, {pipeline_mode = #tpu.pipeline_mode<synchronous>, transform_indices = @transform_14, window_bounds = array<i64: 3, 2, 256>}, {pipeline_mode = #tpu.pipeline_mode<synchronous>, transform_indices = @transform_15, window_bounds = array<i64: 3, 256, 256>}, {pipeline_mode = #tpu.pipeline_mode<synchronous>, transform_indices = @transform_16, window_bounds = array<i64: 3, 1, 256>}, {pipeline_mode = #tpu.pipeline_mode<synchronous>, transform_indices = @transform_17, window_bounds = array<i64: 3, 256, 256>}, {pipeline_mode = #tpu.pipeline_mode<synchronous>, transform_indices = @transform_18, window_bounds = array<i64: 3, 1, 256>}, {pipeline_mode = #tpu.pipeline_mode<synchronous>, transform_indices = @transform_19, window_bounds = array<i64: 3, 2, 256>}, {pipeline_mode = #tpu.pipeline_mode<synchronous>, transform_indices = @transform_20, window_bounds = array<i64: 5, 256>}, {pipeline_mode = #tpu.pipeline_mode<synchronous>, transform_indices = @transform_21, window_bounds = array<i64: 1, 1>}, {transform_indices = @transform_22, window_bounds = array<i64: 1, 8, 128>}]} {
    %c0 = arith.constant 0 : index
    %c0_0 = arith.constant 0 : index
    %0 = vector.load %arg3[%c0, %c0_0] : memref<80x64xbf16, #tpu.memory_space<vmem>>, vector<80x64xbf16>
    %c0_1 = arith.constant 0 : index
    %c0_2 = arith.constant 0 : index
    %1 = vector.load %arg4[%c0_1, %c0_2] : memref<1x64xf32, #tpu.memory_space<vmem>>, vector<1x64xf32>
    %c0_3 = arith.constant 0 : index
    %c0_4 = arith.constant 0 : index
    %c0_5 = arith.constant 0 : index
    %2 = vector.load %arg1[%c0_3, %c0_4, %c0_5] : memref<1x32x80xbf16, #tpu.memory_space<vmem>>, vector<1x32x80xbf16>
    %3 = vector.shape_cast %2 : vector<1x32x80xbf16> to vector<32x80xbf16>
    %cst = arith.constant dense<0.000000e+00> : vector<32x64xf32>
    %4 = tpu.matmul %3, %0, %cst {dimension_numbers = #tpu.dot_dimension_numbers<[1], [0], [0], [1], [0, 0, 1, 1], [], []>} : vector<32x80xbf16>, vector<80x64xbf16>, vector<32x64xf32> -> vector<32x64xf32>
    %5 = vector.broadcast %1 : vector<1x64xf32> to vector<32x64xf32>
    %6 = arith.addf %4, %5 : vector<32x64xf32>
    %c0_6 = arith.constant 0 : index
    %c0_7 = arith.constant 0 : index
    %c0_8 = arith.constant 0 : index
    %7 = vector.load %arg2[%c0_6, %c0_7, %c0_8] : memref<1x32x80xbf16, #tpu.memory_space<vmem>>, vector<1x32x80xbf16>
    %8 = vector.shape_cast %7 : vector<1x32x80xbf16> to vector<32x80xbf16>
    %cst_9 = arith.constant dense<0.000000e+00> : vector<32x64xf32>
    %9 = tpu.matmul %8, %0, %cst_9 {dimension_numbers = #tpu.dot_dimension_numbers<[1], [0], [0], [1], [0, 0, 1, 1], [], []>} : vector<32x80xbf16>, vector<80x64xbf16>, vector<32x64xf32> -> vector<32x64xf32>
    %10 = vector.broadcast %1 : vector<1x64xf32> to vector<32x64xf32>
    %11 = arith.addf %9, %10 : vector<32x64xf32>
    %cst_10 = arith.constant 0.000000e+00 : f32
    %12 = vector.broadcast %cst_10 : f32 to vector<32x64xf32>
    %13 = arith.maximumf %6, %12 : vector<32x64xf32>
    %cst_11 = arith.constant 0.000000e+00 : f32
    %14 = vector.broadcast %cst_11 : f32 to vector<32x64xf32>
    %15 = arith.maximumf %11, %14 : vector<32x64xf32>
    %16 = arith.maximumf %13, %15 : vector<32x64xf32>
    %c0_12 = arith.constant 0 : index
    %c0_13 = arith.constant 0 : index
    %c0_14 = arith.constant 0 : index
    %17 = vector.load %arg5[%c0_12, %c0_13, %c0_14] : memref<6x64x128xbf16, #tpu.memory_space<vmem>>, vector<6x64x128xbf16>
    %18 = arith.extf %17 : vector<6x64x128xbf16> to vector<6x64x128xf32>
    %c0_15 = arith.constant 0 : index
    %c0_16 = arith.constant 0 : index
    %19 = vector.load %arg6[%c0_15, %c0_16] : memref<1x128xf32, #tpu.memory_space<vmem>>, vector<1x128xf32>
    %20 = vector.extract_strided_slice %16 {offsets = [0, 0], sizes = [8, 64], strides = [1, 1]} : vector<32x64xf32> to vector<8x64xf32>
    %21 = vector.extract_strided_slice %16 {offsets = [8, 0], sizes = [7, 64], strides = [1, 1]} : vector<32x64xf32> to vector<7x64xf32>
    %cst_17 = arith.constant 0.000000e+00 : f32
    %22 = vector.broadcast %cst_17 : f32 to vector<5x128xf32>
    %cst_18 = arith.constant 0.000000e+00 : f32
    %23 = vector.broadcast %cst_18 : f32 to vector<5x128xf32>
    %24 = vector.extract_strided_slice %18 {offsets = [0, 0, 0], sizes = [1, 64, 128], strides = [1, 1, 1]} : vector<6x64x128xf32> to vector<1x64x128xf32>
    %25 = vector.shape_cast %24 : vector<1x64x128xf32> to vector<64x128xf32>
    %26 = vector.extract_strided_slice %20 {offsets = [0, 0], sizes = [5, 64], strides = [1, 1]} : vector<8x64xf32> to vector<5x64xf32>
    %cst_19 = arith.constant dense<0.000000e+00> : vector<5x128xf32>
    %27 = tpu.matmul %26, %25, %cst_19 {dimension_numbers = #tpu.dot_dimension_numbers<[1], [0], [0], [1], [0, 0, 1, 1], [], []>} : vector<5x64xf32>, vector<64x128xf32>, vector<5x128xf32> -> vector<5x128xf32>
    %28 = arith.addf %22, %27 : vector<5x128xf32>
    %29 = vector.extract_strided_slice %21 {offsets = [0, 0], sizes = [5, 64], strides = [1, 1]} : vector<7x64xf32> to vector<5x64xf32>
    %cst_20 = arith.constant dense<0.000000e+00> : vector<5x128xf32>
    %30 = tpu.matmul %29, %25, %cst_20 {dimension_numbers = #tpu.dot_dimension_numbers<[1], [0], [0], [1], [0, 0, 1, 1], [], []>} : vector<5x64xf32>, vector<64x128xf32>, vector<5x128xf32> -> vector<5x128xf32>
    %31 = arith.addf %23, %30 : vector<5x128xf32>
    %32 = vector.extract_strided_slice %18 {offsets = [1, 0, 0], sizes = [1, 64, 128], strides = [1, 1, 1]} : vector<6x64x128xf32> to vector<1x64x128xf32>
    %33 = vector.shape_cast %32 : vector<1x64x128xf32> to vector<64x128xf32>
    %34 = vector.extract_strided_slice %21 {offsets = [0, 0], sizes = [5, 64], strides = [1, 1]} : vector<7x64xf32> to vector<5x64xf32>
    %cst_21 = arith.constant dense<0.000000e+00> : vector<5x128xf32>
    %35 = tpu.matmul %34, %33, %cst_21 {dimension_numbers = #tpu.dot_dimension_numbers<[1], [0], [0], [1], [0, 0, 1, 1], [], []>} : vector<5x64xf32>, vector<64x128xf32>, vector<5x128xf32> -> vector<5x128xf32>
    %36 = arith.addf %28, %35 : vector<5x128xf32>
    %37 = vector.extract_strided_slice %20 {offsets = [1, 0], sizes = [5, 64], strides = [1, 1]} : vector<8x64xf32> to vector<5x64xf32>
    %cst_22 = arith.constant dense<0.000000e+00> : vector<5x128xf32>
    %38 = tpu.matmul %37, %33, %cst_22 {dimension_numbers = #tpu.dot_dimension_numbers<[1], [0], [0], [1], [0, 0, 1, 1], [], []>} : vector<5x64xf32>, vector<64x128xf32>, vector<5x128xf32> -> vector<5x128xf32>
    %39 = arith.addf %31, %38 : vector<5x128xf32>
    %40 = vector.extract_strided_slice %18 {offsets = [2, 0, 0], sizes = [1, 64, 128], strides = [1, 1, 1]} : vector<6x64x128xf32> to vector<1x64x128xf32>
    %41 = vector.shape_cast %40 : vector<1x64x128xf32> to vector<64x128xf32>
    %42 = vector.extract_strided_slice %20 {offsets = [1, 0], sizes = [5, 64], strides = [1, 1]} : vector<8x64xf32> to vector<5x64xf32>
    %cst_23 = arith.constant dense<0.000000e+00> : vector<5x128xf32>
    %43 = tpu.matmul %42, %41, %cst_23 {dimension_numbers = #tpu.dot_dimension_numbers<[1], [0], [0], [1], [0, 0, 1, 1], [], []>} : vector<5x64xf32>, vector<64x128xf32>, vector<5x128xf32> -> vector<5x128xf32>
    %44 = arith.addf %36, %43 : vector<5x128xf32>
    %45 = vector.extract_strided_slice %21 {offsets = [1, 0], sizes = [5, 64], strides = [1, 1]} : vector<7x64xf32> to vector<5x64xf32>
    %cst_24 = arith.constant dense<0.000000e+00> : vector<5x128xf32>
    %46 = tpu.matmul %45, %41, %cst_24 {dimension_numbers = #tpu.dot_dimension_numbers<[1], [0], [0], [1], [0, 0, 1, 1], [], []>} : vector<5x64xf32>, vector<64x128xf32>, vector<5x128xf32> -> vector<5x128xf32>
    %47 = arith.addf %39, %46 : vector<5x128xf32>
    %48 = vector.extract_strided_slice %18 {offsets = [3, 0, 0], sizes = [1, 64, 128], strides = [1, 1, 1]} : vector<6x64x128xf32> to vector<1x64x128xf32>
    %49 = vector.shape_cast %48 : vector<1x64x128xf32> to vector<64x128xf32>
    %50 = vector.extract_strided_slice %21 {offsets = [1, 0], sizes = [5, 64], strides = [1, 1]} : vector<7x64xf32> to vector<5x64xf32>
    %cst_25 = arith.constant dense<0.000000e+00> : vector<5x128xf32>
    %51 = tpu.matmul %50, %49, %cst_25 {dimension_numbers = #tpu.dot_dimension_numbers<[1], [0], [0], [1], [0, 0, 1, 1], [], []>} : vector<5x64xf32>, vector<64x128xf32>, vector<5x128xf32> -> vector<5x128xf32>
    %52 = arith.addf %44, %51 : vector<5x128xf32>
    %53 = vector.extract_strided_slice %20 {offsets = [2, 0], sizes = [5, 64], strides = [1, 1]} : vector<8x64xf32> to vector<5x64xf32>
    %cst_26 = arith.constant dense<0.000000e+00> : vector<5x128xf32>
    %54 = tpu.matmul %53, %49, %cst_26 {dimension_numbers = #tpu.dot_dimension_numbers<[1], [0], [0], [1], [0, 0, 1, 1], [], []>} : vector<5x64xf32>, vector<64x128xf32>, vector<5x128xf32> -> vector<5x128xf32>
    %55 = arith.addf %47, %54 : vector<5x128xf32>
    %56 = vector.extract_strided_slice %18 {offsets = [4, 0, 0], sizes = [1, 64, 128], strides = [1, 1, 1]} : vector<6x64x128xf32> to vector<1x64x128xf32>
    %57 = vector.shape_cast %56 : vector<1x64x128xf32> to vector<64x128xf32>
    %58 = vector.extract_strided_slice %20 {offsets = [2, 0], sizes = [5, 64], strides = [1, 1]} : vector<8x64xf32> to vector<5x64xf32>
    %cst_27 = arith.constant dense<0.000000e+00> : vector<5x128xf32>
    %59 = tpu.matmul %58, %57, %cst_27 {dimension_numbers = #tpu.dot_dimension_numbers<[1], [0], [0], [1], [0, 0, 1, 1], [], []>} : vector<5x64xf32>, vector<64x128xf32>, vector<5x128xf32> -> vector<5x128xf32>
    %60 = arith.addf %52, %59 : vector<5x128xf32>
    %61 = vector.extract_strided_slice %21 {offsets = [2, 0], sizes = [5, 64], strides = [1, 1]} : vector<7x64xf32> to vector<5x64xf32>
    %cst_28 = arith.constant dense<0.000000e+00> : vector<5x128xf32>
    %62 = tpu.matmul %61, %57, %cst_28 {dimension_numbers = #tpu.dot_dimension_numbers<[1], [0], [0], [1], [0, 0, 1, 1], [], []>} : vector<5x64xf32>, vector<64x128xf32>, vector<5x128xf32> -> vector<5x128xf32>
    %63 = arith.addf %55, %62 : vector<5x128xf32>
    %64 = vector.extract_strided_slice %18 {offsets = [5, 0, 0], sizes = [1, 64, 128], strides = [1, 1, 1]} : vector<6x64x128xf32> to vector<1x64x128xf32>
    %65 = vector.shape_cast %64 : vector<1x64x128xf32> to vector<64x128xf32>
    %66 = vector.extract_strided_slice %21 {offsets = [2, 0], sizes = [5, 64], strides = [1, 1]} : vector<7x64xf32> to vector<5x64xf32>
    %cst_29 = arith.constant dense<0.000000e+00> : vector<5x128xf32>
    %67 = tpu.matmul %66, %65, %cst_29 {dimension_numbers = #tpu.dot_dimension_numbers<[1], [0], [0], [1], [0, 0, 1, 1], [], []>} : vector<5x64xf32>, vector<64x128xf32>, vector<5x128xf32> -> vector<5x128xf32>
    %68 = arith.addf %60, %67 : vector<5x128xf32>
    %69 = vector.extract_strided_slice %20 {offsets = [3, 0], sizes = [5, 64], strides = [1, 1]} : vector<8x64xf32> to vector<5x64xf32>
    %cst_30 = arith.constant dense<0.000000e+00> : vector<5x128xf32>
    %70 = tpu.matmul %69, %65, %cst_30 {dimension_numbers = #tpu.dot_dimension_numbers<[1], [0], [0], [1], [0, 0, 1, 1], [], []>} : vector<5x64xf32>, vector<64x128xf32>, vector<5x128xf32> -> vector<5x128xf32>
    %71 = arith.addf %63, %70 : vector<5x128xf32>
    %72 = vector.broadcast %19 : vector<1x128xf32> to vector<5x128xf32>
    %73 = arith.addf %68, %72 : vector<5x128xf32>
    %cst_31 = arith.constant 0.000000e+00 : f32
    %74 = vector.broadcast %cst_31 : f32 to vector<5x128xf32>
    %75 = arith.maximumf %73, %74 : vector<5x128xf32>
    %76 = vector.broadcast %19 : vector<1x128xf32> to vector<5x128xf32>
    %77 = arith.addf %71, %76 : vector<5x128xf32>
    %cst_32 = arith.constant 0.000000e+00 : f32
    %78 = vector.broadcast %cst_32 : f32 to vector<5x128xf32>
    %79 = arith.maximumf %77, %78 : vector<5x128xf32>
    %80 = arith.maximumf %75, %79 : vector<5x128xf32>
    %81 = vector.extract_strided_slice %16 {offsets = [16, 0], sizes = [8, 64], strides = [1, 1]} : vector<32x64xf32> to vector<8x64xf32>
    %82 = vector.extract_strided_slice %16 {offsets = [24, 0], sizes = [7, 64], strides = [1, 1]} : vector<32x64xf32> to vector<7x64xf32>
    %cst_33 = arith.constant 0.000000e+00 : f32
    %83 = vector.broadcast %cst_33 : f32 to vector<5x128xf32>
    %cst_34 = arith.constant 0.000000e+00 : f32
    %84 = vector.broadcast %cst_34 : f32 to vector<5x128xf32>
    %85 = vector.extract_strided_slice %18 {offsets = [0, 0, 0], sizes = [1, 64, 128], strides = [1, 1, 1]} : vector<6x64x128xf32> to vector<1x64x128xf32>
    %86 = vector.shape_cast %85 : vector<1x64x128xf32> to vector<64x128xf32>
    %87 = vector.extract_strided_slice %81 {offsets = [0, 0], sizes = [5, 64], strides = [1, 1]} : vector<8x64xf32> to vector<5x64xf32>
    %cst_35 = arith.constant dense<0.000000e+00> : vector<5x128xf32>
    %88 = tpu.matmul %87, %86, %cst_35 {dimension_numbers = #tpu.dot_dimension_numbers<[1], [0], [0], [1], [0, 0, 1, 1], [], []>} : vector<5x64xf32>, vector<64x128xf32>, vector<5x128xf32> -> vector<5x128xf32>
    %89 = arith.addf %83, %88 : vector<5x128xf32>
    %90 = vector.extract_strided_slice %82 {offsets = [0, 0], sizes = [5, 64], strides = [1, 1]} : vector<7x64xf32> to vector<5x64xf32>
    %cst_36 = arith.constant dense<0.000000e+00> : vector<5x128xf32>
    %91 = tpu.matmul %90, %86, %cst_36 {dimension_numbers = #tpu.dot_dimension_numbers<[1], [0], [0], [1], [0, 0, 1, 1], [], []>} : vector<5x64xf32>, vector<64x128xf32>, vector<5x128xf32> -> vector<5x128xf32>
    %92 = arith.addf %84, %91 : vector<5x128xf32>
    %93 = vector.extract_strided_slice %18 {offsets = [1, 0, 0], sizes = [1, 64, 128], strides = [1, 1, 1]} : vector<6x64x128xf32> to vector<1x64x128xf32>
    %94 = vector.shape_cast %93 : vector<1x64x128xf32> to vector<64x128xf32>
    %95 = vector.extract_strided_slice %82 {offsets = [0, 0], sizes = [5, 64], strides = [1, 1]} : vector<7x64xf32> to vector<5x64xf32>
    %cst_37 = arith.constant dense<0.000000e+00> : vector<5x128xf32>
    %96 = tpu.matmul %95, %94, %cst_37 {dimension_numbers = #tpu.dot_dimension_numbers<[1], [0], [0], [1], [0, 0, 1, 1], [], []>} : vector<5x64xf32>, vector<64x128xf32>, vector<5x128xf32> -> vector<5x128xf32>
    %97 = arith.addf %89, %96 : vector<5x128xf32>
    %98 = vector.extract_strided_slice %81 {offsets = [1, 0], sizes = [5, 64], strides = [1, 1]} : vector<8x64xf32> to vector<5x64xf32>
    %cst_38 = arith.constant dense<0.000000e+00> : vector<5x128xf32>
    %99 = tpu.matmul %98, %94, %cst_38 {dimension_numbers = #tpu.dot_dimension_numbers<[1], [0], [0], [1], [0, 0, 1, 1], [], []>} : vector<5x64xf32>, vector<64x128xf32>, vector<5x128xf32> -> vector<5x128xf32>
    %100 = arith.addf %92, %99 : vector<5x128xf32>
    %101 = vector.extract_strided_slice %18 {offsets = [2, 0, 0], sizes = [1, 64, 128], strides = [1, 1, 1]} : vector<6x64x128xf32> to vector<1x64x128xf32>
    %102 = vector.shape_cast %101 : vector<1x64x128xf32> to vector<64x128xf32>
    %103 = vector.extract_strided_slice %81 {offsets = [1, 0], sizes = [5, 64], strides = [1, 1]} : vector<8x64xf32> to vector<5x64xf32>
    %cst_39 = arith.constant dense<0.000000e+00> : vector<5x128xf32>
    %104 = tpu.matmul %103, %102, %cst_39 {dimension_numbers = #tpu.dot_dimension_numbers<[1], [0], [0], [1], [0, 0, 1, 1], [], []>} : vector<5x64xf32>, vector<64x128xf32>, vector<5x128xf32> -> vector<5x128xf32>
    %105 = arith.addf %97, %104 : vector<5x128xf32>
    %106 = vector.extract_strided_slice %82 {offsets = [1, 0], sizes = [5, 64], strides = [1, 1]} : vector<7x64xf32> to vector<5x64xf32>
    %cst_40 = arith.constant dense<0.000000e+00> : vector<5x128xf32>
    %107 = tpu.matmul %106, %102, %cst_40 {dimension_numbers = #tpu.dot_dimension_numbers<[1], [0], [0], [1], [0, 0, 1, 1], [], []>} : vector<5x64xf32>, vector<64x128xf32>, vector<5x128xf32> -> vector<5x128xf32>
    %108 = arith.addf %100, %107 : vector<5x128xf32>
    %109 = vector.extract_strided_slice %18 {offsets = [3, 0, 0], sizes = [1, 64, 128], strides = [1, 1, 1]} : vector<6x64x128xf32> to vector<1x64x128xf32>
    %110 = vector.shape_cast %109 : vector<1x64x128xf32> to vector<64x128xf32>
    %111 = vector.extract_strided_slice %82 {offsets = [1, 0], sizes = [5, 64], strides = [1, 1]} : vector<7x64xf32> to vector<5x64xf32>
    %cst_41 = arith.constant dense<0.000000e+00> : vector<5x128xf32>
    %112 = tpu.matmul %111, %110, %cst_41 {dimension_numbers = #tpu.dot_dimension_numbers<[1], [0], [0], [1], [0, 0, 1, 1], [], []>} : vector<5x64xf32>, vector<64x128xf32>, vector<5x128xf32> -> vector<5x128xf32>
    %113 = arith.addf %105, %112 : vector<5x128xf32>
    %114 = vector.extract_strided_slice %81 {offsets = [2, 0], sizes = [5, 64], strides = [1, 1]} : vector<8x64xf32> to vector<5x64xf32>
    %cst_42 = arith.constant dense<0.000000e+00> : vector<5x128xf32>
    %115 = tpu.matmul %114, %110, %cst_42 {dimension_numbers = #tpu.dot_dimension_numbers<[1], [0], [0], [1], [0, 0, 1, 1], [], []>} : vector<5x64xf32>, vector<64x128xf32>, vector<5x128xf32> -> vector<5x128xf32>
    %116 = arith.addf %108, %115 : vector<5x128xf32>
    %117 = vector.extract_strided_slice %18 {offsets = [4, 0, 0], sizes = [1, 64, 128], strides = [1, 1, 1]} : vector<6x64x128xf32> to vector<1x64x128xf32>
    %118 = vector.shape_cast %117 : vector<1x64x128xf32> to vector<64x128xf32>
    %119 = vector.extract_strided_slice %81 {offsets = [2, 0], sizes = [5, 64], strides = [1, 1]} : vector<8x64xf32> to vector<5x64xf32>
    %cst_43 = arith.constant dense<0.000000e+00> : vector<5x128xf32>
    %120 = tpu.matmul %119, %118, %cst_43 {dimension_numbers = #tpu.dot_dimension_numbers<[1], [0], [0], [1], [0, 0, 1, 1], [], []>} : vector<5x64xf32>, vector<64x128xf32>, vector<5x128xf32> -> vector<5x128xf32>
    %121 = arith.addf %113, %120 : vector<5x128xf32>
    %122 = vector.extract_strided_slice %82 {offsets = [2, 0], sizes = [5, 64], strides = [1, 1]} : vector<7x64xf32> to vector<5x64xf32>
    %cst_44 = arith.constant dense<0.000000e+00> : vector<5x128xf32>
    %123 = tpu.matmul %122, %118, %cst_44 {dimension_numbers = #tpu.dot_dimension_numbers<[1], [0], [0], [1], [0, 0, 1, 1], [], []>} : vector<5x64xf32>, vector<64x128xf32>, vector<5x128xf32> -> vector<5x128xf32>
    %124 = arith.addf %116, %123 : vector<5x128xf32>
    %125 = vector.extract_strided_slice %18 {offsets = [5, 0, 0], sizes = [1, 64, 128], strides = [1, 1, 1]} : vector<6x64x128xf32> to vector<1x64x128xf32>
    %126 = vector.shape_cast %125 : vector<1x64x128xf32> to vector<64x128xf32>
    %127 = vector.extract_strided_slice %82 {offsets = [2, 0], sizes = [5, 64], strides = [1, 1]} : vector<7x64xf32> to vector<5x64xf32>
    %cst_45 = arith.constant dense<0.000000e+00> : vector<5x128xf32>
    %128 = tpu.matmul %127, %126, %cst_45 {dimension_numbers = #tpu.dot_dimension_numbers<[1], [0], [0], [1], [0, 0, 1, 1], [], []>} : vector<5x64xf32>, vector<64x128xf32>, vector<5x128xf32> -> vector<5x128xf32>
    %129 = arith.addf %121, %128 : vector<5x128xf32>
    %130 = vector.extract_strided_slice %81 {offsets = [3, 0], sizes = [5, 64], strides = [1, 1]} : vector<8x64xf32> to vector<5x64xf32>
    %cst_46 = arith.constant dense<0.000000e+00> : vector<5x128xf32>
    %131 = tpu.matmul %130, %126, %cst_46 {dimension_numbers = #tpu.dot_dimension_numbers<[1], [0], [0], [1], [0, 0, 1, 1], [], []>} : vector<5x64xf32>, vector<64x128xf32>, vector<5x128xf32> -> vector<5x128xf32>
    %132 = arith.addf %124, %131 : vector<5x128xf32>
    %133 = vector.broadcast %19 : vector<1x128xf32> to vector<5x128xf32>
    %134 = arith.addf %129, %133 : vector<5x128xf32>
    %cst_47 = arith.constant 0.000000e+00 : f32
    %135 = vector.broadcast %cst_47 : f32 to vector<5x128xf32>
    %136 = arith.maximumf %134, %135 : vector<5x128xf32>
    %137 = vector.broadcast %19 : vector<1x128xf32> to vector<5x128xf32>
    %138 = arith.addf %132, %137 : vector<5x128xf32>
    %cst_48 = arith.constant 0.000000e+00 : f32
    %139 = vector.broadcast %cst_48 : f32 to vector<5x128xf32>
    %140 = arith.maximumf %138, %139 : vector<5x128xf32>
    %141 = arith.maximumf %136, %140 : vector<5x128xf32>
    %142 = tpu.concatenate %80, %141 in 1 : vector<5x128xf32>, vector<5x128xf32> -> vector<5x256xf32>
    %143 = arith.truncf %142 : vector<5x256xf32> to vector<5x256xbf16>
    %cst_49 = arith.constant 0.000000e+00 : f32
    %144 = vector.broadcast %cst_49 : f32 to vector<5x256xf32>
    %c0_50 = arith.constant 0 : index
    %c0_51 = arith.constant 0 : index
    %c0_52 = arith.constant 0 : index
    %c0_53 = arith.constant 0 : index
    %145 = vector.load %arg7[%c0_50, %c0_51, %c0_52, %c0_53] : memref<3x4x256x64xbf16, #tpu.memory_space<vmem>>, vector<1x1x256x64xbf16>
    %146 = vector.shape_cast %145 : vector<1x1x256x64xbf16> to vector<256x64xbf16>
    %cst_54 = arith.constant dense<0.000000e+00> : vector<5x64xf32>
    %147 = tpu.matmul %143, %146, %cst_54 {dimension_numbers = #tpu.dot_dimension_numbers<[1], [0], [0], [1], [0, 0, 1, 1], [], []>} : vector<5x256xbf16>, vector<256x64xbf16>, vector<5x64xf32> -> vector<5x64xf32>
    %c0_55 = arith.constant 0 : index
    %c0_56 = arith.constant 0 : index
    %c0_57 = arith.constant 0 : index
    %c0_58 = arith.constant 0 : index
    %148 = vector.load %arg8[%c0_55, %c0_56, %c0_57, %c0_58] : memref<3x4x1x64xf32, #tpu.memory_space<vmem>>, vector<1x1x1x64xf32>
    %149 = vector.shape_cast %148 : vector<1x1x1x64xf32> to vector<1x64xf32>
    %150 = vector.broadcast %149 : vector<1x64xf32> to vector<5x64xf32>
    %151 = arith.addf %147, %150 : vector<5x64xf32>
    %c0_59 = arith.constant 0 : index
    %c0_60 = arith.constant 0 : index
    %c0_61 = arith.constant 0 : index
    %c0_62 = arith.constant 0 : index
    %152 = vector.load %arg9[%c0_59, %c0_60, %c0_61, %c0_62] : memref<3x4x256x64xbf16, #tpu.memory_space<vmem>>, vector<1x1x256x64xbf16>
    %153 = vector.shape_cast %152 : vector<1x1x256x64xbf16> to vector<256x64xbf16>
    %cst_63 = arith.constant dense<0.000000e+00> : vector<5x64xf32>
    %154 = tpu.matmul %143, %153, %cst_63 {dimension_numbers = #tpu.dot_dimension_numbers<[1], [0], [0], [1], [0, 0, 1, 1], [], []>} : vector<5x256xbf16>, vector<256x64xbf16>, vector<5x64xf32> -> vector<5x64xf32>
    %c0_64 = arith.constant 0 : index
    %c0_65 = arith.constant 0 : index
    %c0_66 = arith.constant 0 : index
    %c0_67 = arith.constant 0 : index
    %155 = vector.load %arg10[%c0_64, %c0_65, %c0_66, %c0_67] : memref<3x4x1x64xf32, #tpu.memory_space<vmem>>, vector<1x1x1x64xf32>
    %156 = vector.shape_cast %155 : vector<1x1x1x64xf32> to vector<1x64xf32>
    %157 = vector.broadcast %156 : vector<1x64xf32> to vector<5x64xf32>
    %158 = arith.addf %154, %157 : vector<5x64xf32>
    %c0_68 = arith.constant 0 : index
    %c0_69 = arith.constant 0 : index
    %c0_70 = arith.constant 0 : index
    %c0_71 = arith.constant 0 : index
    %159 = vector.load %arg11[%c0_68, %c0_69, %c0_70, %c0_71] : memref<3x4x256x64xbf16, #tpu.memory_space<vmem>>, vector<1x1x256x64xbf16>
    %160 = vector.shape_cast %159 : vector<1x1x256x64xbf16> to vector<256x64xbf16>
    %cst_72 = arith.constant dense<0.000000e+00> : vector<5x64xf32>
    %161 = tpu.matmul %143, %160, %cst_72 {dimension_numbers = #tpu.dot_dimension_numbers<[1], [0], [0], [1], [0, 0, 1, 1], [], []>} : vector<5x256xbf16>, vector<256x64xbf16>, vector<5x64xf32> -> vector<5x64xf32>
    %c0_73 = arith.constant 0 : index
    %c0_74 = arith.constant 0 : index
    %c0_75 = arith.constant 0 : index
    %c0_76 = arith.constant 0 : index
    %162 = vector.load %arg12[%c0_73, %c0_74, %c0_75, %c0_76] : memref<3x4x1x64xf32, #tpu.memory_space<vmem>>, vector<1x1x1x64xf32>
    %163 = vector.shape_cast %162 : vector<1x1x1x64xf32> to vector<1x64xf32>
    %164 = vector.broadcast %163 : vector<1x64xf32> to vector<5x64xf32>
    %165 = arith.addf %161, %164 : vector<5x64xf32>
    "tpu.trace_start"() <{level = 10 : i32, message = "qd,kd->qk"}> : () -> ()
    %cst_77 = arith.constant dense<0.000000e+00> : vector<5x5xf32>
    %166 = tpu.matmul %151, %158, %cst_77 {dimension_numbers = #tpu.dot_dimension_numbers<[1], [1], [0], [0], [0, 0, 1, 0], [], []>} : vector<5x64xf32>, vector<5x64xf32>, vector<5x5xf32> -> vector<5x5xf32>
    "tpu.trace_stop"() : () -> ()
    %cst_78 = arith.constant dense<0xFF800000> : vector<5xf32>
    %167 = vector.multi_reduction <maximumf>, %166, %cst_78 [1] : vector<5x5xf32> to vector<5xf32>
    %168 = vector.shape_cast %167 : vector<5xf32> to vector<5x1xf32>
    %169 = vector.broadcast %168 : vector<5x1xf32> to vector<5x5xf32>
    %170 = arith.subf %166, %169 : vector<5x5xf32>
    %171 = math.exp %170 : vector<5x5xf32>
    %cst_79 = arith.constant dense<0.000000e+00> : vector<5xf32>
    %172 = vector.multi_reduction <add>, %171, %cst_79 [1] : vector<5x5xf32> to vector<5xf32>
    %173 = vector.shape_cast %172 : vector<5xf32> to vector<5x1xf32>
    %174 = vector.broadcast %173 : vector<5x1xf32> to vector<5x5xf32>
    %175 = arith.divf %171, %174 : vector<5x5xf32>
    %cst_80 = arith.constant dense<0.000000e+00> : vector<5x64xf32>
    %176 = tpu.matmul %175, %165, %cst_80 {dimension_numbers = #tpu.dot_dimension_numbers<[1], [0], [0], [1], [0, 0, 1, 1], [], []>} : vector<5x5xf32>, vector<5x64xf32>, vector<5x64xf32> -> vector<5x64xf32>
    %177 = arith.truncf %176 : vector<5x64xf32> to vector<5x64xbf16>
    %c0_81 = arith.constant 0 : index
    %c0_82 = arith.constant 0 : index
    %c0_83 = arith.constant 0 : index
    %c0_84 = arith.constant 0 : index
    %178 = vector.load %arg13[%c0_81, %c0_82, %c0_83, %c0_84] : memref<3x4x64x256xbf16, #tpu.memory_space<vmem>>, vector<1x1x64x256xbf16>
    %179 = vector.shape_cast %178 : vector<1x1x64x256xbf16> to vector<64x256xbf16>
    %cst_85 = arith.constant dense<0.000000e+00> : vector<5x256xf32>
    %180 = tpu.matmul %177, %179, %cst_85 {dimension_numbers = #tpu.dot_dimension_numbers<[1], [0], [0], [1], [0, 0, 1, 1], [], []>} : vector<5x64xbf16>, vector<64x256xbf16>, vector<5x256xf32> -> vector<5x256xf32>
    %181 = arith.addf %144, %180 : vector<5x256xf32>
    %c0_86 = arith.constant 0 : index
    %c1 = arith.constant 1 : index
    %c0_87 = arith.constant 0 : index
    %c0_88 = arith.constant 0 : index
    %182 = vector.load %arg7[%c0_86, %c1, %c0_87, %c0_88] : memref<3x4x256x64xbf16, #tpu.memory_space<vmem>>, vector<1x1x256x64xbf16>
    %183 = vector.shape_cast %182 : vector<1x1x256x64xbf16> to vector<256x64xbf16>
    %cst_89 = arith.constant dense<0.000000e+00> : vector<5x64xf32>
    %184 = tpu.matmul %143, %183, %cst_89 {dimension_numbers = #tpu.dot_dimension_numbers<[1], [0], [0], [1], [0, 0, 1, 1], [], []>} : vector<5x256xbf16>, vector<256x64xbf16>, vector<5x64xf32> -> vector<5x64xf32>
    %c0_90 = arith.constant 0 : index
    %c1_91 = arith.constant 1 : index
    %c0_92 = arith.constant 0 : index
    %c0_93 = arith.constant 0 : index
    %185 = vector.load %arg8[%c0_90, %c1_91, %c0_92, %c0_93] : memref<3x4x1x64xf32, #tpu.memory_space<vmem>>, vector<1x1x1x64xf32>
    %186 = vector.shape_cast %185 : vector<1x1x1x64xf32> to vector<1x64xf32>
    %187 = vector.broadcast %186 : vector<1x64xf32> to vector<5x64xf32>
    %188 = arith.addf %184, %187 : vector<5x64xf32>
    %c0_94 = arith.constant 0 : index
    %c1_95 = arith.constant 1 : index
    %c0_96 = arith.constant 0 : index
    %c0_97 = arith.constant 0 : index
    %189 = vector.load %arg9[%c0_94, %c1_95, %c0_96, %c0_97] : memref<3x4x256x64xbf16, #tpu.memory_space<vmem>>, vector<1x1x256x64xbf16>
    %190 = vector.shape_cast %189 : vector<1x1x256x64xbf16> to vector<256x64xbf16>
    %cst_98 = arith.constant dense<0.000000e+00> : vector<5x64xf32>
    %191 = tpu.matmul %143, %190, %cst_98 {dimension_numbers = #tpu.dot_dimension_numbers<[1], [0], [0], [1], [0, 0, 1, 1], [], []>} : vector<5x256xbf16>, vector<256x64xbf16>, vector<5x64xf32> -> vector<5x64xf32>
    %c0_99 = arith.constant 0 : index
    %c1_100 = arith.constant 1 : index
    %c0_101 = arith.constant 0 : index
    %c0_102 = arith.constant 0 : index
    %192 = vector.load %arg10[%c0_99, %c1_100, %c0_101, %c0_102] : memref<3x4x1x64xf32, #tpu.memory_space<vmem>>, vector<1x1x1x64xf32>
    %193 = vector.shape_cast %192 : vector<1x1x1x64xf32> to vector<1x64xf32>
    %194 = vector.broadcast %193 : vector<1x64xf32> to vector<5x64xf32>
    %195 = arith.addf %191, %194 : vector<5x64xf32>
    %c0_103 = arith.constant 0 : index
    %c1_104 = arith.constant 1 : index
    %c0_105 = arith.constant 0 : index
    %c0_106 = arith.constant 0 : index
    %196 = vector.load %arg11[%c0_103, %c1_104, %c0_105, %c0_106] : memref<3x4x256x64xbf16, #tpu.memory_space<vmem>>, vector<1x1x256x64xbf16>
    %197 = vector.shape_cast %196 : vector<1x1x256x64xbf16> to vector<256x64xbf16>
    %cst_107 = arith.constant dense<0.000000e+00> : vector<5x64xf32>
    %198 = tpu.matmul %143, %197, %cst_107 {dimension_numbers = #tpu.dot_dimension_numbers<[1], [0], [0], [1], [0, 0, 1, 1], [], []>} : vector<5x256xbf16>, vector<256x64xbf16>, vector<5x64xf32> -> vector<5x64xf32>
    %c0_108 = arith.constant 0 : index
    %c1_109 = arith.constant 1 : index
    %c0_110 = arith.constant 0 : index
    %c0_111 = arith.constant 0 : index
    %199 = vector.load %arg12[%c0_108, %c1_109, %c0_110, %c0_111] : memref<3x4x1x64xf32, #tpu.memory_space<vmem>>, vector<1x1x1x64xf32>
    %200 = vector.shape_cast %199 : vector<1x1x1x64xf32> to vector<1x64xf32>
    %201 = vector.broadcast %200 : vector<1x64xf32> to vector<5x64xf32>
    %202 = arith.addf %198, %201 : vector<5x64xf32>
    "tpu.trace_start"() <{level = 10 : i32, message = "qd,kd->qk"}> : () -> ()
    %cst_112 = arith.constant dense<0.000000e+00> : vector<5x5xf32>
    %203 = tpu.matmul %188, %195, %cst_112 {dimension_numbers = #tpu.dot_dimension_numbers<[1], [1], [0], [0], [0, 0, 1, 0], [], []>} : vector<5x64xf32>, vector<5x64xf32>, vector<5x5xf32> -> vector<5x5xf32>
    "tpu.trace_stop"() : () -> ()
    %cst_113 = arith.constant dense<0xFF800000> : vector<5xf32>
    %204 = vector.multi_reduction <maximumf>, %203, %cst_113 [1] : vector<5x5xf32> to vector<5xf32>
    %205 = vector.shape_cast %204 : vector<5xf32> to vector<5x1xf32>
    %206 = vector.broadcast %205 : vector<5x1xf32> to vector<5x5xf32>
    %207 = arith.subf %203, %206 : vector<5x5xf32>
    %208 = math.exp %207 : vector<5x5xf32>
    %cst_114 = arith.constant dense<0.000000e+00> : vector<5xf32>
    %209 = vector.multi_reduction <add>, %208, %cst_114 [1] : vector<5x5xf32> to vector<5xf32>
    %210 = vector.shape_cast %209 : vector<5xf32> to vector<5x1xf32>
    %211 = vector.broadcast %210 : vector<5x1xf32> to vector<5x5xf32>
    %212 = arith.divf %208, %211 : vector<5x5xf32>
    %cst_115 = arith.constant dense<0.000000e+00> : vector<5x64xf32>
    %213 = tpu.matmul %212, %202, %cst_115 {dimension_numbers = #tpu.dot_dimension_numbers<[1], [0], [0], [1], [0, 0, 1, 1], [], []>} : vector<5x5xf32>, vector<5x64xf32>, vector<5x64xf32> -> vector<5x64xf32>
    %214 = arith.truncf %213 : vector<5x64xf32> to vector<5x64xbf16>
    %c0_116 = arith.constant 0 : index
    %c1_117 = arith.constant 1 : index
    %c0_118 = arith.constant 0 : index
    %c0_119 = arith.constant 0 : index
    %215 = vector.load %arg13[%c0_116, %c1_117, %c0_118, %c0_119] : memref<3x4x64x256xbf16, #tpu.memory_space<vmem>>, vector<1x1x64x256xbf16>
    %216 = vector.shape_cast %215 : vector<1x1x64x256xbf16> to vector<64x256xbf16>
    %cst_120 = arith.constant dense<0.000000e+00> : vector<5x256xf32>
    %217 = tpu.matmul %214, %216, %cst_120 {dimension_numbers = #tpu.dot_dimension_numbers<[1], [0], [0], [1], [0, 0, 1, 1], [], []>} : vector<5x64xbf16>, vector<64x256xbf16>, vector<5x256xf32> -> vector<5x256xf32>
    %218 = arith.addf %181, %217 : vector<5x256xf32>
    %c0_121 = arith.constant 0 : index
    %c2 = arith.constant 2 : index
    %c0_122 = arith.constant 0 : index
    %c0_123 = arith.constant 0 : index
    %219 = vector.load %arg7[%c0_121, %c2, %c0_122, %c0_123] : memref<3x4x256x64xbf16, #tpu.memory_space<vmem>>, vector<1x1x256x64xbf16>
    %220 = vector.shape_cast %219 : vector<1x1x256x64xbf16> to vector<256x64xbf16>
    %cst_124 = arith.constant dense<0.000000e+00> : vector<5x64xf32>
    %221 = tpu.matmul %143, %220, %cst_124 {dimension_numbers = #tpu.dot_dimension_numbers<[1], [0], [0], [1], [0, 0, 1, 1], [], []>} : vector<5x256xbf16>, vector<256x64xbf16>, vector<5x64xf32> -> vector<5x64xf32>
    %c0_125 = arith.constant 0 : index
    %c2_126 = arith.constant 2 : index
    %c0_127 = arith.constant 0 : index
    %c0_128 = arith.constant 0 : index
    %222 = vector.load %arg8[%c0_125, %c2_126, %c0_127, %c0_128] : memref<3x4x1x64xf32, #tpu.memory_space<vmem>>, vector<1x1x1x64xf32>
    %223 = vector.shape_cast %222 : vector<1x1x1x64xf32> to vector<1x64xf32>
    %224 = vector.broadcast %223 : vector<1x64xf32> to vector<5x64xf32>
    %225 = arith.addf %221, %224 : vector<5x64xf32>
    %c0_129 = arith.constant 0 : index
    %c2_130 = arith.constant 2 : index
    %c0_131 = arith.constant 0 : index
    %c0_132 = arith.constant 0 : index
    %226 = vector.load %arg9[%c0_129, %c2_130, %c0_131, %c0_132] : memref<3x4x256x64xbf16, #tpu.memory_space<vmem>>, vector<1x1x256x64xbf16>
    %227 = vector.shape_cast %226 : vector<1x1x256x64xbf16> to vector<256x64xbf16>
    %cst_133 = arith.constant dense<0.000000e+00> : vector<5x64xf32>
    %228 = tpu.matmul %143, %227, %cst_133 {dimension_numbers = #tpu.dot_dimension_numbers<[1], [0], [0], [1], [0, 0, 1, 1], [], []>} : vector<5x256xbf16>, vector<256x64xbf16>, vector<5x64xf32> -> vector<5x64xf32>
    %c0_134 = arith.constant 0 : index
    %c2_135 = arith.constant 2 : index
    %c0_136 = arith.constant 0 : index
    %c0_137 = arith.constant 0 : index
    %229 = vector.load %arg10[%c0_134, %c2_135, %c0_136, %c0_137] : memref<3x4x1x64xf32, #tpu.memory_space<vmem>>, vector<1x1x1x64xf32>
    %230 = vector.shape_cast %229 : vector<1x1x1x64xf32> to vector<1x64xf32>
    %231 = vector.broadcast %230 : vector<1x64xf32> to vector<5x64xf32>
    %232 = arith.addf %228, %231 : vector<5x64xf32>
    %c0_138 = arith.constant 0 : index
    %c2_139 = arith.constant 2 : index
    %c0_140 = arith.constant 0 : index
    %c0_141 = arith.constant 0 : index
    %233 = vector.load %arg11[%c0_138, %c2_139, %c0_140, %c0_141] : memref<3x4x256x64xbf16, #tpu.memory_space<vmem>>, vector<1x1x256x64xbf16>
    %234 = vector.shape_cast %233 : vector<1x1x256x64xbf16> to vector<256x64xbf16>
    %cst_142 = arith.constant dense<0.000000e+00> : vector<5x64xf32>
    %235 = tpu.matmul %143, %234, %cst_142 {dimension_numbers = #tpu.dot_dimension_numbers<[1], [0], [0], [1], [0, 0, 1, 1], [], []>} : vector<5x256xbf16>, vector<256x64xbf16>, vector<5x64xf32> -> vector<5x64xf32>
    %c0_143 = arith.constant 0 : index
    %c2_144 = arith.constant 2 : index
    %c0_145 = arith.constant 0 : index
    %c0_146 = arith.constant 0 : index
    %236 = vector.load %arg12[%c0_143, %c2_144, %c0_145, %c0_146] : memref<3x4x1x64xf32, #tpu.memory_space<vmem>>, vector<1x1x1x64xf32>
    %237 = vector.shape_cast %236 : vector<1x1x1x64xf32> to vector<1x64xf32>
    %238 = vector.broadcast %237 : vector<1x64xf32> to vector<5x64xf32>
    %239 = arith.addf %235, %238 : vector<5x64xf32>
    "tpu.trace_start"() <{level = 10 : i32, message = "qd,kd->qk"}> : () -> ()
    %cst_147 = arith.constant dense<0.000000e+00> : vector<5x5xf32>
    %240 = tpu.matmul %225, %232, %cst_147 {dimension_numbers = #tpu.dot_dimension_numbers<[1], [1], [0], [0], [0, 0, 1, 0], [], []>} : vector<5x64xf32>, vector<5x64xf32>, vector<5x5xf32> -> vector<5x5xf32>
    "tpu.trace_stop"() : () -> ()
    %cst_148 = arith.constant dense<0xFF800000> : vector<5xf32>
    %241 = vector.multi_reduction <maximumf>, %240, %cst_148 [1] : vector<5x5xf32> to vector<5xf32>
    %242 = vector.shape_cast %241 : vector<5xf32> to vector<5x1xf32>
    %243 = vector.broadcast %242 : vector<5x1xf32> to vector<5x5xf32>
    %244 = arith.subf %240, %243 : vector<5x5xf32>
    %245 = math.exp %244 : vector<5x5xf32>
    %cst_149 = arith.constant dense<0.000000e+00> : vector<5xf32>
    %246 = vector.multi_reduction <add>, %245, %cst_149 [1] : vector<5x5xf32> to vector<5xf32>
    %247 = vector.shape_cast %246 : vector<5xf32> to vector<5x1xf32>
    %248 = vector.broadcast %247 : vector<5x1xf32> to vector<5x5xf32>
    %249 = arith.divf %245, %248 : vector<5x5xf32>
    %cst_150 = arith.constant dense<0.000000e+00> : vector<5x64xf32>
    %250 = tpu.matmul %249, %239, %cst_150 {dimension_numbers = #tpu.dot_dimension_numbers<[1], [0], [0], [1], [0, 0, 1, 1], [], []>} : vector<5x5xf32>, vector<5x64xf32>, vector<5x64xf32> -> vector<5x64xf32>
    %251 = arith.truncf %250 : vector<5x64xf32> to vector<5x64xbf16>
    %c0_151 = arith.constant 0 : index
    %c2_152 = arith.constant 2 : index
    %c0_153 = arith.constant 0 : index
    %c0_154 = arith.constant 0 : index
    %252 = vector.load %arg13[%c0_151, %c2_152, %c0_153, %c0_154] : memref<3x4x64x256xbf16, #tpu.memory_space<vmem>>, vector<1x1x64x256xbf16>
    %253 = vector.shape_cast %252 : vector<1x1x64x256xbf16> to vector<64x256xbf16>
    %cst_155 = arith.constant dense<0.000000e+00> : vector<5x256xf32>
    %254 = tpu.matmul %251, %253, %cst_155 {dimension_numbers = #tpu.dot_dimension_numbers<[1], [0], [0], [1], [0, 0, 1, 1], [], []>} : vector<5x64xbf16>, vector<64x256xbf16>, vector<5x256xf32> -> vector<5x256xf32>
    %255 = arith.addf %218, %254 : vector<5x256xf32>
    %c0_156 = arith.constant 0 : index
    %c3 = arith.constant 3 : index
    %c0_157 = arith.constant 0 : index
    %c0_158 = arith.constant 0 : index
    %256 = vector.load %arg7[%c0_156, %c3, %c0_157, %c0_158] : memref<3x4x256x64xbf16, #tpu.memory_space<vmem>>, vector<1x1x256x64xbf16>
    %257 = vector.shape_cast %256 : vector<1x1x256x64xbf16> to vector<256x64xbf16>
    %cst_159 = arith.constant dense<0.000000e+00> : vector<5x64xf32>
    %258 = tpu.matmul %143, %257, %cst_159 {dimension_numbers = #tpu.dot_dimension_numbers<[1], [0], [0], [1], [0, 0, 1, 1], [], []>} : vector<5x256xbf16>, vector<256x64xbf16>, vector<5x64xf32> -> vector<5x64xf32>
    %c0_160 = arith.constant 0 : index
    %c3_161 = arith.constant 3 : index
    %c0_162 = arith.constant 0 : index
    %c0_163 = arith.constant 0 : index
    %259 = vector.load %arg8[%c0_160, %c3_161, %c0_162, %c0_163] : memref<3x4x1x64xf32, #tpu.memory_space<vmem>>, vector<1x1x1x64xf32>
    %260 = vector.shape_cast %259 : vector<1x1x1x64xf32> to vector<1x64xf32>
    %261 = vector.broadcast %260 : vector<1x64xf32> to vector<5x64xf32>
    %262 = arith.addf %258, %261 : vector<5x64xf32>
    %c0_164 = arith.constant 0 : index
    %c3_165 = arith.constant 3 : index
    %c0_166 = arith.constant 0 : index
    %c0_167 = arith.constant 0 : index
    %263 = vector.load %arg9[%c0_164, %c3_165, %c0_166, %c0_167] : memref<3x4x256x64xbf16, #tpu.memory_space<vmem>>, vector<1x1x256x64xbf16>
    %264 = vector.shape_cast %263 : vector<1x1x256x64xbf16> to vector<256x64xbf16>
    %cst_168 = arith.constant dense<0.000000e+00> : vector<5x64xf32>
    %265 = tpu.matmul %143, %264, %cst_168 {dimension_numbers = #tpu.dot_dimension_numbers<[1], [0], [0], [1], [0, 0, 1, 1], [], []>} : vector<5x256xbf16>, vector<256x64xbf16>, vector<5x64xf32> -> vector<5x64xf32>
    %c0_169 = arith.constant 0 : index
    %c3_170 = arith.constant 3 : index
    %c0_171 = arith.constant 0 : index
    %c0_172 = arith.constant 0 : index
    %266 = vector.load %arg10[%c0_169, %c3_170, %c0_171, %c0_172] : memref<3x4x1x64xf32, #tpu.memory_space<vmem>>, vector<1x1x1x64xf32>
    %267 = vector.shape_cast %266 : vector<1x1x1x64xf32> to vector<1x64xf32>
    %268 = vector.broadcast %267 : vector<1x64xf32> to vector<5x64xf32>
    %269 = arith.addf %265, %268 : vector<5x64xf32>
    %c0_173 = arith.constant 0 : index
    %c3_174 = arith.constant 3 : index
    %c0_175 = arith.constant 0 : index
    %c0_176 = arith.constant 0 : index
    %270 = vector.load %arg11[%c0_173, %c3_174, %c0_175, %c0_176] : memref<3x4x256x64xbf16, #tpu.memory_space<vmem>>, vector<1x1x256x64xbf16>
    %271 = vector.shape_cast %270 : vector<1x1x256x64xbf16> to vector<256x64xbf16>
    %cst_177 = arith.constant dense<0.000000e+00> : vector<5x64xf32>
    %272 = tpu.matmul %143, %271, %cst_177 {dimension_numbers = #tpu.dot_dimension_numbers<[1], [0], [0], [1], [0, 0, 1, 1], [], []>} : vector<5x256xbf16>, vector<256x64xbf16>, vector<5x64xf32> -> vector<5x64xf32>
    %c0_178 = arith.constant 0 : index
    %c3_179 = arith.constant 3 : index
    %c0_180 = arith.constant 0 : index
    %c0_181 = arith.constant 0 : index
    %273 = vector.load %arg12[%c0_178, %c3_179, %c0_180, %c0_181] : memref<3x4x1x64xf32, #tpu.memory_space<vmem>>, vector<1x1x1x64xf32>
    %274 = vector.shape_cast %273 : vector<1x1x1x64xf32> to vector<1x64xf32>
    %275 = vector.broadcast %274 : vector<1x64xf32> to vector<5x64xf32>
    %276 = arith.addf %272, %275 : vector<5x64xf32>
    "tpu.trace_start"() <{level = 10 : i32, message = "qd,kd->qk"}> : () -> ()
    %cst_182 = arith.constant dense<0.000000e+00> : vector<5x5xf32>
    %277 = tpu.matmul %262, %269, %cst_182 {dimension_numbers = #tpu.dot_dimension_numbers<[1], [1], [0], [0], [0, 0, 1, 0], [], []>} : vector<5x64xf32>, vector<5x64xf32>, vector<5x5xf32> -> vector<5x5xf32>
    "tpu.trace_stop"() : () -> ()
    %cst_183 = arith.constant dense<0xFF800000> : vector<5xf32>
    %278 = vector.multi_reduction <maximumf>, %277, %cst_183 [1] : vector<5x5xf32> to vector<5xf32>
    %279 = vector.shape_cast %278 : vector<5xf32> to vector<5x1xf32>
    %280 = vector.broadcast %279 : vector<5x1xf32> to vector<5x5xf32>
    %281 = arith.subf %277, %280 : vector<5x5xf32>
    %282 = math.exp %281 : vector<5x5xf32>
    %cst_184 = arith.constant dense<0.000000e+00> : vector<5xf32>
    %283 = vector.multi_reduction <add>, %282, %cst_184 [1] : vector<5x5xf32> to vector<5xf32>
    %284 = vector.shape_cast %283 : vector<5xf32> to vector<5x1xf32>
    %285 = vector.broadcast %284 : vector<5x1xf32> to vector<5x5xf32>
    %286 = arith.divf %282, %285 : vector<5x5xf32>
    %cst_185 = arith.constant dense<0.000000e+00> : vector<5x64xf32>
    %287 = tpu.matmul %286, %276, %cst_185 {dimension_numbers = #tpu.dot_dimension_numbers<[1], [0], [0], [1], [0, 0, 1, 1], [], []>} : vector<5x5xf32>, vector<5x64xf32>, vector<5x64xf32> -> vector<5x64xf32>
    %288 = arith.truncf %287 : vector<5x64xf32> to vector<5x64xbf16>
    %c0_186 = arith.constant 0 : index
    %c3_187 = arith.constant 3 : index
    %c0_188 = arith.constant 0 : index
    %c0_189 = arith.constant 0 : index
    %289 = vector.load %arg13[%c0_186, %c3_187, %c0_188, %c0_189] : memref<3x4x64x256xbf16, #tpu.memory_space<vmem>>, vector<1x1x64x256xbf16>
    %290 = vector.shape_cast %289 : vector<1x1x64x256xbf16> to vector<64x256xbf16>
    %cst_190 = arith.constant dense<0.000000e+00> : vector<5x256xf32>
    %291 = tpu.matmul %288, %290, %cst_190 {dimension_numbers = #tpu.dot_dimension_numbers<[1], [0], [0], [1], [0, 0, 1, 1], [], []>} : vector<5x64xbf16>, vector<64x256xbf16>, vector<5x256xf32> -> vector<5x256xf32>
    %292 = arith.addf %255, %291 : vector<5x256xf32>
    %c0_191 = arith.constant 0 : index
    %c0_192 = arith.constant 0 : index
    %c0_193 = arith.constant 0 : index
    %293 = vector.load %arg14[%c0_191, %c0_192, %c0_193] : memref<3x1x256xf32, #tpu.memory_space<vmem>>, vector<1x1x256xf32>
    %294 = vector.shape_cast %293 : vector<1x1x256xf32> to vector<1x256xf32>
    %295 = vector.broadcast %294 : vector<1x256xf32> to vector<5x256xf32>
    %296 = arith.addf %292, %295 : vector<5x256xf32>
    %297 = arith.addf %142, %296 : vector<5x256xf32>
    %c0_194 = arith.constant 0 : index
    %c0_195 = arith.constant 0 : index
    %c0_196 = arith.constant 0 : index
    %298 = vector.load %arg15[%c0_194, %c0_195, %c0_196] : memref<3x2x256xf32, #tpu.memory_space<vmem>>, vector<1x2x256xf32>
    %299 = vector.shape_cast %298 : vector<1x2x256xf32> to vector<2x256xf32>
    %cst_197 = arith.constant dense<0.000000e+00> : vector<5xf32>
    %300 = vector.multi_reduction <add>, %297, %cst_197 [1] : vector<5x256xf32> to vector<5xf32>
    %301 = vector.shape_cast %300 : vector<5xf32> to vector<5x1xf32>
    %cst_198 = arith.constant 2.560000e+02 : f32
    %302 = vector.broadcast %cst_198 : f32 to vector<5x1xf32>
    %303 = arith.divf %301, %302 : vector<5x1xf32>
    %304 = arith.mulf %297, %297 : vector<5x256xf32>
    %cst_199 = arith.constant dense<0.000000e+00> : vector<5xf32>
    %305 = vector.multi_reduction <add>, %304, %cst_199 [1] : vector<5x256xf32> to vector<5xf32>
    %306 = vector.shape_cast %305 : vector<5xf32> to vector<5x1xf32>
    %cst_200 = arith.constant 2.560000e+02 : f32
    %307 = vector.broadcast %cst_200 : f32 to vector<5x1xf32>
    %308 = arith.divf %306, %307 : vector<5x1xf32>
    %309 = arith.mulf %303, %303 : vector<5x1xf32>
    %310 = arith.subf %308, %309 : vector<5x1xf32>
    %cst_201 = arith.constant 9.99999974E-6 : f32
    %311 = vector.broadcast %cst_201 : f32 to vector<5x1xf32>
    %312 = arith.addf %310, %311 : vector<5x1xf32>
    %313 = math.rsqrt %312 : vector<5x1xf32>
    %314 = vector.broadcast %303 : vector<5x1xf32> to vector<5x256xf32>
    %315 = arith.subf %297, %314 : vector<5x256xf32>
    %316 = vector.broadcast %313 : vector<5x1xf32> to vector<5x256xf32>
    %317 = arith.mulf %315, %316 : vector<5x256xf32>
    %318 = vector.extract_strided_slice %299 {offsets = [0, 0], sizes = [1, 256], strides = [1, 1]} : vector<2x256xf32> to vector<1x256xf32>
    %319 = vector.broadcast %318 : vector<1x256xf32> to vector<5x256xf32>
    %320 = arith.mulf %317, %319 : vector<5x256xf32>
    %321 = vector.extract_strided_slice %299 {offsets = [1, 0], sizes = [1, 256], strides = [1, 1]} : vector<2x256xf32> to vector<1x256xf32>
    %322 = vector.broadcast %321 : vector<1x256xf32> to vector<5x256xf32>
    %323 = arith.addf %320, %322 : vector<5x256xf32>
    %324 = arith.truncf %323 : vector<5x256xf32> to vector<5x256xbf16>
    %c0_202 = arith.constant 0 : index
    %c0_203 = arith.constant 0 : index
    %c0_204 = arith.constant 0 : index
    %325 = vector.load %arg16[%c0_202, %c0_203, %c0_204] : memref<3x256x256xbf16, #tpu.memory_space<vmem>>, vector<1x256x256xbf16>
    %326 = vector.shape_cast %325 : vector<1x256x256xbf16> to vector<256x256xbf16>
    %cst_205 = arith.constant dense<0.000000e+00> : vector<5x256xf32>
    %327 = tpu.matmul %324, %326, %cst_205 {dimension_numbers = #tpu.dot_dimension_numbers<[1], [0], [0], [1], [0, 0, 1, 1], [], []>} : vector<5x256xbf16>, vector<256x256xbf16>, vector<5x256xf32> -> vector<5x256xf32>
    %c0_206 = arith.constant 0 : index
    %c0_207 = arith.constant 0 : index
    %c0_208 = arith.constant 0 : index
    %328 = vector.load %arg17[%c0_206, %c0_207, %c0_208] : memref<3x1x256xf32, #tpu.memory_space<vmem>>, vector<1x1x256xf32>
    %329 = vector.shape_cast %328 : vector<1x1x256xf32> to vector<1x256xf32>
    %330 = vector.broadcast %329 : vector<1x256xf32> to vector<5x256xf32>
    %331 = arith.addf %327, %330 : vector<5x256xf32>
    %cst_209 = arith.constant 0.000000e+00 : f32
    %332 = vector.broadcast %cst_209 : f32 to vector<5x256xf32>
    %333 = arith.maximumf %331, %332 : vector<5x256xf32>
    %334 = arith.truncf %333 : vector<5x256xf32> to vector<5x256xbf16>
    %c0_210 = arith.constant 0 : index
    %c0_211 = arith.constant 0 : index
    %c0_212 = arith.constant 0 : index
    %335 = vector.load %arg18[%c0_210, %c0_211, %c0_212] : memref<3x256x256xbf16, #tpu.memory_space<vmem>>, vector<1x256x256xbf16>
    %336 = vector.shape_cast %335 : vector<1x256x256xbf16> to vector<256x256xbf16>
    %cst_213 = arith.constant dense<0.000000e+00> : vector<5x256xf32>
    %337 = tpu.matmul %334, %336, %cst_213 {dimension_numbers = #tpu.dot_dimension_numbers<[1], [0], [0], [1], [0, 0, 1, 1], [], []>} : vector<5x256xbf16>, vector<256x256xbf16>, vector<5x256xf32> -> vector<5x256xf32>
    %c0_214 = arith.constant 0 : index
    %c0_215 = arith.constant 0 : index
    %c0_216 = arith.constant 0 : index
    %338 = vector.load %arg19[%c0_214, %c0_215, %c0_216] : memref<3x1x256xf32, #tpu.memory_space<vmem>>, vector<1x1x256xf32>
    %339 = vector.shape_cast %338 : vector<1x1x256xf32> to vector<1x256xf32>
    %340 = vector.broadcast %339 : vector<1x256xf32> to vector<5x256xf32>
    %341 = arith.addf %337, %340 : vector<5x256xf32>
    %342 = arith.addf %323, %341 : vector<5x256xf32>
    %c0_217 = arith.constant 0 : index
    %c0_218 = arith.constant 0 : index
    %c0_219 = arith.constant 0 : index
    %343 = vector.load %arg20[%c0_217, %c0_218, %c0_219] : memref<3x2x256xf32, #tpu.memory_space<vmem>>, vector<1x2x256xf32>
    %344 = vector.shape_cast %343 : vector<1x2x256xf32> to vector<2x256xf32>
    %cst_220 = arith.constant dense<0.000000e+00> : vector<5xf32>
    %345 = vector.multi_reduction <add>, %342, %cst_220 [1] : vector<5x256xf32> to vector<5xf32>
    %346 = vector.shape_cast %345 : vector<5xf32> to vector<5x1xf32>
    %cst_221 = arith.constant 2.560000e+02 : f32
    %347 = vector.broadcast %cst_221 : f32 to vector<5x1xf32>
    %348 = arith.divf %346, %347 : vector<5x1xf32>
    %349 = arith.mulf %342, %342 : vector<5x256xf32>
    %cst_222 = arith.constant dense<0.000000e+00> : vector<5xf32>
    %350 = vector.multi_reduction <add>, %349, %cst_222 [1] : vector<5x256xf32> to vector<5xf32>
    %351 = vector.shape_cast %350 : vector<5xf32> to vector<5x1xf32>
    %cst_223 = arith.constant 2.560000e+02 : f32
    %352 = vector.broadcast %cst_223 : f32 to vector<5x1xf32>
    %353 = arith.divf %351, %352 : vector<5x1xf32>
    %354 = arith.mulf %348, %348 : vector<5x1xf32>
    %355 = arith.subf %353, %354 : vector<5x1xf32>
    %cst_224 = arith.constant 9.99999974E-6 : f32
    %356 = vector.broadcast %cst_224 : f32 to vector<5x1xf32>
    %357 = arith.addf %355, %356 : vector<5x1xf32>
    %358 = math.rsqrt %357 : vector<5x1xf32>
    %359 = vector.broadcast %348 : vector<5x1xf32> to vector<5x256xf32>
    %360 = arith.subf %342, %359 : vector<5x256xf32>
    %361 = vector.broadcast %358 : vector<5x1xf32> to vector<5x256xf32>
    %362 = arith.mulf %360, %361 : vector<5x256xf32>
    %363 = vector.extract_strided_slice %344 {offsets = [0, 0], sizes = [1, 256], strides = [1, 1]} : vector<2x256xf32> to vector<1x256xf32>
    %364 = vector.broadcast %363 : vector<1x256xf32> to vector<5x256xf32>
    %365 = arith.mulf %362, %364 : vector<5x256xf32>
    %366 = vector.extract_strided_slice %344 {offsets = [1, 0], sizes = [1, 256], strides = [1, 1]} : vector<2x256xf32> to vector<1x256xf32>
    %367 = vector.broadcast %366 : vector<1x256xf32> to vector<5x256xf32>
    %368 = arith.addf %365, %367 : vector<5x256xf32>
    %369 = arith.truncf %368 : vector<5x256xf32> to vector<5x256xbf16>
    %cst_225 = arith.constant 0.000000e+00 : f32
    %370 = vector.broadcast %cst_225 : f32 to vector<5x256xf32>
    %c1_226 = arith.constant 1 : index
    %c0_227 = arith.constant 0 : index
    %c0_228 = arith.constant 0 : index
    %c0_229 = arith.constant 0 : index
    %371 = vector.load %arg7[%c1_226, %c0_227, %c0_228, %c0_229] : memref<3x4x256x64xbf16, #tpu.memory_space<vmem>>, vector<1x1x256x64xbf16>
    %372 = vector.shape_cast %371 : vector<1x1x256x64xbf16> to vector<256x64xbf16>
    %cst_230 = arith.constant dense<0.000000e+00> : vector<5x64xf32>
    %373 = tpu.matmul %369, %372, %cst_230 {dimension_numbers = #tpu.dot_dimension_numbers<[1], [0], [0], [1], [0, 0, 1, 1], [], []>} : vector<5x256xbf16>, vector<256x64xbf16>, vector<5x64xf32> -> vector<5x64xf32>
    %c1_231 = arith.constant 1 : index
    %c0_232 = arith.constant 0 : index
    %c0_233 = arith.constant 0 : index
    %c0_234 = arith.constant 0 : index
    %374 = vector.load %arg8[%c1_231, %c0_232, %c0_233, %c0_234] : memref<3x4x1x64xf32, #tpu.memory_space<vmem>>, vector<1x1x1x64xf32>
    %375 = vector.shape_cast %374 : vector<1x1x1x64xf32> to vector<1x64xf32>
    %376 = vector.broadcast %375 : vector<1x64xf32> to vector<5x64xf32>
    %377 = arith.addf %373, %376 : vector<5x64xf32>
    %c1_235 = arith.constant 1 : index
    %c0_236 = arith.constant 0 : index
    %c0_237 = arith.constant 0 : index
    %c0_238 = arith.constant 0 : index
    %378 = vector.load %arg9[%c1_235, %c0_236, %c0_237, %c0_238] : memref<3x4x256x64xbf16, #tpu.memory_space<vmem>>, vector<1x1x256x64xbf16>
    %379 = vector.shape_cast %378 : vector<1x1x256x64xbf16> to vector<256x64xbf16>
    %cst_239 = arith.constant dense<0.000000e+00> : vector<5x64xf32>
    %380 = tpu.matmul %369, %379, %cst_239 {dimension_numbers = #tpu.dot_dimension_numbers<[1], [0], [0], [1], [0, 0, 1, 1], [], []>} : vector<5x256xbf16>, vector<256x64xbf16>, vector<5x64xf32> -> vector<5x64xf32>
    %c1_240 = arith.constant 1 : index
    %c0_241 = arith.constant 0 : index
    %c0_242 = arith.constant 0 : index
    %c0_243 = arith.constant 0 : index
    %381 = vector.load %arg10[%c1_240, %c0_241, %c0_242, %c0_243] : memref<3x4x1x64xf32, #tpu.memory_space<vmem>>, vector<1x1x1x64xf32>
    %382 = vector.shape_cast %381 : vector<1x1x1x64xf32> to vector<1x64xf32>
    %383 = vector.broadcast %382 : vector<1x64xf32> to vector<5x64xf32>
    %384 = arith.addf %380, %383 : vector<5x64xf32>
    %c1_244 = arith.constant 1 : index
    %c0_245 = arith.constant 0 : index
    %c0_246 = arith.constant 0 : index
    %c0_247 = arith.constant 0 : index
    %385 = vector.load %arg11[%c1_244, %c0_245, %c0_246, %c0_247] : memref<3x4x256x64xbf16, #tpu.memory_space<vmem>>, vector<1x1x256x64xbf16>
    %386 = vector.shape_cast %385 : vector<1x1x256x64xbf16> to vector<256x64xbf16>
    %cst_248 = arith.constant dense<0.000000e+00> : vector<5x64xf32>
    %387 = tpu.matmul %369, %386, %cst_248 {dimension_numbers = #tpu.dot_dimension_numbers<[1], [0], [0], [1], [0, 0, 1, 1], [], []>} : vector<5x256xbf16>, vector<256x64xbf16>, vector<5x64xf32> -> vector<5x64xf32>
    %c1_249 = arith.constant 1 : index
    %c0_250 = arith.constant 0 : index
    %c0_251 = arith.constant 0 : index
    %c0_252 = arith.constant 0 : index
    %388 = vector.load %arg12[%c1_249, %c0_250, %c0_251, %c0_252] : memref<3x4x1x64xf32, #tpu.memory_space<vmem>>, vector<1x1x1x64xf32>
    %389 = vector.shape_cast %388 : vector<1x1x1x64xf32> to vector<1x64xf32>
    %390 = vector.broadcast %389 : vector<1x64xf32> to vector<5x64xf32>
    %391 = arith.addf %387, %390 : vector<5x64xf32>
    "tpu.trace_start"() <{level = 10 : i32, message = "qd,kd->qk"}> : () -> ()
    %cst_253 = arith.constant dense<0.000000e+00> : vector<5x5xf32>
    %392 = tpu.matmul %377, %384, %cst_253 {dimension_numbers = #tpu.dot_dimension_numbers<[1], [1], [0], [0], [0, 0, 1, 0], [], []>} : vector<5x64xf32>, vector<5x64xf32>, vector<5x5xf32> -> vector<5x5xf32>
    "tpu.trace_stop"() : () -> ()
    %cst_254 = arith.constant dense<0xFF800000> : vector<5xf32>
    %393 = vector.multi_reduction <maximumf>, %392, %cst_254 [1] : vector<5x5xf32> to vector<5xf32>
    %394 = vector.shape_cast %393 : vector<5xf32> to vector<5x1xf32>
    %395 = vector.broadcast %394 : vector<5x1xf32> to vector<5x5xf32>
    %396 = arith.subf %392, %395 : vector<5x5xf32>
    %397 = math.exp %396 : vector<5x5xf32>
    %cst_255 = arith.constant dense<0.000000e+00> : vector<5xf32>
    %398 = vector.multi_reduction <add>, %397, %cst_255 [1] : vector<5x5xf32> to vector<5xf32>
    %399 = vector.shape_cast %398 : vector<5xf32> to vector<5x1xf32>
    %400 = vector.broadcast %399 : vector<5x1xf32> to vector<5x5xf32>
    %401 = arith.divf %397, %400 : vector<5x5xf32>
    %cst_256 = arith.constant dense<0.000000e+00> : vector<5x64xf32>
    %402 = tpu.matmul %401, %391, %cst_256 {dimension_numbers = #tpu.dot_dimension_numbers<[1], [0], [0], [1], [0, 0, 1, 1], [], []>} : vector<5x5xf32>, vector<5x64xf32>, vector<5x64xf32> -> vector<5x64xf32>
    %403 = arith.truncf %402 : vector<5x64xf32> to vector<5x64xbf16>
    %c1_257 = arith.constant 1 : index
    %c0_258 = arith.constant 0 : index
    %c0_259 = arith.constant 0 : index
    %c0_260 = arith.constant 0 : index
    %404 = vector.load %arg13[%c1_257, %c0_258, %c0_259, %c0_260] : memref<3x4x64x256xbf16, #tpu.memory_space<vmem>>, vector<1x1x64x256xbf16>
    %405 = vector.shape_cast %404 : vector<1x1x64x256xbf16> to vector<64x256xbf16>
    %cst_261 = arith.constant dense<0.000000e+00> : vector<5x256xf32>
    %406 = tpu.matmul %403, %405, %cst_261 {dimension_numbers = #tpu.dot_dimension_numbers<[1], [0], [0], [1], [0, 0, 1, 1], [], []>} : vector<5x64xbf16>, vector<64x256xbf16>, vector<5x256xf32> -> vector<5x256xf32>
    %407 = arith.addf %370, %406 : vector<5x256xf32>
    %c1_262 = arith.constant 1 : index
    %c1_263 = arith.constant 1 : index
    %c0_264 = arith.constant 0 : index
    %c0_265 = arith.constant 0 : index
    %408 = vector.load %arg7[%c1_262, %c1_263, %c0_264, %c0_265] : memref<3x4x256x64xbf16, #tpu.memory_space<vmem>>, vector<1x1x256x64xbf16>
    %409 = vector.shape_cast %408 : vector<1x1x256x64xbf16> to vector<256x64xbf16>
    %cst_266 = arith.constant dense<0.000000e+00> : vector<5x64xf32>
    %410 = tpu.matmul %369, %409, %cst_266 {dimension_numbers = #tpu.dot_dimension_numbers<[1], [0], [0], [1], [0, 0, 1, 1], [], []>} : vector<5x256xbf16>, vector<256x64xbf16>, vector<5x64xf32> -> vector<5x64xf32>
    %c1_267 = arith.constant 1 : index
    %c1_268 = arith.constant 1 : index
    %c0_269 = arith.constant 0 : index
    %c0_270 = arith.constant 0 : index
    %411 = vector.load %arg8[%c1_267, %c1_268, %c0_269, %c0_270] : memref<3x4x1x64xf32, #tpu.memory_space<vmem>>, vector<1x1x1x64xf32>
    %412 = vector.shape_cast %411 : vector<1x1x1x64xf32> to vector<1x64xf32>
    %413 = vector.broadcast %412 : vector<1x64xf32> to vector<5x64xf32>
    %414 = arith.addf %410, %413 : vector<5x64xf32>
    %c1_271 = arith.constant 1 : index
    %c1_272 = arith.constant 1 : index
    %c0_273 = arith.constant 0 : index
    %c0_274 = arith.constant 0 : index
    %415 = vector.load %arg9[%c1_271, %c1_272, %c0_273, %c0_274] : memref<3x4x256x64xbf16, #tpu.memory_space<vmem>>, vector<1x1x256x64xbf16>
    %416 = vector.shape_cast %415 : vector<1x1x256x64xbf16> to vector<256x64xbf16>
    %cst_275 = arith.constant dense<0.000000e+00> : vector<5x64xf32>
    %417 = tpu.matmul %369, %416, %cst_275 {dimension_numbers = #tpu.dot_dimension_numbers<[1], [0], [0], [1], [0, 0, 1, 1], [], []>} : vector<5x256xbf16>, vector<256x64xbf16>, vector<5x64xf32> -> vector<5x64xf32>
    %c1_276 = arith.constant 1 : index
    %c1_277 = arith.constant 1 : index
    %c0_278 = arith.constant 0 : index
    %c0_279 = arith.constant 0 : index
    %418 = vector.load %arg10[%c1_276, %c1_277, %c0_278, %c0_279] : memref<3x4x1x64xf32, #tpu.memory_space<vmem>>, vector<1x1x1x64xf32>
    %419 = vector.shape_cast %418 : vector<1x1x1x64xf32> to vector<1x64xf32>
    %420 = vector.broadcast %419 : vector<1x64xf32> to vector<5x64xf32>
    %421 = arith.addf %417, %420 : vector<5x64xf32>
    %c1_280 = arith.constant 1 : index
    %c1_281 = arith.constant 1 : index
    %c0_282 = arith.constant 0 : index
    %c0_283 = arith.constant 0 : index
    %422 = vector.load %arg11[%c1_280, %c1_281, %c0_282, %c0_283] : memref<3x4x256x64xbf16, #tpu.memory_space<vmem>>, vector<1x1x256x64xbf16>
    %423 = vector.shape_cast %422 : vector<1x1x256x64xbf16> to vector<256x64xbf16>
    %cst_284 = arith.constant dense<0.000000e+00> : vector<5x64xf32>
    %424 = tpu.matmul %369, %423, %cst_284 {dimension_numbers = #tpu.dot_dimension_numbers<[1], [0], [0], [1], [0, 0, 1, 1], [], []>} : vector<5x256xbf16>, vector<256x64xbf16>, vector<5x64xf32> -> vector<5x64xf32>
    %c1_285 = arith.constant 1 : index
    %c1_286 = arith.constant 1 : index
    %c0_287 = arith.constant 0 : index
    %c0_288 = arith.constant 0 : index
    %425 = vector.load %arg12[%c1_285, %c1_286, %c0_287, %c0_288] : memref<3x4x1x64xf32, #tpu.memory_space<vmem>>, vector<1x1x1x64xf32>
    %426 = vector.shape_cast %425 : vector<1x1x1x64xf32> to vector<1x64xf32>
    %427 = vector.broadcast %426 : vector<1x64xf32> to vector<5x64xf32>
    %428 = arith.addf %424, %427 : vector<5x64xf32>
    "tpu.trace_start"() <{level = 10 : i32, message = "qd,kd->qk"}> : () -> ()
    %cst_289 = arith.constant dense<0.000000e+00> : vector<5x5xf32>
    %429 = tpu.matmul %414, %421, %cst_289 {dimension_numbers = #tpu.dot_dimension_numbers<[1], [1], [0], [0], [0, 0, 1, 0], [], []>} : vector<5x64xf32>, vector<5x64xf32>, vector<5x5xf32> -> vector<5x5xf32>
    "tpu.trace_stop"() : () -> ()
    %cst_290 = arith.constant dense<0xFF800000> : vector<5xf32>
    %430 = vector.multi_reduction <maximumf>, %429, %cst_290 [1] : vector<5x5xf32> to vector<5xf32>
    %431 = vector.shape_cast %430 : vector<5xf32> to vector<5x1xf32>
    %432 = vector.broadcast %431 : vector<5x1xf32> to vector<5x5xf32>
    %433 = arith.subf %429, %432 : vector<5x5xf32>
    %434 = math.exp %433 : vector<5x5xf32>
    %cst_291 = arith.constant dense<0.000000e+00> : vector<5xf32>
    %435 = vector.multi_reduction <add>, %434, %cst_291 [1] : vector<5x5xf32> to vector<5xf32>
    %436 = vector.shape_cast %435 : vector<5xf32> to vector<5x1xf32>
    %437 = vector.broadcast %436 : vector<5x1xf32> to vector<5x5xf32>
    %438 = arith.divf %434, %437 : vector<5x5xf32>
    %cst_292 = arith.constant dense<0.000000e+00> : vector<5x64xf32>
    %439 = tpu.matmul %438, %428, %cst_292 {dimension_numbers = #tpu.dot_dimension_numbers<[1], [0], [0], [1], [0, 0, 1, 1], [], []>} : vector<5x5xf32>, vector<5x64xf32>, vector<5x64xf32> -> vector<5x64xf32>
    %440 = arith.truncf %439 : vector<5x64xf32> to vector<5x64xbf16>
    %c1_293 = arith.constant 1 : index
    %c1_294 = arith.constant 1 : index
    %c0_295 = arith.constant 0 : index
    %c0_296 = arith.constant 0 : index
    %441 = vector.load %arg13[%c1_293, %c1_294, %c0_295, %c0_296] : memref<3x4x64x256xbf16, #tpu.memory_space<vmem>>, vector<1x1x64x256xbf16>
    %442 = vector.shape_cast %441 : vector<1x1x64x256xbf16> to vector<64x256xbf16>
    %cst_297 = arith.constant dense<0.000000e+00> : vector<5x256xf32>
    %443 = tpu.matmul %440, %442, %cst_297 {dimension_numbers = #tpu.dot_dimension_numbers<[1], [0], [0], [1], [0, 0, 1, 1], [], []>} : vector<5x64xbf16>, vector<64x256xbf16>, vector<5x256xf32> -> vector<5x256xf32>
    %444 = arith.addf %407, %443 : vector<5x256xf32>
    %c1_298 = arith.constant 1 : index
    %c2_299 = arith.constant 2 : index
    %c0_300 = arith.constant 0 : index
    %c0_301 = arith.constant 0 : index
    %445 = vector.load %arg7[%c1_298, %c2_299, %c0_300, %c0_301] : memref<3x4x256x64xbf16, #tpu.memory_space<vmem>>, vector<1x1x256x64xbf16>
    %446 = vector.shape_cast %445 : vector<1x1x256x64xbf16> to vector<256x64xbf16>
    %cst_302 = arith.constant dense<0.000000e+00> : vector<5x64xf32>
    %447 = tpu.matmul %369, %446, %cst_302 {dimension_numbers = #tpu.dot_dimension_numbers<[1], [0], [0], [1], [0, 0, 1, 1], [], []>} : vector<5x256xbf16>, vector<256x64xbf16>, vector<5x64xf32> -> vector<5x64xf32>
    %c1_303 = arith.constant 1 : index
    %c2_304 = arith.constant 2 : index
    %c0_305 = arith.constant 0 : index
    %c0_306 = arith.constant 0 : index
    %448 = vector.load %arg8[%c1_303, %c2_304, %c0_305, %c0_306] : memref<3x4x1x64xf32, #tpu.memory_space<vmem>>, vector<1x1x1x64xf32>
    %449 = vector.shape_cast %448 : vector<1x1x1x64xf32> to vector<1x64xf32>
    %450 = vector.broadcast %449 : vector<1x64xf32> to vector<5x64xf32>
    %451 = arith.addf %447, %450 : vector<5x64xf32>
    %c1_307 = arith.constant 1 : index
    %c2_308 = arith.constant 2 : index
    %c0_309 = arith.constant 0 : index
    %c0_310 = arith.constant 0 : index
    %452 = vector.load %arg9[%c1_307, %c2_308, %c0_309, %c0_310] : memref<3x4x256x64xbf16, #tpu.memory_space<vmem>>, vector<1x1x256x64xbf16>
    %453 = vector.shape_cast %452 : vector<1x1x256x64xbf16> to vector<256x64xbf16>
    %cst_311 = arith.constant dense<0.000000e+00> : vector<5x64xf32>
    %454 = tpu.matmul %369, %453, %cst_311 {dimension_numbers = #tpu.dot_dimension_numbers<[1], [0], [0], [1], [0, 0, 1, 1], [], []>} : vector<5x256xbf16>, vector<256x64xbf16>, vector<5x64xf32> -> vector<5x64xf32>
    %c1_312 = arith.constant 1 : index
    %c2_313 = arith.constant 2 : index
    %c0_314 = arith.constant 0 : index
    %c0_315 = arith.constant 0 : index
    %455 = vector.load %arg10[%c1_312, %c2_313, %c0_314, %c0_315] : memref<3x4x1x64xf32, #tpu.memory_space<vmem>>, vector<1x1x1x64xf32>
    %456 = vector.shape_cast %455 : vector<1x1x1x64xf32> to vector<1x64xf32>
    %457 = vector.broadcast %456 : vector<1x64xf32> to vector<5x64xf32>
    %458 = arith.addf %454, %457 : vector<5x64xf32>
    %c1_316 = arith.constant 1 : index
    %c2_317 = arith.constant 2 : index
    %c0_318 = arith.constant 0 : index
    %c0_319 = arith.constant 0 : index
    %459 = vector.load %arg11[%c1_316, %c2_317, %c0_318, %c0_319] : memref<3x4x256x64xbf16, #tpu.memory_space<vmem>>, vector<1x1x256x64xbf16>
    %460 = vector.shape_cast %459 : vector<1x1x256x64xbf16> to vector<256x64xbf16>
    %cst_320 = arith.constant dense<0.000000e+00> : vector<5x64xf32>
    %461 = tpu.matmul %369, %460, %cst_320 {dimension_numbers = #tpu.dot_dimension_numbers<[1], [0], [0], [1], [0, 0, 1, 1], [], []>} : vector<5x256xbf16>, vector<256x64xbf16>, vector<5x64xf32> -> vector<5x64xf32>
    %c1_321 = arith.constant 1 : index
    %c2_322 = arith.constant 2 : index
    %c0_323 = arith.constant 0 : index
    %c0_324 = arith.constant 0 : index
    %462 = vector.load %arg12[%c1_321, %c2_322, %c0_323, %c0_324] : memref<3x4x1x64xf32, #tpu.memory_space<vmem>>, vector<1x1x1x64xf32>
    %463 = vector.shape_cast %462 : vector<1x1x1x64xf32> to vector<1x64xf32>
    %464 = vector.broadcast %463 : vector<1x64xf32> to vector<5x64xf32>
    %465 = arith.addf %461, %464 : vector<5x64xf32>
    "tpu.trace_start"() <{level = 10 : i32, message = "qd,kd->qk"}> : () -> ()
    %cst_325 = arith.constant dense<0.000000e+00> : vector<5x5xf32>
    %466 = tpu.matmul %451, %458, %cst_325 {dimension_numbers = #tpu.dot_dimension_numbers<[1], [1], [0], [0], [0, 0, 1, 0], [], []>} : vector<5x64xf32>, vector<5x64xf32>, vector<5x5xf32> -> vector<5x5xf32>
    "tpu.trace_stop"() : () -> ()
    %cst_326 = arith.constant dense<0xFF800000> : vector<5xf32>
    %467 = vector.multi_reduction <maximumf>, %466, %cst_326 [1] : vector<5x5xf32> to vector<5xf32>
    %468 = vector.shape_cast %467 : vector<5xf32> to vector<5x1xf32>
    %469 = vector.broadcast %468 : vector<5x1xf32> to vector<5x5xf32>
    %470 = arith.subf %466, %469 : vector<5x5xf32>
    %471 = math.exp %470 : vector<5x5xf32>
    %cst_327 = arith.constant dense<0.000000e+00> : vector<5xf32>
    %472 = vector.multi_reduction <add>, %471, %cst_327 [1] : vector<5x5xf32> to vector<5xf32>
    %473 = vector.shape_cast %472 : vector<5xf32> to vector<5x1xf32>
    %474 = vector.broadcast %473 : vector<5x1xf32> to vector<5x5xf32>
    %475 = arith.divf %471, %474 : vector<5x5xf32>
    %cst_328 = arith.constant dense<0.000000e+00> : vector<5x64xf32>
    %476 = tpu.matmul %475, %465, %cst_328 {dimension_numbers = #tpu.dot_dimension_numbers<[1], [0], [0], [1], [0, 0, 1, 1], [], []>} : vector<5x5xf32>, vector<5x64xf32>, vector<5x64xf32> -> vector<5x64xf32>
    %477 = arith.truncf %476 : vector<5x64xf32> to vector<5x64xbf16>
    %c1_329 = arith.constant 1 : index
    %c2_330 = arith.constant 2 : index
    %c0_331 = arith.constant 0 : index
    %c0_332 = arith.constant 0 : index
    %478 = vector.load %arg13[%c1_329, %c2_330, %c0_331, %c0_332] : memref<3x4x64x256xbf16, #tpu.memory_space<vmem>>, vector<1x1x64x256xbf16>
    %479 = vector.shape_cast %478 : vector<1x1x64x256xbf16> to vector<64x256xbf16>
    %cst_333 = arith.constant dense<0.000000e+00> : vector<5x256xf32>
    %480 = tpu.matmul %477, %479, %cst_333 {dimension_numbers = #tpu.dot_dimension_numbers<[1], [0], [0], [1], [0, 0, 1, 1], [], []>} : vector<5x64xbf16>, vector<64x256xbf16>, vector<5x256xf32> -> vector<5x256xf32>
    %481 = arith.addf %444, %480 : vector<5x256xf32>
    %c1_334 = arith.constant 1 : index
    %c3_335 = arith.constant 3 : index
    %c0_336 = arith.constant 0 : index
    %c0_337 = arith.constant 0 : index
    %482 = vector.load %arg7[%c1_334, %c3_335, %c0_336, %c0_337] : memref<3x4x256x64xbf16, #tpu.memory_space<vmem>>, vector<1x1x256x64xbf16>
    %483 = vector.shape_cast %482 : vector<1x1x256x64xbf16> to vector<256x64xbf16>
    %cst_338 = arith.constant dense<0.000000e+00> : vector<5x64xf32>
    %484 = tpu.matmul %369, %483, %cst_338 {dimension_numbers = #tpu.dot_dimension_numbers<[1], [0], [0], [1], [0, 0, 1, 1], [], []>} : vector<5x256xbf16>, vector<256x64xbf16>, vector<5x64xf32> -> vector<5x64xf32>
    %c1_339 = arith.constant 1 : index
    %c3_340 = arith.constant 3 : index
    %c0_341 = arith.constant 0 : index
    %c0_342 = arith.constant 0 : index
    %485 = vector.load %arg8[%c1_339, %c3_340, %c0_341, %c0_342] : memref<3x4x1x64xf32, #tpu.memory_space<vmem>>, vector<1x1x1x64xf32>
    %486 = vector.shape_cast %485 : vector<1x1x1x64xf32> to vector<1x64xf32>
    %487 = vector.broadcast %486 : vector<1x64xf32> to vector<5x64xf32>
    %488 = arith.addf %484, %487 : vector<5x64xf32>
    %c1_343 = arith.constant 1 : index
    %c3_344 = arith.constant 3 : index
    %c0_345 = arith.constant 0 : index
    %c0_346 = arith.constant 0 : index
    %489 = vector.load %arg9[%c1_343, %c3_344, %c0_345, %c0_346] : memref<3x4x256x64xbf16, #tpu.memory_space<vmem>>, vector<1x1x256x64xbf16>
    %490 = vector.shape_cast %489 : vector<1x1x256x64xbf16> to vector<256x64xbf16>
    %cst_347 = arith.constant dense<0.000000e+00> : vector<5x64xf32>
    %491 = tpu.matmul %369, %490, %cst_347 {dimension_numbers = #tpu.dot_dimension_numbers<[1], [0], [0], [1], [0, 0, 1, 1], [], []>} : vector<5x256xbf16>, vector<256x64xbf16>, vector<5x64xf32> -> vector<5x64xf32>
    %c1_348 = arith.constant 1 : index
    %c3_349 = arith.constant 3 : index
    %c0_350 = arith.constant 0 : index
    %c0_351 = arith.constant 0 : index
    %492 = vector.load %arg10[%c1_348, %c3_349, %c0_350, %c0_351] : memref<3x4x1x64xf32, #tpu.memory_space<vmem>>, vector<1x1x1x64xf32>
    %493 = vector.shape_cast %492 : vector<1x1x1x64xf32> to vector<1x64xf32>
    %494 = vector.broadcast %493 : vector<1x64xf32> to vector<5x64xf32>
    %495 = arith.addf %491, %494 : vector<5x64xf32>
    %c1_352 = arith.constant 1 : index
    %c3_353 = arith.constant 3 : index
    %c0_354 = arith.constant 0 : index
    %c0_355 = arith.constant 0 : index
    %496 = vector.load %arg11[%c1_352, %c3_353, %c0_354, %c0_355] : memref<3x4x256x64xbf16, #tpu.memory_space<vmem>>, vector<1x1x256x64xbf16>
    %497 = vector.shape_cast %496 : vector<1x1x256x64xbf16> to vector<256x64xbf16>
    %cst_356 = arith.constant dense<0.000000e+00> : vector<5x64xf32>
    %498 = tpu.matmul %369, %497, %cst_356 {dimension_numbers = #tpu.dot_dimension_numbers<[1], [0], [0], [1], [0, 0, 1, 1], [], []>} : vector<5x256xbf16>, vector<256x64xbf16>, vector<5x64xf32> -> vector<5x64xf32>
    %c1_357 = arith.constant 1 : index
    %c3_358 = arith.constant 3 : index
    %c0_359 = arith.constant 0 : index
    %c0_360 = arith.constant 0 : index
    %499 = vector.load %arg12[%c1_357, %c3_358, %c0_359, %c0_360] : memref<3x4x1x64xf32, #tpu.memory_space<vmem>>, vector<1x1x1x64xf32>
    %500 = vector.shape_cast %499 : vector<1x1x1x64xf32> to vector<1x64xf32>
    %501 = vector.broadcast %500 : vector<1x64xf32> to vector<5x64xf32>
    %502 = arith.addf %498, %501 : vector<5x64xf32>
    "tpu.trace_start"() <{level = 10 : i32, message = "qd,kd->qk"}> : () -> ()
    %cst_361 = arith.constant dense<0.000000e+00> : vector<5x5xf32>
    %503 = tpu.matmul %488, %495, %cst_361 {dimension_numbers = #tpu.dot_dimension_numbers<[1], [1], [0], [0], [0, 0, 1, 0], [], []>} : vector<5x64xf32>, vector<5x64xf32>, vector<5x5xf32> -> vector<5x5xf32>
    "tpu.trace_stop"() : () -> ()
    %cst_362 = arith.constant dense<0xFF800000> : vector<5xf32>
    %504 = vector.multi_reduction <maximumf>, %503, %cst_362 [1] : vector<5x5xf32> to vector<5xf32>
    %505 = vector.shape_cast %504 : vector<5xf32> to vector<5x1xf32>
    %506 = vector.broadcast %505 : vector<5x1xf32> to vector<5x5xf32>
    %507 = arith.subf %503, %506 : vector<5x5xf32>
    %508 = math.exp %507 : vector<5x5xf32>
    %cst_363 = arith.constant dense<0.000000e+00> : vector<5xf32>
    %509 = vector.multi_reduction <add>, %508, %cst_363 [1] : vector<5x5xf32> to vector<5xf32>
    %510 = vector.shape_cast %509 : vector<5xf32> to vector<5x1xf32>
    %511 = vector.broadcast %510 : vector<5x1xf32> to vector<5x5xf32>
    %512 = arith.divf %508, %511 : vector<5x5xf32>
    %cst_364 = arith.constant dense<0.000000e+00> : vector<5x64xf32>
    %513 = tpu.matmul %512, %502, %cst_364 {dimension_numbers = #tpu.dot_dimension_numbers<[1], [0], [0], [1], [0, 0, 1, 1], [], []>} : vector<5x5xf32>, vector<5x64xf32>, vector<5x64xf32> -> vector<5x64xf32>
    %514 = arith.truncf %513 : vector<5x64xf32> to vector<5x64xbf16>
    %c1_365 = arith.constant 1 : index
    %c3_366 = arith.constant 3 : index
    %c0_367 = arith.constant 0 : index
    %c0_368 = arith.constant 0 : index
    %515 = vector.load %arg13[%c1_365, %c3_366, %c0_367, %c0_368] : memref<3x4x64x256xbf16, #tpu.memory_space<vmem>>, vector<1x1x64x256xbf16>
    %516 = vector.shape_cast %515 : vector<1x1x64x256xbf16> to vector<64x256xbf16>
    %cst_369 = arith.constant dense<0.000000e+00> : vector<5x256xf32>
    %517 = tpu.matmul %514, %516, %cst_369 {dimension_numbers = #tpu.dot_dimension_numbers<[1], [0], [0], [1], [0, 0, 1, 1], [], []>} : vector<5x64xbf16>, vector<64x256xbf16>, vector<5x256xf32> -> vector<5x256xf32>
    %518 = arith.addf %481, %517 : vector<5x256xf32>
    %c1_370 = arith.constant 1 : index
    %c0_371 = arith.constant 0 : index
    %c0_372 = arith.constant 0 : index
    %519 = vector.load %arg14[%c1_370, %c0_371, %c0_372] : memref<3x1x256xf32, #tpu.memory_space<vmem>>, vector<1x1x256xf32>
    %520 = vector.shape_cast %519 : vector<1x1x256xf32> to vector<1x256xf32>
    %521 = vector.broadcast %520 : vector<1x256xf32> to vector<5x256xf32>
    %522 = arith.addf %518, %521 : vector<5x256xf32>
    %523 = arith.addf %368, %522 : vector<5x256xf32>
    %c1_373 = arith.constant 1 : index
    %c0_374 = arith.constant 0 : index
    %c0_375 = arith.constant 0 : index
    %524 = vector.load %arg15[%c1_373, %c0_374, %c0_375] : memref<3x2x256xf32, #tpu.memory_space<vmem>>, vector<1x2x256xf32>
    %525 = vector.shape_cast %524 : vector<1x2x256xf32> to vector<2x256xf32>
    %cst_376 = arith.constant dense<0.000000e+00> : vector<5xf32>
    %526 = vector.multi_reduction <add>, %523, %cst_376 [1] : vector<5x256xf32> to vector<5xf32>
    %527 = vector.shape_cast %526 : vector<5xf32> to vector<5x1xf32>
    %cst_377 = arith.constant 2.560000e+02 : f32
    %528 = vector.broadcast %cst_377 : f32 to vector<5x1xf32>
    %529 = arith.divf %527, %528 : vector<5x1xf32>
    %530 = arith.mulf %523, %523 : vector<5x256xf32>
    %cst_378 = arith.constant dense<0.000000e+00> : vector<5xf32>
    %531 = vector.multi_reduction <add>, %530, %cst_378 [1] : vector<5x256xf32> to vector<5xf32>
    %532 = vector.shape_cast %531 : vector<5xf32> to vector<5x1xf32>
    %cst_379 = arith.constant 2.560000e+02 : f32
    %533 = vector.broadcast %cst_379 : f32 to vector<5x1xf32>
    %534 = arith.divf %532, %533 : vector<5x1xf32>
    %535 = arith.mulf %529, %529 : vector<5x1xf32>
    %536 = arith.subf %534, %535 : vector<5x1xf32>
    %cst_380 = arith.constant 9.99999974E-6 : f32
    %537 = vector.broadcast %cst_380 : f32 to vector<5x1xf32>
    %538 = arith.addf %536, %537 : vector<5x1xf32>
    %539 = math.rsqrt %538 : vector<5x1xf32>
    %540 = vector.broadcast %529 : vector<5x1xf32> to vector<5x256xf32>
    %541 = arith.subf %523, %540 : vector<5x256xf32>
    %542 = vector.broadcast %539 : vector<5x1xf32> to vector<5x256xf32>
    %543 = arith.mulf %541, %542 : vector<5x256xf32>
    %544 = vector.extract_strided_slice %525 {offsets = [0, 0], sizes = [1, 256], strides = [1, 1]} : vector<2x256xf32> to vector<1x256xf32>
    %545 = vector.broadcast %544 : vector<1x256xf32> to vector<5x256xf32>
    %546 = arith.mulf %543, %545 : vector<5x256xf32>
    %547 = vector.extract_strided_slice %525 {offsets = [1, 0], sizes = [1, 256], strides = [1, 1]} : vector<2x256xf32> to vector<1x256xf32>
    %548 = vector.broadcast %547 : vector<1x256xf32> to vector<5x256xf32>
    %549 = arith.addf %546, %548 : vector<5x256xf32>
    %550 = arith.truncf %549 : vector<5x256xf32> to vector<5x256xbf16>
    %c1_381 = arith.constant 1 : index
    %c0_382 = arith.constant 0 : index
    %c0_383 = arith.constant 0 : index
    %551 = vector.load %arg16[%c1_381, %c0_382, %c0_383] : memref<3x256x256xbf16, #tpu.memory_space<vmem>>, vector<1x256x256xbf16>
    %552 = vector.shape_cast %551 : vector<1x256x256xbf16> to vector<256x256xbf16>
    %cst_384 = arith.constant dense<0.000000e+00> : vector<5x256xf32>
    %553 = tpu.matmul %550, %552, %cst_384 {dimension_numbers = #tpu.dot_dimension_numbers<[1], [0], [0], [1], [0, 0, 1, 1], [], []>} : vector<5x256xbf16>, vector<256x256xbf16>, vector<5x256xf32> -> vector<5x256xf32>
    %c1_385 = arith.constant 1 : index
    %c0_386 = arith.constant 0 : index
    %c0_387 = arith.constant 0 : index
    %554 = vector.load %arg17[%c1_385, %c0_386, %c0_387] : memref<3x1x256xf32, #tpu.memory_space<vmem>>, vector<1x1x256xf32>
    %555 = vector.shape_cast %554 : vector<1x1x256xf32> to vector<1x256xf32>
    %556 = vector.broadcast %555 : vector<1x256xf32> to vector<5x256xf32>
    %557 = arith.addf %553, %556 : vector<5x256xf32>
    %cst_388 = arith.constant 0.000000e+00 : f32
    %558 = vector.broadcast %cst_388 : f32 to vector<5x256xf32>
    %559 = arith.maximumf %557, %558 : vector<5x256xf32>
    %560 = arith.truncf %559 : vector<5x256xf32> to vector<5x256xbf16>
    %c1_389 = arith.constant 1 : index
    %c0_390 = arith.constant 0 : index
    %c0_391 = arith.constant 0 : index
    %561 = vector.load %arg18[%c1_389, %c0_390, %c0_391] : memref<3x256x256xbf16, #tpu.memory_space<vmem>>, vector<1x256x256xbf16>
    %562 = vector.shape_cast %561 : vector<1x256x256xbf16> to vector<256x256xbf16>
    %cst_392 = arith.constant dense<0.000000e+00> : vector<5x256xf32>
    %563 = tpu.matmul %560, %562, %cst_392 {dimension_numbers = #tpu.dot_dimension_numbers<[1], [0], [0], [1], [0, 0, 1, 1], [], []>} : vector<5x256xbf16>, vector<256x256xbf16>, vector<5x256xf32> -> vector<5x256xf32>
    %c1_393 = arith.constant 1 : index
    %c0_394 = arith.constant 0 : index
    %c0_395 = arith.constant 0 : index
    %564 = vector.load %arg19[%c1_393, %c0_394, %c0_395] : memref<3x1x256xf32, #tpu.memory_space<vmem>>, vector<1x1x256xf32>
    %565 = vector.shape_cast %564 : vector<1x1x256xf32> to vector<1x256xf32>
    %566 = vector.broadcast %565 : vector<1x256xf32> to vector<5x256xf32>
    %567 = arith.addf %563, %566 : vector<5x256xf32>
    %568 = arith.addf %549, %567 : vector<5x256xf32>
    %c1_396 = arith.constant 1 : index
    %c0_397 = arith.constant 0 : index
    %c0_398 = arith.constant 0 : index
    %569 = vector.load %arg20[%c1_396, %c0_397, %c0_398] : memref<3x2x256xf32, #tpu.memory_space<vmem>>, vector<1x2x256xf32>
    %570 = vector.shape_cast %569 : vector<1x2x256xf32> to vector<2x256xf32>
    %cst_399 = arith.constant dense<0.000000e+00> : vector<5xf32>
    %571 = vector.multi_reduction <add>, %568, %cst_399 [1] : vector<5x256xf32> to vector<5xf32>
    %572 = vector.shape_cast %571 : vector<5xf32> to vector<5x1xf32>
    %cst_400 = arith.constant 2.560000e+02 : f32
    %573 = vector.broadcast %cst_400 : f32 to vector<5x1xf32>
    %574 = arith.divf %572, %573 : vector<5x1xf32>
    %575 = arith.mulf %568, %568 : vector<5x256xf32>
    %cst_401 = arith.constant dense<0.000000e+00> : vector<5xf32>
    %576 = vector.multi_reduction <add>, %575, %cst_401 [1] : vector<5x256xf32> to vector<5xf32>
    %577 = vector.shape_cast %576 : vector<5xf32> to vector<5x1xf32>
    %cst_402 = arith.constant 2.560000e+02 : f32
    %578 = vector.broadcast %cst_402 : f32 to vector<5x1xf32>
    %579 = arith.divf %577, %578 : vector<5x1xf32>
    %580 = arith.mulf %574, %574 : vector<5x1xf32>
    %581 = arith.subf %579, %580 : vector<5x1xf32>
    %cst_403 = arith.constant 9.99999974E-6 : f32
    %582 = vector.broadcast %cst_403 : f32 to vector<5x1xf32>
    %583 = arith.addf %581, %582 : vector<5x1xf32>
    %584 = math.rsqrt %583 : vector<5x1xf32>
    %585 = vector.broadcast %574 : vector<5x1xf32> to vector<5x256xf32>
    %586 = arith.subf %568, %585 : vector<5x256xf32>
    %587 = vector.broadcast %584 : vector<5x1xf32> to vector<5x256xf32>
    %588 = arith.mulf %586, %587 : vector<5x256xf32>
    %589 = vector.extract_strided_slice %570 {offsets = [0, 0], sizes = [1, 256], strides = [1, 1]} : vector<2x256xf32> to vector<1x256xf32>
    %590 = vector.broadcast %589 : vector<1x256xf32> to vector<5x256xf32>
    %591 = arith.mulf %588, %590 : vector<5x256xf32>
    %592 = vector.extract_strided_slice %570 {offsets = [1, 0], sizes = [1, 256], strides = [1, 1]} : vector<2x256xf32> to vector<1x256xf32>
    %593 = vector.broadcast %592 : vector<1x256xf32> to vector<5x256xf32>
    %594 = arith.addf %591, %593 : vector<5x256xf32>
    %595 = arith.truncf %594 : vector<5x256xf32> to vector<5x256xbf16>
    %cst_404 = arith.constant 0.000000e+00 : f32
    %596 = vector.broadcast %cst_404 : f32 to vector<5x256xf32>
    %c2_405 = arith.constant 2 : index
    %c0_406 = arith.constant 0 : index
    %c0_407 = arith.constant 0 : index
    %c0_408 = arith.constant 0 : index
    %597 = vector.load %arg7[%c2_405, %c0_406, %c0_407, %c0_408] : memref<3x4x256x64xbf16, #tpu.memory_space<vmem>>, vector<1x1x256x64xbf16>
    %598 = vector.shape_cast %597 : vector<1x1x256x64xbf16> to vector<256x64xbf16>
    %cst_409 = arith.constant dense<0.000000e+00> : vector<5x64xf32>
    %599 = tpu.matmul %595, %598, %cst_409 {dimension_numbers = #tpu.dot_dimension_numbers<[1], [0], [0], [1], [0, 0, 1, 1], [], []>} : vector<5x256xbf16>, vector<256x64xbf16>, vector<5x64xf32> -> vector<5x64xf32>
    %c2_410 = arith.constant 2 : index
    %c0_411 = arith.constant 0 : index
    %c0_412 = arith.constant 0 : index
    %c0_413 = arith.constant 0 : index
    %600 = vector.load %arg8[%c2_410, %c0_411, %c0_412, %c0_413] : memref<3x4x1x64xf32, #tpu.memory_space<vmem>>, vector<1x1x1x64xf32>
    %601 = vector.shape_cast %600 : vector<1x1x1x64xf32> to vector<1x64xf32>
    %602 = vector.broadcast %601 : vector<1x64xf32> to vector<5x64xf32>
    %603 = arith.addf %599, %602 : vector<5x64xf32>
    %c2_414 = arith.constant 2 : index
    %c0_415 = arith.constant 0 : index
    %c0_416 = arith.constant 0 : index
    %c0_417 = arith.constant 0 : index
    %604 = vector.load %arg9[%c2_414, %c0_415, %c0_416, %c0_417] : memref<3x4x256x64xbf16, #tpu.memory_space<vmem>>, vector<1x1x256x64xbf16>
    %605 = vector.shape_cast %604 : vector<1x1x256x64xbf16> to vector<256x64xbf16>
    %cst_418 = arith.constant dense<0.000000e+00> : vector<5x64xf32>
    %606 = tpu.matmul %595, %605, %cst_418 {dimension_numbers = #tpu.dot_dimension_numbers<[1], [0], [0], [1], [0, 0, 1, 1], [], []>} : vector<5x256xbf16>, vector<256x64xbf16>, vector<5x64xf32> -> vector<5x64xf32>
    %c2_419 = arith.constant 2 : index
    %c0_420 = arith.constant 0 : index
    %c0_421 = arith.constant 0 : index
    %c0_422 = arith.constant 0 : index
    %607 = vector.load %arg10[%c2_419, %c0_420, %c0_421, %c0_422] : memref<3x4x1x64xf32, #tpu.memory_space<vmem>>, vector<1x1x1x64xf32>
    %608 = vector.shape_cast %607 : vector<1x1x1x64xf32> to vector<1x64xf32>
    %609 = vector.broadcast %608 : vector<1x64xf32> to vector<5x64xf32>
    %610 = arith.addf %606, %609 : vector<5x64xf32>
    %c2_423 = arith.constant 2 : index
    %c0_424 = arith.constant 0 : index
    %c0_425 = arith.constant 0 : index
    %c0_426 = arith.constant 0 : index
    %611 = vector.load %arg11[%c2_423, %c0_424, %c0_425, %c0_426] : memref<3x4x256x64xbf16, #tpu.memory_space<vmem>>, vector<1x1x256x64xbf16>
    %612 = vector.shape_cast %611 : vector<1x1x256x64xbf16> to vector<256x64xbf16>
    %cst_427 = arith.constant dense<0.000000e+00> : vector<5x64xf32>
    %613 = tpu.matmul %595, %612, %cst_427 {dimension_numbers = #tpu.dot_dimension_numbers<[1], [0], [0], [1], [0, 0, 1, 1], [], []>} : vector<5x256xbf16>, vector<256x64xbf16>, vector<5x64xf32> -> vector<5x64xf32>
    %c2_428 = arith.constant 2 : index
    %c0_429 = arith.constant 0 : index
    %c0_430 = arith.constant 0 : index
    %c0_431 = arith.constant 0 : index
    %614 = vector.load %arg12[%c2_428, %c0_429, %c0_430, %c0_431] : memref<3x4x1x64xf32, #tpu.memory_space<vmem>>, vector<1x1x1x64xf32>
    %615 = vector.shape_cast %614 : vector<1x1x1x64xf32> to vector<1x64xf32>
    %616 = vector.broadcast %615 : vector<1x64xf32> to vector<5x64xf32>
    %617 = arith.addf %613, %616 : vector<5x64xf32>
    "tpu.trace_start"() <{level = 10 : i32, message = "qd,kd->qk"}> : () -> ()
    %cst_432 = arith.constant dense<0.000000e+00> : vector<5x5xf32>
    %618 = tpu.matmul %603, %610, %cst_432 {dimension_numbers = #tpu.dot_dimension_numbers<[1], [1], [0], [0], [0, 0, 1, 0], [], []>} : vector<5x64xf32>, vector<5x64xf32>, vector<5x5xf32> -> vector<5x5xf32>
    "tpu.trace_stop"() : () -> ()
    %cst_433 = arith.constant dense<0xFF800000> : vector<5xf32>
    %619 = vector.multi_reduction <maximumf>, %618, %cst_433 [1] : vector<5x5xf32> to vector<5xf32>
    %620 = vector.shape_cast %619 : vector<5xf32> to vector<5x1xf32>
    %621 = vector.broadcast %620 : vector<5x1xf32> to vector<5x5xf32>
    %622 = arith.subf %618, %621 : vector<5x5xf32>
    %623 = math.exp %622 : vector<5x5xf32>
    %cst_434 = arith.constant dense<0.000000e+00> : vector<5xf32>
    %624 = vector.multi_reduction <add>, %623, %cst_434 [1] : vector<5x5xf32> to vector<5xf32>
    %625 = vector.shape_cast %624 : vector<5xf32> to vector<5x1xf32>
    %626 = vector.broadcast %625 : vector<5x1xf32> to vector<5x5xf32>
    %627 = arith.divf %623, %626 : vector<5x5xf32>
    %cst_435 = arith.constant dense<0.000000e+00> : vector<5x64xf32>
    %628 = tpu.matmul %627, %617, %cst_435 {dimension_numbers = #tpu.dot_dimension_numbers<[1], [0], [0], [1], [0, 0, 1, 1], [], []>} : vector<5x5xf32>, vector<5x64xf32>, vector<5x64xf32> -> vector<5x64xf32>
    %629 = arith.truncf %628 : vector<5x64xf32> to vector<5x64xbf16>
    %c2_436 = arith.constant 2 : index
    %c0_437 = arith.constant 0 : index
    %c0_438 = arith.constant 0 : index
    %c0_439 = arith.constant 0 : index
    %630 = vector.load %arg13[%c2_436, %c0_437, %c0_438, %c0_439] : memref<3x4x64x256xbf16, #tpu.memory_space<vmem>>, vector<1x1x64x256xbf16>
    %631 = vector.shape_cast %630 : vector<1x1x64x256xbf16> to vector<64x256xbf16>
    %cst_440 = arith.constant dense<0.000000e+00> : vector<5x256xf32>
    %632 = tpu.matmul %629, %631, %cst_440 {dimension_numbers = #tpu.dot_dimension_numbers<[1], [0], [0], [1], [0, 0, 1, 1], [], []>} : vector<5x64xbf16>, vector<64x256xbf16>, vector<5x256xf32> -> vector<5x256xf32>
    %633 = arith.addf %596, %632 : vector<5x256xf32>
    %c2_441 = arith.constant 2 : index
    %c1_442 = arith.constant 1 : index
    %c0_443 = arith.constant 0 : index
    %c0_444 = arith.constant 0 : index
    %634 = vector.load %arg7[%c2_441, %c1_442, %c0_443, %c0_444] : memref<3x4x256x64xbf16, #tpu.memory_space<vmem>>, vector<1x1x256x64xbf16>
    %635 = vector.shape_cast %634 : vector<1x1x256x64xbf16> to vector<256x64xbf16>
    %cst_445 = arith.constant dense<0.000000e+00> : vector<5x64xf32>
    %636 = tpu.matmul %595, %635, %cst_445 {dimension_numbers = #tpu.dot_dimension_numbers<[1], [0], [0], [1], [0, 0, 1, 1], [], []>} : vector<5x256xbf16>, vector<256x64xbf16>, vector<5x64xf32> -> vector<5x64xf32>
    %c2_446 = arith.constant 2 : index
    %c1_447 = arith.constant 1 : index
    %c0_448 = arith.constant 0 : index
    %c0_449 = arith.constant 0 : index
    %637 = vector.load %arg8[%c2_446, %c1_447, %c0_448, %c0_449] : memref<3x4x1x64xf32, #tpu.memory_space<vmem>>, vector<1x1x1x64xf32>
    %638 = vector.shape_cast %637 : vector<1x1x1x64xf32> to vector<1x64xf32>
    %639 = vector.broadcast %638 : vector<1x64xf32> to vector<5x64xf32>
    %640 = arith.addf %636, %639 : vector<5x64xf32>
    %c2_450 = arith.constant 2 : index
    %c1_451 = arith.constant 1 : index
    %c0_452 = arith.constant 0 : index
    %c0_453 = arith.constant 0 : index
    %641 = vector.load %arg9[%c2_450, %c1_451, %c0_452, %c0_453] : memref<3x4x256x64xbf16, #tpu.memory_space<vmem>>, vector<1x1x256x64xbf16>
    %642 = vector.shape_cast %641 : vector<1x1x256x64xbf16> to vector<256x64xbf16>
    %cst_454 = arith.constant dense<0.000000e+00> : vector<5x64xf32>
    %643 = tpu.matmul %595, %642, %cst_454 {dimension_numbers = #tpu.dot_dimension_numbers<[1], [0], [0], [1], [0, 0, 1, 1], [], []>} : vector<5x256xbf16>, vector<256x64xbf16>, vector<5x64xf32> -> vector<5x64xf32>
    %c2_455 = arith.constant 2 : index
    %c1_456 = arith.constant 1 : index
    %c0_457 = arith.constant 0 : index
    %c0_458 = arith.constant 0 : index
    %644 = vector.load %arg10[%c2_455, %c1_456, %c0_457, %c0_458] : memref<3x4x1x64xf32, #tpu.memory_space<vmem>>, vector<1x1x1x64xf32>
    %645 = vector.shape_cast %644 : vector<1x1x1x64xf32> to vector<1x64xf32>
    %646 = vector.broadcast %645 : vector<1x64xf32> to vector<5x64xf32>
    %647 = arith.addf %643, %646 : vector<5x64xf32>
    %c2_459 = arith.constant 2 : index
    %c1_460 = arith.constant 1 : index
    %c0_461 = arith.constant 0 : index
    %c0_462 = arith.constant 0 : index
    %648 = vector.load %arg11[%c2_459, %c1_460, %c0_461, %c0_462] : memref<3x4x256x64xbf16, #tpu.memory_space<vmem>>, vector<1x1x256x64xbf16>
    %649 = vector.shape_cast %648 : vector<1x1x256x64xbf16> to vector<256x64xbf16>
    %cst_463 = arith.constant dense<0.000000e+00> : vector<5x64xf32>
    %650 = tpu.matmul %595, %649, %cst_463 {dimension_numbers = #tpu.dot_dimension_numbers<[1], [0], [0], [1], [0, 0, 1, 1], [], []>} : vector<5x256xbf16>, vector<256x64xbf16>, vector<5x64xf32> -> vector<5x64xf32>
    %c2_464 = arith.constant 2 : index
    %c1_465 = arith.constant 1 : index
    %c0_466 = arith.constant 0 : index
    %c0_467 = arith.constant 0 : index
    %651 = vector.load %arg12[%c2_464, %c1_465, %c0_466, %c0_467] : memref<3x4x1x64xf32, #tpu.memory_space<vmem>>, vector<1x1x1x64xf32>
    %652 = vector.shape_cast %651 : vector<1x1x1x64xf32> to vector<1x64xf32>
    %653 = vector.broadcast %652 : vector<1x64xf32> to vector<5x64xf32>
    %654 = arith.addf %650, %653 : vector<5x64xf32>
    "tpu.trace_start"() <{level = 10 : i32, message = "qd,kd->qk"}> : () -> ()
    %cst_468 = arith.constant dense<0.000000e+00> : vector<5x5xf32>
    %655 = tpu.matmul %640, %647, %cst_468 {dimension_numbers = #tpu.dot_dimension_numbers<[1], [1], [0], [0], [0, 0, 1, 0], [], []>} : vector<5x64xf32>, vector<5x64xf32>, vector<5x5xf32> -> vector<5x5xf32>
    "tpu.trace_stop"() : () -> ()
    %cst_469 = arith.constant dense<0xFF800000> : vector<5xf32>
    %656 = vector.multi_reduction <maximumf>, %655, %cst_469 [1] : vector<5x5xf32> to vector<5xf32>
    %657 = vector.shape_cast %656 : vector<5xf32> to vector<5x1xf32>
    %658 = vector.broadcast %657 : vector<5x1xf32> to vector<5x5xf32>
    %659 = arith.subf %655, %658 : vector<5x5xf32>
    %660 = math.exp %659 : vector<5x5xf32>
    %cst_470 = arith.constant dense<0.000000e+00> : vector<5xf32>
    %661 = vector.multi_reduction <add>, %660, %cst_470 [1] : vector<5x5xf32> to vector<5xf32>
    %662 = vector.shape_cast %661 : vector<5xf32> to vector<5x1xf32>
    %663 = vector.broadcast %662 : vector<5x1xf32> to vector<5x5xf32>
    %664 = arith.divf %660, %663 : vector<5x5xf32>
    %cst_471 = arith.constant dense<0.000000e+00> : vector<5x64xf32>
    %665 = tpu.matmul %664, %654, %cst_471 {dimension_numbers = #tpu.dot_dimension_numbers<[1], [0], [0], [1], [0, 0, 1, 1], [], []>} : vector<5x5xf32>, vector<5x64xf32>, vector<5x64xf32> -> vector<5x64xf32>
    %666 = arith.truncf %665 : vector<5x64xf32> to vector<5x64xbf16>
    %c2_472 = arith.constant 2 : index
    %c1_473 = arith.constant 1 : index
    %c0_474 = arith.constant 0 : index
    %c0_475 = arith.constant 0 : index
    %667 = vector.load %arg13[%c2_472, %c1_473, %c0_474, %c0_475] : memref<3x4x64x256xbf16, #tpu.memory_space<vmem>>, vector<1x1x64x256xbf16>
    %668 = vector.shape_cast %667 : vector<1x1x64x256xbf16> to vector<64x256xbf16>
    %cst_476 = arith.constant dense<0.000000e+00> : vector<5x256xf32>
    %669 = tpu.matmul %666, %668, %cst_476 {dimension_numbers = #tpu.dot_dimension_numbers<[1], [0], [0], [1], [0, 0, 1, 1], [], []>} : vector<5x64xbf16>, vector<64x256xbf16>, vector<5x256xf32> -> vector<5x256xf32>
    %670 = arith.addf %633, %669 : vector<5x256xf32>
    %c2_477 = arith.constant 2 : index
    %c2_478 = arith.constant 2 : index
    %c0_479 = arith.constant 0 : index
    %c0_480 = arith.constant 0 : index
    %671 = vector.load %arg7[%c2_477, %c2_478, %c0_479, %c0_480] : memref<3x4x256x64xbf16, #tpu.memory_space<vmem>>, vector<1x1x256x64xbf16>
    %672 = vector.shape_cast %671 : vector<1x1x256x64xbf16> to vector<256x64xbf16>
    %cst_481 = arith.constant dense<0.000000e+00> : vector<5x64xf32>
    %673 = tpu.matmul %595, %672, %cst_481 {dimension_numbers = #tpu.dot_dimension_numbers<[1], [0], [0], [1], [0, 0, 1, 1], [], []>} : vector<5x256xbf16>, vector<256x64xbf16>, vector<5x64xf32> -> vector<5x64xf32>
    %c2_482 = arith.constant 2 : index
    %c2_483 = arith.constant 2 : index
    %c0_484 = arith.constant 0 : index
    %c0_485 = arith.constant 0 : index
    %674 = vector.load %arg8[%c2_482, %c2_483, %c0_484, %c0_485] : memref<3x4x1x64xf32, #tpu.memory_space<vmem>>, vector<1x1x1x64xf32>
    %675 = vector.shape_cast %674 : vector<1x1x1x64xf32> to vector<1x64xf32>
    %676 = vector.broadcast %675 : vector<1x64xf32> to vector<5x64xf32>
    %677 = arith.addf %673, %676 : vector<5x64xf32>
    %c2_486 = arith.constant 2 : index
    %c2_487 = arith.constant 2 : index
    %c0_488 = arith.constant 0 : index
    %c0_489 = arith.constant 0 : index
    %678 = vector.load %arg9[%c2_486, %c2_487, %c0_488, %c0_489] : memref<3x4x256x64xbf16, #tpu.memory_space<vmem>>, vector<1x1x256x64xbf16>
    %679 = vector.shape_cast %678 : vector<1x1x256x64xbf16> to vector<256x64xbf16>
    %cst_490 = arith.constant dense<0.000000e+00> : vector<5x64xf32>
    %680 = tpu.matmul %595, %679, %cst_490 {dimension_numbers = #tpu.dot_dimension_numbers<[1], [0], [0], [1], [0, 0, 1, 1], [], []>} : vector<5x256xbf16>, vector<256x64xbf16>, vector<5x64xf32> -> vector<5x64xf32>
    %c2_491 = arith.constant 2 : index
    %c2_492 = arith.constant 2 : index
    %c0_493 = arith.constant 0 : index
    %c0_494 = arith.constant 0 : index
    %681 = vector.load %arg10[%c2_491, %c2_492, %c0_493, %c0_494] : memref<3x4x1x64xf32, #tpu.memory_space<vmem>>, vector<1x1x1x64xf32>
    %682 = vector.shape_cast %681 : vector<1x1x1x64xf32> to vector<1x64xf32>
    %683 = vector.broadcast %682 : vector<1x64xf32> to vector<5x64xf32>
    %684 = arith.addf %680, %683 : vector<5x64xf32>
    %c2_495 = arith.constant 2 : index
    %c2_496 = arith.constant 2 : index
    %c0_497 = arith.constant 0 : index
    %c0_498 = arith.constant 0 : index
    %685 = vector.load %arg11[%c2_495, %c2_496, %c0_497, %c0_498] : memref<3x4x256x64xbf16, #tpu.memory_space<vmem>>, vector<1x1x256x64xbf16>
    %686 = vector.shape_cast %685 : vector<1x1x256x64xbf16> to vector<256x64xbf16>
    %cst_499 = arith.constant dense<0.000000e+00> : vector<5x64xf32>
    %687 = tpu.matmul %595, %686, %cst_499 {dimension_numbers = #tpu.dot_dimension_numbers<[1], [0], [0], [1], [0, 0, 1, 1], [], []>} : vector<5x256xbf16>, vector<256x64xbf16>, vector<5x64xf32> -> vector<5x64xf32>
    %c2_500 = arith.constant 2 : index
    %c2_501 = arith.constant 2 : index
    %c0_502 = arith.constant 0 : index
    %c0_503 = arith.constant 0 : index
    %688 = vector.load %arg12[%c2_500, %c2_501, %c0_502, %c0_503] : memref<3x4x1x64xf32, #tpu.memory_space<vmem>>, vector<1x1x1x64xf32>
    %689 = vector.shape_cast %688 : vector<1x1x1x64xf32> to vector<1x64xf32>
    %690 = vector.broadcast %689 : vector<1x64xf32> to vector<5x64xf32>
    %691 = arith.addf %687, %690 : vector<5x64xf32>
    "tpu.trace_start"() <{level = 10 : i32, message = "qd,kd->qk"}> : () -> ()
    %cst_504 = arith.constant dense<0.000000e+00> : vector<5x5xf32>
    %692 = tpu.matmul %677, %684, %cst_504 {dimension_numbers = #tpu.dot_dimension_numbers<[1], [1], [0], [0], [0, 0, 1, 0], [], []>} : vector<5x64xf32>, vector<5x64xf32>, vector<5x5xf32> -> vector<5x5xf32>
    "tpu.trace_stop"() : () -> ()
    %cst_505 = arith.constant dense<0xFF800000> : vector<5xf32>
    %693 = vector.multi_reduction <maximumf>, %692, %cst_505 [1] : vector<5x5xf32> to vector<5xf32>
    %694 = vector.shape_cast %693 : vector<5xf32> to vector<5x1xf32>
    %695 = vector.broadcast %694 : vector<5x1xf32> to vector<5x5xf32>
    %696 = arith.subf %692, %695 : vector<5x5xf32>
    %697 = math.exp %696 : vector<5x5xf32>
    %cst_506 = arith.constant dense<0.000000e+00> : vector<5xf32>
    %698 = vector.multi_reduction <add>, %697, %cst_506 [1] : vector<5x5xf32> to vector<5xf32>
    %699 = vector.shape_cast %698 : vector<5xf32> to vector<5x1xf32>
    %700 = vector.broadcast %699 : vector<5x1xf32> to vector<5x5xf32>
    %701 = arith.divf %697, %700 : vector<5x5xf32>
    %cst_507 = arith.constant dense<0.000000e+00> : vector<5x64xf32>
    %702 = tpu.matmul %701, %691, %cst_507 {dimension_numbers = #tpu.dot_dimension_numbers<[1], [0], [0], [1], [0, 0, 1, 1], [], []>} : vector<5x5xf32>, vector<5x64xf32>, vector<5x64xf32> -> vector<5x64xf32>
    %703 = arith.truncf %702 : vector<5x64xf32> to vector<5x64xbf16>
    %c2_508 = arith.constant 2 : index
    %c2_509 = arith.constant 2 : index
    %c0_510 = arith.constant 0 : index
    %c0_511 = arith.constant 0 : index
    %704 = vector.load %arg13[%c2_508, %c2_509, %c0_510, %c0_511] : memref<3x4x64x256xbf16, #tpu.memory_space<vmem>>, vector<1x1x64x256xbf16>
    %705 = vector.shape_cast %704 : vector<1x1x64x256xbf16> to vector<64x256xbf16>
    %cst_512 = arith.constant dense<0.000000e+00> : vector<5x256xf32>
    %706 = tpu.matmul %703, %705, %cst_512 {dimension_numbers = #tpu.dot_dimension_numbers<[1], [0], [0], [1], [0, 0, 1, 1], [], []>} : vector<5x64xbf16>, vector<64x256xbf16>, vector<5x256xf32> -> vector<5x256xf32>
    %707 = arith.addf %670, %706 : vector<5x256xf32>
    %c2_513 = arith.constant 2 : index
    %c3_514 = arith.constant 3 : index
    %c0_515 = arith.constant 0 : index
    %c0_516 = arith.constant 0 : index
    %708 = vector.load %arg7[%c2_513, %c3_514, %c0_515, %c0_516] : memref<3x4x256x64xbf16, #tpu.memory_space<vmem>>, vector<1x1x256x64xbf16>
    %709 = vector.shape_cast %708 : vector<1x1x256x64xbf16> to vector<256x64xbf16>
    %cst_517 = arith.constant dense<0.000000e+00> : vector<5x64xf32>
    %710 = tpu.matmul %595, %709, %cst_517 {dimension_numbers = #tpu.dot_dimension_numbers<[1], [0], [0], [1], [0, 0, 1, 1], [], []>} : vector<5x256xbf16>, vector<256x64xbf16>, vector<5x64xf32> -> vector<5x64xf32>
    %c2_518 = arith.constant 2 : index
    %c3_519 = arith.constant 3 : index
    %c0_520 = arith.constant 0 : index
    %c0_521 = arith.constant 0 : index
    %711 = vector.load %arg8[%c2_518, %c3_519, %c0_520, %c0_521] : memref<3x4x1x64xf32, #tpu.memory_space<vmem>>, vector<1x1x1x64xf32>
    %712 = vector.shape_cast %711 : vector<1x1x1x64xf32> to vector<1x64xf32>
    %713 = vector.broadcast %712 : vector<1x64xf32> to vector<5x64xf32>
    %714 = arith.addf %710, %713 : vector<5x64xf32>
    %c2_522 = arith.constant 2 : index
    %c3_523 = arith.constant 3 : index
    %c0_524 = arith.constant 0 : index
    %c0_525 = arith.constant 0 : index
    %715 = vector.load %arg9[%c2_522, %c3_523, %c0_524, %c0_525] : memref<3x4x256x64xbf16, #tpu.memory_space<vmem>>, vector<1x1x256x64xbf16>
    %716 = vector.shape_cast %715 : vector<1x1x256x64xbf16> to vector<256x64xbf16>
    %cst_526 = arith.constant dense<0.000000e+00> : vector<5x64xf32>
    %717 = tpu.matmul %595, %716, %cst_526 {dimension_numbers = #tpu.dot_dimension_numbers<[1], [0], [0], [1], [0, 0, 1, 1], [], []>} : vector<5x256xbf16>, vector<256x64xbf16>, vector<5x64xf32> -> vector<5x64xf32>
    %c2_527 = arith.constant 2 : index
    %c3_528 = arith.constant 3 : index
    %c0_529 = arith.constant 0 : index
    %c0_530 = arith.constant 0 : index
    %718 = vector.load %arg10[%c2_527, %c3_528, %c0_529, %c0_530] : memref<3x4x1x64xf32, #tpu.memory_space<vmem>>, vector<1x1x1x64xf32>
    %719 = vector.shape_cast %718 : vector<1x1x1x64xf32> to vector<1x64xf32>
    %720 = vector.broadcast %719 : vector<1x64xf32> to vector<5x64xf32>
    %721 = arith.addf %717, %720 : vector<5x64xf32>
    %c2_531 = arith.constant 2 : index
    %c3_532 = arith.constant 3 : index
    %c0_533 = arith.constant 0 : index
    %c0_534 = arith.constant 0 : index
    %722 = vector.load %arg11[%c2_531, %c3_532, %c0_533, %c0_534] : memref<3x4x256x64xbf16, #tpu.memory_space<vmem>>, vector<1x1x256x64xbf16>
    %723 = vector.shape_cast %722 : vector<1x1x256x64xbf16> to vector<256x64xbf16>
    %cst_535 = arith.constant dense<0.000000e+00> : vector<5x64xf32>
    %724 = tpu.matmul %595, %723, %cst_535 {dimension_numbers = #tpu.dot_dimension_numbers<[1], [0], [0], [1], [0, 0, 1, 1], [], []>} : vector<5x256xbf16>, vector<256x64xbf16>, vector<5x64xf32> -> vector<5x64xf32>
    %c2_536 = arith.constant 2 : index
    %c3_537 = arith.constant 3 : index
    %c0_538 = arith.constant 0 : index
    %c0_539 = arith.constant 0 : index
    %725 = vector.load %arg12[%c2_536, %c3_537, %c0_538, %c0_539] : memref<3x4x1x64xf32, #tpu.memory_space<vmem>>, vector<1x1x1x64xf32>
    %726 = vector.shape_cast %725 : vector<1x1x1x64xf32> to vector<1x64xf32>
    %727 = vector.broadcast %726 : vector<1x64xf32> to vector<5x64xf32>
    %728 = arith.addf %724, %727 : vector<5x64xf32>
    "tpu.trace_start"() <{level = 10 : i32, message = "qd,kd->qk"}> : () -> ()
    %cst_540 = arith.constant dense<0.000000e+00> : vector<5x5xf32>
    %729 = tpu.matmul %714, %721, %cst_540 {dimension_numbers = #tpu.dot_dimension_numbers<[1], [1], [0], [0], [0, 0, 1, 0], [], []>} : vector<5x64xf32>, vector<5x64xf32>, vector<5x5xf32> -> vector<5x5xf32>
    "tpu.trace_stop"() : () -> ()
    %cst_541 = arith.constant dense<0xFF800000> : vector<5xf32>
    %730 = vector.multi_reduction <maximumf>, %729, %cst_541 [1] : vector<5x5xf32> to vector<5xf32>
    %731 = vector.shape_cast %730 : vector<5xf32> to vector<5x1xf32>
    %732 = vector.broadcast %731 : vector<5x1xf32> to vector<5x5xf32>
    %733 = arith.subf %729, %732 : vector<5x5xf32>
    %734 = math.exp %733 : vector<5x5xf32>
    %cst_542 = arith.constant dense<0.000000e+00> : vector<5xf32>
    %735 = vector.multi_reduction <add>, %734, %cst_542 [1] : vector<5x5xf32> to vector<5xf32>
    %736 = vector.shape_cast %735 : vector<5xf32> to vector<5x1xf32>
    %737 = vector.broadcast %736 : vector<5x1xf32> to vector<5x5xf32>
    %738 = arith.divf %734, %737 : vector<5x5xf32>
    %cst_543 = arith.constant dense<0.000000e+00> : vector<5x64xf32>
    %739 = tpu.matmul %738, %728, %cst_543 {dimension_numbers = #tpu.dot_dimension_numbers<[1], [0], [0], [1], [0, 0, 1, 1], [], []>} : vector<5x5xf32>, vector<5x64xf32>, vector<5x64xf32> -> vector<5x64xf32>
    %740 = arith.truncf %739 : vector<5x64xf32> to vector<5x64xbf16>
    %c2_544 = arith.constant 2 : index
    %c3_545 = arith.constant 3 : index
    %c0_546 = arith.constant 0 : index
    %c0_547 = arith.constant 0 : index
    %741 = vector.load %arg13[%c2_544, %c3_545, %c0_546, %c0_547] : memref<3x4x64x256xbf16, #tpu.memory_space<vmem>>, vector<1x1x64x256xbf16>
    %742 = vector.shape_cast %741 : vector<1x1x64x256xbf16> to vector<64x256xbf16>
    %cst_548 = arith.constant dense<0.000000e+00> : vector<5x256xf32>
    %743 = tpu.matmul %740, %742, %cst_548 {dimension_numbers = #tpu.dot_dimension_numbers<[1], [0], [0], [1], [0, 0, 1, 1], [], []>} : vector<5x64xbf16>, vector<64x256xbf16>, vector<5x256xf32> -> vector<5x256xf32>
    %744 = arith.addf %707, %743 : vector<5x256xf32>
    %c2_549 = arith.constant 2 : index
    %c0_550 = arith.constant 0 : index
    %c0_551 = arith.constant 0 : index
    %745 = vector.load %arg14[%c2_549, %c0_550, %c0_551] : memref<3x1x256xf32, #tpu.memory_space<vmem>>, vector<1x1x256xf32>
    %746 = vector.shape_cast %745 : vector<1x1x256xf32> to vector<1x256xf32>
    %747 = vector.broadcast %746 : vector<1x256xf32> to vector<5x256xf32>
    %748 = arith.addf %744, %747 : vector<5x256xf32>
    %749 = arith.addf %594, %748 : vector<5x256xf32>
    %c2_552 = arith.constant 2 : index
    %c0_553 = arith.constant 0 : index
    %c0_554 = arith.constant 0 : index
    %750 = vector.load %arg15[%c2_552, %c0_553, %c0_554] : memref<3x2x256xf32, #tpu.memory_space<vmem>>, vector<1x2x256xf32>
    %751 = vector.shape_cast %750 : vector<1x2x256xf32> to vector<2x256xf32>
    %cst_555 = arith.constant dense<0.000000e+00> : vector<5xf32>
    %752 = vector.multi_reduction <add>, %749, %cst_555 [1] : vector<5x256xf32> to vector<5xf32>
    %753 = vector.shape_cast %752 : vector<5xf32> to vector<5x1xf32>
    %cst_556 = arith.constant 2.560000e+02 : f32
    %754 = vector.broadcast %cst_556 : f32 to vector<5x1xf32>
    %755 = arith.divf %753, %754 : vector<5x1xf32>
    %756 = arith.mulf %749, %749 : vector<5x256xf32>
    %cst_557 = arith.constant dense<0.000000e+00> : vector<5xf32>
    %757 = vector.multi_reduction <add>, %756, %cst_557 [1] : vector<5x256xf32> to vector<5xf32>
    %758 = vector.shape_cast %757 : vector<5xf32> to vector<5x1xf32>
    %cst_558 = arith.constant 2.560000e+02 : f32
    %759 = vector.broadcast %cst_558 : f32 to vector<5x1xf32>
    %760 = arith.divf %758, %759 : vector<5x1xf32>
    %761 = arith.mulf %755, %755 : vector<5x1xf32>
    %762 = arith.subf %760, %761 : vector<5x1xf32>
    %cst_559 = arith.constant 9.99999974E-6 : f32
    %763 = vector.broadcast %cst_559 : f32 to vector<5x1xf32>
    %764 = arith.addf %762, %763 : vector<5x1xf32>
    %765 = math.rsqrt %764 : vector<5x1xf32>
    %766 = vector.broadcast %755 : vector<5x1xf32> to vector<5x256xf32>
    %767 = arith.subf %749, %766 : vector<5x256xf32>
    %768 = vector.broadcast %765 : vector<5x1xf32> to vector<5x256xf32>
    %769 = arith.mulf %767, %768 : vector<5x256xf32>
    %770 = vector.extract_strided_slice %751 {offsets = [0, 0], sizes = [1, 256], strides = [1, 1]} : vector<2x256xf32> to vector<1x256xf32>
    %771 = vector.broadcast %770 : vector<1x256xf32> to vector<5x256xf32>
    %772 = arith.mulf %769, %771 : vector<5x256xf32>
    %773 = vector.extract_strided_slice %751 {offsets = [1, 0], sizes = [1, 256], strides = [1, 1]} : vector<2x256xf32> to vector<1x256xf32>
    %774 = vector.broadcast %773 : vector<1x256xf32> to vector<5x256xf32>
    %775 = arith.addf %772, %774 : vector<5x256xf32>
    %776 = arith.truncf %775 : vector<5x256xf32> to vector<5x256xbf16>
    %c2_560 = arith.constant 2 : index
    %c0_561 = arith.constant 0 : index
    %c0_562 = arith.constant 0 : index
    %777 = vector.load %arg16[%c2_560, %c0_561, %c0_562] : memref<3x256x256xbf16, #tpu.memory_space<vmem>>, vector<1x256x256xbf16>
    %778 = vector.shape_cast %777 : vector<1x256x256xbf16> to vector<256x256xbf16>
    %cst_563 = arith.constant dense<0.000000e+00> : vector<5x256xf32>
    %779 = tpu.matmul %776, %778, %cst_563 {dimension_numbers = #tpu.dot_dimension_numbers<[1], [0], [0], [1], [0, 0, 1, 1], [], []>} : vector<5x256xbf16>, vector<256x256xbf16>, vector<5x256xf32> -> vector<5x256xf32>
    %c2_564 = arith.constant 2 : index
    %c0_565 = arith.constant 0 : index
    %c0_566 = arith.constant 0 : index
    %780 = vector.load %arg17[%c2_564, %c0_565, %c0_566] : memref<3x1x256xf32, #tpu.memory_space<vmem>>, vector<1x1x256xf32>
    %781 = vector.shape_cast %780 : vector<1x1x256xf32> to vector<1x256xf32>
    %782 = vector.broadcast %781 : vector<1x256xf32> to vector<5x256xf32>
    %783 = arith.addf %779, %782 : vector<5x256xf32>
    %cst_567 = arith.constant 0.000000e+00 : f32
    %784 = vector.broadcast %cst_567 : f32 to vector<5x256xf32>
    %785 = arith.maximumf %783, %784 : vector<5x256xf32>
    %786 = arith.truncf %785 : vector<5x256xf32> to vector<5x256xbf16>
    %c2_568 = arith.constant 2 : index
    %c0_569 = arith.constant 0 : index
    %c0_570 = arith.constant 0 : index
    %787 = vector.load %arg18[%c2_568, %c0_569, %c0_570] : memref<3x256x256xbf16, #tpu.memory_space<vmem>>, vector<1x256x256xbf16>
    %788 = vector.shape_cast %787 : vector<1x256x256xbf16> to vector<256x256xbf16>
    %cst_571 = arith.constant dense<0.000000e+00> : vector<5x256xf32>
    %789 = tpu.matmul %786, %788, %cst_571 {dimension_numbers = #tpu.dot_dimension_numbers<[1], [0], [0], [1], [0, 0, 1, 1], [], []>} : vector<5x256xbf16>, vector<256x256xbf16>, vector<5x256xf32> -> vector<5x256xf32>
    %c2_572 = arith.constant 2 : index
    %c0_573 = arith.constant 0 : index
    %c0_574 = arith.constant 0 : index
    %790 = vector.load %arg19[%c2_572, %c0_573, %c0_574] : memref<3x1x256xf32, #tpu.memory_space<vmem>>, vector<1x1x256xf32>
    %791 = vector.shape_cast %790 : vector<1x1x256xf32> to vector<1x256xf32>
    %792 = vector.broadcast %791 : vector<1x256xf32> to vector<5x256xf32>
    %793 = arith.addf %789, %792 : vector<5x256xf32>
    %794 = arith.addf %775, %793 : vector<5x256xf32>
    %c2_575 = arith.constant 2 : index
    %c0_576 = arith.constant 0 : index
    %c0_577 = arith.constant 0 : index
    %795 = vector.load %arg20[%c2_575, %c0_576, %c0_577] : memref<3x2x256xf32, #tpu.memory_space<vmem>>, vector<1x2x256xf32>
    %796 = vector.shape_cast %795 : vector<1x2x256xf32> to vector<2x256xf32>
    %cst_578 = arith.constant dense<0.000000e+00> : vector<5xf32>
    %797 = vector.multi_reduction <add>, %794, %cst_578 [1] : vector<5x256xf32> to vector<5xf32>
    %798 = vector.shape_cast %797 : vector<5xf32> to vector<5x1xf32>
    %cst_579 = arith.constant 2.560000e+02 : f32
    %799 = vector.broadcast %cst_579 : f32 to vector<5x1xf32>
    %800 = arith.divf %798, %799 : vector<5x1xf32>
    %801 = arith.mulf %794, %794 : vector<5x256xf32>
    %cst_580 = arith.constant dense<0.000000e+00> : vector<5xf32>
    %802 = vector.multi_reduction <add>, %801, %cst_580 [1] : vector<5x256xf32> to vector<5xf32>
    %803 = vector.shape_cast %802 : vector<5xf32> to vector<5x1xf32>
    %cst_581 = arith.constant 2.560000e+02 : f32
    %804 = vector.broadcast %cst_581 : f32 to vector<5x1xf32>
    %805 = arith.divf %803, %804 : vector<5x1xf32>
    %806 = arith.mulf %800, %800 : vector<5x1xf32>
    %807 = arith.subf %805, %806 : vector<5x1xf32>
    %cst_582 = arith.constant 9.99999974E-6 : f32
    %808 = vector.broadcast %cst_582 : f32 to vector<5x1xf32>
    %809 = arith.addf %807, %808 : vector<5x1xf32>
    %810 = math.rsqrt %809 : vector<5x1xf32>
    %811 = vector.broadcast %800 : vector<5x1xf32> to vector<5x256xf32>
    %812 = arith.subf %794, %811 : vector<5x256xf32>
    %813 = vector.broadcast %810 : vector<5x1xf32> to vector<5x256xf32>
    %814 = arith.mulf %812, %813 : vector<5x256xf32>
    %815 = vector.extract_strided_slice %796 {offsets = [0, 0], sizes = [1, 256], strides = [1, 1]} : vector<2x256xf32> to vector<1x256xf32>
    %816 = vector.broadcast %815 : vector<1x256xf32> to vector<5x256xf32>
    %817 = arith.mulf %814, %816 : vector<5x256xf32>
    %818 = vector.extract_strided_slice %796 {offsets = [1, 0], sizes = [1, 256], strides = [1, 1]} : vector<2x256xf32> to vector<1x256xf32>
    %819 = vector.broadcast %818 : vector<1x256xf32> to vector<5x256xf32>
    %820 = arith.addf %817, %819 : vector<5x256xf32>
    %c0_583 = arith.constant 0 : index
    %c0_584 = arith.constant 0 : index
    %821 = vector.load %arg21[%c0_583, %c0_584] : memref<5x256xf32, #tpu.memory_space<vmem>>, vector<5x256xf32>
    %822 = arith.mulf %820, %821 : vector<5x256xf32>
    %cst_585 = arith.constant dense<0.000000e+00> : vector<5xf32>
    %823 = vector.multi_reduction <add>, %822, %cst_585 [1] : vector<5x256xf32> to vector<5xf32>
    %824 = vector.shape_cast %823 : vector<5xf32> to vector<5x1xf32>
    %cst_586 = arith.constant dense<0.000000e+00> : vector<1xf32>
    %825 = vector.multi_reduction <add>, %824, %cst_586 [0] : vector<5x1xf32> to vector<1xf32>
    %826 = vector.shape_cast %825 : vector<1xf32> to vector<1x1xf32>
    %c0_587 = arith.constant 0 : index
    %c0_588 = arith.constant 0 : index
    %827 = vector.load %arg22[%c0_587, %c0_588] : memref<1x1xf32, #tpu.memory_space<vmem>>, vector<1x1xf32>
    %828 = arith.addf %826, %827 : vector<1x1xf32>
    %829 = vector.shape_cast %828 : vector<1x1xf32> to vector<1x1x1xf32>
    %830 = vector.broadcast %829 : vector<1x1x1xf32> to vector<1x8x128xf32>
    %c0_589 = arith.constant 0 : index
    %c0_590 = arith.constant 0 : index
    %c0_591 = arith.constant 0 : index
    %831 = vector.load %arg23[%c0_589, %c0_590, %c0_591] : memref<1x8x128xf32, #tpu.memory_space<vmem>>, vector<1x8x128xf32>
    tpu.vector_store %arg23[%c0_589, %c0_590, %c0_591], %830 {strides = array<i32>} : memref<1x8x128xf32, #tpu.memory_space<vmem>>, vector<1x8x128xf32>,
    return
  }
  func.func @transform_0(%arg0: i32) -> (i32, i32, i32) {
    %c0_i32 = arith.constant 0 : i32
    %c0_i32_0 = arith.constant 0 : i32
    %c0_i32_1 = arith.constant 0 : i32
    return %arg0, %c0_i32, %c0_i32_0 : i32, i32, i32
  }
  func.func @transform_1(%arg0: i32) -> (i32, i32, i32) {
    %c0_i32 = arith.constant 0 : i32
    %c0_i32_0 = arith.constant 0 : i32
    %c0_i32_1 = arith.constant 0 : i32
    return %arg0, %c0_i32, %c0_i32_0 : i32, i32, i32
  }
  func.func @transform_2(%arg0: i32) -> (i32, i32) {
    %c0_i32 = arith.constant 0 : i32
    %c0_i32_0 = arith.constant 0 : i32
    %c0_i32_1 = arith.constant 0 : i32
    return %c0_i32, %c0_i32_0 : i32, i32
  }
  func.func @transform_3(%arg0: i32) -> (i32, i32) {
    %c0_i32 = arith.constant 0 : i32
    %c0_i32_0 = arith.constant 0 : i32
    %c0_i32_1 = arith.constant 0 : i32
    return %c0_i32, %c0_i32_0 : i32, i32
  }
  func.func @transform_4(%arg0: i32) -> (i32, i32, i32) {
    %c0_i32 = arith.constant 0 : i32
    %c0_i32_0 = arith.constant 0 : i32
    %c0_i32_1 = arith.constant 0 : i32
    %c0_i32_2 = arith.constant 0 : i32
    return %c0_i32, %c0_i32_0, %c0_i32_1 : i32, i32, i32
  }
  func.func @transform_5(%arg0: i32) -> (i32, i32) {
    %c0_i32 = arith.constant 0 : i32
    %c0_i32_0 = arith.constant 0 : i32
    %c0_i32_1 = arith.constant 0 : i32
    return %c0_i32, %c0_i32_0 : i32, i32
  }
  func.func @transform_6(%arg0: i32) -> (i32, i32, i32, i32) {
    %c0_i32 = arith.constant 0 : i32
    %c0_i32_0 = arith.constant 0 : i32
    %c0_i32_1 = arith.constant 0 : i32
    %c0_i32_2 = arith.constant 0 : i32
    %c0_i32_3 = arith.constant 0 : i32
    return %c0_i32, %c0_i32_0, %c0_i32_1, %c0_i32_2 : i32, i32, i32, i32
  }
  func.func @transform_7(%arg0: i32) -> (i32, i32, i32, i32) {
    %c0_i32 = arith.constant 0 : i32
    %c0_i32_0 = arith.constant 0 : i32
    %c0_i32_1 = arith.constant 0 : i32
    %c0_i32_2 = arith.constant 0 : i32
    %c0_i32_3 = arith.constant 0 : i32
    return %c0_i32, %c0_i32_0, %c0_i32_1, %c0_i32_2 : i32, i32, i32, i32
  }
  func.func @transform_8(%arg0: i32) -> (i32, i32, i32, i32) {
    %c0_i32 = arith.constant 0 : i32
    %c0_i32_0 = arith.constant 0 : i32
    %c0_i32_1 = arith.constant 0 : i32
    %c0_i32_2 = arith.constant 0 : i32
    %c0_i32_3 = arith.constant 0 : i32
    return %c0_i32, %c0_i32_0, %c0_i32_1, %c0_i32_2 : i32, i32, i32, i32
  }
  func.func @transform_9(%arg0: i32) -> (i32, i32, i32, i32) {
    %c0_i32 = arith.constant 0 : i32
    %c0_i32_0 = arith.constant 0 : i32
    %c0_i32_1 = arith.constant 0 : i32
    %c0_i32_2 = arith.constant 0 : i32
    %c0_i32_3 = arith.constant 0 : i32
    return %c0_i32, %c0_i32_0, %c0_i32_1, %c0_i32_2 : i32, i32, i32, i32
  }
  func.func @transform_10(%arg0: i32) -> (i32, i32, i32, i32) {
    %c0_i32 = arith.constant 0 : i32
    %c0_i32_0 = arith.constant 0 : i32
    %c0_i32_1 = arith.constant 0 : i32
    %c0_i32_2 = arith.constant 0 : i32
    %c0_i32_3 = arith.constant 0 : i32
    return %c0_i32, %c0_i32_0, %c0_i32_1, %c0_i32_2 : i32, i32, i32, i32
  }
  func.func @transform_11(%arg0: i32) -> (i32, i32, i32, i32) {
    %c0_i32 = arith.constant 0 : i32
    %c0_i32_0 = arith.constant 0 : i32
    %c0_i32_1 = arith.constant 0 : i32
    %c0_i32_2 = arith.constant 0 : i32
    %c0_i32_3 = arith.constant 0 : i32
    return %c0_i32, %c0_i32_0, %c0_i32_1, %c0_i32_2 : i32, i32, i32, i32
  }
  func.func @transform_12(%arg0: i32) -> (i32, i32, i32, i32) {
    %c0_i32 = arith.constant 0 : i32
    %c0_i32_0 = arith.constant 0 : i32
    %c0_i32_1 = arith.constant 0 : i32
    %c0_i32_2 = arith.constant 0 : i32
    %c0_i32_3 = arith.constant 0 : i32
    return %c0_i32, %c0_i32_0, %c0_i32_1, %c0_i32_2 : i32, i32, i32, i32
  }
  func.func @transform_13(%arg0: i32) -> (i32, i32, i32) {
    %c0_i32 = arith.constant 0 : i32
    %c0_i32_0 = arith.constant 0 : i32
    %c0_i32_1 = arith.constant 0 : i32
    %c0_i32_2 = arith.constant 0 : i32
    return %c0_i32, %c0_i32_0, %c0_i32_1 : i32, i32, i32
  }
  func.func @transform_14(%arg0: i32) -> (i32, i32, i32) {
    %c0_i32 = arith.constant 0 : i32
    %c0_i32_0 = arith.constant 0 : i32
    %c0_i32_1 = arith.constant 0 : i32
    %c0_i32_2 = arith.constant 0 : i32
    return %c0_i32, %c0_i32_0, %c0_i32_1 : i32, i32, i32
  }
  func.func @transform_15(%arg0: i32) -> (i32, i32, i32) {
    %c0_i32 = arith.constant 0 : i32
    %c0_i32_0 = arith.constant 0 : i32
    %c0_i32_1 = arith.constant 0 : i32
    %c0_i32_2 = arith.constant 0 : i32
    return %c0_i32, %c0_i32_0, %c0_i32_1 : i32, i32, i32
  }
  func.func @transform_16(%arg0: i32) -> (i32, i32, i32) {
    %c0_i32 = arith.constant 0 : i32
    %c0_i32_0 = arith.constant 0 : i32
    %c0_i32_1 = arith.constant 0 : i32
    %c0_i32_2 = arith.constant 0 : i32
    return %c0_i32, %c0_i32_0, %c0_i32_1 : i32, i32, i32
  }
  func.func @transform_17(%arg0: i32) -> (i32, i32, i32) {
    %c0_i32 = arith.constant 0 : i32
    %c0_i32_0 = arith.constant 0 : i32
    %c0_i32_1 = arith.constant 0 : i32
    %c0_i32_2 = arith.constant 0 : i32
    return %c0_i32, %c0_i32_0, %c0_i32_1 : i32, i32, i32
  }
  func.func @transform_18(%arg0: i32) -> (i32, i32, i32) {
    %c0_i32 = arith.constant 0 : i32
    %c0_i32_0 = arith.constant 0 : i32
    %c0_i32_1 = arith.constant 0 : i32
    %c0_i32_2 = arith.constant 0 : i32
    return %c0_i32, %c0_i32_0, %c0_i32_1 : i32, i32, i32
  }
  func.func @transform_19(%arg0: i32) -> (i32, i32, i32) {
    %c0_i32 = arith.constant 0 : i32
    %c0_i32_0 = arith.constant 0 : i32
    %c0_i32_1 = arith.constant 0 : i32
    %c0_i32_2 = arith.constant 0 : i32
    return %c0_i32, %c0_i32_0, %c0_i32_1 : i32, i32, i32
  }
  func.func @transform_20(%arg0: i32) -> (i32, i32) {
    %c0_i32 = arith.constant 0 : i32
    %c0_i32_0 = arith.constant 0 : i32
    %c0_i32_1 = arith.constant 0 : i32
    return %c0_i32, %c0_i32_0 : i32, i32
  }
  func.func @transform_21(%arg0: i32) -> (i32, i32) {
    %c0_i32 = arith.constant 0 : i32
    %c0_i32_0 = arith.constant 0 : i32
    %c0_i32_1 = arith.constant 0 : i32
    return %c0_i32, %c0_i32_0 : i32, i32
  }
  func.func @transform_22(%arg0: i32) -> (i32, i32, i32) {
    %c0_i32 = arith.constant 0 : i32
    %c0_i32_0 = arith.constant 0 : i32
    %c0_i32_1 = arith.constant 0 : i32
    return %arg0, %c0_i32, %c0_i32_0 : i32, i32, i32
  }
}

</mosaic_0001>

<bundles_post_ra>
// kernel: promoter_net_forward.1
= control target key start
LH: loop header
LB: loop body
LE: loop exit
PB: predicated region body
PF: predicated region fallthrough
CT: control target
= control target key end

     0   :  { %s17235_s29 = smov 0   ;;  %s21827_s0 = inlined_call_operand.vmem [shape: bf16[2,32,80], index: 0, kind: input, shape index: {}]   ;;  %s21828_s1 = inlined_call_operand.vmem [shape: bf16[2,32,80], index: 1, kind: input, shape index: {}]   ;;  %s21829_s2 = inlined_call_operand.vmem [shape: bf16[80,64], index: 2, kind: input, shape index: {}]   ;;  %s21830_s3 = inlined_call_operand.vmem [shape: f32[1,64], index: 3, kind: input, shape index: {}]   ;;  %s21831_s4 = inlined_call_operand.vmem [shape: bf16[6,64,128], index: 4, kind: input, shape index: {}]   ;;  %s21832_s5 = inlined_call_operand.vmem [shape: f32[1,128], index: 5, kind: input, shape index: {}]   ;;  %s21833_s6 = inlined_call_operand.vmem [shape: bf16[3,4,256,64], index: 6, kind: input, shape index: {}]   ;;  %s21834_s7 = inlined_call_operand.vmem [shape: f32[3,4,1,64], index: 7, kind: input, shape index: {}]   ;;  %s21835_s8 = inlined_call_operand.vmem [shape: bf16[3,4,256,64], index: 8, kind: input, shape index: {}]   ;;  %s21836_s9 = inlined_call_operand.vmem [shape: f32[3,4,1,64], index: 9, kind: input, shape index: {}]   ;;  %s21837_s10 = inlined_call_operand.vmem [shape: bf16[3,4,256,64], index: 10, kind: input, shape index: {}]   ;;  %s21838_s11 = inlined_call_operand.vmem [shape: f32[3,4,1,64], index: 11, kind: input, shape index: {}]   ;;  %s21839_s12 = inlined_call_operand.vmem [shape: bf16[3,4,64,256], index: 12, kind: input, shape index: {}]   ;;  %s21840_s13 = inlined_call_operand.vmem [shape: f32[3,1,256], index: 13, kind: input, shape index: {}]   ;;  %s21841_s14 = inlined_call_operand.vmem [shape: f32[3,2,256], index: 14, kind: input, shape index: {}]   ;;  %s21842_s15 = inlined_call_operand.vmem [shape: bf16[3,256,256], index: 15, kind: input, shape index: {}]   ;;  %s21843_s16 = inlined_call_operand.vmem [shape: f32[3,1,256], index: 16, kind: input, shape index: {}]   ;;  %s21844_s17 = inlined_call_operand.vmem [shape: bf16[3,256,256], index: 17, kind: input, shape index: {}]   ;;  %s21845_s18 = inlined_call_operand.vmem [shape: f32[3,1,256], index: 18, kind: input, shape index: {}]   ;;  %s21846_s19 = inlined_call_operand.vmem [shape: f32[3,2,256], index: 19, kind: input, shape index: {}]   ;;  %s21847_s20 = inlined_call_operand.vmem [shape: f32[5,256], index: 20, kind: input, shape index: {}]   ;;  %s21848_s21 = inlined_call_operand.<no memory space> [shape: f32[1,1], index: 21, kind: input, shape index: {}]   ;;  %s21849_s22 = inlined_call_operand.vmem [shape: f32[2,8,128], index: 22, kind: output, shape index: {}]  }
   0x1   :  { %21854 = sst [smem:[#allocation3_spill]] %s21827_s0  ;;  %v27_v0 = vstv %s21848_s21 }
   0x2   :  { %21855 = sst [smem:[#allocation4_spill]] %s21828_s1  ;;  %28 = vst [vmem:[#allocation2] sm:$0x1] %v27_v0 }
   0x3   :  { %21856 = sst [smem:[#allocation5_spill]] %s21829_s2 }
   0x4   :  { %21857 = sst [smem:[#allocation6_spill]] %s21830_s3 }
   0x5   :  { %21858 = sst [smem:[#allocation7_spill]] %s21831_s4 }
   0x6   :  { %21859 = sst [smem:[#allocation8_spill]] %s21832_s5 }
   0x7   :  { %21860 = sst [smem:[#allocation9_spill]] %s21833_s6 }
   0x8 LB: > { %s11082_s30 = sadd.s32 4294967295, %s17113_s29   ;;  %p11086_p0 = scmp.ge.s32.totalorder %s17113_s29, 1  ;;  %s17113_s29 = sphi %s17235_s29, %s34_s29  }
   0x9   : > { %p624_p1 = scmp.lt.s32.totalorder %s17113_s29, 3 }
   0xb   : > { %p625_p2 = pnand %p11086_p0, %p624_p1 }
   0xc   : > { %s21861_s23 = sld [smem:[#allocation5_spill]] (!%p625_p2)  ;;  %p690_p3 = scmp.lt.s32.totalorder (!%p625_p2), %s11082_s30, 1 }
   0xd   : > { %628 = sbr.rel (%p625_p2) target bundleno = 10389 (0x2895), region = 108  ;;  %s21862_s6 = sld [smem:[#allocation7_spill]] (!%p625_p2) }
   0xe   : > { %s21863_s1 = sld [smem:[#allocation3_spill]] (!%p625_p2) }
   0xf   : > { %s21864_s2 = sld [smem:[#allocation4_spill]] (!%p625_p2) }
  0x10   : > { %s21865_s26 = sld [smem:[#allocation6_spill]] (!%p625_p2) }
  0x11   : > { %s21866_s0 = sld [smem:[#allocation9_spill]] (!%p625_p2) }
  0x12   : > { %v16007_v1 = vld [vmem:[%s21861_s23 + $0x20] sm:$0xff]  ;;  %v16006_v2 = vld [vmem:[%s21861_s23 + $0x18] sm:$0xff]  ;;  %s21869_s30 = smov (!%p690_p3, %s11082_s30), 1  ;;  %v16005_v5 = vld [vmem:[%s21861_s23 + $0x10] sm:$0xff]  ;;  %vm763_vm0 = vcmask 654336   ;;  %vm937_vm1 = vcmask 523264  }
  0x13   : > { %773 = vmatpush.bf16.msra.mxu0 %v16007_v1  ;;  %812 = vmatpush.bf16.msra.mxu1 %v16007_v1  ;;  %v16974_v3 = vld [vmem:[%s21862_s6 + $0x18] sm:$0xff]   ;;  %v16973_v7 = vld [vmem:[%s21862_s6 + $0x10] sm:$0xff]   ;;  %v16004_v12 = vld [vmem:[%s21861_s23 + $0x8] sm:$0xff]  ;;  %s16001_s5 = sshll.u32 %s21869_s30, 4  ;;  %s21867_s28 = sld [smem:[#allocation8_spill]]  ;;  %vm2020_vm2 = vcmask 1044480  }
  0x14   : > { %v16978_v4 = vld [vmem:[%s21862_s6 + $0x38] sm:$0xff]   ;;  %v17260_v6 = vunpack.c.h.bf16 %v16974_v3  ;;  %v17265_v8 = vunpack.c.l.bf16 %v16974_v3  ;;  %v16977_v11 = vld [vmem:[%s21862_s6 + $0x30] sm:$0xff]   ;;  %v17279_v13 = vunpack.c.h.bf16 %v16973_v7  ;;  %v16972_v14 = vld [vmem:[%s21862_s6 + $0x8] sm:$0xff]   ;;  %v17294_v18 = vunpack.c.l.bf16 %v16973_v7  ;;  %s17305_s24 = scalar_lea.vmem %s21863_s1, %s16001_s5  ;;  %s11091_s25 = sshll.u32 %s21869_s30, 3 }
  0x15   : > { %v17267_v9 = vunpack.c.h.bf16 %v16978_v4  ;;  %v17269_v10 = vunpack.c.l.bf16 %v16978_v4  ;;  %v17285_v15 = vunpack.c.h.bf16 %v16977_v11  ;;  %v16986_v16 = vld [vmem:[%s21862_s6 + $0x78] sm:$0xff]   ;;  %v16976_v17 = vld [vmem:[%s21862_s6 + $0x28] sm:$0xff]   ;;  %v17297_v19 = vunpack.c.l.bf16 %v16977_v11  ;;  %v16003_v20 = vld [vmem:[%s21861_s23] sm:$0xff]  ;;  %s17310_s27 = scalar_lea.vmem %s21864_s2, %s16001_s5 }
  0x16   : > { %972 = vmatpush.msra.mxu3 %v17260_v6  ;;  %v17313_v21 = vunpack.c.h.bf16 %v16972_v14  ;;  %v16877_v22 = vld [vmem:[%s21862_s6] sm:$0xff]   ;;  %v17319_v23 = vunpack.c.h.bf16 %v16976_v17  ;;  %v17327_v27 = vunpack.c.l.bf16 %v16972_v14  ;;  %v17329_v28 = vunpack.c.h.bf16 %v16986_v16  ;;  %v16985_v29 = vld [vmem:[%s21862_s6 + $0x70] sm:$0xff]   ;;  %v16984_v36 = vld [vmem:[%s21862_s6 + $0x68] sm:$0xff]  }
  0x17   : > { %774 = vmatpush.bf16.msra.mxu0 %v16006_v2  ;;  %813 = vmatpush.bf16.msra.mxu1 %v16006_v2  ;;  %v16975_v24 = vld [vmem:[%s21862_s6 + $0x20] sm:$0xff]   ;;  %v17335_v30 = vunpack.c.l.bf16 %v16976_v17  ;;  %v17339_v31 = vunpack.c.h.bf16 %v16877_v22  ;;  %v17341_v32 = vunpack.c.l.bf16 %v16986_v16  ;;  %v17347_v34 = vunpack.c.l.bf16 %v16877_v22  ;;  %v16009_v43 = vld [vmem:[%s17305_s24 + $0x8] sm:$0xff]  ;;  %v16994_v46 = vld [vmem:[%s21862_s6 + $0xb8] sm:$0xff]  }
  0x18   : > { %949 = vmatpush.msra.mxu2 %v17267_v9  ;;  %973 = vmatpush.msra.mxu3 %v17265_v8  ;;  %v16008_v25 = vld [vmem:[%s17305_s24] sm:$0xff]  ;;  %v17345_v33 = vunpack.c.h.bf16 %v16975_v24  ;;  %v17349_v35 = vunpack.c.h.bf16 %v16985_v29  ;;  %v17360_v37 = vunpack.c.l.bf16 %v16985_v29  ;;  %v17362_v38 = vunpack.c.l.bf16 %v16975_v24  ;;  %v16011_v44 = vld [vmem:[%s17310_s27 + $0x8] sm:$0xff]  ;;  %v16993_v49 = vld [vmem:[%s21862_s6 + $0xb0] sm:$0xff]   ;;  %s703_s24 = scalar_lea.vmem %s21849_s22, %s11091_s25 }
  0x19   : > { %v16010_v26 = vld [vmem:[%s17310_s27] sm:$0xff]  ;;  %v17368_v39 = vunpack.c.h.bf16 %v16984_v36  ;;  %v17376_v41 = vunpack.c.l.bf16 %v16984_v36  ;;  %v17412_v47 = vunpack.c.h.bf16 %v16994_v46  ;;  %v17417_v48 = vunpack.c.l.bf16 %v16994_v46  ;;  %v16992_v52 = vld [vmem:[%s21862_s6 + $0xa8] sm:$0xff]   ;;  %v16982_v63 = vld [vmem:[%s21862_s6 + $0x58] sm:$0xff]  }
  0x1a   : > { %950 = vmatpush.msra.mxu2 %v17269_v10  ;;  %974 = vmatpush.msra.mxu3 %v17279_v13  ;;  %v16983_v40 = vld [vmem:[%s21862_s6 + $0x60] sm:$0xff]   ;;  %v17424_v50 = vunpack.c.h.bf16 %v16993_v49  ;;  %v17429_v51 = vunpack.c.l.bf16 %v16993_v49  ;;  %v17435_v53 = vunpack.c.h.bf16 %v16992_v52  ;;  %v17439_v54 = vunpack.c.l.bf16 %v16992_v52  ;;  %v16981_v4 = vld [vmem:[%s21862_s6 + $0x50] sm:$0xff]   ;;  %v16990_v49 = vld [vmem:[%s21862_s6 + $0x98] sm:$0xff]  }
  0x1b   : > { %775 = vmatpush.bf16.msra.mxu0 %v16005_v5  ;;  %814 = vmatpush.bf16.msra.mxu1 %v16005_v5  ;;  %v17382_v42 = vunpack.c.h.bf16 %v16983_v40  ;;  %v17407_v45 = vunpack.c.l.bf16 %v16983_v40  ;;  %v16991_v55 = vld [vmem:[%s21862_s6 + $0xa0] sm:$0xff]   ;;  %v17465_v2 = vunpack.c.h.bf16 %v16982_v63  ;;  %v17472_v5 = vunpack.c.l.bf16 %v16982_v63 }
  0x1c   : > { %951 = vmatpush.msra.mxu2 %v17285_v15  ;;  %975 = vmatpush.msra.mxu3 %v17294_v18  ;;  %v17446_v56 = vunpack.c.h.bf16 %v16991_v55  ;;  %v17450_v57 = vunpack.c.l.bf16 %v16991_v55  ;;  %v17458_v58 = vld [vmem:[%s21865_s26] ss:$0 sm:$0xff]  ;;  %v17478_v14 = vunpack.c.h.bf16 %v16981_v4  ;;  %v17489_v22 = vunpack.c.l.bf16 %v16981_v4 }
  0x1d   : > { %v16979_v36 = vld [vmem:[%s21862_s6 + $0x40] sm:$0xff]   ;;  %v17524_v55 = vunpack.c.h.bf16 %v16990_v49  ;;  %vm1991_vm3 = vcmask 36864   ;;  %vm2016_vm8 = vcmask 39936  }
  0x1e   : > { %952 = vmatpush.msra.mxu2 %v17297_v19  ;;  %976 = vmatpush.msra.mxu3 %v17313_v21  ;;  %v17513_v46 = vunpack.c.h.bf16 %v16979_v36  ;;  %v17522_v52 = vunpack.c.l.bf16 %v16979_v36 }
  0x1f   : > { %776 = vmatpush.bf16.msra.mxu0 %v16004_v12  ;;  %815 = vmatpush.bf16.msra.mxu1 %v16004_v12 }
  0x20   : > { %953 = vmatpush.msra.mxu2 %v17319_v23  ;;  %977 = vmatpush.msra.mxu3 %v17327_v27 }
  0x22   : > { %954 = vmatpush.msra.mxu2 %v17335_v30  ;;  %978 = vmatpush.msra.mxu3 %v17339_v31 }
  0x23   : > { %777 = vmatpush.bf16.msra.mxu0 %v16003_v20  ;;  %816 = vmatpush.bf16.msra.mxu1 %v16003_v20  ;;  %v16980_v20 = vld [vmem:[%s21862_s6 + $0x48] sm:$0xff]  }
  0x24   : > { %955 = vmatpush.msra.mxu2 %v17345_v33  ;;  %979 = vmatpush.msra.mxu3 %v17347_v34  ;;  %v17502_v40 = vunpack.c.l.bf16 %v16980_v20 }
  0x26   : > { %11120 = vmatmul.msk.bf16.vlgmr.msra.gmra.mxu0 %vm763_vm0, %v16008_v25  ;;  %11130 = vmatmul.msk.bf16.vlgmr.msra.gmra.mxu1 %vm763_vm0, %v16010_v26  ;;  %v17493_v26 = vunpack.c.h.bf16 %v16980_v20 }
  0x27   : > { %1104 = vmatpush.msrb.mxu1 %v17329_v28  ;;  %1080 = vmatpush.msrb.mxu0 %v17329_v28 }
  0x28   : > { %1015 = vmatpush.msrb.mxu3 %v17260_v6  ;;  %956 = vmatpush.msra.mxu2 %v17362_v38 }
  0x29   : > { %1105 = vmatpush.msrb.mxu1 %v17341_v32  ;;  %1081 = vmatpush.msrb.mxu0 %v17341_v32 }
  0x2a   : > { %1016 = vmatpush.msrb.mxu3 %v17265_v8  ;;  %995 = vmatpush.msrb.mxu2 %v17267_v9 }
  0x2b   : > { %1106 = vmatpush.msrb.mxu1 %v17349_v35  ;;  %1082 = vmatpush.msrb.mxu0 %v17349_v35 }
  0x2c   : > { %1017 = vmatpush.msrb.mxu3 %v17279_v13  ;;  %996 = vmatpush.msrb.mxu2 %v17269_v10 }
  0x2d   : > { %1107 = vmatpush.msrb.mxu1 %v17360_v37  ;;  %1083 = vmatpush.msrb.mxu0 %v17360_v37 }
  0x2e   : > { %1018 = vmatpush.msrb.mxu3 %v17294_v18  ;;  %997 = vmatpush.msrb.mxu2 %v17285_v15 }
  0x2f   : > { %1108 = vmatpush.msrb.mxu1 %v17368_v39  ;;  %1084 = vmatpush.msrb.mxu0 %v17368_v39 }
  0x30   : > { %1019 = vmatpush.msrb.mxu3 %v17313_v21  ;;  %998 = vmatpush.msrb.mxu2 %v17297_v19 }
  0x31   : > { %1109 = vmatpush.msrb.mxu1 %v17376_v41  ;;  %1085 = vmatpush.msrb.mxu0 %v17376_v41 }
  0x32   : > { %1020 = vmatpush.msrb.mxu3 %v17327_v27  ;;  %999 = vmatpush.msrb.mxu2 %v17319_v23 }
  0x33   : > { %1110 = vmatpush.msrb.mxu1 %v17382_v42  ;;  %1086 = vmatpush.msrb.mxu0 %v17382_v42 }
  0x34   : > { %1021 = vmatpush.msrb.mxu3 %v17339_v31  ;;  %1000 = vmatpush.msrb.mxu2 %v17335_v30 }
  0x35   : > { %1111 = vmatpush.msrb.mxu1 %v17407_v45  ;;  %1087 = vmatpush.msrb.mxu0 %v17407_v45 }
  0x36   : > { %11121 = vmatmul.msk.bf16.gmra.mxu0 %vm763_vm0, %v16009_v43  ;;  %11131 = vmatmul.msk.bf16.gmra.mxu1 %vm763_vm0, %v16011_v44 }
  0x37   : > { %1022 = vmatpush.msrb.mxu3 %v17347_v34  ;;  %1001 = vmatpush.msrb.mxu2 %v17345_v33 }
  0x38   : > { %1194 = vmatpush.msra.mxu1 %v17412_v47  ;;  %1170 = vmatpush.msra.mxu0 %v17412_v47 }
  0x39   : > { %1002 = vmatpush.msrb.mxu2 %v17362_v38 }
  0x3a   : > { %1195 = vmatpush.msra.mxu1 %v17417_v48  ;;  %1171 = vmatpush.msra.mxu0 %v17417_v48 }
  0x3c   : > { %1196 = vmatpush.msra.mxu1 %v17424_v50  ;;  %1172 = vmatpush.msra.mxu0 %v17424_v50 }
  0x3e   : > { %1197 = vmatpush.msra.mxu1 %v17429_v51  ;;  %1173 = vmatpush.msra.mxu0 %v17429_v51 }
  0x40   : > { %1198 = vmatpush.msra.mxu1 %v17435_v53  ;;  %1174 = vmatpush.msra.mxu0 %v17435_v53 }
  0x42   : > { %1199 = vmatpush.msra.mxu1 %v17439_v54  ;;  %1175 = vmatpush.msra.mxu0 %v17439_v54 }
  0x44   : > { %1200 = vmatpush.msra.mxu1 %v17446_v56  ;;  %1176 = vmatpush.msra.mxu0 %v17446_v56 }
  0x46   : > { %1201 = vmatpush.msra.mxu1 %v17450_v57  ;;  %1177 = vmatpush.msra.mxu0 %v17450_v57 }
  0xa3   : > { %v779_v59 = vpop.f32.mrf.mxu0  ;;  %v818_v60 = vpop.f32.mrf.mxu1 }
  0xa4   : > { %v780_v61 = vadd.f32 %v17458_v58, %v779_v59  ;;  %v819_v62 = vadd.f32 %v17458_v58, %v818_v60  ;;  %v16989_v59 = vld [vmem:[%s21862_s6 + $0x90] sm:$0xff]  }
  0xa5   : > { %v17543_v63 = vunpack.c.h.bf16 %v16989_v59 }
  0xa6   : > { %v828_v0 = vmax.f32 %v780_v61, 0.0  ;;  %v832_v1 = vmax.f32 %v819_v62, 0.0  ;;  %v17534_v61 = vunpack.c.l.bf16 %v16990_v49 }
  0xa8   : > { %v17467_v3 = vmax.f32 %v828_v0, %v832_v1  ;;  %v16988_v0 = vld [vmem:[%s21862_s6 + $0x88] sm:$0xff]   ;;  %v17552_v1 = vunpack.c.l.bf16 %v16989_v59 }
  0xa9   : > { %v17557_v4 = vunpack.c.h.bf16 %v16988_v0 }
  0xaa   : > { %11133 = vmatmul.msk.f32.vlgmr.msra.gmra.mxu3 %vm937_vm1, %v17467_v3  ;;  %v1093_v7 = vrot.slane %v17467_v3, 2  ;;  %v1183_v44 = vrot.slane %v17467_v3, 3  ;;  %v984_v60 = vrot.slane %v17467_v3, 1  ;;  %v16046_v3 = vld [vmem:[%s21837_s10 + $0x10] sm:$0xff] }
  0xab   : > { %1059 = vmatpush.msra.mxu3 %v17465_v2  ;;  %v781_v11 = vpop.f32.mrf.mxu0  ;;  %v820_v12 = vpop.f32.mrf.mxu1 }
  0xac   : > { %v782_v16 = vadd.f32 %v17458_v58, %v781_v11  ;;  %v821_v17 = vadd.f32 %v17458_v58, %v820_v12  ;;  %11139 = vmatmul.msk.f32.vlgmr.msrb.gmra.mxu1 %vm937_vm1, %v1093_v7  ;;  %v16987_v11 = vld [vmem:[%s21862_s6 + $0x80] sm:$0xff]   ;;  %v17566_v12 = vunpack.c.l.bf16 %v16988_v0 }
  0xad   : > { %1060 = vmatpush.msra.mxu3 %v17472_v5  ;;  %1292 = vmatpush.msrb.mxu1 %v17260_v6  ;;  %v17573_v20 = vunpack.c.h.bf16 %v16987_v11 }
  0xae   : > { %v829_v24 = vmax.f32 %v782_v16, 0.0  ;;  %v833_v25 = vmax.f32 %v821_v17, 0.0 }
  0xaf   : > { %1061 = vmatpush.msra.mxu3 %v17478_v14  ;;  %1293 = vmatpush.msrb.mxu1 %v17265_v8 }
  0xb0   : > { %v17496_v29 = vmax.f32 %v829_v24, %v833_v25  ;;  %v17579_v24 = vunpack.c.l.bf16 %v16987_v11 }
  0xb1   : > { %1062 = vmatpush.msra.mxu3 %v17489_v22  ;;  %1294 = vmatpush.msrb.mxu1 %v17279_v13 }
  0xb2   : > { %11132 = vmatmul.msk.f32.vlgmr.msra.gmra.mxu2 %vm937_vm1, %v17496_v29  ;;  %11135 = vmatmul.msk.f32.vlgmr.msrb.gmra.mxu3 %vm937_vm1, %v17496_v29  ;;  %v1048_v43 = vrot.slane %v17496_v29, 1  ;;  %v1138_v62 = vrot.slane %v17496_v29, 2 }
  0xb3   : > { %1035 = vmatpush.msra.mxu2 %v17465_v2  ;;  %1063 = vmatpush.msra.mxu3 %v17493_v26  ;;  %v784_v16 = vpop.f32.mrf.mxu0  ;;  %v823_v17 = vpop.f32.mrf.mxu1 }
  0xb4   : > { %11138 = vmatmul.msk.f32.vlgmr.msrb.gmra.mxu0 %vm937_vm1, %v1048_v43  ;;  %11143 = vmatmul.msk.f32.vlgmr.msra.gmra.mxu1 %vm937_vm1, %v1183_v44  ;;  %v785_v25 = vadd.f32 %v17458_v58, %v784_v16  ;;  %v824_v29 = vadd.f32 %v17458_v58, %v823_v17 }
  0xb5   : > { %1036 = vmatpush.msra.mxu2 %v17472_v5  ;;  %1064 = vmatpush.msra.mxu3 %v17502_v40 }
  0xb6   : > { %1272 = vmatpush.msrb.mxu0 %v17267_v9  ;;  %1295 = vmatpush.msrb.mxu1 %v17294_v18  ;;  %v830_v44 = vmax.f32 %v785_v25, 0.0  ;;  %v834_v49 = vmax.f32 %v824_v29, 0.0 }
  0xb7   : > { %1037 = vmatpush.msra.mxu2 %v17478_v14  ;;  %1065 = vmatpush.msra.mxu3 %v17513_v46 }
  0xb8   : > { %1273 = vmatpush.msrb.mxu0 %v17269_v10  ;;  %1296 = vmatpush.msrb.mxu1 %v17313_v21  ;;  %v17605_v59 = vmax.f32 %v830_v44, %v834_v49  ;;  %v16020_v44 = vld [vmem:[%s21866_s0 + $0x40] sm:$0xff] }
  0xb9   : > { %1038 = vmatpush.msra.mxu2 %v17489_v22  ;;  %1066 = vmatpush.msra.mxu3 %v17522_v52 }
  0xba   : > { %11134 = vmatmul.msk.f32.vlgmr.msrb.gmra.mxu2 %vm937_vm1, %v984_v60  ;;  %11137 = vmatmul.msk.f32.vlgmr.msra.gmra.mxu3 %vm937_vm1, %v1048_v43 }
  0xbb   : > { %1149 = vmatpush.msrb.mxu3 %v17524_v55  ;;  %1039 = vmatpush.msra.mxu2 %v17493_v26  ;;  %v786_v36 = vpop.f32.mrf.mxu0  ;;  %v825_v43 = vpop.f32.mrf.mxu1 }
  0xbc   : > { %11142 = vmatmul.msk.f32.vlgmr.msra.gmra.mxu0 %vm937_vm1, %v1138_v62  ;;  %1297 = vmatpush.msrb.mxu1 %v17327_v27 }
  0xbd   : > { %1150 = vmatpush.msrb.mxu3 %v17534_v61  ;;  %1040 = vmatpush.msra.mxu2 %v17502_v40 }
  0xbe   : > { %1274 = vmatpush.msrb.mxu0 %v17285_v15  ;;  %1298 = vmatpush.msrb.mxu1 %v17339_v31 }
  0xbf   : > { %1151 = vmatpush.msrb.mxu3 %v17543_v63  ;;  %1041 = vmatpush.msra.mxu2 %v17513_v46 }
  0xc0   : > { %1275 = vmatpush.msrb.mxu0 %v17297_v19  ;;  %1299 = vmatpush.msrb.mxu1 %v17347_v34 }
  0xc1   : > { %1152 = vmatpush.msrb.mxu3 %v17552_v1  ;;  %1042 = vmatpush.msra.mxu2 %v17522_v52 }
  0xc2   : > { %1276 = vmatpush.msrb.mxu0 %v17319_v23  ;;  %11136 = vmatmul.msk.f32.vlgmr.msra.gmra.mxu2 %vm937_vm1, %v984_v60 }
  0xc3   : > { %1125 = vmatpush.msrb.mxu2 %v17524_v55  ;;  %1153 = vmatpush.msrb.mxu3 %v17557_v4 }
  0xc4   : > { %1277 = vmatpush.msrb.mxu0 %v17335_v30  ;;  %1381 = vmatpush.msra.mxu1 %v17329_v28 }
  0xc5   : > { %1126 = vmatpush.msrb.mxu2 %v17534_v61  ;;  %1154 = vmatpush.msrb.mxu3 %v17566_v12 }
  0xc6   : > { %1278 = vmatpush.msrb.mxu0 %v17345_v33  ;;  %1382 = vmatpush.msra.mxu1 %v17341_v32 }
  0xc7   : > { %1127 = vmatpush.msrb.mxu2 %v17543_v63  ;;  %1155 = vmatpush.msrb.mxu3 %v17573_v20 }
  0xc8   : > { %1279 = vmatpush.msrb.mxu0 %v17362_v38  ;;  %1383 = vmatpush.msra.mxu1 %v17349_v35 }
  0xc9   : > { %1128 = vmatpush.msrb.mxu2 %v17552_v1  ;;  %1156 = vmatpush.msrb.mxu3 %v17579_v24 }
  0xca   : > { %11141 = vmatmul.msk.f32.vlgmr.msrb.gmra.mxu3 %vm937_vm1, %v1138_v62  ;;  %1357 = vmatpush.msra.mxu0 %v17329_v28  ;;  %v826_v28 = vadd.f32 %v17458_v58, %v825_v43  ;;  %v16023_v62 = vld [vmem:[%s21866_s0 + $0x58] sm:$0xff]  ;;  %v17807_v43 = vld [vmem:[%s21867_s28] ss:$0 sm:$0xff] }
  0xcb   : > { %1249 = vmatpush.msra.mxu3 %v17260_v6  ;;  %1129 = vmatpush.msrb.mxu2 %v17557_v4  ;;  %v787_v6 = vadd.f32 %v17458_v58, %v786_v36  ;;  %v16030_v58 = vld [vmem:[%s21835_s8 + $0x10] sm:$0xff] }
  0xcc   : > { %1358 = vmatpush.msra.mxu0 %v17341_v32  ;;  %1384 = vmatpush.msra.mxu1 %v17360_v37  ;;  %v835_v32 = vmax.f32 %v826_v28, 0.0 }
  0xcd   : > { %1250 = vmatpush.msra.mxu3 %v17265_v8  ;;  %1130 = vmatpush.msrb.mxu2 %v17566_v12  ;;  %v831_v8 = vmax.f32 %v787_v6, 0.0 }
  0xce   : > { %1359 = vmatpush.msra.mxu0 %v17349_v35  ;;  %1385 = vmatpush.msra.mxu1 %v17368_v39  ;;  %v16035_v35 = vld [vmem:[%s21835_s8 + $0x38] sm:$0xff] }
  0xcf   : > { %1251 = vmatpush.msra.mxu3 %v17279_v13  ;;  %1131 = vmatpush.msrb.mxu2 %v17573_v20  ;;  %v1261_v13 = vrot.slane %v17605_v59, 1 }
  0xd0   : > { %1360 = vmatpush.msra.mxu0 %v17360_v37  ;;  %1386 = vmatpush.msra.mxu1 %v17376_v41  ;;  %v16012_v37 = vld [vmem:[%s21866_s0] sm:$0xff] }
  0xd1   : > { %1252 = vmatpush.msra.mxu3 %v17294_v18  ;;  %1132 = vmatpush.msrb.mxu2 %v17579_v24  ;;  %v17622_v18 = vmax.f32 %v831_v8, %v835_v32 }
  0xd2   : > { %11140 = vmatmul.msk.f32.vlgmr.msrb.gmra.mxu2 %vm937_vm1, %v1093_v7  ;;  %1361 = vmatpush.msra.mxu0 %v17368_v39  ;;  %v16034_v39 = vld [vmem:[%s21835_s8 + $0x30] sm:$0xff]  ;;  %v16025_v7 = vld [vmem:[%s21866_s0 + $0x68] sm:$0xff] }
  0xd3   : > { %1226 = vmatpush.msra.mxu2 %v17267_v9  ;;  %1253 = vmatpush.msra.mxu3 %v17313_v21  ;;  %v1370_v9 = vrot.slane %v17605_v59, 2  ;;  %v16019_v21 = vld [vmem:[%s21866_s0 + $0x38] sm:$0xff] }
  0xd4   : > { %1362 = vmatpush.msra.mxu0 %v17376_v41  ;;  %1387 = vmatpush.msra.mxu1 %v17382_v42  ;;  %v16050_v41 = vld [vmem:[%s21837_s10 + $0x30] sm:$0xff] }
  0xd5   : > { %1227 = vmatpush.msra.mxu2 %v17269_v10  ;;  %1254 = vmatpush.msra.mxu3 %v17327_v27  ;;  %v1325_v10 = vrot.slane %v17622_v18, 1  ;;  %v16017_v27 = vld [vmem:[%s21866_s0 + $0x28] sm:$0xff] }
  0xd6   : > { %1363 = vmatpush.msra.mxu0 %v17382_v42  ;;  %11147 = vmatmul.msk.f32.vlgmr.msrb.gmra.mxu1 %vm937_vm1, %v17622_v18  ;;  %v16033_v42 = vld [vmem:[%s21835_s8 + $0x28] sm:$0xff] }
  0xd7   : > { %1228 = vmatpush.msra.mxu2 %v17285_v15  ;;  %1255 = vmatpush.msra.mxu3 %v17339_v31  ;;  %v1460_v15 = vrot.slane %v17605_v59, 3  ;;  %v16015_v31 = vld [vmem:[%s21866_s0 + $0x18] sm:$0xff] }
  0xd8   : > { %11146 = vmatmul.msk.f32.vlgmr.msrb.gmra.mxu0 %vm937_vm1, %v1261_v13  ;;  %1388 = vmatpush.msra.mxu1 %v17407_v45 }
  0xd9   : > { %1229 = vmatpush.msra.mxu2 %v17297_v19  ;;  %1256 = vmatpush.msra.mxu3 %v17347_v34  ;;  %v1415_v19 = vrot.slane %v17622_v18, 2  ;;  %v16013_v34 = vld [vmem:[%s21866_s0 + $0x8] sm:$0xff] }
  0xda   : > { %1364 = vmatpush.msra.mxu0 %v17407_v45  ;;  %1471 = vmatpush.msrb.mxu1 %v17412_v47 }
  0xdb   : > { %1336 = vmatpush.msrb.mxu3 %v17465_v2  ;;  %1230 = vmatpush.msra.mxu2 %v17319_v23  ;;  %v16018_v23 = vld [vmem:[%s21866_s0 + $0x30] sm:$0xff] }
  0xdc   : > { %1447 = vmatpush.msrb.mxu0 %v17412_v47  ;;  %1472 = vmatpush.msrb.mxu1 %v17417_v48  ;;  %v16049_v47 = vld [vmem:[%s21837_s10 + $0x28] sm:$0xff] }
  0xdd   : > { %1337 = vmatpush.msrb.mxu3 %v17472_v5  ;;  %1231 = vmatpush.msra.mxu2 %v17335_v30  ;;  %v16016_v30 = vld [vmem:[%s21866_s0 + $0x20] sm:$0xff] }
  0xde   : > { %1448 = vmatpush.msrb.mxu0 %v17417_v48  ;;  %1473 = vmatpush.msrb.mxu1 %v17424_v50  ;;  %v16032_v48 = vld [vmem:[%s21835_s8 + $0x20] sm:$0xff] }
  0xdf   : > { %1338 = vmatpush.msrb.mxu3 %v17478_v14  ;;  %1232 = vmatpush.msra.mxu2 %v17345_v33  ;;  %v16014_v33 = vld [vmem:[%s21866_s0 + $0x10] sm:$0xff] }
  0xe0   : > { %1449 = vmatpush.msrb.mxu0 %v17424_v50  ;;  %11145 = vmatmul.msk.f32.vlgmr.msra.gmra.mxu3 %vm937_vm1, %v17605_v59  ;;  %v16048_v50 = vld [vmem:[%s21837_s10 + $0x20] sm:$0xff]  ;;  %v16059_v59 = vld [vmem:[%s21837_s10 + $0x78] sm:$0xff] }
  0xe1   : > { %1339 = vmatpush.msrb.mxu3 %v17489_v22  ;;  %1233 = vmatpush.msra.mxu2 %v17362_v38  ;;  %v16051_v38 = vld [vmem:[%s21837_s10 + $0x38] sm:$0xff] }
  0xe2   : > { %1450 = vmatpush.msrb.mxu0 %v17429_v51  ;;  %1474 = vmatpush.msrb.mxu1 %v17429_v51  ;;  %v16031_v51 = vld [vmem:[%s21835_s8 + $0x18] sm:$0xff] }
  0xe3   : > { %1312 = vmatpush.msrb.mxu2 %v17465_v2  ;;  %1340 = vmatpush.msrb.mxu3 %v17493_v26  ;;  %v16026_v2 = vld [vmem:[%s21866_s0 + $0x70] sm:$0xff] }
  0xe4   : > { %11150 = vmatmul.msk.f32.vlgmr.msra.gmra.mxu0 %vm937_vm1, %v1325_v10  ;;  %11151 = vmatmul.msk.f32.vlgmr.msra.gmra.mxu1 %vm937_vm1, %v1370_v9 }
  0xe5   : > { %1451 = vmatpush.msrb.mxu0 %v17435_v53  ;;  %1475 = vmatpush.msrb.mxu1 %v17435_v53 }
  0xe6   : > { %1313 = vmatpush.msrb.mxu2 %v17472_v5  ;;  %1341 = vmatpush.msrb.mxu3 %v17502_v40  ;;  %v16029_v5 = vld [vmem:[%s21835_s8 + $0x8] sm:$0xff] }
  0xe7   : > { %1452 = vmatpush.msrb.mxu0 %v17439_v54  ;;  %1476 = vmatpush.msrb.mxu1 %v17439_v54  ;;  %v16027_v54 = vld [vmem:[%s21866_s0 + $0x78] sm:$0xff] }
  0xe8   : > { %1314 = vmatpush.msrb.mxu2 %v17478_v14  ;;  %1342 = vmatpush.msrb.mxu3 %v17513_v46  ;;  %v16045_v14 = vld [vmem:[%s21837_s10 + $0x8] sm:$0xff] }
  0xe9   : > { %1453 = vmatpush.msrb.mxu0 %v17446_v56  ;;  %1477 = vmatpush.msrb.mxu1 %v17446_v56  ;;  %v16047_v56 = vld [vmem:[%s21837_s10 + $0x18] sm:$0xff] }
  0xea   : > { %11144 = vmatmul.msk.f32.vlgmr.msra.gmra.mxu2 %vm937_vm1, %v17622_v18  ;;  %1343 = vmatpush.msrb.mxu3 %v17522_v52  ;;  %v16058_v18 = vld [vmem:[%s21837_s10 + $0x70] sm:$0xff] }
  0xeb   : > { %1315 = vmatpush.msrb.mxu2 %v17489_v22  ;;  %11149 = vmatmul.msk.f32.vlgmr.msrb.gmra.mxu3 %vm937_vm1, %v1325_v10  ;;  %v16028_v22 = vld [vmem:[%s21835_s8] sm:$0xff]  ;;  %v16041_v10 = vld [vmem:[%s21835_s8 + $0x68] sm:$0xff] }
  0xec   : > { %1426 = vmatpush.msra.mxu3 %v17524_v55  ;;  %1454 = vmatpush.msrb.mxu0 %v17450_v57 }
  0xed   : > { %1478 = vmatpush.msrb.mxu1 %v17450_v57  ;;  %1316 = vmatpush.msrb.mxu2 %v17493_v26 }
  0xee   : > { %11154 = vmatmul.msk.f32.vlgmr.msrb.gmra.mxu0 %vm937_vm1, %v1415_v19  ;;  %11155 = vmatmul.msk.f32.vlgmr.msrb.gmra.mxu1 %vm937_vm1, %v1460_v15 }
  0xef   : > { %1427 = vmatpush.msra.mxu3 %v17534_v61  ;;  %1317 = vmatpush.msrb.mxu2 %v17502_v40  ;;  %v16024_v40 = vld [vmem:[%s21866_s0 + $0x60] sm:$0xff] }
  0xf0   : > { %1781 = vmatpush.bf16.msra.mxu0 %v16035_v35  ;;  %v16039_v35 = vld [vmem:[%s21835_s8 + $0x58] sm:$0xff] }
  0xf1   : > { %1428 = vmatpush.msra.mxu3 %v17543_v63  ;;  %1318 = vmatpush.msrb.mxu2 %v17513_v46  ;;  %v16044_v46 = vld [vmem:[%s21837_s10] sm:$0xff] }
  0xf3   : > { %1429 = vmatpush.msra.mxu3 %v17552_v1  ;;  %1319 = vmatpush.msrb.mxu2 %v17522_v52 }
  0xf4   : > { %11148 = vmatmul.msk.f32.vlgmr.msrb.gmra.mxu2 %vm937_vm1, %v1261_v13  ;;  %1782 = vmatpush.bf16.msra.mxu0 %v16034_v39  ;;  %v16042_v13 = vld [vmem:[%s21835_s8 + $0x70] sm:$0xff] }
  0xf5   : > { %1402 = vmatpush.msra.mxu2 %v17524_v55  ;;  %1430 = vmatpush.msra.mxu3 %v17557_v4  ;;  %v16038_v39 = vld [vmem:[%s21835_s8 + $0x50] sm:$0xff] }
  0xf7   : > { %1403 = vmatpush.msra.mxu2 %v17534_v61  ;;  %1431 = vmatpush.msra.mxu3 %v17566_v12 }
  0xf8   : > { %1783 = vmatpush.bf16.msra.mxu0 %v16033_v42  ;;  %v16054_v42 = vld [vmem:[%s21837_s10 + $0x50] sm:$0xff] }
  0xf9   : > { %1404 = vmatpush.msra.mxu2 %v17543_v63  ;;  %1432 = vmatpush.msra.mxu3 %v17573_v20 }
  0xfb   : > { %1405 = vmatpush.msra.mxu2 %v17552_v1  ;;  %1433 = vmatpush.msra.mxu3 %v17579_v24 }
  0xfc   : > { %11153 = vmatmul.msk.f32.vlgmr.msra.gmra.mxu3 %vm937_vm1, %v1415_v19  ;;  %1784 = vmatpush.bf16.msra.mxu0 %v16032_v48  ;;  %v16087_v48 = vld [vmem:[%s21835_s8 + $0x98] sm:$0xff] }
  0xfd   : > { %1406 = vmatpush.msra.mxu2 %v17557_v4  ;;  %1636 = vmatpush.bf16.msrb.mxu3 %v16027_v54  ;;  %v16086_v54 = vld [vmem:[%s21835_s8 + $0x90] sm:$0xff] }
  0xff   : > { %1407 = vmatpush.msra.mxu2 %v17566_v12  ;;  %v16022_v12 = vld [vmem:[%s21866_s0 + $0x50] sm:$0xff] }
 0x100   : > { %1785 = vmatpush.bf16.msra.mxu0 %v16031_v51  ;;  %v16036_v51 = vld [vmem:[%s21835_s8 + $0x40] sm:$0xff] }
 0x101   : > { %1408 = vmatpush.msra.mxu2 %v17573_v20  ;;  %1637 = vmatpush.bf16.msrb.mxu3 %v16026_v2  ;;  %v16021_v20 = vld [vmem:[%s21866_s0 + $0x48] sm:$0xff] }
 0x102   : > { %v16085_v2 = vld [vmem:[%s21835_s8 + $0x88] sm:$0xff] }
 0x103   : > { %1409 = vmatpush.msra.mxu2 %v17579_v24  ;;  %v16043_v24 = vld [vmem:[%s21835_s8 + $0x78] sm:$0xff] }
 0x104   : > { %11152 = vmatmul.msk.f32.vlgmr.msra.gmra.mxu2 %vm937_vm1, %v1370_v9  ;;  %1786 = vmatpush.bf16.msra.mxu0 %v16030_v58 }
 0x105   : > { %1623 = vmatpush.bf16.msrb.mxu2 %v16019_v21  ;;  %1638 = vmatpush.bf16.msrb.mxu3 %v16025_v7  ;;  %v16084_v7 = vld [vmem:[%s21835_s8 + $0x80] sm:$0xff] }
 0x106   : > { %1794 = vmatpush.bf16.msra.mxu1 %v16043_v24 }
 0x108   : > { %1787 = vmatpush.bf16.msra.mxu0 %v16029_v5 }
 0x109   : > { %1624 = vmatpush.bf16.msrb.mxu2 %v16018_v23  ;;  %1639 = vmatpush.bf16.msrb.mxu3 %v16024_v40  ;;  %v16091_v23 = vld [vmem:[%s21835_s8 + $0xb8] sm:$0xff] }
 0x10a   : > { %1795 = vmatpush.bf16.msra.mxu1 %v16042_v13 }
 0x10c   : > { %1788 = vmatpush.bf16.msra.mxu0 %v16028_v22 }
 0x10d   : > { %1625 = vmatpush.bf16.msrb.mxu2 %v16017_v27  ;;  %1640 = vmatpush.bf16.msrb.mxu3 %v16023_v62  ;;  %v16057_v27 = vld [vmem:[%s21837_s10 + $0x68] sm:$0xff] }
 0x10e   : > { %1796 = vmatpush.bf16.msra.mxu1 %v16041_v10 }
 0x111   : > { %1626 = vmatpush.bf16.msrb.mxu2 %v16016_v30  ;;  %1641 = vmatpush.bf16.msrb.mxu3 %v16022_v12 }
 0x115   : > { %1627 = vmatpush.bf16.msrb.mxu2 %v16015_v31  ;;  %1642 = vmatpush.bf16.msrb.mxu3 %v16021_v20  ;;  %v16040_v31 = vld [vmem:[%s21835_s8 + $0x60] sm:$0xff] }
 0x116   : > { %1797 = vmatpush.bf16.msra.mxu1 %v16040_v31 }
 0x119   : > { %1628 = vmatpush.bf16.msrb.mxu2 %v16014_v33  ;;  %1643 = vmatpush.bf16.msrb.mxu3 %v16020_v44  ;;  %v16090_v33 = vld [vmem:[%s21835_s8 + $0xb0] sm:$0xff]  ;;  %v16097_v44 = vld [vmem:[%s21835_s8 + $0xe8] sm:$0xff] }
 0x11a   : > { %1798 = vmatpush.bf16.msra.mxu1 %v16039_v35  ;;  %v17010_v35 = vld [vmem:[%s21834_s7] ss:$0 sm:$0xff] }
 0x11d   : > { %1629 = vmatpush.bf16.msrb.mxu2 %v16013_v34  ;;  %1952 = vmatpush.bf16.msra.mxu3 %v16059_v59  ;;  %v16056_v34 = vld [vmem:[%s21837_s10 + $0x60] sm:$0xff]  ;;  %v16093_v59 = vld [vmem:[%s21835_s8 + $0xc8] sm:$0xff] }
 0x11e   : > { %1799 = vmatpush.bf16.msra.mxu1 %v16038_v39 }
 0x121   : > { %1630 = vmatpush.bf16.msrb.mxu2 %v16012_v37  ;;  %1953 = vmatpush.bf16.msra.mxu3 %v16058_v18  ;;  %v16089_v37 = vld [vmem:[%s21835_s8 + $0xa8] sm:$0xff] }
 0x125   : > { %1939 = vmatpush.bf16.msra.mxu2 %v16051_v38  ;;  %1954 = vmatpush.bf16.msra.mxu3 %v16057_v27  ;;  %v16055_v38 = vld [vmem:[%s21837_s10 + $0x58] sm:$0xff] }
 0x129   : > { %1940 = vmatpush.bf16.msra.mxu2 %v16050_v41  ;;  %v1113_v60 = vpop.f32.mrf.mxu1  ;;  %1955 = vmatpush.bf16.msra.mxu3 %v16056_v34  ;;  %v16088_v41 = vld [vmem:[%s21835_s8 + $0xa0] sm:$0xff]  ;;  %v16075_v34 = vld [vmem:[%s21866_s0 + $0xb8] sm:$0xff] }
 0x12d   : > { %v981_v45 = vpop.f32.mrf.mxu3  ;;  %1941 = vmatpush.bf16.msra.mxu2 %v16049_v47  ;;  %1956 = vmatpush.bf16.msra.mxu3 %v16055_v38  ;;  %v16074_v38 = vld [vmem:[%s21866_s0 + $0xb0] sm:$0xff] }
 0x131   : > { %1942 = vmatpush.bf16.msra.mxu2 %v16048_v50  ;;  %v1089_v63 = vpop.f32.mrf.mxu0  ;;  %v1203_v25 = vpop.f32.mrf.mxu1  ;;  %1957 = vmatpush.bf16.msra.mxu3 %v16054_v42  ;;  %v16053_v50 = vld [vmem:[%s21837_s10 + $0x48] sm:$0xff] }
 0x135   : > { %v958_v53 = vpop.f32.mrf.mxu2  ;;  %v1024_v57 = vpop.f32.mrf.mxu3  ;;  %1943 = vmatpush.bf16.msra.mxu2 %v16047_v56  ;;  %1958 = vmatpush.bf16.msra.mxu3 %v16053_v50  ;;  %v16052_v56 = vld [vmem:[%s21837_s10 + $0x40] sm:$0xff] }
 0x136   : > { %v982_v4 = vadd.f32 %v981_v45, %v958_v53  ;;  %v16037_v45 = vld [vmem:[%s21835_s8 + $0x48] sm:$0xff] }
 0x137   : > { %1800 = vmatpush.bf16.msra.mxu1 %v16037_v45 }
 0x139   : > { %1944 = vmatpush.bf16.msra.mxu2 %v16046_v3  ;;  %v1179_v28 = vpop.f32.mrf.mxu0  ;;  %1959 = vmatpush.bf16.msra.mxu3 %v16052_v56 }
 0x13b   : > { %1801 = vmatpush.bf16.msra.mxu1 %v16036_v51  ;;  %v16071_v51 = vld [vmem:[%s21866_s0 + $0x98] sm:$0xff] }
 0x13d   : > { %v1004_v26 = vpop.f32.mrf.mxu2  ;;  %1945 = vmatpush.bf16.msra.mxu2 %v16045_v14  ;;  %v1068_v52 = vpop.f32.mrf.mxu3 }
 0x13e   : > { %v1025_v55 = vadd.f32 %v1024_v57, %v1004_v26 }
 0x140   : > { %v1071_v61 = vadd.f32 %v1068_v52, %v1025_v55 }
 0x141   : > { %1946 = vmatpush.bf16.msra.mxu2 %v16044_v46 }
 0x142   : > { %v1116_v11 = vadd.f32 %v1113_v60, %v1071_v61 }
 0x145   : > { %v1044_v0 = vpop.f32.mrf.mxu2 }
 0x146   : > { %v1047_v16 = vadd.f32 %v1044_v0, %v982_v4 }
 0x148   : > { %v1092_v29 = vadd.f32 %v1089_v63, %v1047_v16 }
 0x14d   : > { %v1158_v1 = vpop.f32.mrf.mxu3 }
 0x14e   : > { %v1161_v17 = vadd.f32 %v1158_v1, %v1116_v11 }
 0x150   : > { %v1206_v36 = vadd.f32 %v1203_v25, %v1161_v17 }
 0x152   : > { %v1212_v8 = vadd.f32 %v17807_v43, %v1206_v36 }
 0x153   : > { %v1301_v53 = vpop.f32.mrf.mxu1 }
 0x154   : > { %v1213_v15 = vmax.f32 %v1212_v8, 0.0  ;;  %v16092_v8 = vld [vmem:[%s21835_s8 + $0xc0] sm:$0xff] }
 0x155   : > { %v1134_v49 = vpop.f32.mrf.mxu2  ;;  %v1281_v57 = vpop.f32.mrf.mxu0 }
 0x156   : > { %v1137_v6 = vadd.f32 %v1134_v49, %v1092_v29  ;;  %v1302_v5 = vadd.f32 %v1301_v53, %v1281_v57  ;;  %v16099_v29 = vld [vmem:[%s21835_s8 + $0xf8] sm:$0xff]  ;;  %v16096_v49 = vld [vmem:[%s21835_s8 + $0xe0] sm:$0xff] }
 0x157   : > { %v17011_v53 = vld [vmem:[%s21838_s11] ss:$0 sm:$0xff] }
 0x158   : > { %v1182_v32 = vadd.f32 %v1179_v28, %v1137_v6  ;;  %v16095_v6 = vld [vmem:[%s21835_s8 + $0xd8] sm:$0xff]  ;;  %v16094_v28 = vld [vmem:[%s21835_s8 + $0xd0] sm:$0xff] }
 0x15a   : > { %v1210_v9 = vadd.f32 %v17807_v43, %v1182_v32 }
 0x15c   : > { %v1211_v19 = vmax.f32 %v1210_v9, 0.0 }
 0x15e   : > { %v17826_v21 = vmax.f32 %v1211_v19, %v1213_v15 }
 0x160   : > { %v17836_v30 = vpack.c.bf16 %v17826_v21, %v17826_v21 }
 0x161   : > { %v1390_v14 = vpop.f32.mrf.mxu1  ;;  %v1366_v26 = vpop.f32.mrf.mxu0 }
 0x162   : > { %1631 = vmatmul.bf16.vlgmr.msrb.gmra.mxu2 %v17836_v30  ;;  %1789 = vmatmul.bf16.vlgmr.msra.gmra.mxu0 %v17836_v30 }
 0x163   : > { %2347 = vmatpush.bf16.msrb.mxu2 %v16091_v23  ;;  %v1258_v47 = vpop.f32.mrf.mxu3  ;;  %v17009_v23 = vld [vmem:[%s21836_s9] ss:$0 sm:$0xff] }
 0x167   : > { %2348 = vmatpush.bf16.msrb.mxu2 %v16090_v33 }
 0x16b   : > { %2349 = vmatpush.bf16.msrb.mxu2 %v16089_v37  ;;  %v1480_v62 = vpop.f32.mrf.mxu1  ;;  %v1456_v11 = vpop.f32.mrf.mxu0 }
 0x16d   : > { %v1235_v58 = vpop.f32.mrf.mxu2 }
 0x16e   : > { %v1345_v3 = vpop.f32.mrf.mxu3  ;;  %v1259_v52 = vadd.f32 %v1258_v47, %v1235_v58  ;;  %v16073_v47 = vld [vmem:[%s21866_s0 + $0xa8] sm:$0xff] }
 0x16f   : > { %2350 = vmatpush.bf16.msrb.mxu2 %v16088_v41  ;;  %v1348_v22 = vadd.f32 %v1345_v3, %v1302_v5  ;;  %v16068_v3 = vld [vmem:[%s21866_s0 + $0x80] sm:$0xff]  ;;  %v16107_v5 = vld [vmem:[%s21837_s10 + $0xb8] sm:$0xff] }
 0x171   : > { %v1393_v55 = vadd.f32 %v1390_v14, %v1348_v22  ;;  %v17012_v14 = vld [vmem:[%s21836_s9 + $0x1] ss:$0 sm:$0xff]  ;;  %v16106_v22 = vld [vmem:[%s21837_s10 + $0xb0] sm:$0xff] }
 0x172   : > { %1947 = vmatmul.bf16.vlgmr.msra.gmra.mxu2 %v17836_v30 }
 0x173   : > { %2351 = vmatpush.bf16.msrb.mxu2 %v16087_v48  ;;  %v16072_v48 = vld [vmem:[%s21866_s0 + $0xa0] sm:$0xff] }
 0x177   : > { %2352 = vmatpush.bf16.msrb.mxu2 %v16086_v54  ;;  %v1321_v40 = vpop.f32.mrf.mxu2  ;;  %v16070_v54 = vld [vmem:[%s21866_s0 + $0x90] sm:$0xff] }
 0x178   : > { %v1324_v60 = vadd.f32 %v1321_v40, %v1259_v52  ;;  %v16105_v40 = vld [vmem:[%s21837_s10 + $0xa8] sm:$0xff] }
 0x17a   : > { %v1369_v0 = vadd.f32 %v1366_v26, %v1324_v60  ;;  %v16103_v60 = vld [vmem:[%s21837_s10 + $0x98] sm:$0xff] }
 0x17b   : > { %2353 = vmatpush.bf16.msrb.mxu2 %v16085_v2  ;;  %v16069_v2 = vld [vmem:[%s21866_s0 + $0x88] sm:$0xff] }
 0x17f   : > { %2354 = vmatpush.bf16.msrb.mxu2 %v16084_v7  ;;  %v1435_v46 = vpop.f32.mrf.mxu3 }
 0x180   : > { %v1438_v61 = vadd.f32 %v1435_v46, %v1393_v55  ;;  %v16104_v55 = vld [vmem:[%s21837_s10 + $0xa0] sm:$0xff] }
 0x182   : > { %2355 = vmatmul.bf16.vlgmr.msrb.gmra.mxu2 %v17836_v30  ;;  %v1483_v63 = vadd.f32 %v1480_v62, %v1438_v61  ;;  %v16102_v62 = vld [vmem:[%s21837_s10 + $0x90] sm:$0xff] }
 0x184   : > { %v1486_v12 = vadd.f32 %v17807_v43, %v1483_v63  ;;  %v16101_v63 = vld [vmem:[%s21837_s10 + $0x88] sm:$0xff] }
 0x186   : > { %v1487_v20 = vmax.f32 %v1486_v12, 0.0 }
 0x187   : > { %v1411_v1 = vpop.f32.mrf.mxu2 }
 0x188   : > { %v1414_v4 = vadd.f32 %v1411_v1, %v1369_v0  ;;  %v16100_v0 = vld [vmem:[%s21837_s10 + $0x80] sm:$0xff] }
 0x18a   : > { %v1459_v16 = vadd.f32 %v1456_v11, %v1414_v4 }
 0x18c   : > { %v1484_v17 = vadd.f32 %v17807_v43, %v1459_v16  ;;  %v16098_v43 = vld [vmem:[%s21835_s8 + $0xf0] sm:$0xff] }
 0x18e   : > { %v1485_v24 = vmax.f32 %v1484_v17, 0.0 }
 0x190   : > { %v17895_v25 = vmax.f32 %v1485_v24, %v1487_v20  ;;  %v16083_v20 = vld [vmem:[%s21866_s0 + $0xf8] sm:$0xff]  ;;  %v16082_v24 = vld [vmem:[%s21866_s0 + $0xf0] sm:$0xff] }
 0x192   : > { %v17902_v36 = vpack.c.bf16 %v17895_v25, %v17895_v25 }
 0x194   : > { %1644 = vmatmul.bf16.vlgmr.msrb.gmra.mxu3 %v17902_v36  ;;  %1802 = vmatmul.bf16.vlgmr.msra.gmra.mxu1 %v17902_v36 }
 0x195   : > { %2360 = vmatpush.bf16.msrb.mxu3 %v16099_v29  ;;  %v16081_v29 = vld [vmem:[%s21866_s0 + $0xe8] sm:$0xff] }
 0x199   : > { %2361 = vmatpush.bf16.msrb.mxu3 %v16098_v43 }
 0x19d   : > { %2362 = vmatpush.bf16.msrb.mxu3 %v16097_v44 }
 0x1a1   : > { %2363 = vmatpush.bf16.msrb.mxu3 %v16096_v49 }
 0x1a4   : > { %1960 = vmatmul.bf16.vlgmr.msra.gmra.mxu3 %v17902_v36 }
 0x1a5   : > { %2364 = vmatpush.bf16.msrb.mxu3 %v16095_v6 }
 0x1a9   : > { %2365 = vmatpush.bf16.msrb.mxu3 %v16094_v28 }
 0x1ad   : > { %2366 = vmatpush.bf16.msrb.mxu3 %v16093_v59  ;;  %v16080_v59 = vld [vmem:[%s21866_s0 + $0xe0] sm:$0xff] }
 0x1b1   : > { %2367 = vmatpush.bf16.msrb.mxu3 %v16092_v8  ;;  %v16079_v8 = vld [vmem:[%s21866_s0 + $0xd8] sm:$0xff] }
 0x1b4   : > { %2368 = vmatmul.bf16.vlgmr.msrb.gmra.mxu3 %v17902_v36 }
 0x1df   : > { %v1790_v32 = vpop.f32.mrf.mxu0 }
 0x1e0   : > { %v1791_v31 = vadd.f32 %v17009_v23, %v1790_v32  ;;  %v16078_v32 = vld [vmem:[%s21866_s0 + $0xd0] sm:$0xff] }
 0x1e5   : > { %v1632_v13 = vpop.f32.mrf.mxu2 }
 0x1e6   : > { %v1633_v39 = vadd.f32 %v17010_v35, %v1632_v13  ;;  %v16077_v13 = vld [vmem:[%s21866_s0 + $0xc8] sm:$0xff] }
 0x1e7   : > { %v1792_v18 = vpop.f32.mrf.mxu0 }
 0x1e8   : > { %v16076_v18 = vld [vmem:[%s21866_s0 + $0xc0] sm:$0xff] }
 0x1ed   : > { %v1634_v9 = vpop.f32.mrf.mxu2 }
 0x1f5   : > { %v1948_v10 = vpop.f32.mrf.mxu2 }
 0x1f6   : > { %v1949_v56 = vadd.f32 %v17011_v53, %v1948_v10  ;;  %v11699_v53 = vld [vmem:[%s21839_s12 + $0x10] sm:$0xf] }
 0x1fd   : > { %v1950_v15 = vpop.f32.mrf.mxu2 }
 0x205   : > { %v2356_v19 = vpop.f32.mrf.mxu2 }
 0x206   : > { %v2357_v26 = vadd.f32 %v17012_v14, %v2356_v19  ;;  %v16111_v14 = vld [vmem:[%s21837_s10 + $0xd8] sm:$0xff] }
 0x20d   : > { %v2358_v27 = vpop.f32.mrf.mxu2 }
 0x211   : > { %v1803_v33 = vpop.f32.mrf.mxu1 }
 0x212   : > { %v1804_v37 = vadd.f32 %v1803_v33, %v1791_v31 }
 0x214   : > { %11348 = vmatpush.xpose.msk.msrb.mxu0 %vm937_vm1, %v1804_v37 }
 0x217   : > { %v1645_v41 = vpop.f32.mrf.mxu3 }
 0x218   : > { %2187 = vmatpush.bf16.msra.mxu0 %v16075_v34  ;;  %v1646_v42 = vadd.f32 %v1645_v41, %v1633_v39  ;;  %v11715_v41 = vld [vmem:[%s21839_s12 + $0x30] sm:$0xf] }
 0x219   : > { %v1805_v45 = vpop.f32.mrf.mxu1 }
 0x21a   : > { %11349 = vmatmul.msk.f32.vlgmr.msrb.gmra.mxu0 %vm937_vm1, %v1646_v42  ;;  %v16067_v42 = vld [vmem:[%s21839_s12 + $0x34] sm:$0xf0]  ;;  %v16114_v45 = vld [vmem:[%s21837_s10 + $0xf0] sm:$0xff] }
 0x21c   : > { %2188 = vmatpush.bf16.msra.mxu0 %v16074_v38  ;;  %v16115_v38 = vld [vmem:[%s21837_s10 + $0xf8] sm:$0xff] }
 0x21f   : > { %v1647_v50 = vpop.f32.mrf.mxu3 }
 0x220   : > { %2189 = vmatpush.bf16.msra.mxu0 %v16073_v47  ;;  %v11716_v47 = vor.u32 %v16067_v42, %v11715_v41  ;;  %v16065_v50 = vld [vmem:[%s21839_s12 + $0x24] sm:$0xf0] }
 0x224   : > { %2190 = vmatpush.bf16.msra.mxu0 %v16072_v48  ;;  %v11707_v48 = vld [vmem:[%s21839_s12 + $0x20] sm:$0xf] }
 0x227   : > { %v1961_v57 = vpop.f32.mrf.mxu3 }
 0x228   : > { %2191 = vmatpush.bf16.msra.mxu0 %v16071_v51  ;;  %v1962_v58 = vadd.f32 %v1961_v57, %v1949_v56  ;;  %v11708_v51 = vor.u32 %v16065_v50, %v11707_v48  ;;  %v16113_v56 = vld [vmem:[%s21837_s10 + $0xe8] sm:$0xff]  ;;  %v17015_v48 = vld [vmem:[%s21836_s9 + $0x2] ss:$0 sm:$0xff] }
 0x22a   : > { %11350 = vmatpush.msk.msrb.mxu1 %vm2020_vm2, %v1962_v58  ;;  %v11691_v58 = vld [vmem:[%s21839_s12] sm:$0xf] }
 0x22c   : > { %2192 = vmatpush.bf16.msra.mxu0 %v16070_v54  ;;  %2200 = vmatpush.bf16.msra.mxu1 %v16083_v20  ;;  %v16063_v54 = vld [vmem:[%s21839_s12 + $0x14] sm:$0xf0]  ;;  %v11693_v20 = vld [vmem:[%s21839_s12 + $0x8] sm:$0xf0] }
 0x22d   : > { %v11700_v57 = vor.u32 %v16063_v54, %v11699_v53 }
 0x22f   : > { %v1963_v7 = vpop.f32.mrf.mxu3 }
 0x230   : > { %2193 = vmatpush.bf16.msra.mxu0 %v16069_v2  ;;  %2201 = vmatpush.bf16.msra.mxu1 %v16082_v24  ;;  %v16061_v2 = vld [vmem:[%s21839_s12 + $0x4] sm:$0xf0]  ;;  %v16147_v7 = vld [vmem:[%s21835_s8 + $0x138] sm:$0xff] }
 0x234   : > { %2194 = vmatpush.bf16.msra.mxu0 %v16068_v3  ;;  %2202 = vmatpush.bf16.msra.mxu1 %v16081_v29  ;;  %v16112_v3 = vld [vmem:[%s21837_s10 + $0xe0] sm:$0xff]  ;;  %v16155_v29 = vld [vmem:[%s21835_s8 + $0x178] sm:$0xff] }
 0x237   : > { %2195 = vmatmul.bf16.vlgmr.msra.gmra.mxu0 %v17836_v30  ;;  %v2369_v46 = vpop.f32.mrf.mxu3 }
 0x238   : > { %2507 = vmatpush.bf16.msrb.mxu0 %v16107_v5  ;;  %v2370_v52 = vadd.f32 %v2369_v46, %v2357_v26  ;;  %2203 = vmatpush.bf16.msra.mxu1 %v16080_v59  ;;  %v11692_v5 = vor.u32 %v16061_v2, %v11691_v58  ;;  %v16110_v26 = vld [vmem:[%s21837_s10 + $0xd0] sm:$0xff]  ;;  %v16109_v46 = vld [vmem:[%s21837_s10 + $0xc8] sm:$0xff]  ;;  %v16151_v59 = vld [vmem:[%s21835_s8 + $0x158] sm:$0xff] }
 0x23a   : > { %11643 = vmatpush.xpose.msk.msra.mxu2 %vm937_vm1, %v2370_v52  ;;  %v16066_v52 = vld [vmem:[%s21839_s12 + $0x34] sm:$0xf] }
 0x23c   : > { %2508 = vmatpush.bf16.msrb.mxu0 %v16106_v22  ;;  %2204 = vmatpush.bf16.msra.mxu1 %v16079_v8  ;;  %v16146_v22 = vld [vmem:[%s21835_s8 + $0x130] sm:$0xff] }
 0x23d   : > { %v16142_v8 = vld [vmem:[%s21835_s8 + $0x110] sm:$0xff] }
 0x23f   : > { %v2371_v61 = vpop.f32.mrf.mxu3 }
 0x240   : > { %2509 = vmatpush.bf16.msrb.mxu0 %v16105_v40  ;;  %2205 = vmatpush.bf16.msra.mxu1 %v16078_v32  ;;  %v16145_v40 = vld [vmem:[%s21835_s8 + $0x128] sm:$0xff]  ;;  %v16150_v32 = vld [vmem:[%s21835_s8 + $0x150] sm:$0xff] }
 0x244   : > { %2510 = vmatpush.bf16.msrb.mxu0 %v16104_v55  ;;  %2206 = vmatpush.bf16.msra.mxu1 %v16077_v13  ;;  %v11717_v55 = vld [vmem:[%s21839_s12 + $0x38] sm:$0xf0]  ;;  %v16141_v13 = vld [vmem:[%s21835_s8 + $0x108] sm:$0xff] }
 0x245   : > { %v11720_v61 = vor.u32 %v16066_v52, %v11717_v55  ;;  %v11683_v52 = vld [vmem:[%s21839_s12 + $0x78] sm:$0xf0]  ;;  %v11673_v55 = vld [vmem:[%s21839_s12 + $0x60] sm:$0xf] }
 0x248   : > { %2511 = vmatpush.bf16.msrb.mxu0 %v16103_v60  ;;  %2207 = vmatpush.bf16.msra.mxu1 %v16076_v18  ;;  %v16108_v60 = vld [vmem:[%s21837_s10 + $0xc0] sm:$0xff]  ;;  %v16149_v18 = vld [vmem:[%s21835_s8 + $0x148] sm:$0xff] }
 0x24c   : > { %2512 = vmatpush.bf16.msrb.mxu0 %v16102_v62  ;;  %v16064_v62 = vld [vmem:[%s21839_s12 + $0x24] sm:$0xf] }
 0x250   : > { %2513 = vmatpush.bf16.msrb.mxu0 %v16101_v63  ;;  %v11709_v63 = vld [vmem:[%s21839_s12 + $0x28] sm:$0xf0] }
 0x254   : > { %2514 = vmatpush.bf16.msrb.mxu0 %v16100_v0  ;;  %v11712_v0 = vor.u32 %v16064_v62, %v11709_v63  ;;  %v16120_v62 = vld [vmem:[%s21839_s12 + $0x64] sm:$0xf]  ;;  %v11675_v63 = vld [vmem:[%s21839_s12 + $0x68] sm:$0xf0] }
 0x257   : > { %2515 = vmatmul.bf16.vlgmr.msrb.gmra.mxu0 %v17836_v30 }
 0x258   : > { %2735 = vmatpush.bf16.msra.mxu0 %v11716_v47 }
 0x25c   : > { %2736 = vmatpush.bf16.msra.mxu0 %v11708_v51 }
 0x260   : > { %2737 = vmatpush.bf16.msra.mxu0 %v11700_v57 }
 0x264   : > { %2738 = vmatpush.bf16.msra.mxu0 %v11692_v5 }
 0x268   : > { %3051 = vmatpush.bf16.msrb.mxu0 %v16147_v7 }
 0x26c   : > { %3052 = vmatpush.bf16.msrb.mxu0 %v16146_v22  ;;  %v11681_v22 = vld [vmem:[%s21839_s12 + $0x70] sm:$0xf] }
 0x270   : > { %3053 = vmatpush.bf16.msrb.mxu0 %v16145_v40  ;;  %v16122_v40 = vld [vmem:[%s21839_s12 + $0x74] sm:$0xf] }
 0x297   : > { %v1988_v1 = vpop.f32.mrf.mxu0 }
 0x298   : > { %v1992_v4 = vsel %vm1991_vm3, %v1988_v1, -inf }
 0x299   : > { %1993 = vmax.xlane.f32.xlu0 %v1992_v4  ;;  %v11701_v4 = vld [vmem:[%s21839_s12 + $0x18] sm:$0xf0] }
 0x2b4   : > { %v17996_v11 = vpop.f32.mrf.mxu0 }
 0x2bc   : > { %v2198_v12 = vpop.f32.mrf.mxu0 }
 0x2d4   : > { %v17998_v16 = vpop.f32.mrf.mxu0 }
 0x2dc   : > { %v2518_v17 = vpop.f32.mrf.mxu0 }
 0x2dd   : > { %v16060_v17 = vld [vmem:[%s21839_s12 + $0x4] sm:$0xf] }
 0x2de   : > { %v11696_v24 = vor.u32 %v16060_v17, %v11693_v20  ;;  %v16118_v17 = vld [vmem:[%s21839_s12 + $0x54] sm:$0xf]  ;;  %v11667_v20 = vld [vmem:[%s21839_s12 + $0x58] sm:$0xf0] }
 0x30c   : > { %v1994_v43 = vpop.xlane.xlu0 %1993 }
 0x30d   : > { %v1995_v44 = vsub.f32 %v1988_v1, %v1994_v43  ;;  %v16062_v1 = vld [vmem:[%s21839_s12 + $0x14] sm:$0xf] }
 0x30e   : > { %v11704_v12 = vor.u32 %v16062_v1, %v11701_v4  ;;  %v16154_v43 = vld [vmem:[%s21835_s8 + $0x170] sm:$0xff]  ;;  %v11678_v1 = vor.u32 %v16120_v62, %v11675_v63  ;;  %v16157_v62 = vld [vmem:[%s21837_s10 + $0x108] sm:$0xff] }
 0x30f   : > { %v1996_v49 = vmul.f32 1.442695, %v1995_v44  ;;  %v16153_v44 = vld [vmem:[%s21835_s8 + $0x168] sm:$0xff]  ;;  %v11665_v4 = vld [vmem:[%s21839_s12 + $0x50] sm:$0xf] }
 0x310   : > { %v16165_v63 = vld [vmem:[%s21837_s10 + $0x148] sm:$0xff] }
 0x311   : > { %17045 = vpow2.f32 %v1996_v49  ;;  %v16144_v49 = vld [vmem:[%s21835_s8 + $0x120] sm:$0xff] }
 0x312   : > { %3054 = vmatpush.bf16.msrb.mxu0 %v16144_v49  ;;  %v16116_v49 = vld [vmem:[%s21839_s12 + $0x44] sm:$0xf] }
 0x317   : > { %v17046_v6 = vpop.eup %17045 }
 0x318   : > { %v1998_v28 = vsel %vm1991_vm3, %v17046_v6, 0.0 }
 0x319   : > { %1999 = vadd.xlane.f32.xlu0 %v1998_v28  ;;  %v16143_v28 = vld [vmem:[%s21835_s8 + $0x118] sm:$0xff] }
 0x31a   : > { %3055 = vmatpush.bf16.msrb.mxu0 %v16143_v28 }
 0x31e   : > { %3056 = vmatpush.bf16.msrb.mxu0 %v16142_v8 }
 0x322   : > { %3057 = vmatpush.bf16.msrb.mxu0 %v16141_v13  ;;  %v16130_v13 = vld [vmem:[%s21866_s0 + $0x130] sm:$0xff] }
 0x38c   : > { %v2000_v9 = vpop.xlane.xlu0 %1999 }
 0x38d   : > { %17047 = vrcp.f32 %v2000_v9  ;;  %v2012_v23 = vand.u32 2147483648, %v2000_v9  ;;  %v2010_v31 = vand.u32 2147483647, %v2000_v9  ;;  %vm2006_vm5 = vweird.f32 %v2000_v9 }
 0x38f   : > { %v2013_v34 = vor.u32 1.1754944e-38, %v2012_v23  ;;  %vm2011_vm7 = vcmp.eq.f32.partialorder %v2010_v31, 8.507059e+37  ;;  %v17013_v23 = vld [vmem:[%s21834_s7 + $0x1] ss:$0 sm:$0xff] }
 0x393   : > { %v17048_v10 = vpop.eup %17047 }
 0x394   : > { %v2002_v15 = vmul.f32 %v17048_v10, %v2000_v9  ;;  %vm2007_vm4 = vweird.f32 %v17048_v10  ;;  %v16140_v9 = vld [vmem:[%s21835_s8 + $0x100] sm:$0xff] }
 0x395   : > { %vm2008_vm6 = vmor %vm2006_vm5, %vm2007_vm4  ;;  %3058 = vmatpush.bf16.msrb.mxu0 %v16140_v9 }
 0x396   : > { %v2003_v19 = vsub.f32 1.0, %v2002_v15 }
 0x398   : > { %v2004_v27 = vmul.f32 %v17048_v10, %v2003_v19 }
 0x39a   : > { %v2005_v33 = vadd.f32 %v17048_v10, %v2004_v27  ;;  %v2197_v27 = vadd.f32 %v17013_v23, %v17996_v11 }
 0x39c   : > { %v2009_v35 = vsel %vm2008_vm6, %v17048_v10, %v2005_v33  ;;  %v16148_v10 = vld [vmem:[%s21835_s8 + $0x140] sm:$0xff] }
 0x39d   : > { %v2014_v37 = vsel %vm2011_vm7, %v2013_v34, %v2009_v35  ;;  %v17014_v35 = vld [vmem:[%s21838_s11 + $0x1] ss:$0 sm:$0xff] }
 0x39e   : > { %v2015_v39 = vmul.f32 %v17046_v6, %v2014_v37  ;;  %v16152_v6 = vld [vmem:[%s21835_s8 + $0x160] sm:$0xff]  ;;  %v2517_v37 = vadd.f32 %v17014_v35, %v17998_v16 }
 0x3a0   : > { %11351 = vmatmul.msk.f32.vlgmr.msrb.gmra.mxu1 %vm2016_vm8, %v2015_v39 }
 0x3a1   : > { %2520 = vmatpush.bf16.msrb.mxu1 %v16115_v38 }
 0x3a5   : > { %2521 = vmatpush.bf16.msrb.mxu1 %v16114_v45 }
 0x3a8   : > { %2208 = vmatmul.bf16.vlgmr.msra.gmra.mxu1 %v17902_v36 }
 0x3a9   : > { %2522 = vmatpush.bf16.msrb.mxu1 %v16113_v56 }
 0x3ad   : > { %2523 = vmatpush.bf16.msrb.mxu1 %v16112_v3 }
 0x3b1   : > { %2524 = vmatpush.bf16.msrb.mxu1 %v16111_v14 }
 0x3b5   : > { %2525 = vmatpush.bf16.msrb.mxu1 %v16110_v26  ;;  %v16123_v26 = vld [vmem:[%s21839_s12 + $0x74] sm:$0xf0] }
 0x3b9   : > { %2526 = vmatpush.bf16.msrb.mxu1 %v16109_v46  ;;  %v11682_v46 = vor.u32 %v16123_v26, %v11681_v22  ;;  %v16161_v22 = vld [vmem:[%s21837_s10 + $0x128] sm:$0xff] }
 0x3ba   : > { %v16169_v26 = vld [vmem:[%s21837_s10 + $0x168] sm:$0xff] }
 0x3bb   : > { %2666 = vmatpush.bf16.msrb.mxu2 %v11682_v46  ;;  %v16168_v46 = vld [vmem:[%s21837_s10 + $0x160] sm:$0xff] }
 0x3bd   : > { %2527 = vmatpush.bf16.msrb.mxu1 %v16108_v60  ;;  %v16121_v60 = vld [vmem:[%s21839_s12 + $0x64] sm:$0xf0] }
 0x3c0   : > { %2528 = vmatmul.bf16.vlgmr.msrb.gmra.mxu1 %v17902_v36 }
 0x3c1   : > { %2748 = vmatpush.bf16.msra.mxu1 %v11720_v61  ;;  %v11686_v61 = vor.u32 %v16122_v40, %v11683_v52  ;;  %v16160_v40 = vld [vmem:[%s21837_s10 + $0x120] sm:$0xff]  ;;  %v16159_v52 = vld [vmem:[%s21837_s10 + $0x118] sm:$0xff] }
 0x3c5   : > { %2749 = vmatpush.bf16.msra.mxu1 %v11712_v0  ;;  %v11674_v0 = vor.u32 %v16121_v60, %v11673_v55  ;;  %v16167_v55 = vld [vmem:[%s21837_s10 + $0x158] sm:$0xff]  ;;  %v16158_v60 = vld [vmem:[%s21837_s10 + $0x110] sm:$0xff] }
 0x3c7   : > { %2667 = vmatpush.bf16.msrb.mxu2 %v11674_v0  ;;  %v16156_v0 = vld [vmem:[%s21837_s10 + $0x100] sm:$0xff] }
 0x3c9   : > { %2750 = vmatpush.bf16.msra.mxu1 %v11704_v12  ;;  %v16119_v12 = vld [vmem:[%s21839_s12 + $0x54] sm:$0xf0] }
 0x3cd   : > { %2751 = vmatpush.bf16.msra.mxu1 %v11696_v24  ;;  %v11666_v24 = vor.u32 %v16119_v12, %v11665_v4  ;;  %v16187_v4 = vld [vmem:[%s21866_s0 + $0x1b8] sm:$0xff] }
 0x3ce   : > { %v16195_v12 = vld [vmem:[%s21866_s0 + $0x1f8] sm:$0xff] }
 0x3cf   : > { %2668 = vmatpush.bf16.msrb.mxu2 %v11666_v24  ;;  %v16185_v24 = vld [vmem:[%s21866_s0 + $0x1a8] sm:$0xff] }
 0x3d1   : > { %3064 = vmatpush.bf16.msrb.mxu1 %v16155_v29  ;;  %v11670_v29 = vor.u32 %v16118_v17, %v11667_v20  ;;  %v16186_v17 = vld [vmem:[%s21866_s0 + $0x1b0] sm:$0xff] }
 0x3d2   : > { %v16194_v20 = vld [vmem:[%s21866_s0 + $0x1f0] sm:$0xff] }
 0x3d5   : > { %3065 = vmatpush.bf16.msrb.mxu1 %v16154_v43  ;;  %v11657_v43 = vld [vmem:[%s21839_s12 + $0x40] sm:$0xf] }
 0x3d9   : > { %3066 = vmatpush.bf16.msrb.mxu1 %v16153_v44  ;;  %v16117_v44 = vld [vmem:[%s21839_s12 + $0x44] sm:$0xf0] }
 0x3da   : > { %v11658_v28 = vor.u32 %v16117_v44, %v11657_v43  ;;  %v16184_v43 = vld [vmem:[%s21866_s0 + $0x1a0] sm:$0xff] }
 0x3db   : > { %v16192_v44 = vld [vmem:[%s21866_s0 + $0x1e0] sm:$0xff] }
 0x3dc   : > { %2669 = vmatpush.bf16.msrb.mxu2 %v11658_v28  ;;  %v16182_v28 = vld [vmem:[%s21866_s0 + $0x190] sm:$0xff] }
 0x3dd   : > { %3067 = vmatpush.bf16.msrb.mxu1 %v16152_v6  ;;  %v11659_v6 = vld [vmem:[%s21839_s12 + $0x48] sm:$0xf0] }
 0x3de   : > { %v11662_v8 = vor.u32 %v16116_v49, %v11659_v6  ;;  %v16183_v49 = vld [vmem:[%s21866_s0 + $0x198] sm:$0xff] }
 0x3df   : > { %v16191_v6 = vld [vmem:[%s21866_s0 + $0x1d8] sm:$0xff] }
 0x3e1   : > { %3068 = vmatpush.bf16.msrb.mxu1 %v16151_v59 }
 0x3e5   : > { %3069 = vmatpush.bf16.msrb.mxu1 %v16150_v32  ;;  %v16131_v32 = vld [vmem:[%s21866_s0 + $0x138] sm:$0xff] }
 0x3e9   : > { %3070 = vmatpush.bf16.msrb.mxu1 %v16149_v18 }
 0x3ed   : > { %3071 = vmatpush.bf16.msrb.mxu1 %v16148_v10  ;;  %v16129_v10 = vld [vmem:[%s21866_s0 + $0x128] sm:$0xff] }
 0x41d   : > { %v2041_v15 = vpop.f32.mrf.mxu1 }
 0x41e   : > { %v2044_v19 = vpack.c.bf16 %v2041_v15, %v2041_v15 }
 0x420   : > { %11721 = vmatmul.msk.bf16.vlgmr.msra.gmra.mxu0 %vm937_vm1, %v2044_v19  ;;  %11722 = vmatmul.msk.bf16.vlgmr.msra.gmra.mxu1 %vm937_vm1, %v2044_v19 }
 0x425   : > { %v2209_v31 = vpop.f32.mrf.mxu1 }
 0x426   : > { %v2210_v33 = vadd.f32 %v2209_v31, %v2197_v27  ;;  %v16128_v31 = vld [vmem:[%s21866_s0 + $0x120] sm:$0xff] }
 0x428   : > { %11644 = vmatmul.msk.f32.vlgmr.msra.gmra.mxu2 %vm937_vm1, %v2210_v33 }
 0x429   : > { %2891 = vmatpush.bf16.msra.mxu2 %v16131_v32  ;;  %v16189_v32 = vld [vmem:[%s21866_s0 + $0x1c8] sm:$0xff] }
 0x42d   : > { %v2211_v34 = vpop.f32.mrf.mxu1  ;;  %2892 = vmatpush.bf16.msra.mxu2 %v16130_v13  ;;  %v16180_v13 = vld [vmem:[%s21866_s0 + $0x180] sm:$0xff] }
 0x430   : > { %3059 = vmatmul.bf16.vlgmr.msrb.gmra.mxu0 %v17836_v30  ;;  %3072 = vmatmul.bf16.vlgmr.msrb.gmra.mxu1 %v17902_v36 }
 0x431   : > { %2893 = vmatpush.bf16.msra.mxu2 %v16129_v10  ;;  %v16227_v10 = vld [vmem:[%s21837_s10 + $0x1f8] sm:$0xff] }
 0x435   : > { %2894 = vmatpush.bf16.msra.mxu2 %v16128_v31  ;;  %v16216_v31 = vld [vmem:[%s21837_s10 + $0x1a0] sm:$0xff] }
 0x43d   : > { %v2529_v38 = vpop.f32.mrf.mxu1 }
 0x43e   : > { %v2530_v39 = vadd.f32 %v2529_v38, %v2517_v37  ;;  %v16127_v37 = vld [vmem:[%s21866_s0 + $0x118] sm:$0xff] }
 0x43f   : > { %2895 = vmatpush.bf16.msra.mxu2 %v16127_v37  ;;  %v16214_v37 = vld [vmem:[%s21837_s10 + $0x190] sm:$0xff] }
 0x440   : > { %11645 = vmatpush.msk.msra.mxu3 %vm2020_vm2, %v2530_v39  ;;  %v16139_v39 = vld [vmem:[%s21866_s0 + $0x178] sm:$0xff] }
 0x442   : > { %2679 = vmatpush.bf16.msrb.mxu3 %v11686_v61  ;;  %v16166_v61 = vld [vmem:[%s21837_s10 + $0x150] sm:$0xff] }
 0x445   : > { %v2531_v11 = vpop.f32.mrf.mxu1 }
 0x446   : > { %2680 = vmatpush.bf16.msrb.mxu3 %v11678_v1  ;;  %v16164_v1 = vld [vmem:[%s21837_s10 + $0x140] sm:$0xff] }
 0x44a   : > { %2681 = vmatpush.bf16.msrb.mxu3 %v11670_v29  ;;  %v16193_v29 = vld [vmem:[%s21866_s0 + $0x1e8] sm:$0xff] }
 0x44e   : > { %2682 = vmatpush.bf16.msrb.mxu3 %v11662_v8  ;;  %v16181_v8 = vld [vmem:[%s21866_s0 + $0x188] sm:$0xff] }
 0x49d   : > { %v18162_v41 = vpop.f32.mrf.mxu0  ;;  %v18164_v42 = vpop.f32.mrf.mxu1 }
 0x4a5   : > { %v2742_v45 = vpop.f32.mrf.mxu0  ;;  %v2755_v47 = vpop.f32.mrf.mxu1 }
 0x4a6   : > { %v16126_v45 = vld [vmem:[%s21866_s0 + $0x110] sm:$0xff] }
 0x4a7   : > { %v16138_v47 = vld [vmem:[%s21866_s0 + $0x170] sm:$0xff]  ;;  %2896 = vmatpush.bf16.msra.mxu2 %v16126_v45  ;;  %v16212_v45 = vld [vmem:[%s21837_s10 + $0x180] sm:$0xff] }
 0x4ab   : > { %v2556_v50 = vpop.f32.mrf.mxu2 }
 0x4ac   : > { %v2559_v51 = vsel %vm1991_vm3, %v2556_v50, -inf }
 0x4ad   : > { %2560 = vmax.xlane.f32.xlu1 %v2559_v51  ;;  %v3060_v16 = vpop.f32.mrf.mxu0  ;;  %v3073_v53 = vpop.f32.mrf.mxu1  ;;  %v16136_v51 = vld [vmem:[%s21866_s0 + $0x160] sm:$0xff] }
 0x4ae   : > { %v3061_v54 = vadd.f32 %v17015_v48, %v3060_v16  ;;  %v16125_v48 = vld [vmem:[%s21866_s0 + $0x108] sm:$0xff]  ;;  %v16135_v16 = vld [vmem:[%s21866_s0 + $0x158] sm:$0xff] }
 0x4af   : > { %2897 = vmatpush.bf16.msra.mxu2 %v16125_v48 }
 0x4b0   : > { %v3074_v56 = vadd.f32 %v3073_v53, %v3061_v54  ;;  %v16134_v53 = vld [vmem:[%s21866_s0 + $0x150] sm:$0xff]  ;;  %v16133_v54 = vld [vmem:[%s21866_s0 + $0x148] sm:$0xff] }
 0x4b2   : > { %12014 = vmatpush.xpose.msk.msra.mxu0 %vm937_vm1, %v3074_v56  ;;  %v16124_v56 = vld [vmem:[%s21866_s0 + $0x100] sm:$0xff] }
 0x4b3   : > { %2898 = vmatpush.bf16.msra.mxu2 %v16124_v56 }
 0x4b5   : > { %v3062_v57 = vpop.f32.mrf.mxu0  ;;  %v3075_v58 = vpop.f32.mrf.mxu1 }
 0x4b6   : > { %v16132_v57 = vld [vmem:[%s21866_s0 + $0x140] sm:$0xff] }
 0x520   : > { %v2561_v2 = vpop.xlane.xlu1 %2560 }
 0x521   : > { %v2562_v3 = vsub.f32 %v2556_v50, %v2561_v2  ;;  %v16137_v50 = vld [vmem:[%s21866_s0 + $0x168] sm:$0xff]  ;;  %v16163_v2 = vld [vmem:[%s21837_s10 + $0x138] sm:$0xff] }
 0x523   : > { %v2563_v5 = vmul.f32 1.442695, %v2562_v3  ;;  %v16171_v3 = vld [vmem:[%s21837_s10 + $0x178] sm:$0xff] }
 0x525   : > { %17049 = vpow2.f32 %v2563_v5 }
 0x52b   : > { %v17050_v7 = vpop.eup %17049 }
 0x52c   : > { %v2565_v14 = vsel %vm1991_vm3, %v17050_v7, 0.0 }
 0x52d   : > { %2566 = vadd.xlane.f32.xlu1 %v2565_v14  ;;  %v16170_v14 = vld [vmem:[%s21837_s10 + $0x170] sm:$0xff] }
 0x5a0   : > { %v2567_v59 = vpop.xlane.xlu1 %2566 }
 0x5a1   : > { %17051 = vrcp.f32 %v2567_v59  ;;  %v2579_v19 = vand.u32 2147483648, %v2567_v59  ;;  %v2577_v27 = vand.u32 2147483647, %v2567_v59  ;;  %vm2573_vm10 = vweird.f32 %v2567_v59 }
 0x5a3   : > { %v2580_v34 = vor.u32 1.1754944e-38, %v2579_v19  ;;  %vm2578_vm12 = vcmp.eq.f32.partialorder %v2577_v27, 8.507059e+37  ;;  %v16226_v19 = vld [vmem:[%s21837_s10 + $0x1f0] sm:$0xff]  ;;  %v16225_v27 = vld [vmem:[%s21837_s10 + $0x1e8] sm:$0xff] }
 0x5a7   : > { %v17052_v18 = vpop.eup %17051 }
 0x5a8   : > { %v2569_v9 = vmul.f32 %v17052_v18, %v2567_v59  ;;  %vm2574_vm9 = vweird.f32 %v17052_v18  ;;  %v16190_v59 = vld [vmem:[%s21866_s0 + $0x1d0] sm:$0xff] }
 0x5a9   : > { %vm2575_vm11 = vmor %vm2573_vm10, %vm2574_vm9 }
 0x5aa   : > { %v2570_v15 = vsub.f32 1.0, %v2569_v9  ;;  %v16219_v9 = vld [vmem:[%s21837_s10 + $0x1b8] sm:$0xff] }
 0x5ac   : > { %v2571_v23 = vmul.f32 %v17052_v18, %v2570_v15  ;;  %v16218_v15 = vld [vmem:[%s21837_s10 + $0x1b0] sm:$0xff] }
 0x5ae   : > { %v2572_v33 = vadd.f32 %v17052_v18, %v2571_v23  ;;  %v16217_v23 = vld [vmem:[%s21837_s10 + $0x1a8] sm:$0xff] }
 0x5b0   : > { %v2576_v35 = vsel %vm2575_vm11, %v17052_v18, %v2572_v33  ;;  %v16188_v18 = vld [vmem:[%s21866_s0 + $0x1c0] sm:$0xff] }
 0x5b1   : > { %v2581_v38 = vsel %vm2578_vm12, %v2580_v34, %v2576_v35  ;;  %v16224_v33 = vld [vmem:[%s21837_s10 + $0x1e0] sm:$0xff]  ;;  %v16215_v34 = vld [vmem:[%s21837_s10 + $0x198] sm:$0xff] }
 0x5b2   : > { %v2582_v11 = vmul.f32 %v17050_v7, %v2581_v38  ;;  %v16162_v7 = vld [vmem:[%s21837_s10 + $0x130] sm:$0xff]  ;;  %v16223_v35 = vld [vmem:[%s21837_s10 + $0x1d8] sm:$0xff] }
 0x5b3   : > { %v16222_v38 = vld [vmem:[%s21837_s10 + $0x1d0] sm:$0xff] }
 0x5b4   : > { %11646 = vmatmul.msk.f32.vlgmr.msra.gmra.mxu3 %vm2016_vm8, %v2582_v11  ;;  %v16221_v11 = vld [vmem:[%s21837_s10 + $0x1c8] sm:$0xff] }
 0x5b5   : > { %2904 = vmatpush.bf16.msra.mxu3 %v16139_v39  ;;  %v16213_v39 = vld [vmem:[%s21837_s10 + $0x188] sm:$0xff] }
 0x5b9   : > { %2905 = vmatpush.bf16.msra.mxu3 %v16138_v47  ;;  %v16220_v47 = vld [vmem:[%s21837_s10 + $0x1c0] sm:$0xff] }
 0x5bd   : > { %2906 = vmatpush.bf16.msra.mxu3 %v16137_v50 }
 0x5c1   : > { %2907 = vmatpush.bf16.msra.mxu3 %v16136_v51 }
 0x5c5   : > { %2908 = vmatpush.bf16.msra.mxu3 %v16135_v16 }
 0x5c9   : > { %2909 = vmatpush.bf16.msra.mxu3 %v16134_v53  ;;  %v17016_v53 = vld [vmem:[%s21834_s7 + $0x2] ss:$0 sm:$0xff] }
 0x5cd   : > { %2910 = vmatpush.bf16.msra.mxu3 %v16133_v54 }
 0x5d1   : > { %2911 = vmatpush.bf16.msra.mxu3 %v16132_v57 }
 0x637   : > { %v2606_v58 = vpop.f32.mrf.mxu3 }
 0x638   : > { %v2609_v5 = vpack.c.bf16 %v2606_v58, %v2606_v58 }
 0x63a   : > { %11687 = vmatmul.msk.bf16.vlgmr.msrb.gmra.mxu2 %vm937_vm1, %v2609_v5  ;;  %11688 = vmatmul.msk.bf16.vlgmr.msrb.gmra.mxu3 %vm937_vm1, %v2609_v5  ;;  %v17017_v5 = vld [vmem:[%s21838_s11 + $0x2] ss:$0 sm:$0xff] }
 0x63b   : > { %3211 = vmatpush.bf16.msrb.mxu2 %v16163_v2  ;;  %3224 = vmatpush.bf16.msrb.mxu3 %v16171_v3 }
 0x63f   : > { %3212 = vmatpush.bf16.msrb.mxu2 %v16162_v7  ;;  %3225 = vmatpush.bf16.msrb.mxu3 %v16170_v14 }
 0x643   : > { %3213 = vmatpush.bf16.msrb.mxu2 %v16161_v22  ;;  %3226 = vmatpush.bf16.msrb.mxu3 %v16169_v26 }
 0x647   : > { %3214 = vmatpush.bf16.msrb.mxu2 %v16160_v40  ;;  %3227 = vmatpush.bf16.msrb.mxu3 %v16168_v46 }
 0x64a   : > { %2899 = vmatmul.bf16.vlgmr.msra.gmra.mxu2 %v17836_v30  ;;  %2912 = vmatmul.bf16.vlgmr.msra.gmra.mxu3 %v17902_v36 }
 0x64b   : > { %3215 = vmatpush.bf16.msrb.mxu2 %v16159_v52  ;;  %3228 = vmatpush.bf16.msrb.mxu3 %v16167_v55 }
 0x64f   : > { %3216 = vmatpush.bf16.msrb.mxu2 %v16158_v60  ;;  %3229 = vmatpush.bf16.msrb.mxu3 %v16166_v61 }
 0x653   : > { %3217 = vmatpush.bf16.msrb.mxu2 %v16157_v62  ;;  %3230 = vmatpush.bf16.msrb.mxu3 %v16165_v63 }
 0x657   : > { %3218 = vmatpush.bf16.msrb.mxu2 %v16156_v0  ;;  %3231 = vmatpush.bf16.msrb.mxu3 %v16164_v1 }
 0x65a   : > { %3219 = vmatmul.bf16.vlgmr.msrb.gmra.mxu2 %v17836_v30  ;;  %3232 = vmatmul.bf16.vlgmr.msrb.gmra.mxu3 %v17902_v36 }
 0x65b   : > { %3528 = vmatpush.bf16.msra.mxu2 %v16187_v4  ;;  %3541 = vmatpush.bf16.msra.mxu3 %v16195_v12 }
 0x65f   : > { %3529 = vmatpush.bf16.msra.mxu2 %v16186_v17  ;;  %3542 = vmatpush.bf16.msra.mxu3 %v16194_v20 }
 0x663   : > { %3530 = vmatpush.bf16.msra.mxu2 %v16185_v24  ;;  %3543 = vmatpush.bf16.msra.mxu3 %v16193_v29 }
 0x667   : > { %3531 = vmatpush.bf16.msra.mxu2 %v16184_v43  ;;  %3544 = vmatpush.bf16.msra.mxu3 %v16192_v44  ;;  %v16178_v44 = vld [vmem:[%s21839_s12 + $0xb4] sm:$0xf] }
 0x66b   : > { %3532 = vmatpush.bf16.msra.mxu2 %v16183_v49  ;;  %3545 = vmatpush.bf16.msra.mxu3 %v16191_v6  ;;  %v12054_v49 = vld [vmem:[%s21839_s12 + $0xb8] sm:$0xf0]  ;;  %v16176_v6 = vld [vmem:[%s21839_s12 + $0xa4] sm:$0xf] }
 0x66f   : > { %3533 = vmatpush.bf16.msra.mxu2 %v16182_v28  ;;  %3546 = vmatpush.bf16.msra.mxu3 %v16190_v59  ;;  %v12057_v28 = vor.u32 %v16178_v44, %v12054_v49  ;;  %v12046_v59 = vld [vmem:[%s21839_s12 + $0xa8] sm:$0xf0]  ;;  %v17019_v44 = vld [vmem:[%s21838_s11 + $0x3] ss:$0 sm:$0xff] }
 0x673   : > { %3534 = vmatpush.bf16.msra.mxu2 %v16181_v8  ;;  %3547 = vmatpush.bf16.msra.mxu3 %v16189_v32  ;;  %v12049_v8 = vor.u32 %v16176_v6, %v12046_v59  ;;  %v12052_v32 = vld [vmem:[%s21839_s12 + $0xb0] sm:$0xf] }
 0x677   : > { %3535 = vmatpush.bf16.msra.mxu2 %v16180_v13  ;;  %3548 = vmatpush.bf16.msra.mxu3 %v16188_v18  ;;  %v16179_v13 = vld [vmem:[%s21839_s12 + $0xb4] sm:$0xf0]  ;;  %v16174_v18 = vld [vmem:[%s21839_s12 + $0x94] sm:$0xf] }
 0x67a   : > { %3536 = vmatmul.bf16.vlgmr.msra.gmra.mxu2 %v17836_v30  ;;  %3549 = vmatmul.bf16.vlgmr.msra.gmra.mxu3 %v17902_v36 }
 0x67b   : > { %3848 = vmatpush.bf16.msrb.mxu2 %v16219_v9  ;;  %3861 = vmatpush.bf16.msrb.mxu3 %v16227_v10  ;;  %v12038_v9 = vld [vmem:[%s21839_s12 + $0x98] sm:$0xf0]  ;;  %v12053_v10 = vor.u32 %v16179_v13, %v12052_v32 }
 0x67d   : > { %3370 = vmatpush.bf16.msrb.mxu0 %v12053_v10 }
 0x67f   : > { %3849 = vmatpush.bf16.msrb.mxu2 %v16218_v15  ;;  %3862 = vmatpush.bf16.msrb.mxu3 %v16226_v19  ;;  %v12044_v15 = vld [vmem:[%s21839_s12 + $0xa0] sm:$0xf]  ;;  %v16177_v19 = vld [vmem:[%s21839_s12 + $0xa4] sm:$0xf0] }
 0x683   : > { %3850 = vmatpush.bf16.msrb.mxu2 %v16217_v23  ;;  %3863 = vmatpush.bf16.msrb.mxu3 %v16225_v27  ;;  %v12045_v23 = vor.u32 %v16177_v19, %v12044_v15  ;;  %v12041_v27 = vor.u32 %v16174_v18, %v12038_v9  ;;  %v17018_v18 = vld [vmem:[%s21834_s7 + $0x3] ss:$0 sm:$0xff] }
 0x685   : > { %3371 = vmatpush.bf16.msrb.mxu0 %v12045_v23 }
 0x687   : > { %3851 = vmatpush.bf16.msrb.mxu2 %v16216_v31  ;;  %3864 = vmatpush.bf16.msrb.mxu3 %v16224_v33  ;;  %v16172_v31 = vld [vmem:[%s21839_s12 + $0x84] sm:$0xf]  ;;  %v12030_v33 = vld [vmem:[%s21839_s12 + $0x88] sm:$0xf0] }
 0x68b   : > { %3852 = vmatpush.bf16.msrb.mxu2 %v16215_v34  ;;  %3865 = vmatpush.bf16.msrb.mxu3 %v16223_v35  ;;  %v12036_v34 = vld [vmem:[%s21839_s12 + $0x90] sm:$0xf]  ;;  %v16175_v35 = vld [vmem:[%s21839_s12 + $0x94] sm:$0xf0] }
 0x68f   : > { %3853 = vmatpush.bf16.msrb.mxu2 %v16214_v37  ;;  %3866 = vmatpush.bf16.msrb.mxu3 %v16222_v38  ;;  %v12037_v37 = vor.u32 %v16175_v35, %v12036_v34  ;;  %v12033_v38 = vor.u32 %v16172_v31, %v12030_v33 }
 0x691   : > { %3372 = vmatpush.bf16.msrb.mxu0 %v12037_v37 }
 0x693   : > { %3854 = vmatpush.bf16.msrb.mxu2 %v16213_v39  ;;  %3867 = vmatpush.bf16.msrb.mxu3 %v16221_v11  ;;  %v12028_v11 = vld [vmem:[%s21839_s12 + $0x80] sm:$0xf] }
 0x697   : > { %3855 = vmatpush.bf16.msrb.mxu2 %v16212_v45  ;;  %3868 = vmatpush.bf16.msrb.mxu3 %v16220_v47  ;;  %v16173_v45 = vld [vmem:[%s21839_s12 + $0x84] sm:$0xf0] }
 0x698   : > { %v12029_v47 = vor.u32 %v16173_v45, %v12028_v11  ;;  %v16234_v11 = vld [vmem:[%s21839_s12 + $0xf4] sm:$0xf] }
 0x69a   : > { %3856 = vmatmul.bf16.vlgmr.msrb.gmra.mxu2 %v17836_v30  ;;  %3869 = vmatmul.bf16.vlgmr.msrb.gmra.mxu3 %v17902_v36 }
 0x69b   : > { %3373 = vmatpush.bf16.msrb.mxu0 %v12029_v47  ;;  %v12391_v47 = vld [vmem:[%s21839_s12 + $0xf8] sm:$0xf0] }
 0x6bd   : > { %v18423_v48 = vpop.f32.mrf.mxu2  ;;  %v18425_v50 = vpop.f32.mrf.mxu3 }
 0x6c5   : > { %v2673_v51 = vpop.f32.mrf.mxu2  ;;  %v2686_v16 = vpop.f32.mrf.mxu3 }
 0x6c6   : > { %v16203_v51 = vld [vmem:[%s21835_s8 + $0x1b8] sm:$0xff] }
 0x6cd   : > { %v2900_v54 = vpop.f32.mrf.mxu2  ;;  %v2913_v56 = vpop.f32.mrf.mxu3 }
 0x6ce   : > { %v2901_v57 = vadd.f32 %v17016_v53, %v2900_v54  ;;  %v16202_v53 = vld [vmem:[%s21835_s8 + $0x1b0] sm:$0xff] }
 0x6d0   : > { %v2914_v58 = vadd.f32 %v2913_v56, %v2901_v57 }
 0x6d2   : > { %12015 = vmatmul.msk.f32.vlgmr.msra.gmra.mxu0 %vm937_vm1, %v2914_v58  ;;  %v16201_v58 = vld [vmem:[%s21835_s8 + $0x1a8] sm:$0xff] }
 0x6d3   : > { %3688 = vmatpush.bf16.msra.mxu0 %v16203_v51  ;;  %v12381_v51 = vld [vmem:[%s21839_s12 + $0xe0] sm:$0xf] }
 0x6d5   : > { %v2902_v2 = vpop.f32.mrf.mxu2  ;;  %v2915_v3 = vpop.f32.mrf.mxu3 }
 0x6d7   : > { %3689 = vmatpush.bf16.msra.mxu0 %v16202_v53  ;;  %v12394_v53 = vor.u32 %v16234_v11, %v12391_v47  ;;  %v16250_v47 = vld [vmem:[%s21842_s15 + $0x74] sm:$0xf] }
 0x6db   : > { %3690 = vmatpush.bf16.msra.mxu0 %v16201_v58 }
 0x6dd   : > { %v3220_v7 = vpop.f32.mrf.mxu2  ;;  %v3233_v14 = vpop.f32.mrf.mxu3 }
 0x6de   : > { %v3221_v22 = vadd.f32 %v17017_v5, %v3220_v7 }
 0x6e0   : > { %v3234_v26 = vadd.f32 %v3233_v14, %v3221_v22 }
 0x6e2   : > { %12016 = vmatpush.msk.msra.mxu1 %vm2020_vm2, %v3234_v26  ;;  %v16211_v26 = vld [vmem:[%s21835_s8 + $0x1f8] sm:$0xff] }
 0x6e4   : > { %3383 = vmatpush.bf16.msrb.mxu1 %v12057_v28 }
 0x6e5   : > { %v3222_v40 = vpop.f32.mrf.mxu2  ;;  %v3235_v46 = vpop.f32.mrf.mxu3 }
 0x6e6   : > { %v16210_v46 = vld [vmem:[%s21835_s8 + $0x1f0] sm:$0xff] }
 0x6e8   : > { %3384 = vmatpush.bf16.msrb.mxu1 %v12049_v8 }
 0x6ec   : > { %3385 = vmatpush.bf16.msrb.mxu1 %v12041_v27 }
 0x6f0   : > { %3386 = vmatpush.bf16.msrb.mxu1 %v12033_v38 }
 0x6fd   : > { %v18435_v52 = vpop.f32.mrf.mxu2  ;;  %v18437_v55 = vpop.f32.mrf.mxu3 }
 0x705   : > { %v3539_v60 = vpop.f32.mrf.mxu2  ;;  %v3552_v61 = vpop.f32.mrf.mxu3 }
 0x706   : > { %v16209_v60 = vld [vmem:[%s21835_s8 + $0x1e8] sm:$0xff]  ;;  %v16208_v61 = vld [vmem:[%s21835_s8 + $0x1e0] sm:$0xff] }
 0x71d   : > { %v18439_v62 = vpop.f32.mrf.mxu2  ;;  %v18441_v63 = vpop.f32.mrf.mxu3 }
 0x71e   : > { %v3858_v49 = vadd.f32 %v17019_v44, %v18439_v62  ;;  %v16228_v44 = vld [vmem:[%s21839_s12 + $0xc4] sm:$0xf] }
 0x720   : > { %v3871_v59 = vadd.f32 %v18441_v63, %v3858_v49  ;;  %v17020_v63 = vld [vmem:[%s21836_s9 + $0x3] ss:$0 sm:$0xff] }
 0x725   : > { %v3859_v0 = vpop.f32.mrf.mxu2  ;;  %v3872_v1 = vpop.f32.mrf.mxu3 }
 0x726   : > { %v16207_v0 = vld [vmem:[%s21835_s8 + $0x1d8] sm:$0xff]  ;;  %v16206_v1 = vld [vmem:[%s21835_s8 + $0x1d0] sm:$0xff] }
 0x74f   : > { %v3260_v4 = vpop.f32.mrf.mxu0 }
 0x750   : > { %v3263_v12 = vsel %vm1991_vm3, %v3260_v4, -inf }
 0x751   : > { %3264 = vmax.xlane.f32.xlu2 %v3263_v12  ;;  %v16200_v12 = vld [vmem:[%s21835_s8 + $0x1a0] sm:$0xff] }
 0x752   : > { %3691 = vmatpush.bf16.msra.mxu0 %v16200_v12 }
 0x7c4   : > { %v3265_v17 = vpop.xlane.xlu2 %3264 }
 0x7c5   : > { %v3266_v20 = vsub.f32 %v3260_v4, %v3265_v17  ;;  %v16205_v4 = vld [vmem:[%s21835_s8 + $0x1c8] sm:$0xff]  ;;  %v16204_v17 = vld [vmem:[%s21835_s8 + $0x1c0] sm:$0xff] }
 0x7c7   : > { %v3267_v24 = vmul.f32 1.442695, %v3266_v20  ;;  %v16199_v20 = vld [vmem:[%s21835_s8 + $0x198] sm:$0xff] }
 0x7c8   : > { %3692 = vmatpush.bf16.msra.mxu0 %v16199_v20 }
 0x7c9   : > { %17053 = vpow2.f32 %v3267_v24  ;;  %v16198_v24 = vld [vmem:[%s21835_s8 + $0x190] sm:$0xff] }
 0x7cc   : > { %3693 = vmatpush.bf16.msra.mxu0 %v16198_v24 }
 0x7cf   : > { %v17054_v29 = vpop.eup %17053 }
 0x7d0   : > { %v3269_v43 = vsel %vm1991_vm3, %v17054_v29, 0.0 }
 0x7d1   : > { %3270 = vadd.xlane.f32.xlu2 %v3269_v43  ;;  %v16196_v43 = vld [vmem:[%s21835_s8 + $0x180] sm:$0xff] }
 0x844   : > { %v3271_v39 = vpop.xlane.xlu2 %3270 }
 0x845   : > { %17055 = vrcp.f32 %v3271_v39  ;;  %v3283_v57 = vand.u32 2147483648, %v3271_v39  ;;  %v3281_v3 = vand.u32 2147483647, %v3271_v39  ;;  %vm3277_vm14 = vweird.f32 %v3271_v39 }
 0x847   : > { %v3284_v7 = vor.u32 1.1754944e-38, %v3283_v57  ;;  %vm3282_vm0 = vcmp.eq.f32.partialorder %v3281_v3, 8.507059e+37  ;;  %v16231_v3 = vld [vmem:[%s21839_s12 + $0xd4] sm:$0xf0] }
 0x84b   : > { %v17056_v16 = vpop.eup %17055 }
 0x84c   : > { %v3273_v54 = vmul.f32 %v17056_v16, %v3271_v39  ;;  %vm3278_vm13 = vweird.f32 %v17056_v16  ;;  %v16235_v39 = vld [vmem:[%s21839_s12 + $0xf4] sm:$0xf0] }
 0x84d   : > { %vm3279_vm15 = vmor %vm3277_vm14, %vm3278_vm13 }
 0x84e   : > { %v3274_v56 = vsub.f32 1.0, %v3273_v54  ;;  %v16232_v54 = vld [vmem:[%s21839_s12 + $0xe4] sm:$0xf] }
 0x850   : > { %v3275_v2 = vmul.f32 %v17056_v16, %v3274_v56  ;;  %v12383_v56 = vld [vmem:[%s21839_s12 + $0xe8] sm:$0xf0] }
 0x851   : > { %v12386_v58 = vor.u32 %v16232_v54, %v12383_v56  ;;  %v16266_v54 = vld [vmem:[%s21842_s15 + $0xf4] sm:$0xf] }
 0x852   : > { %v3276_v5 = vadd.f32 %v17056_v16, %v3275_v2  ;;  %v12373_v2 = vld [vmem:[%s21839_s12 + $0xd0] sm:$0xf] }
 0x854   : > { %v3280_v14 = vsel %vm3279_vm15, %v17056_v16, %v3276_v5  ;;  %v16233_v16 = vld [vmem:[%s21839_s12 + $0xe4] sm:$0xf0]  ;;  %v16230_v5 = vld [vmem:[%s21839_s12 + $0xd4] sm:$0xf] }
 0x855   : > { %v3285_v22 = vsel %vm3282_vm0, %v3284_v7, %v3280_v14  ;;  %v12382_v57 = vor.u32 %v16233_v16, %v12381_v51  ;;  %v12375_v7 = vld [vmem:[%s21839_s12 + $0xd8] sm:$0xf0]  ;;  %v12374_v14 = vor.u32 %v16231_v3, %v12373_v2  ;;  %v17115_v51 = vmov 256.0   ;;  %v12447_v2 = vld [vmem:[%s21842_s15 + $0x60] sm:$0xf] }
 0x856   : > { %v3286_v40 = vmul.f32 %v17054_v29, %v3285_v22  ;;  %v16197_v29 = vld [vmem:[%s21835_s8 + $0x188] sm:$0xff]  ;;  %v12378_v22 = vor.u32 %v16230_v5, %v12375_v7  ;;  %v12511_v7 = vld [vmem:[%s21842_s15 + $0xe0] sm:$0xf] }
 0x857   : > { %3694 = vmatpush.bf16.msra.mxu0 %v16197_v29  ;;  %v12365_v29 = vld [vmem:[%s21839_s12 + $0xc0] sm:$0xf]  ;;  %v16249_v3 = vld [vmem:[%s21842_s15 + $0x64] sm:$0xf0] }
 0x858   : > { %12017 = vmatmul.msk.f32.vlgmr.msra.gmra.mxu1 %vm2016_vm8, %v3286_v40  ;;  %v12448_v5 = vor.u32 %v16249_v3, %v12447_v2  ;;  %v12481_v2 = vld [vmem:[%s21842_s15 + $0xa8] sm:$0xf0] }
 0x859   : > { %3701 = vmatpush.bf16.msra.mxu1 %v16211_v26 }
 0x85b   : > { %3695 = vmatpush.bf16.msra.mxu0 %v16196_v43  ;;  %v16229_v43 = vld [vmem:[%s21839_s12 + $0xc4] sm:$0xf0] }
 0x85c   : > { %v12366_v49 = vor.u32 %v16229_v43, %v12365_v29  ;;  %v16246_v29 = vld [vmem:[%s21842_s15 + $0x54] sm:$0xf]  ;;  %v12441_v43 = vld [vmem:[%s21842_s15 + $0x58] sm:$0xf0] }
 0x85d   : > { %3702 = vmatpush.bf16.msra.mxu1 %v16210_v46 }
 0x861   : > { %3703 = vmatpush.bf16.msra.mxu1 %v16209_v60 }
 0x865   : > { %3704 = vmatpush.bf16.msra.mxu1 %v16208_v61 }
 0x869   : > { %3705 = vmatpush.bf16.msra.mxu1 %v16207_v0 }
 0x86d   : > { %3706 = vmatpush.bf16.msra.mxu1 %v16206_v1 }
 0x871   : > { %3707 = vmatpush.bf16.msra.mxu1 %v16205_v4 }
 0x875   : > { %3708 = vmatpush.bf16.msra.mxu1 %v16204_v17 }
 0x8d5   : > { %v3310_v6 = vpop.f32.mrf.mxu1 }
 0x8d6   : > { %v3313_v28 = vpack.c.bf16 %v3310_v6, %v3310_v6  ;;  %v12367_v6 = vld [vmem:[%s21839_s12 + $0xc8] sm:$0xf0] }
 0x8d8   : > { %12058 = vmatmul.msk.bf16.vlgmr.msrb.gmra.mxu0 %vm937_vm1, %v3313_v28  ;;  %12059 = vmatmul.msk.bf16.vlgmr.msrb.gmra.mxu1 %vm937_vm1, %v3313_v28  ;;  %v12370_v28 = vor.u32 %v16228_v44, %v12367_v6  ;;  %v16262_v6 = vld [vmem:[%s21842_s15 + $0xd4] sm:$0xf] }
 0x8d9   : > { %12353 = vmatpush.msk.msrb.mxu1 %vm2020_vm2, %v3871_v59 }
 0x8e8   : > { %3696 = vmatmul.bf16.vlgmr.msra.gmra.mxu0 %v17836_v30  ;;  %3709 = vmatmul.bf16.vlgmr.msra.gmra.mxu1 %v17902_v36  ;;  %v3538_v30 = vadd.f32 %v17018_v18, %v18435_v52  ;;  %v2754_v18 = vadd.f32 %v18164_v42, %v18425_v50 }
 0x8e9   : > { %4020 = vmatpush.bf16.msra.mxu1 %v12394_v53  ;;  %v12457_v53 = vld [vmem:[%s21842_s15 + $0x78] sm:$0xf0] }
 0x8ea   : > { %v3551_v19 = vadd.f32 %v18437_v55, %v3538_v30  ;;  %v12389_v55 = vld [vmem:[%s21839_s12 + $0xf0] sm:$0xf]  ;;  %v12460_v56 = vor.u32 %v16250_v47, %v12457_v53  ;;  %v12479_v47 = vld [vmem:[%s21842_s15 + $0xa0] sm:$0xf]  ;;  %v16240_v53 = vld [vmem:[%s21842_s15 + $0x24] sm:$0xf] }
 0x8eb   : > { %v12390_v45 = vor.u32 %v16235_v39, %v12389_v55  ;;  %v16251_v55 = vld [vmem:[%s21842_s15 + $0x74] sm:$0xf0]  ;;  %v12519_v39 = vld [vmem:[%s21842_s15 + $0xf0] sm:$0xf] }
 0x8ed   : > { %4021 = vmatpush.bf16.msra.mxu1 %v12386_v58 }
 0x8f1   : > { %4022 = vmatpush.bf16.msra.mxu1 %v12378_v22  ;;  %v16248_v22 = vld [vmem:[%s21842_s15 + $0x64] sm:$0xf] }
 0x8f5   : > { %4023 = vmatpush.bf16.msra.mxu1 %v12370_v28  ;;  %v12505_v28 = vld [vmem:[%s21842_s15 + $0xd8] sm:$0xf0] }
 0x955   : > { %v18552_v8 = vpop.f32.mrf.mxu0  ;;  %v18554_v32 = vpop.f32.mrf.mxu1 }
 0x95d   : > { %v3377_v13 = vpop.f32.mrf.mxu0  ;;  %v3390_v62 = vpop.f32.mrf.mxu1 }
 0x95e   : > { %v4031_v62 = vld [vmem:[%s21840_s13] sm:$0x3] }
 0x95f   : > { %v4034_v30 = vperm.slane %v4031_v62, 1 }
 0x965   : > { %v3697_v9 = vpop.f32.mrf.mxu0  ;;  %v3710_v10 = vpop.f32.mrf.mxu1 }
 0x966   : > { %v3698_v15 = vadd.f32 %v17020_v63, %v3697_v9  ;;  %v2741_v63 = vadd.f32 %v18162_v41, %v18423_v48 }
 0x968   : > { %v3711_v36 = vadd.f32 %v3710_v10, %v3698_v15  ;;  %v3392_v9 = vadd.f32 %v18552_v8, %v2741_v63  ;;  %v3393_v10 = vadd.f32 %v18554_v32, %v2754_v18  ;;  %v4033_v15 = vperm.slane %v4031_v62, 0  ;;  %v12431_v62 = vld [vmem:[%s21842_s15 + $0x40] sm:$0xf]  ;;  %v16245_v63 = vld [vmem:[%s21842_s15 + $0x44] sm:$0xf0] }
 0x969   : > { %v12495_v18 = vld [vmem:[%s21842_s15 + $0xc0] sm:$0xf] }
 0x96a   : > { %12351 = vmatpush.xpose.msk.msrb.mxu0 %vm937_vm1, %v3711_v36 }
 0x96d   : > { %v3699_v23 = vpop.f32.mrf.mxu0  ;;  %v3712_v27 = vpop.f32.mrf.mxu1  ;;  %12352 = vmatmul.msk.f32.vlgmr.msrb.gmra.mxu0 %vm937_vm1, %v3551_v19 }
 0x96e   : > { %4007 = vmatpush.bf16.msra.mxu0 %v12390_v45  ;;  %v16267_v45 = vld [vmem:[%s21842_s15 + $0xf4] sm:$0xf0] }
 0x96f   : > { %v12520_v16 = vor.u32 %v16267_v45, %v12519_v39  ;;  %v16241_v45 = vld [vmem:[%s21842_s15 + $0x24] sm:$0xf0] }
 0x971   : > { %4310 = vmatpush.bf16.msra.mxu3 %v12520_v16  ;;  %v16257_v16 = vld [vmem:[%s21842_s15 + $0xa4] sm:$0xf0] }
 0x972   : > { %4008 = vmatpush.bf16.msra.mxu0 %v12382_v57  ;;  %v12521_v57 = vld [vmem:[%s21842_s15 + $0xf8] sm:$0xf0] }
 0x973   : > { %v12524_v58 = vor.u32 %v16266_v54, %v12521_v57  ;;  %v12417_v54 = vld [vmem:[%s21842_s15 + $0x28] sm:$0xf0] }
 0x974   : > { %v12420_v57 = vor.u32 %v16240_v53, %v12417_v54  ;;  %v12575_v53 = vld [vmem:[%s21844_s17 + $0x60] sm:$0xf]  ;;  %v16281_v54 = vld [vmem:[%s21844_s17 + $0x64] sm:$0xf0] }
 0x976   : > { %4009 = vmatpush.bf16.msra.mxu0 %v12374_v14  ;;  %v16265_v14 = vld [vmem:[%s21842_s15 + $0xe4] sm:$0xf0] }
 0x97a   : > { %4010 = vmatpush.bf16.msra.mxu0 %v12366_v49  ;;  %v12444_v49 = vor.u32 %v16246_v29, %v12441_v43  ;;  %v12463_v29 = vld [vmem:[%s21842_s15 + $0x80] sm:$0xf] }
 0x97e   : > { %4323 = vmatpush.bf16.msrb.mxu0 %v12460_v56  ;;  %v12480_v56 = vor.u32 %v16257_v16, %v12479_v47  ;;  %v12633_v16 = vld [vmem:[%s21844_s17 + $0xd8] sm:$0xf0] }
 0x9ea   : > { %v3897_v31 = vpop.f32.mrf.mxu0 }
 0x9eb   : > { %v3900_v33 = vsel %vm1991_vm3, %v3897_v31, -inf }
 0x9ec   : > { %3901 = vmax.xlane.f32.xlu0 %v3900_v33 }
 0xa5f   : > { %v3902_v34 = vpop.xlane.xlu0 %3901 }
 0xa60   : > { %v3903_v35 = vsub.f32 %v3897_v31, %v3902_v34 }
 0xa62   : > { %v3904_v37 = vmul.f32 1.442695, %v3903_v35 }
 0xa64   : > { %17057 = vpow2.f32 %v3904_v37 }
 0xa6a   : > { %v17058_v38 = vpop.eup %17057 }
 0xa6b   : > { %v3906_v52 = vsel %vm1991_vm3, %v17058_v38, 0.0 }
 0xa6c   : > { %3907 = vadd.xlane.f32.xlu1 %v3906_v52  ;;  %v12455_v52 = vld [vmem:[%s21842_s15 + $0x70] sm:$0xf] }
 0xa6d   : > { %v12456_v11 = vor.u32 %v16251_v55, %v12455_v52  ;;  %v12489_v52 = vld [vmem:[%s21842_s15 + $0xb8] sm:$0xf0] }
 0xa6f   : > { %4297 = vmatpush.bf16.msra.mxu2 %v12456_v11  ;;  %v12415_v11 = vld [vmem:[%s21842_s15 + $0x20] sm:$0xf] }
 0xa73   : > { %4298 = vmatpush.bf16.msra.mxu2 %v12448_v5 }
 0xadf   : > { %v3908_v26 = vpop.xlane.xlu1 %3907 }
 0xae0   : > { %17059 = vrcp.f32 %v3908_v26  ;;  %v3920_v61 = vand.u32 2147483648, %v3908_v26  ;;  %v3918_v1 = vand.u32 2147483647, %v3908_v26  ;;  %vm3914_vm5 = vweird.f32 %v3908_v26 }
 0xae1   : > { %17061 = vrcp.f32 %v17115_v51  ;;  %v12416_v51 = vor.u32 %v16241_v45, %v12415_v11  ;;  %v12631_v11 = vld [vmem:[%s21844_s17 + $0xd0] sm:$0xf]  ;;  %v16295_v45 = vld [vmem:[%s21844_s17 + $0xd4] sm:$0xf0] }
 0xae2   : > { %v3921_v12 = vor.u32 1.1754944e-38, %v3920_v61  ;;  %vm3919_vm7 = vcmp.eq.f32.partialorder %v3918_v1, 8.507059e+37 }
 0xae6   : > { %v17060_v40 = vpop.eup %17059 }
 0xae7   : > { %v3910_v46 = vmul.f32 %v17060_v40, %v3908_v26  ;;  %vm3915_vm4 = vweird.f32 %v17060_v40  ;;  %v12512_v26 = vor.u32 %v16265_v14, %v12511_v7  ;;  %v18692_v1 = vpop.eup %17061  ;;  %v12407_v7 = vld [vmem:[%s21842_s15 + $0x10] sm:$0xf]  ;;  %v16239_v14 = vld [vmem:[%s21842_s15 + $0x14] sm:$0xf0] }
 0xae8   : > { %vm3916_vm6 = vmor %vm3914_vm5, %vm3915_vm4  ;;  %vm4052_vm9 = vweird.f32 %v18692_v1 }
 0xae9   : > { %v3911_v60 = vsub.f32 1.0, %v3910_v46  ;;  %v16264_v46 = vld [vmem:[%s21842_s15 + $0xe4] sm:$0xf]  ;;  %4311 = vmatpush.bf16.msra.mxu3 %v12512_v26  ;;  %v12408_v26 = vor.u32 %v16239_v14, %v12407_v7  ;;  %v16293_v7 = vld [vmem:[%s21844_s17 + $0xc4] sm:$0xf0] }
 0xaeb   : > { %v3912_v0 = vmul.f32 %v17060_v40, %v3911_v60  ;;  %v12513_v60 = vld [vmem:[%s21842_s15 + $0xe8] sm:$0xf0] }
 0xaed   : > { %v3913_v4 = vadd.f32 %v17060_v40, %v3912_v0  ;;  %v12516_v0 = vor.u32 %v16264_v46, %v12513_v60  ;;  %v16238_v46 = vld [vmem:[%s21842_s15 + $0x14] sm:$0xf]  ;;  %v12409_v60 = vld [vmem:[%s21842_s15 + $0x18] sm:$0xf0] }
 0xaef   : > { %v3917_v17 = vsel %vm3916_vm6, %v17060_v40, %v3913_v4  ;;  %v12449_v40 = vld [vmem:[%s21842_s15 + $0x68] sm:$0xf0]  ;;  %v12439_v4 = vld [vmem:[%s21842_s15 + $0x50] sm:$0xf] }
 0xaf0   : > { %v3922_v20 = vsel %vm3919_vm7, %v3921_v12, %v3917_v17  ;;  %v12452_v61 = vor.u32 %v16248_v22, %v12449_v40  ;;  %v16247_v12 = vld [vmem:[%s21842_s15 + $0x54] sm:$0xf0]  ;;  %v12503_v17 = vld [vmem:[%s21842_s15 + $0xd0] sm:$0xf] }
 0xaf1   : > { %v3923_v24 = vmul.f32 %v17058_v38, %v3922_v20  ;;  %v12440_v20 = vor.u32 %v16247_v12, %v12439_v4  ;;  %v12471_v22 = vld [vmem:[%s21842_s15 + $0x90] sm:$0xf]  ;;  %v16255_v40 = vld [vmem:[%s21842_s15 + $0x94] sm:$0xf0]  ;;  %v16254_v4 = vld [vmem:[%s21842_s15 + $0x94] sm:$0xf] }
 0xaf2   : > { %4324 = vmatpush.bf16.msrb.mxu0 %v12452_v61  ;;  %v12472_v61 = vor.u32 %v16255_v40, %v12471_v22  ;;  %v12473_v12 = vld [vmem:[%s21842_s15 + $0x98] sm:$0xf0]  ;;  %v16292_v22 = vld [vmem:[%s21844_s17 + $0xc4] sm:$0xf]  ;;  %v16279_v40 = vld [vmem:[%s21844_s17 + $0x54] sm:$0xf0] }
 0xaf3   : > { %12354 = vmatmul.msk.f32.vlgmr.msrb.gmra.mxu1 %vm2016_vm8, %v3923_v24  ;;  %v16263_v24 = vld [vmem:[%s21842_s15 + $0xd4] sm:$0xf0]  ;;  %4299 = vmatpush.bf16.msra.mxu2 %v12440_v20  ;;  %v12399_v20 = vld [vmem:[%s21842_s15] sm:$0xf] }
 0xaf4   : > { %4336 = vmatpush.bf16.msrb.mxu1 %v12524_v58  ;;  %v12504_v44 = vor.u32 %v16263_v24, %v12503_v17  ;;  %v16256_v58 = vld [vmem:[%s21842_s15 + $0xa4] sm:$0xf]  ;;  %v12476_v17 = vor.u32 %v16254_v4, %v12473_v12  ;;  %v16237_v24 = vld [vmem:[%s21842_s15 + $0x4] sm:$0xf0] }
 0xaf5   : > { %v12484_v3 = vor.u32 %v16256_v58, %v12481_v2  ;;  %v12632_v58 = vor.u32 %v16295_v45, %v12631_v11  ;;  %v12576_v2 = vor.u32 %v16281_v54, %v12575_v53 }
 0xaf6   : > { %4312 = vmatpush.bf16.msra.mxu3 %v12504_v44  ;;  %4325 = vmatpush.bf16.msrb.mxu0 %v12444_v49  ;;  %v12400_v44 = vor.u32 %v16237_v24, %v12399_v20  ;;  %v16253_v49 = vld [vmem:[%s21842_s15 + $0x84] sm:$0xf0]  ;;  %v12615_v20 = vld [vmem:[%s21844_s17 + $0xb0] sm:$0xf]  ;;  %v12559_v24 = vld [vmem:[%s21844_s17 + $0x40] sm:$0xf] }
 0xaf8   : > { %4337 = vmatpush.bf16.msrb.mxu1 %v12516_v0  ;;  %v12412_v0 = vor.u32 %v16238_v46, %v12409_v60  ;;  %v12625_v46 = vld [vmem:[%s21844_s17 + $0xc8] sm:$0xf0]  ;;  %v16278_v60 = vld [vmem:[%s21844_s17 + $0x54] sm:$0xf] }
 0xb70   : > { %v3947_v59 = vpop.f32.mrf.mxu1 }
 0xb71   : > { %v3950_v13 = vpack.c.bf16 %v3947_v59, %v3947_v59  ;;  %v4048_v59 = vmul.f32 256.0, %v18692_v1 }
 0xb73   : > { %12395 = vmatmul.msk.bf16.vlgmr.msra.gmra.mxu0 %vm937_vm1, %v3950_v13  ;;  %12396 = vmatmul.msk.bf16.vlgmr.msra.gmra.mxu1 %vm937_vm1, %v3950_v13  ;;  %v12508_v13 = vor.u32 %v16262_v6, %v12505_v28  ;;  %v16236_v6 = vld [vmem:[%s21842_s15 + $0x4] sm:$0xf]  ;;  %v12401_v28 = vld [vmem:[%s21842_s15 + $0x8] sm:$0xf0] }
 0xb75   : > { %4338 = vmatpush.bf16.msrb.mxu1 %v12508_v13  ;;  %v12404_v13 = vor.u32 %v16236_v6, %v12401_v28  ;;  %v16291_v6 = vld [vmem:[%s21844_s17 + $0xb4] sm:$0xf0]  ;;  %v16276_v28 = vld [vmem:[%s21844_s17 + $0x44] sm:$0xf] }
 0xbf0   : > { %v4012_v36 = vpop.f32.mrf.mxu0  ;;  %v4025_v19 = vpop.f32.mrf.mxu1 }
 0xbf1   : > { %v4029_v23 = vadd.f32 %v4012_v36, %v3392_v9  ;;  %v4030_v27 = vadd.f32 %v4025_v19, %v3393_v10  ;;  %v12432_v9 = vor.u32 %v16245_v63, %v12431_v62  ;;  %v16261_v10 = vld [vmem:[%s21842_s15 + $0xc4] sm:$0xf0]  ;;  %v12465_v62 = vld [vmem:[%s21842_s15 + $0x88] sm:$0xf0] }
 0xbf2   : > { %v12496_v36 = vor.u32 %v16261_v10, %v12495_v18 }
 0xbf3   : > { %v4037_v31 = vadd.f32 %v4033_v15, %v4029_v23  ;;  %v4038_v33 = vadd.f32 %v4034_v30, %v4030_v27  ;;  %v16244_v15 = vld [vmem:[%s21842_s15 + $0x44] sm:$0xf]  ;;  %v12433_v30 = vld [vmem:[%s21842_s15 + $0x48] sm:$0xf0]  ;;  %4300 = vmatpush.bf16.msra.mxu2 %v12432_v9 }
 0xbf4   : > { %v12436_v19 = vor.u32 %v16244_v15, %v12433_v30  ;;  %v16260_v23 = vld [vmem:[%s21842_s15 + $0xc4] sm:$0xf]  ;;  %v12497_v27 = vld [vmem:[%s21842_s15 + $0xc8] sm:$0xf0]  ;;  %4313 = vmatpush.bf16.msra.mxu3 %v12496_v36  ;;  %v12647_v36 = vld [vmem:[%s21844_s17 + $0xf0] sm:$0xf] }
 0xbf5   : > { %v18629_v34 = vadd.f32 %v4037_v31, %v17826_v21  ;;  %v18632_v41 = vadd.f32 %v4038_v33, %v17895_v25  ;;  %v4049_v31 = vsub.f32 1.0, %v4048_v59  ;;  %v12500_v33 = vor.u32 %v16260_v23, %v12497_v27  ;;  %v16298_v23 = vld [vmem:[%s21844_s17 + $0xf4] sm:$0xf] }
 0xbf6   : > { %4326 = vmatpush.bf16.msrb.mxu0 %v12436_v19  ;;  %v12464_v59 = vor.u32 %v16253_v49, %v12463_v29  ;;  %v16299_v19 = vld [vmem:[%s21844_s17 + $0xf4] sm:$0xf0]  ;;  %v16277_v29 = vld [vmem:[%s21844_s17 + $0x44] sm:$0xf0]  ;;  %v12628_v49 = vor.u32 %v16292_v22, %v12625_v46  ;;  %v12543_v46 = vld [vmem:[%s21844_s17 + $0x20] sm:$0xf] }
 0xbf7   : > { %v4042_v42 = vsel %vm2020_vm2, %v18629_v34, 0.0  ;;  %v4043_v48 = vsel %vm2020_vm2, %v18632_v41, 0.0  ;;  %v4055_v50 = vmul.f32 %v18629_v34, %v18629_v34  ;;  %v4056_v8 = vmul.f32 %v18632_v41, %v18632_v41  ;;  %4339 = vmatpush.bf16.msrb.mxu1 %v12500_v33  ;;  %v12649_v33 = vld [vmem:[%s21844_s17 + $0xf8] sm:$0xf0] }
 0xbf8   : > { %v4014_v32 = vpop.f32.mrf.mxu0  ;;  %v4027_v35 = vpop.f32.mrf.mxu1  ;;  %v4044_v37 = vadd.f32 %v4043_v48, %v4042_v42  ;;  %v12423_v42 = vld [vmem:[%s21842_s15 + $0x30] sm:$0xf]  ;;  %v16243_v48 = vld [vmem:[%s21842_s15 + $0x34] sm:$0xf0]  ;;  %v4050_v39 = vmul.f32 %v18692_v1, %v4049_v31  ;;  %v12648_v31 = vor.u32 %v16299_v19, %v12647_v36  ;;  %v12607_v19 = vld [vmem:[%s21844_s17 + $0xa0] sm:$0xf] }
 0xbf9   : > { %v4057_v21 = vsel %vm2020_vm2, %v4055_v50, 0.0  ;;  %v4058_v25 = vsel %vm2020_vm2, %v4056_v8, 0.0  ;;  %v12487_v50 = vld [vmem:[%s21842_s15 + $0xb0] sm:$0xf]  ;;  %v12424_v8 = vor.u32 %v16243_v48, %v12423_v42  ;;  %v16259_v32 = vld [vmem:[%s21842_s15 + $0xb4] sm:$0xf0] }
 0xbfa   : > { %4045 = vadd.xlane.f32.xlu2 %v4044_v37  ;;  %v4059_v38 = vadd.f32 %v4058_v25, %v4057_v21  ;;  %v16242_v35 = vld [vmem:[%s21842_s15 + $0x34] sm:$0xf]  ;;  %v12425_v37 = vld [vmem:[%s21842_s15 + $0x38] sm:$0xf0]  ;;  %v12488_v21 = vor.u32 %v16259_v32, %v12487_v50  ;;  %v4051_v5 = vadd.f32 %v18692_v1, %v4050_v39  ;;  %v12639_v42 = vld [vmem:[%s21844_s17 + $0xe0] sm:$0xf]  ;;  %v12652_v50 = vor.u32 %v16298_v23, %v12649_v33 }
 0xbfb   : > { %v12428_v25 = vor.u32 %v16242_v35, %v12425_v37  ;;  %4301 = vmatpush.bf16.msra.mxu2 %v12424_v8  ;;  %v16297_v48 = vld [vmem:[%s21844_s17 + $0xe4] sm:$0xf0]  ;;  %v16296_v8 = vld [vmem:[%s21844_s17 + $0xe4] sm:$0xf]  ;;  %v12641_v32 = vld [vmem:[%s21844_s17 + $0xe8] sm:$0xf0] }
 0xbfc   : > { %4060 = vadd.xlane.f32.xlu0 %v4059_v38  ;;  %v16258_v38 = vld [vmem:[%s21842_s15 + $0xb4] sm:$0xf]  ;;  %4314 = vmatpush.bf16.msra.mxu3 %v12488_v21  ;;  %v18830_v43 = vsel %vm4052_vm9, %v18692_v1, %v4051_v5  ;;  %v16252_v1 = vld [vmem:[%s21842_s15 + $0x84] sm:$0xf]  ;;  %v12583_v35 = vld [vmem:[%s21844_s17 + $0x70] sm:$0xf]  ;;  %v12640_v21 = vor.u32 %v16297_v48, %v12639_v42 }
 0xbfd   : > { %v12492_v55 = vor.u32 %v16258_v38, %v12489_v52  ;;  %4327 = vmatpush.bf16.msrb.mxu0 %v12428_v25  ;;  %v12468_v18 = vor.u32 %v16252_v1, %v12465_v62  ;;  %v16283_v25 = vld [vmem:[%s21844_s17 + $0x74] sm:$0xf0]  ;;  %v16282_v38 = vld [vmem:[%s21844_s17 + $0x74] sm:$0xf]  ;;  %v12644_v52 = vor.u32 %v16296_v8, %v12641_v32  ;;  %v12585_v39 = vld [vmem:[%s21844_s17 + $0x78] sm:$0xf0] }
 0xbfe   : > { %v12588_v47 = vor.u32 %v16282_v38, %v12585_v39  ;;  %v12623_v5 = vld [vmem:[%s21844_s17 + $0xc0] sm:$0xf]  ;;  %v12617_v1 = vld [vmem:[%s21844_s17 + $0xb8] sm:$0xf0]  ;;  %v16289_v23 = vld [vmem:[%s21844_s17 + $0xa4] sm:$0xf0] }
 0xbff   : > { %4340 = vmatpush.bf16.msrb.mxu1 %v12492_v55  ;;  %4302 = vmatpush.bf16.msra.mxu2 %v12416_v51  ;;  %v12584_v55 = vor.u32 %v16283_v25, %v12583_v35  ;;  %v16294_v51 = vld [vmem:[%s21844_s17 + $0xd4] sm:$0xf]  ;;  %v12624_v12 = vor.u32 %v16293_v7, %v12623_v5  ;;  %v4041_v62 = vld [vmem:[%s21841_s14] sm:$0xf]  ;;  %v16288_v33 = vld [vmem:[%s21844_s17 + $0xa4] sm:$0xf]  ;;  %v12608_v32 = vor.u32 %v16289_v23, %v12607_v19 }
 0xc00   : > { %4315 = vmatpush.bf16.msra.mxu3 %v12480_v56  ;;  %v16280_v56 = vld [vmem:[%s21844_s17 + $0x64] sm:$0xf]  ;;  %v12636_v14 = vor.u32 %v16294_v51, %v12633_v16  ;;  %v12609_v42 = vld [vmem:[%s21844_s17 + $0xa8] sm:$0xf0]  ;;  %v4090_v8 = vperm.slane %v4041_v62, 3 }
 0xc01   : > { %4328 = vmatpush.bf16.msrb.mxu0 %v12420_v57  ;;  %v12577_v57 = vld [vmem:[%s21844_s17 + $0x68] sm:$0xf0]  ;;  %v12599_v5 = vld [vmem:[%s21844_s17 + $0x90] sm:$0xf]  ;;  %v16287_v7 = vld [vmem:[%s21844_s17 + $0x94] sm:$0xf0] }
 0xc02   : > { %v4094_v51 = vperm.slane %v4090_v8, 1  ;;  %v12600_v22 = vor.u32 %v16287_v7, %v12599_v5  ;;  %v4131_v19 = vld [vmem:[%s21843_s16] sm:$0x3]  ;;  %v16303_v5 = vld [vmem:[%s21866_s0 + $0x218] sm:$0xff] }
 0xc03   : > { %4341 = vmatpush.bf16.msrb.mxu1 %v12484_v3  ;;  %4303 = vmatpush.bf16.msra.mxu2 %v12408_v26  ;;  %v12580_v3 = vor.u32 %v16280_v56, %v12577_v57  ;;  %v12567_v26 = vld [vmem:[%s21844_s17 + $0x50] sm:$0xf]  ;;  %v16275_v56 = vld [vmem:[%s21844_s17 + $0x34] sm:$0xf0]  ;;  %v16274_v57 = vld [vmem:[%s21844_s17 + $0x34] sm:$0xf] }
 0xc04   : > { %4316 = vmatpush.bf16.msra.mxu3 %v12472_v61  ;;  %v12569_v61 = vld [vmem:[%s21844_s17 + $0x58] sm:$0xf0]  ;;  %v4134_v23 = vperm.slane %v4131_v19, 1 }
 0xc05   : > { %4329 = vmatpush.bf16.msrb.mxu0 %v12412_v0  ;;  %v12568_v0 = vor.u32 %v16279_v40, %v12567_v26  ;;  %v12601_v26 = vld [vmem:[%s21844_s17 + $0x98] sm:$0xf0] }
 0xc06   : > { %v16311_v7 = vld [vmem:[%s21866_s0 + $0x258] sm:$0xff] }
 0xc07   : > { %4342 = vmatpush.bf16.msrb.mxu1 %v12476_v17  ;;  %4304 = vmatpush.bf16.msra.mxu2 %v12400_v44  ;;  %v12572_v17 = vor.u32 %v16278_v60, %v12569_v61  ;;  %v16273_v60 = vld [vmem:[%s21844_s17 + $0x24] sm:$0xf0]  ;;  %v16272_v61 = vld [vmem:[%s21844_s17 + $0x24] sm:$0xf] }
 0xc08   : > { %4317 = vmatpush.bf16.msra.mxu3 %v12464_v59  ;;  %v12561_v59 = vld [vmem:[%s21844_s17 + $0x48] sm:$0xf0] }
 0xc09   : > { %4330 = vmatpush.bf16.msrb.mxu0 %v12404_v13  ;;  %v16290_v13 = vld [vmem:[%s21844_s17 + $0xb4] sm:$0xf] }
 0xc0a   : > { %v12620_v36 = vor.u32 %v16290_v13, %v12617_v1  ;;  %v16270_v13 = vld [vmem:[%s21844_s17 + $0x14] sm:$0xf]  ;;  %v12537_v1 = vld [vmem:[%s21844_s17 + $0x18] sm:$0xf0] }
 0xc0b   : > { %4343 = vmatpush.bf16.msrb.mxu1 %v12468_v18  ;;  %4551 = vmatpush.bf16.msrb.mxu2 %v12584_v55  ;;  %v12560_v18 = vor.u32 %v16277_v29, %v12559_v24  ;;  %v16284_v24 = vld [vmem:[%s21844_s17 + $0x84] sm:$0xf] }
 0xc0c   : > { %4564 = vmatpush.bf16.msrb.mxu3 %v12648_v31  ;;  %v4082_v31 = vperm.slane %v4041_v62, 2 }
 0xc0d   : > { %4577 = vmatpush.bf16.msra.mxu0 %v12588_v47 }
 0xc0e   : > { %v4086_v55 = vperm.slane %v4082_v31, 0 }
 0xc0f   : > { %4590 = vmatpush.bf16.msra.mxu1 %v12652_v50  ;;  %4552 = vmatpush.bf16.msrb.mxu2 %v12576_v2  ;;  %v4089_v50 = vperm.slane %v4041_v62, 1  ;;  %v12553_v2 = vld [vmem:[%s21844_s17 + $0x38] sm:$0xf0] }
 0xc10   : > { %4565 = vmatpush.bf16.msrb.mxu3 %v12640_v21  ;;  %v12612_v21 = vor.u32 %v16288_v33, %v12609_v42  ;;  %v4133_v42 = vperm.slane %v4131_v19, 0  ;;  %v16347_v19 = vld [vmem:[%s21837_s10 + $0x278] sm:$0xff] }
 0xc11   : > { %4578 = vmatpush.bf16.msra.mxu0 %v12580_v3  ;;  %v4093_v47 = vperm.slane %v4089_v50, 1  ;;  %v12556_v3 = vor.u32 %v16274_v57, %v12553_v2  ;;  %v16304_v57 = vld [vmem:[%s21866_s0 + $0x220] sm:$0xff] }
 0xc13   : > { %4591 = vmatpush.bf16.msra.mxu1 %v12644_v52  ;;  %4553 = vmatpush.bf16.msrb.mxu2 %v12568_v0  ;;  %v12544_v0 = vor.u32 %v16273_v60, %v12543_v46  ;;  %v16302_v60 = vld [vmem:[%s21866_s0 + $0x210] sm:$0xff] }
 0xc14   : > { %4566 = vmatpush.bf16.msrb.mxu3 %v12632_v58 }
 0xc15   : > { %4579 = vmatpush.bf16.msra.mxu0 %v12572_v17  ;;  %v12591_v17 = vld [vmem:[%s21844_s17 + $0x80] sm:$0xf] }
 0xc17   : > { %4592 = vmatpush.bf16.msra.mxu1 %v12636_v14  ;;  %4554 = vmatpush.bf16.msrb.mxu2 %v12560_v18  ;;  %v16286_v14 = vld [vmem:[%s21844_s17 + $0x94] sm:$0xf]  ;;  %v16269_v18 = vld [vmem:[%s21844_s17 + $0x4] sm:$0xf0] }
 0xc18   : > { %4567 = vmatpush.bf16.msrb.mxu3 %v12624_v12  ;;  %v12604_v40 = vor.u32 %v16286_v14, %v12601_v26 }
 0xc1b   : > { %4593 = vmatpush.bf16.msra.mxu1 %v12628_v49 }
 0xc1f   : > { %4594 = vmatpush.bf16.msra.mxu1 %v12620_v36 }
 0xc23   : > { %4595 = vmatpush.bf16.msra.mxu1 %v12612_v21 }
 0xc27   : > { %4596 = vmatpush.bf16.msra.mxu1 %v12604_v40 }
 0xc6d   : > { %v4046_v63 = vpop.xlane.xlu2 %4045 }
 0xc6e   : > { %v18848_v9 = vmul.f32 %v18830_v43, %v4046_v63 }
 0xc6f   : > { %v4061_v10 = vpop.xlane.xlu0 %4060 }
 0xc70   : > { %v4062_v15 = vmul.f32 %v4061_v10, %v18830_v43  ;;  %v4063_v30 = vmul.f32 %v18848_v9, %v18848_v9  ;;  %v12616_v10 = vor.u32 %v16291_v6, %v12615_v20  ;;  %v4076_v25 = vsub.f32 %v18629_v34, %v18848_v9  ;;  %v16285_v20 = vld [vmem:[%s21844_s17 + $0x84] sm:$0xf0]  ;;  %v12535_v6 = vld [vmem:[%s21844_s17 + $0x10] sm:$0xf] }
 0xc71   : > { %v4077_v38 = vsub.f32 %v18632_v41, %v18848_v9  ;;  %v12551_v9 = vld [vmem:[%s21844_s17 + $0x30] sm:$0xf]  ;;  %v12592_v29 = vor.u32 %v16285_v20, %v12591_v17 }
 0xc72   : > { %v4064_v27 = vsub.f32 %v4062_v15, %v4063_v30  ;;  %v12564_v15 = vor.u32 %v16276_v28, %v12561_v59  ;;  %4568 = vmatpush.bf16.msrb.mxu3 %v12616_v10  ;;  %v12552_v58 = vor.u32 %v16275_v56, %v12551_v9  ;;  %v16271_v28 = vld [vmem:[%s21844_s17 + $0x14] sm:$0xf0]  ;;  %v16268_v10 = vld [vmem:[%s21844_s17 + $0x4] sm:$0xf]  ;;  %v4385_v9 = vld [vmem:[%s21845_s18] sm:$0x3] }
 0xc73   : > { %v12536_v59 = vor.u32 %v16271_v28, %v12535_v6  ;;  %v4388_v2 = vperm.slane %v4385_v9, 1  ;;  %v4387_v46 = vperm.slane %v4385_v9, 0  ;;  %v16316_v9 = vld [vmem:[%s21835_s8 + $0x200] sm:$0xff] }
 0xc74   : > { %v18880_v37 = vadd.f32 1e-05, %v4064_v27  ;;  %v4081_v27 = vperm.slane %v4041_v62, 0  ;;  %4580 = vmatpush.bf16.msra.mxu0 %v12564_v15  ;;  %4555 = vmatpush.bf16.msrb.mxu2 %v12552_v58  ;;  %v12540_v62 = vor.u32 %v16270_v13, %v12537_v1  ;;  %v16312_v58 = vld [vmem:[%s21866_s0 + $0x260] sm:$0xff] }
 0xc76   : > { %17063 = vrsqrt.f32 %v18880_v37  ;;  %vm4072_vm11 = vweird.f32 %v18880_v37  ;;  %v4085_v52 = vperm.slane %v4081_v27, 0  ;;  %4569 = vmatpush.bf16.msrb.mxu3 %v12608_v32 }
 0xc78   : > { %4581 = vmatpush.bf16.msra.mxu0 %v12556_v3  ;;  %4556 = vmatpush.bf16.msrb.mxu2 %v12544_v0 }
 0xc7a   : > { %4570 = vmatpush.bf16.msrb.mxu3 %v12600_v22 }
 0xc7c   : > { %v17064_v4 = vpop.eup %17063  ;;  %4557 = vmatpush.bf16.msrb.mxu2 %v12536_v59 }
 0xc7d   : > { %v4067_v44 = vmul.f32 %v17064_v4, %v18880_v37  ;;  %vm4073_vm10 = vweird.f32 %v17064_v4 }
 0xc7e   : > { %vm4074_vm12 = vmor %vm4072_vm11, %vm4073_vm10  ;;  %4571 = vmatpush.bf16.msrb.mxu3 %v12592_v29 }
 0xc7f   : > { %v4068_v63 = vmul.f32 %v17064_v4, %v4067_v44  ;;  %v12593_v44 = vld [vmem:[%s21844_s17 + $0x88] sm:$0xf0] }
 0xc80   : > { %v12596_v49 = vor.u32 %v16284_v24, %v12593_v44 }
 0xc81   : > { %v4069_v30 = vmul.f32 0.5, %v4068_v63  ;;  %v12527_v63 = vld [vmem:[%s21844_s17] sm:$0xf] }
 0xc82   : > { %4597 = vmatpush.bf16.msra.mxu1 %v12596_v49  ;;  %v12528_v15 = vor.u32 %v16269_v18, %v12527_v63  ;;  %v16309_v63 = vld [vmem:[%s21866_s0 + $0x248] sm:$0xff]  ;;  %v16323_v18 = vld [vmem:[%s21835_s8 + $0x238] sm:$0xff] }
 0xc83   : > { %v4070_v48 = vsub.f32 1.5, %v4069_v30  ;;  %v12529_v30 = vld [vmem:[%s21844_s17 + $0x8] sm:$0xf0] }
 0xc84   : > { %v12532_v36 = vor.u32 %v16268_v10, %v12529_v30  ;;  %4558 = vmatpush.bf16.msrb.mxu2 %v12528_v15  ;;  %v16331_v10 = vld [vmem:[%s21835_s8 + $0x278] sm:$0xff]  ;;  %v16300_v15 = vld [vmem:[%s21866_s0 + $0x200] sm:$0xff] }
 0xc85   : > { %v4071_v35 = vmul.f32 %v17064_v4, %v4070_v48  ;;  %v16308_v30 = vld [vmem:[%s21866_s0 + $0x240] sm:$0xff] }
 0xc87   : > { %v4075_v39 = vsel %vm4074_vm12, %v17064_v4, %v4071_v35  ;;  %v12545_v4 = vld [vmem:[%s21844_s17 + $0x28] sm:$0xf0] }
 0xc88   : > { %v4078_v11 = vmul.f32 %v4076_v25, %v4075_v39  ;;  %v4079_v45 = vmul.f32 %v4077_v38, %v4075_v39  ;;  %v12548_v12 = vor.u32 %v16272_v61, %v12545_v4  ;;  %v16310_v61 = vld [vmem:[%s21866_s0 + $0x250] sm:$0xff] }
 0xc8a   : > { %v4087_v37 = vmul.f32 %v4085_v52, %v4078_v11  ;;  %v4088_v16 = vmul.f32 %v4086_v55, %v4079_v45  ;;  %4582 = vmatpush.bf16.msra.mxu0 %v12548_v12 }
 0xc8c   : > { %v18986_v53 = vadd.f32 %v4093_v47, %v4087_v37  ;;  %v18988_v54 = vadd.f32 %v4094_v51, %v4088_v16  ;;  %v16307_v47 = vld [vmem:[%s21866_s0 + $0x238] sm:$0xff]  ;;  %v16306_v37 = vld [vmem:[%s21866_s0 + $0x230] sm:$0xff] }
 0xc8d   : > { %v16315_v51 = vld [vmem:[%s21866_s0 + $0x278] sm:$0xff]  ;;  %v16314_v16 = vld [vmem:[%s21866_s0 + $0x270] sm:$0xff] }
 0xc8e   : > { %v4097_v34 = vpack.c.bf16 %v18986_v53, %v18986_v53  ;;  %v4098_v41 = vpack.c.bf16 %v18988_v54, %v18988_v54  ;;  %4583 = vmatpush.bf16.msra.mxu0 %v12540_v62  ;;  %v16301_v62 = vld [vmem:[%s21866_s0 + $0x208] sm:$0xff] }
 0xc90   : > { %4305 = vmatmul.bf16.vlgmr.msra.gmra.mxu2 %v4097_v34  ;;  %4318 = vmatmul.bf16.vlgmr.msra.gmra.mxu3 %v4098_v41 }
 0xc91   : > { %4331 = vmatmul.bf16.vlgmr.msrb.gmra.mxu0 %v4097_v34  ;;  %4344 = vmatmul.bf16.vlgmr.msrb.gmra.mxu1 %v4098_v41  ;;  %v16305_v34 = vld [vmem:[%s21866_s0 + $0x228] sm:$0xff] }
 0xc92   : > { %4584 = vmatpush.bf16.msra.mxu0 %v12532_v36  ;;  %4790 = vmatpush.bf16.msra.mxu2 %v16307_v47  ;;  %v16313_v41 = vld [vmem:[%s21866_s0 + $0x268] sm:$0xff]  ;;  %v16339_v36 = vld [vmem:[%s21837_s10 + $0x238] sm:$0xff]  ;;  %v16334_v47 = vld [vmem:[%s21837_s10 + $0x210] sm:$0xff] }
 0xc93   : > { %4803 = vmatpush.bf16.msra.mxu3 %v16315_v51  ;;  %4963 = vmatpush.bf16.msrb.mxu1 %v16331_v10  ;;  %v16342_v51 = vld [vmem:[%s21837_s10 + $0x250] sm:$0xff] }
 0xc96   : > { %4791 = vmatpush.bf16.msra.mxu2 %v16306_v37  ;;  %4950 = vmatpush.bf16.msrb.mxu0 %v16323_v18  ;;  %v16317_v37 = vld [vmem:[%s21835_s8 + $0x208] sm:$0xff] }
 0xc97   : > { %4804 = vmatpush.bf16.msra.mxu3 %v16314_v16  ;;  %v16325_v16 = vld [vmem:[%s21835_s8 + $0x248] sm:$0xff] }
 0xc9a   : > { %4792 = vmatpush.bf16.msra.mxu2 %v16305_v34  ;;  %v16333_v34 = vld [vmem:[%s21837_s10 + $0x208] sm:$0xff] }
 0xc9b   : > { %4805 = vmatpush.bf16.msra.mxu3 %v16313_v41  ;;  %v16341_v41 = vld [vmem:[%s21837_s10 + $0x248] sm:$0xff] }
 0xc9e   : > { %4793 = vmatpush.bf16.msra.mxu2 %v16304_v57 }
 0xc9f   : > { %4806 = vmatpush.bf16.msra.mxu3 %v16312_v58 }
 0xca2   : > { %4794 = vmatpush.bf16.msra.mxu2 %v16303_v5  ;;  %v16340_v5 = vld [vmem:[%s21837_s10 + $0x240] sm:$0xff] }
 0xca3   : > { %4807 = vmatpush.bf16.msra.mxu3 %v16311_v7 }
 0xca6   : > { %4795 = vmatpush.bf16.msra.mxu2 %v16302_v60  ;;  %v4605_v60 = vld [vmem:[%s21846_s19] sm:$0xf] }
 0xca7   : > { %4808 = vmatpush.bf16.msra.mxu3 %v16310_v61 }
 0xcaa   : > { %4796 = vmatpush.bf16.msra.mxu2 %v16301_v62 }
 0xcab   : > { %4809 = vmatpush.bf16.msra.mxu3 %v16309_v63 }
 0xcae   : > { %4797 = vmatpush.bf16.msra.mxu2 %v16300_v15 }
 0xcaf   : > { %4810 = vmatpush.bf16.msra.mxu3 %v16308_v30 }
 0xd0e   : > { %v4332_v27 = vpop.f32.mrf.mxu0  ;;  %v4345_v31 = vpop.f32.mrf.mxu1 }
 0xd0f   : > { %v4333_v33 = vadd.f32 %v4332_v27, %v4134_v23  ;;  %v16322_v23 = vld [vmem:[%s21835_s8 + $0x230] sm:$0xff] }
 0xd10   : > { %v16330_v27 = vld [vmem:[%s21835_s8 + $0x270] sm:$0xff]  ;;  %4951 = vmatpush.bf16.msrb.mxu0 %v16322_v23 }
 0xd11   : > { %v4346_v48 = vadd.f32 %v4345_v31, %v4333_v33  ;;  %4964 = vmatpush.bf16.msrb.mxu1 %v16330_v27  ;;  %v16338_v31 = vld [vmem:[%s21837_s10 + $0x230] sm:$0xff] }
 0xd12   : > { %v16346_v33 = vld [vmem:[%s21837_s10 + $0x270] sm:$0xff] }
 0xd13   : > { %v4350_v50 = vmax.f32 %v4346_v48, 0.0  ;;  %v4306_v8 = vpop.f32.mrf.mxu2  ;;  %v4319_v32 = vpop.f32.mrf.mxu3  ;;  %v16329_v48 = vld [vmem:[%s21835_s8 + $0x268] sm:$0xff]  ;;  %v16378_v23 = vld [vmem:[%s21835_s8 + $0x2b0] sm:$0xff] }
 0xd14   : > { %v4307_v35 = vadd.f32 %v4306_v8, %v4133_v42  ;;  %v16321_v42 = vld [vmem:[%s21835_s8 + $0x228] sm:$0xff]  ;;  %v16386_v27 = vld [vmem:[%s21835_s8 + $0x2f0] sm:$0xff] }
 0xd15   : > { %v4352_v21 = vpack.c.bf16 %v4350_v50, %v4350_v50  ;;  %4952 = vmatpush.bf16.msrb.mxu0 %v16321_v42  ;;  %4965 = vmatpush.bf16.msrb.mxu1 %v16329_v48  ;;  %v16337_v50 = vld [vmem:[%s21837_s10 + $0x228] sm:$0xff]  ;;  %v16376_v42 = vld [vmem:[%s21835_s8 + $0x2a0] sm:$0xff] }
 0xd16   : > { %v4320_v25 = vadd.f32 %v4319_v32, %v4307_v35  ;;  %v4334_v38 = vpop.f32.mrf.mxu0  ;;  %v4347_v52 = vpop.f32.mrf.mxu1  ;;  %v16345_v8 = vld [vmem:[%s21837_s10 + $0x268] sm:$0xff]  ;;  %v16320_v32 = vld [vmem:[%s21835_s8 + $0x220] sm:$0xff] }
 0xd17   : > { %4572 = vmatmul.bf16.vlgmr.msrb.gmra.mxu3 %v4352_v21  ;;  %4598 = vmatmul.bf16.vlgmr.msra.gmra.mxu1 %v4352_v21  ;;  %v16328_v35 = vld [vmem:[%s21835_s8 + $0x260] sm:$0xff]  ;;  %v16319_v38 = vld [vmem:[%s21835_s8 + $0x218] sm:$0xff] }
 0xd18   : > { %v4349_v55 = vmax.f32 %v4320_v25, 0.0  ;;  %5123 = vmatpush.bf16.msrb.mxu3 %v16347_v19  ;;  %v16336_v21 = vld [vmem:[%s21837_s10 + $0x220] sm:$0xff]  ;;  %v16327_v52 = vld [vmem:[%s21835_s8 + $0x258] sm:$0xff] }
 0xd19   : > { %4953 = vmatpush.bf16.msrb.mxu0 %v16320_v32  ;;  %4966 = vmatpush.bf16.msrb.mxu1 %v16328_v35  ;;  %v16344_v25 = vld [vmem:[%s21837_s10 + $0x260] sm:$0xff]  ;;  %v16387_v19 = vld [vmem:[%s21835_s8 + $0x2f8] sm:$0xff]  ;;  %v16374_v32 = vld [vmem:[%s21835_s8 + $0x290] sm:$0xff] }
 0xd1a   : > { %v4351_v39 = vpack.c.bf16 %v4349_v55, %v4349_v55  ;;  %v16335_v55 = vld [vmem:[%s21837_s10 + $0x218] sm:$0xff]  ;;  %v16384_v48 = vld [vmem:[%s21835_s8 + $0x2e0] sm:$0xff]  ;;  %v16382_v35 = vld [vmem:[%s21835_s8 + $0x2d0] sm:$0xff] }
 0xd1b   : > { %v4308_v11 = vpop.f32.mrf.mxu2  ;;  %v4321_v45 = vpop.f32.mrf.mxu3 }
 0xd1c   : > { %4559 = vmatmul.bf16.vlgmr.msrb.gmra.mxu2 %v4351_v39  ;;  %4585 = vmatmul.bf16.vlgmr.msra.gmra.mxu0 %v4351_v39  ;;  %v16343_v39 = vld [vmem:[%s21837_s10 + $0x258] sm:$0xff]  ;;  %v16318_v11 = vld [vmem:[%s21835_s8 + $0x210] sm:$0xff] }
 0xd1d   : > { %5110 = vmatpush.bf16.msrb.mxu2 %v16339_v36  ;;  %5124 = vmatpush.bf16.msrb.mxu3 %v16346_v33  ;;  %v16326_v45 = vld [vmem:[%s21835_s8 + $0x250] sm:$0xff]  ;;  %v16385_v33 = vld [vmem:[%s21835_s8 + $0x2e8] sm:$0xff] }
 0xd1e   : > { %4954 = vmatpush.bf16.msrb.mxu0 %v16319_v38  ;;  %4967 = vmatpush.bf16.msrb.mxu1 %v16327_v52  ;;  %v16372_v38 = vld [vmem:[%s21835_s8 + $0x280] sm:$0xff] }
 0xd1f   : > { %v16380_v52 = vld [vmem:[%s21835_s8 + $0x2c0] sm:$0xff] }
 0xd21   : > { %5111 = vmatpush.bf16.msrb.mxu2 %v16338_v31  ;;  %5125 = vmatpush.bf16.msrb.mxu3 %v16345_v8  ;;  %v16377_v31 = vld [vmem:[%s21835_s8 + $0x2a8] sm:$0xff]  ;;  %v16383_v8 = vld [vmem:[%s21835_s8 + $0x2d8] sm:$0xff] }
 0xd22   : > { %4955 = vmatpush.bf16.msrb.mxu0 %v16318_v11  ;;  %4968 = vmatpush.bf16.msrb.mxu1 %v16326_v45 }
 0xd25   : > { %5112 = vmatpush.bf16.msrb.mxu2 %v16337_v50  ;;  %5126 = vmatpush.bf16.msrb.mxu3 %v16344_v25  ;;  %v16375_v50 = vld [vmem:[%s21835_s8 + $0x298] sm:$0xff]  ;;  %v16381_v25 = vld [vmem:[%s21835_s8 + $0x2c8] sm:$0xff] }
 0xd26   : > { %4956 = vmatpush.bf16.msrb.mxu0 %v16317_v37  ;;  %4969 = vmatpush.bf16.msrb.mxu1 %v16325_v16 }
 0xd29   : > { %5113 = vmatpush.bf16.msrb.mxu2 %v16336_v21  ;;  %5127 = vmatpush.bf16.msrb.mxu3 %v16343_v39  ;;  %v16373_v21 = vld [vmem:[%s21835_s8 + $0x288] sm:$0xff] }
 0xd2a   : > { %4957 = vmatpush.bf16.msrb.mxu0 %v16316_v9  ;;  %v16362_v9 = vld [vmem:[%s21866_s0 + $0x2b0] sm:$0xff] }
 0xd2d   : > { %5114 = vmatpush.bf16.msrb.mxu2 %v16335_v55  ;;  %5128 = vmatpush.bf16.msrb.mxu3 %v16342_v51  ;;  %v17021_v55 = vld [vmem:[%s21836_s9 + $0x4] ss:$0 sm:$0xff]  ;;  %v16363_v51 = vld [vmem:[%s21866_s0 + $0x2b8] sm:$0xff] }
 0xd31   : > { %5115 = vmatpush.bf16.msrb.mxu2 %v16334_v47  ;;  %5129 = vmatpush.bf16.msrb.mxu3 %v16341_v41  ;;  %v17022_v47 = vld [vmem:[%s21834_s7 + $0x4] ss:$0 sm:$0xff] }
 0xd35   : > { %5116 = vmatpush.bf16.msrb.mxu2 %v16333_v34  ;;  %5130 = vmatpush.bf16.msrb.mxu3 %v16340_v5 }
 0xd94   : > { %v4599_v56 = vpop.f32.mrf.mxu1 }
 0xd99   : > { %v4586_v3 = vpop.f32.mrf.mxu0 }
 0xd9a   : > { %v4573_v14 = vpop.f32.mrf.mxu3  ;;  %v4587_v22 = vadd.f32 %v4586_v3, %v4388_v2  ;;  %v16332_v3 = vld [vmem:[%s21837_s10 + $0x200] sm:$0xff] }
 0xd9b   : > { %5117 = vmatpush.bf16.msrb.mxu2 %v16332_v3 }
 0xd9c   : > { %v4600_v26 = vadd.f32 %v4599_v56, %v4587_v22  ;;  %v4601_v40 = vpop.f32.mrf.mxu1  ;;  %v16324_v56 = vld [vmem:[%s21835_s8 + $0x240] sm:$0xff] }
 0xd9d   : > { %4970 = vmatpush.bf16.msrb.mxu1 %v16324_v56 }
 0xd9e   : > { %v19109_v4 = vadd.f32 %v4600_v26, %v18988_v54 }
 0xd9f   : > { %v4560_v0 = vpop.f32.mrf.mxu2 }
 0xda0   : > { %v4561_v12 = vadd.f32 %v4560_v0, %v4387_v46  ;;  %v4613_v44 = vmul.f32 %v19109_v4, %v19109_v4  ;;  %v4607_v6 = vsel %vm2020_vm2, %v19109_v4, 0.0 }
 0xda1   : > { %v4588_v17 = vpop.f32.mrf.mxu0 }
 0xda2   : > { %v4574_v20 = vadd.f32 %v4573_v14, %v4561_v12  ;;  %v4575_v24 = vpop.f32.mrf.mxu3  ;;  %v4615_v1 = vsel %vm2020_vm2, %v4613_v44, 0.0  ;;  %v4638_v12 = vperm.slane %v4605_v60, 0  ;;  %v4639_v17 = vperm.slane %v4605_v60, 2 }
 0xda3   : > { %v4646_v24 = vperm.slane %v4605_v60, 1  ;;  %v4647_v44 = vperm.slane %v4605_v60, 3  ;;  %v16358_v60 = vld [vmem:[%s21866_s0 + $0x290] sm:$0xff] }
 0xda4   : > { %v19112_v29 = vadd.f32 %v4574_v20, %v18986_v53 }
 0xda6   : > { %v4606_v49 = vsel %vm2020_vm2, %v19112_v29, 0.0  ;;  %v4612_v54 = vmul.f32 %v19112_v29, %v19112_v29 }
 0xda7   : > { %v4562_v28 = vpop.f32.mrf.mxu2  ;;  %v4608_v59 = vadd.f32 %v4607_v6, %v4606_v49 }
 0xda8   : > { %v4614_v13 = vsel %vm2020_vm2, %v4612_v54, 0.0  ;;  %v4642_v28 = vperm.slane %v4638_v12, 0 }
 0xda9   : > { %4609 = vadd.xlane.f32.xlu1 %v4608_v59  ;;  %v4616_v53 = vadd.f32 %v4615_v1, %v4614_v13  ;;  %v4643_v59 = vperm.slane %v4639_v17, 0  ;;  %v4650_v1 = vperm.slane %v4646_v24, 1  ;;  %v16395_v24 = vld [vmem:[%s21837_s10 + $0x2b8] sm:$0xff] }
 0xdab   : > { %4617 = vadd.xlane.f32.xlu2 %v4616_v53  ;;  %v4651_v53 = vperm.slane %v4647_v44, 1  ;;  %v17024_v44 = vld [vmem:[%s21836_s9 + $0x5] ss:$0 sm:$0xff] }
 0xe1c   : > { %v4610_v57 = vpop.xlane.xlu1 %4609 }
 0xe1d   : > { %v4611_v58 = vmul.f32 %v4610_v57, %v18830_v43 }
 0xe1e   : > { %v4618_v2 = vpop.xlane.xlu2 %4617 }
 0xe1f   : > { %v4619_v7 = vmul.f32 %v4618_v2, %v18830_v43  ;;  %v4620_v14 = vmul.f32 %v4611_v58, %v4611_v58  ;;  %v4633_v6 = vsub.f32 %v19112_v29, %v4611_v58  ;;  %v4634_v54 = vsub.f32 %v19109_v4, %v4611_v58  ;;  %v16379_v29 = vld [vmem:[%s21835_s8 + $0x2b8] sm:$0xff]  ;;  %v16361_v2 = vld [vmem:[%s21866_s0 + $0x2a8] sm:$0xff] }
 0xe21   : > { %v4621_v22 = vsub.f32 %v4619_v7, %v4620_v14  ;;  %v16360_v7 = vld [vmem:[%s21866_s0 + $0x2a0] sm:$0xff] }
 0xe22   : > { %v17023_v14 = vld [vmem:[%s21838_s11 + $0x4] ss:$0 sm:$0xff] }
 0xe23   : > { %v4622_v26 = vadd.f32 1e-05, %v4621_v22  ;;  %v16359_v22 = vld [vmem:[%s21866_s0 + $0x298] sm:$0xff] }
 0xe25   : > { %17065 = vrsqrt.f32 %v4622_v26  ;;  %vm4629_vm14 = vweird.f32 %v4622_v26 }
 0xe2b   : > { %v17066_v40 = vpop.eup %17065 }
 0xe2c   : > { %v4624_v46 = vmul.f32 %v17066_v40, %v4622_v26  ;;  %vm4630_vm13 = vweird.f32 %v17066_v40 }
 0xe2d   : > { %vm4631_vm15 = vmor %vm4629_vm14, %vm4630_vm13 }
 0xe2e   : > { %v4625_v61 = vmul.f32 %v17066_v40, %v4624_v46 }
 0xe30   : > { %v4626_v0 = vmul.f32 0.5, %v4625_v61 }
 0xe32   : > { %v4627_v20 = vsub.f32 1.5, %v4626_v0  ;;  %v16357_v0 = vld [vmem:[%s21866_s0 + $0x288] sm:$0xff] }
 0xe34   : > { %v4628_v49 = vmul.f32 %v17066_v40, %v4627_v20  ;;  %v16356_v20 = vld [vmem:[%s21866_s0 + $0x280] sm:$0xff] }
 0xe36   : > { %v4632_v13 = vsel %vm4631_vm15, %v17066_v40, %v4628_v49  ;;  %v16394_v49 = vld [vmem:[%s21837_s10 + $0x2b0] sm:$0xff] }
 0xe37   : > { %v4635_v62 = vmul.f32 %v4633_v6, %v4632_v13  ;;  %v4636_v63 = vmul.f32 %v4634_v54, %v4632_v13 }
 0xe39   : > { %v4644_v18 = vmul.f32 %v4642_v28, %v4635_v62  ;;  %v4645_v10 = vmul.f32 %v4643_v59, %v4636_v63  ;;  %v16393_v59 = vld [vmem:[%s21837_s10 + $0x2a8] sm:$0xff]  ;;  %v16391_v63 = vld [vmem:[%s21837_s10 + $0x298] sm:$0xff] }
 0xe3b   : > { %v19239_v15 = vadd.f32 %v4650_v1, %v4644_v18  ;;  %v19241_v30 = vadd.f32 %v4651_v53, %v4645_v10  ;;  %v16392_v1 = vld [vmem:[%s21837_s10 + $0x2a0] sm:$0xff]  ;;  %v16390_v18 = vld [vmem:[%s21837_s10 + $0x290] sm:$0xff]  ;;  %v16389_v10 = vld [vmem:[%s21837_s10 + $0x288] sm:$0xff] }
 0xe3d   : > { %v19245_v36 = vpack.c.bf16 %v19239_v15, %v19239_v15  ;;  %v19249_v4 = vpack.c.bf16 %v19241_v30, %v19241_v30 }
 0xe3f   : > { %4798 = vmatmul.bf16.vlgmr.msra.gmra.mxu2 %v19245_v36  ;;  %4811 = vmatmul.bf16.vlgmr.msra.gmra.mxu3 %v19249_v4 }
 0xe40   : > { %4958 = vmatmul.bf16.vlgmr.msrb.gmra.mxu0 %v19245_v36  ;;  %4971 = vmatmul.bf16.vlgmr.msrb.gmra.mxu1 %v19249_v4 }
 0xe41   : > { %5516 = vmatpush.bf16.msra.mxu2 %v16379_v29  ;;  %5529 = vmatpush.bf16.msra.mxu3 %v16387_v19  ;;  %v16388_v29 = vld [vmem:[%s21837_s10 + $0x280] sm:$0xff] }
 0xe45   : > { %5517 = vmatpush.bf16.msra.mxu2 %v16378_v23  ;;  %5530 = vmatpush.bf16.msra.mxu3 %v16386_v27 }
 0xe49   : > { %5518 = vmatpush.bf16.msra.mxu2 %v16377_v31  ;;  %5531 = vmatpush.bf16.msra.mxu3 %v16385_v33 }
 0xe4d   : > { %5519 = vmatpush.bf16.msra.mxu2 %v16376_v42  ;;  %5532 = vmatpush.bf16.msra.mxu3 %v16384_v48  ;;  %v16371_v48 = vld [vmem:[%s21866_s0 + $0x2f8] sm:$0xff] }
 0xe4f   : > { %5118 = vmatmul.bf16.vlgmr.msrb.gmra.mxu2 %v19245_v36  ;;  %5131 = vmatmul.bf16.vlgmr.msrb.gmra.mxu3 %v19249_v4 }
 0xe51   : > { %5520 = vmatpush.bf16.msra.mxu2 %v16375_v50  ;;  %5533 = vmatpush.bf16.msra.mxu3 %v16383_v8  ;;  %v16370_v50 = vld [vmem:[%s21866_s0 + $0x2f0] sm:$0xff]  ;;  %v16369_v8 = vld [vmem:[%s21866_s0 + $0x2e8] sm:$0xff] }
 0xe55   : > { %5521 = vmatpush.bf16.msra.mxu2 %v16374_v32  ;;  %5534 = vmatpush.bf16.msra.mxu3 %v16382_v35 }
 0xe59   : > { %5522 = vmatpush.bf16.msra.mxu2 %v16373_v21  ;;  %5535 = vmatpush.bf16.msra.mxu3 %v16381_v25 }
 0xe5d   : > { %5523 = vmatpush.bf16.msra.mxu2 %v16372_v38  ;;  %5536 = vmatpush.bf16.msra.mxu3 %v16380_v52  ;;  %v16368_v52 = vld [vmem:[%s21866_s0 + $0x2e0] sm:$0xff] }
 0xe60   : > { %5524 = vmatmul.bf16.vlgmr.msra.gmra.mxu2 %v19245_v36  ;;  %5537 = vmatmul.bf16.vlgmr.msra.gmra.mxu3 %v19249_v4 }
 0xebd   : > { %v4959_v39 = vpop.f32.mrf.mxu0  ;;  %v4972_v11 = vpop.f32.mrf.mxu1 }
 0xebe   : > { %v4960_v45 = vadd.f32 %v17021_v55, %v4959_v39  ;;  %v16367_v55 = vld [vmem:[%s21866_s0 + $0x2d8] sm:$0xff]  ;;  %v16366_v39 = vld [vmem:[%s21866_s0 + $0x2d0] sm:$0xff] }
 0xec0   : > { %v4973_v37 = vadd.f32 %v4972_v11, %v4960_v45  ;;  %v16365_v11 = vld [vmem:[%s21866_s0 + $0x2c8] sm:$0xff]  ;;  %v16364_v45 = vld [vmem:[%s21866_s0 + $0x2c0] sm:$0xff] }
 0xec2   : > { %12944 = vmatpush.xpose.msk.msra.mxu0 %vm937_vm1, %v4973_v37  ;;  %v4799_v16 = vpop.f32.mrf.mxu2  ;;  %v4812_v34 = vpop.f32.mrf.mxu3 }
 0xec3   : > { %v4800_v41 = vadd.f32 %v17022_v47, %v4799_v16 }
 0xec5   : > { %v4813_v56 = vadd.f32 %v4812_v34, %v4800_v41  ;;  %v4961_v57 = vpop.f32.mrf.mxu0  ;;  %v4974_v58 = vpop.f32.mrf.mxu1 }
 0xec6   : > { %5356 = vmatpush.bf16.msrb.mxu0 %v16363_v51 }
 0xec7   : > { %12945 = vmatmul.msk.f32.vlgmr.msra.gmra.mxu0 %vm937_vm1, %v4813_v56 }
 0xeca   : > { %5357 = vmatpush.bf16.msrb.mxu0 %v16362_v9  ;;  %v4801_v3 = vpop.f32.mrf.mxu2  ;;  %v4814_v5 = vpop.f32.mrf.mxu3 }
 0xecb   : > { %v16403_v3 = vld [vmem:[%s21837_s10 + $0x2f8] sm:$0xff] }
 0xece   : > { %5358 = vmatpush.bf16.msrb.mxu0 %v16361_v2 }
 0xed2   : > { %5359 = vmatpush.bf16.msrb.mxu0 %v16360_v7  ;;  %v5119_v26 = vpop.f32.mrf.mxu2  ;;  %v5132_v40 = vpop.f32.mrf.mxu3  ;;  %v13319_v7 = vld [vmem:[%s21839_s12 + $0x130] sm:$0xf] }
 0xed3   : > { %v5120_v46 = vadd.f32 %v17023_v14, %v5119_v26  ;;  %v16355_v14 = vld [vmem:[%s21839_s12 + $0x134] sm:$0xf0] }
 0xed4   : > { %v13320_v26 = vor.u32 %v16355_v14, %v13319_v7 }
 0xed5   : > { %v5133_v61 = vadd.f32 %v5132_v40, %v5120_v46  ;;  %v13311_v40 = vld [vmem:[%s21839_s12 + $0x120] sm:$0xf]  ;;  %v16353_v46 = vld [vmem:[%s21839_s12 + $0x124] sm:$0xf0] }
 0xed6   : > { %5360 = vmatpush.bf16.msrb.mxu0 %v16359_v22  ;;  %v16402_v22 = vld [vmem:[%s21837_s10 + $0x2f0] sm:$0xff] }
 0xed7   : > { %12946 = vmatpush.msk.msra.mxu1 %vm2020_vm2, %v5133_v61  ;;  %v13303_v61 = vld [vmem:[%s21839_s12 + $0x110] sm:$0xf] }
 0xed9   : > { %5369 = vmatpush.bf16.msrb.mxu1 %v16371_v48  ;;  %v16348_v48 = vld [vmem:[%s21839_s12 + $0x104] sm:$0xf] }
 0xeda   : > { %5361 = vmatpush.bf16.msrb.mxu0 %v16358_v60  ;;  %v5121_v12 = vpop.f32.mrf.mxu2  ;;  %v5134_v17 = vpop.f32.mrf.mxu3  ;;  %v13312_v60 = vor.u32 %v16353_v46, %v13311_v40  ;;  %v17027_v46 = vld [vmem:[%s21836_s9 + $0x6] ss:$0 sm:$0xff] }
 0xedb   : > { %v16401_v12 = vld [vmem:[%s21837_s10 + $0x2e8] sm:$0xff] }
 0xedd   : > { %5370 = vmatpush.bf16.msrb.mxu1 %v16370_v50  ;;  %v13297_v50 = vld [vmem:[%s21839_s12 + $0x108] sm:$0xf0] }
 0xede   : > { %5362 = vmatpush.bf16.msrb.mxu0 %v16357_v0  ;;  %v16351_v0 = vld [vmem:[%s21839_s12 + $0x114] sm:$0xf0] }
 0xedf   : > { %v13304_v17 = vor.u32 %v16351_v0, %v13303_v61 }
 0xee1   : > { %5371 = vmatpush.bf16.msrb.mxu1 %v16369_v8  ;;  %v13300_v8 = vor.u32 %v16348_v48, %v13297_v50  ;;  %v16407_v48 = vld [vmem:[%s21839_s12 + $0x154] sm:$0xf0]  ;;  %v16406_v50 = vld [vmem:[%s21839_s12 + $0x154] sm:$0xf] }
 0xee2   : > { %5363 = vmatpush.bf16.msrb.mxu0 %v16356_v20  ;;  %v13295_v20 = vld [vmem:[%s21839_s12 + $0x100] sm:$0xf] }
 0xee3   : > { %v5525_v6 = vpop.f32.mrf.mxu2  ;;  %v5538_v54 = vpop.f32.mrf.mxu3 }
 0xee4   : > { %v5526_v28 = vadd.f32 %v17024_v44, %v5525_v6  ;;  %v16400_v44 = vld [vmem:[%s21837_s10 + $0x2e0] sm:$0xff]  ;;  %v16435_v6 = vld [vmem:[%s21835_s8 + $0x338] sm:$0xff] }
 0xee5   : > { %5364 = vmatmul.bf16.vlgmr.msrb.gmra.mxu0 %v19245_v36  ;;  %5372 = vmatpush.bf16.msrb.mxu1 %v16368_v52  ;;  %v16431_v52 = vld [vmem:[%s21835_s8 + $0x318] sm:$0xff] }
 0xee6   : > { %5676 = vmatpush.bf16.msra.mxu0 %v16395_v24  ;;  %v5539_v13 = vadd.f32 %v5538_v54, %v5526_v28  ;;  %v16349_v24 = vld [vmem:[%s21839_s12 + $0x104] sm:$0xf0]  ;;  %v16399_v54 = vld [vmem:[%s21837_s10 + $0x2d8] sm:$0xff]  ;;  %v16434_v28 = vld [vmem:[%s21835_s8 + $0x330] sm:$0xff] }
 0xee8   : > { %13247 = vmatpush.xpose.msk.msrb.mxu2 %vm937_vm1, %v5539_v13  ;;  %v16433_v13 = vld [vmem:[%s21835_s8 + $0x328] sm:$0xff] }
 0xee9   : > { %5373 = vmatpush.bf16.msrb.mxu1 %v16367_v55  ;;  %v16439_v55 = vld [vmem:[%s21835_s8 + $0x358] sm:$0xff] }
 0xeea   : > { %5677 = vmatpush.bf16.msra.mxu0 %v16394_v49  ;;  %v13296_v49 = vor.u32 %v16349_v24, %v13295_v20 }
 0xeeb   : > { %v5527_v53 = vpop.f32.mrf.mxu2  ;;  %v5540_v62 = vpop.f32.mrf.mxu3 }
 0xeec   : > { %v16354_v53 = vld [vmem:[%s21839_s12 + $0x134] sm:$0xf]  ;;  %v13321_v62 = vld [vmem:[%s21839_s12 + $0x138] sm:$0xf0] }
 0xeed   : > { %5374 = vmatpush.bf16.msrb.mxu1 %v16366_v39  ;;  %v16430_v39 = vld [vmem:[%s21835_s8 + $0x310] sm:$0xff] }
 0xeee   : > { %5678 = vmatpush.bf16.msra.mxu0 %v16393_v59  ;;  %v16398_v59 = vld [vmem:[%s21837_s10 + $0x2d0] sm:$0xff] }
 0xef1   : > { %5375 = vmatpush.bf16.msrb.mxu1 %v16365_v11  ;;  %v16438_v11 = vld [vmem:[%s21835_s8 + $0x350] sm:$0xff] }
 0xef2   : > { %5679 = vmatpush.bf16.msra.mxu0 %v16392_v1  ;;  %v16397_v1 = vld [vmem:[%s21837_s10 + $0x2c8] sm:$0xff] }
 0xef5   : > { %5376 = vmatpush.bf16.msrb.mxu1 %v16364_v45  ;;  %v16429_v45 = vld [vmem:[%s21835_s8 + $0x308] sm:$0xff] }
 0xef6   : > { %5680 = vmatpush.bf16.msra.mxu0 %v16391_v63  ;;  %v16396_v63 = vld [vmem:[%s21837_s10 + $0x2c0] sm:$0xff] }
 0xefa   : > { %5681 = vmatpush.bf16.msra.mxu0 %v16390_v18  ;;  %v13324_v18 = vor.u32 %v16354_v53, %v13321_v62  ;;  %v13287_v62 = vld [vmem:[%s21839_s12 + $0x178] sm:$0xf0] }
 0xefe   : > { %5682 = vmatpush.bf16.msra.mxu0 %v16389_v10  ;;  %v16352_v10 = vld [vmem:[%s21839_s12 + $0x124] sm:$0xf] }
 0xf02   : > { %5683 = vmatpush.bf16.msra.mxu0 %v16388_v29  ;;  %v13313_v29 = vld [vmem:[%s21839_s12 + $0x128] sm:$0xf0] }
 0xf05   : > { %5684 = vmatmul.bf16.vlgmr.msra.gmra.mxu0 %v19245_v36 }
 0xf06   : > { %5904 = vmatpush.bf16.msrb.mxu0 %v13320_v26 }
 0xf0a   : > { %5905 = vmatpush.bf16.msrb.mxu0 %v13312_v60 }
 0xf0e   : > { %5906 = vmatpush.bf16.msrb.mxu0 %v13304_v17 }
 0xf12   : > { %5907 = vmatpush.bf16.msrb.mxu0 %v13296_v49 }
 0xf16   : > { %6220 = vmatpush.bf16.msra.mxu0 %v16435_v6 }
 0xf1a   : > { %6221 = vmatpush.bf16.msra.mxu0 %v16434_v28 }
 0xf1e   : > { %6222 = vmatpush.bf16.msra.mxu0 %v16433_v13  ;;  %v16411_v13 = vld [vmem:[%s21839_s12 + $0x174] sm:$0xf0] }
 0xf44   : > { %v5159_v19 = vpop.f32.mrf.mxu0 }
 0xf45   : > { %v5162_v23 = vsel %vm1991_vm3, %v5159_v19, -inf }
 0xf46   : > { %5163 = vmax.xlane.f32.xlu0 %v5162_v23  ;;  %v16350_v23 = vld [vmem:[%s21839_s12 + $0x114] sm:$0xf] }
 0xf62   : > { %v19374_v27 = vpop.f32.mrf.mxu0 }
 0xf6a   : > { %v5367_v31 = vpop.f32.mrf.mxu0 }
 0xf6b   : > { %v13305_v31 = vld [vmem:[%s21839_s12 + $0x118] sm:$0xf0] }
 0xf82   : > { %v19376_v33 = vpop.f32.mrf.mxu0 }
 0xf8a   : > { %v5687_v42 = vpop.f32.mrf.mxu0 }
 0xf8b   : > { %v13308_v42 = vor.u32 %v16350_v23, %v13305_v31 }
 0xfb9   : > { %v5164_v32 = vpop.xlane.xlu0 %5163 }
 0xfba   : > { %v5165_v35 = vsub.f32 %v5159_v19, %v5164_v32  ;;  %v13316_v19 = vor.u32 %v16352_v10, %v13313_v29  ;;  %v16443_v32 = vld [vmem:[%s21835_s8 + $0x378] sm:$0xff]  ;;  %v16408_v29 = vld [vmem:[%s21839_s12 + $0x164] sm:$0xf] }
 0xfbc   : > { %v5166_v21 = vmul.f32 1.442695, %v5165_v35  ;;  %v16442_v35 = vld [vmem:[%s21835_s8 + $0x370] sm:$0xff] }
 0xfbe   : > { %17067 = vpow2.f32 %v5166_v21  ;;  %v16441_v21 = vld [vmem:[%s21835_s8 + $0x368] sm:$0xff] }
 0xfc4   : > { %v17068_v25 = vpop.eup %17067 }
 0xfc5   : > { %v5168_v38 = vsel %vm1991_vm3, %v17068_v25, 0.0 }
 0xfc6   : > { %5169 = vadd.xlane.f32.xlu1 %v5168_v38  ;;  %v16440_v38 = vld [vmem:[%s21835_s8 + $0x360] sm:$0xff] }
0x1039   : > { %v5170_v47 = vpop.xlane.xlu1 %5169 }
0x103a   : > { %17069 = vrcp.f32 %v5170_v47  ;;  %v5182_v34 = vand.u32 2147483648, %v5170_v47  ;;  %v5180_v9 = vand.u32 2147483647, %v5170_v47  ;;  %vm5176_vm4 = vweird.f32 %v5170_v47 }
0x103c   : > { %v5183_v57 = vor.u32 1.1754944e-38, %v5182_v34  ;;  %vm5181_vm6 = vcmp.eq.f32.partialorder %v5180_v9, 8.507059e+37 }
0x1040   : > { %v17070_v51 = vpop.eup %17069 }
0x1041   : > { %v5172_v37 = vmul.f32 %v17070_v51, %v5170_v47  ;;  %vm5177_vm0 = vweird.f32 %v17070_v51  ;;  %v16437_v47 = vld [vmem:[%s21835_s8 + $0x348] sm:$0xff] }
0x1042   : > { %vm5178_vm5 = vmor %vm5176_vm4, %vm5177_vm0 }
0x1043   : > { %v5173_v16 = vsub.f32 1.0, %v5172_v37  ;;  %v16436_v37 = vld [vmem:[%s21835_s8 + $0x340] sm:$0xff] }
0x1045   : > { %v5174_v41 = vmul.f32 %v17070_v51, %v5173_v16 }
0x1047   : > { %v5175_v56 = vadd.f32 %v17070_v51, %v5174_v41  ;;  %v17025_v41 = vld [vmem:[%s21834_s7 + $0x5] ss:$0 sm:$0xff] }
0x1048   : > { %v5366_v9 = vadd.f32 %v17025_v41, %v19374_v27 }
0x1049   : > { %v5179_v58 = vsel %vm5178_vm5, %v17070_v51, %v5175_v56  ;;  %v16428_v51 = vld [vmem:[%s21835_s8 + $0x300] sm:$0xff] }
0x104a   : > { %v5184_v2 = vsel %vm5181_vm6, %v5183_v57, %v5179_v58 }
0x104b   : > { %v5185_v5 = vmul.f32 %v17068_v25, %v5184_v2  ;;  %v16432_v25 = vld [vmem:[%s21835_s8 + $0x320] sm:$0xff] }
0x104c   : > { %6223 = vmatpush.bf16.msra.mxu0 %v16432_v25  ;;  %v17026_v2 = vld [vmem:[%s21838_s11 + $0x5] ss:$0 sm:$0xff]  ;;  %v16405_v25 = vld [vmem:[%s21839_s12 + $0x144] sm:$0xf0] }
0x104d   : > { %12947 = vmatmul.msk.f32.vlgmr.msra.gmra.mxu1 %vm2016_vm8, %v5185_v5 }
0x104e   : > { %5689 = vmatpush.bf16.msra.mxu1 %v16403_v3  ;;  %v5686_v3 = vadd.f32 %v17026_v2, %v19376_v33 }
0x1050   : > { %6224 = vmatpush.bf16.msra.mxu0 %v16431_v52  ;;  %v13263_v52 = vld [vmem:[%s21839_s12 + $0x148] sm:$0xf0] }
0x1052   : > { %5690 = vmatpush.bf16.msra.mxu1 %v16402_v22 }
0x1054   : > { %6225 = vmatpush.bf16.msra.mxu0 %v16430_v39 }
0x1055   : > { %5377 = vmatmul.bf16.vlgmr.msrb.gmra.mxu1 %v19249_v4 }
0x1056   : > { %5691 = vmatpush.bf16.msra.mxu1 %v16401_v12 }
0x1058   : > { %6226 = vmatpush.bf16.msra.mxu0 %v16429_v45  ;;  %v16419_v45 = vld [vmem:[%s21866_s0 + $0x338] sm:$0xff] }
0x105a   : > { %5692 = vmatpush.bf16.msra.mxu1 %v16400_v44 }
0x105c   : > { %6227 = vmatpush.bf16.msra.mxu0 %v16428_v51 }
0x105e   : > { %5693 = vmatpush.bf16.msra.mxu1 %v16399_v54 }
0x1062   : > { %5694 = vmatpush.bf16.msra.mxu1 %v16398_v59  ;;  %v13285_v59 = vld [vmem:[%s21839_s12 + $0x170] sm:$0xf] }
0x1063   : > { %v13286_v53 = vor.u32 %v16411_v13, %v13285_v59  ;;  %v16458_v59 = vld [vmem:[%s21837_s10 + $0x370] sm:$0xff]  ;;  %v16449_v13 = vld [vmem:[%s21837_s10 + $0x328] sm:$0xff] }
0x1065   : > { %5835 = vmatpush.bf16.msra.mxu2 %v13286_v53  ;;  %v16448_v53 = vld [vmem:[%s21837_s10 + $0x320] sm:$0xff] }
0x1066   : > { %5695 = vmatpush.bf16.msra.mxu1 %v16397_v1  ;;  %v16410_v1 = vld [vmem:[%s21839_s12 + $0x174] sm:$0xf] }
0x1067   : > { %v13290_v10 = vor.u32 %v16410_v1, %v13287_v62  ;;  %v16457_v1 = vld [vmem:[%s21837_s10 + $0x368] sm:$0xff]  ;;  %v16456_v62 = vld [vmem:[%s21837_s10 + $0x360] sm:$0xff] }
0x106a   : > { %5696 = vmatpush.bf16.msra.mxu1 %v16396_v63  ;;  %v13277_v63 = vld [vmem:[%s21839_s12 + $0x160] sm:$0xf] }
0x106d   : > { %5697 = vmatmul.bf16.vlgmr.msra.gmra.mxu1 %v19249_v4 }
0x106e   : > { %5917 = vmatpush.bf16.msrb.mxu1 %v13324_v18  ;;  %v16409_v18 = vld [vmem:[%s21839_s12 + $0x164] sm:$0xf0] }
0x106f   : > { %v13278_v23 = vor.u32 %v16409_v18, %v13277_v63  ;;  %v16447_v63 = vld [vmem:[%s21837_s10 + $0x318] sm:$0xff] }
0x1070   : > { %v16455_v18 = vld [vmem:[%s21837_s10 + $0x358] sm:$0xff] }
0x1071   : > { %5836 = vmatpush.bf16.msra.mxu2 %v13278_v23  ;;  %v16453_v23 = vld [vmem:[%s21837_s10 + $0x348] sm:$0xff] }
0x1072   : > { %5918 = vmatpush.bf16.msrb.mxu1 %v13316_v19  ;;  %v13279_v19 = vld [vmem:[%s21839_s12 + $0x168] sm:$0xf0] }
0x1073   : > { %v13282_v31 = vor.u32 %v16408_v29, %v13279_v19  ;;  %v16454_v29 = vld [vmem:[%s21837_s10 + $0x350] sm:$0xff]  ;;  %v16445_v19 = vld [vmem:[%s21837_s10 + $0x308] sm:$0xff] }
0x1076   : > { %5919 = vmatpush.bf16.msrb.mxu1 %v13308_v42  ;;  %v13269_v42 = vld [vmem:[%s21839_s12 + $0x150] sm:$0xf] }
0x107a   : > { %5920 = vmatpush.bf16.msrb.mxu1 %v13300_v8  ;;  %v13271_v8 = vld [vmem:[%s21839_s12 + $0x158] sm:$0xf0] }
0x107e   : > { %6233 = vmatpush.bf16.msra.mxu1 %v16443_v32  ;;  %v13270_v32 = vor.u32 %v16407_v48, %v13269_v42  ;;  %v16452_v42 = vld [vmem:[%s21837_s10 + $0x340] sm:$0xff]  ;;  %v16475_v48 = vld [vmem:[%s21866_s0 + $0x3b8] sm:$0xff] }
0x1080   : > { %5837 = vmatpush.bf16.msra.mxu2 %v13270_v32  ;;  %v16482_v32 = vld [vmem:[%s21866_s0 + $0x3f0] sm:$0xff] }
0x1082   : > { %6234 = vmatpush.bf16.msra.mxu1 %v16442_v35  ;;  %v13274_v35 = vor.u32 %v16406_v50, %v13271_v8  ;;  %v16483_v50 = vld [vmem:[%s21866_s0 + $0x3f8] sm:$0xff]  ;;  %v16474_v8 = vld [vmem:[%s21866_s0 + $0x3b0] sm:$0xff] }
0x1086   : > { %6235 = vmatpush.bf16.msra.mxu1 %v16441_v21  ;;  %v13261_v21 = vld [vmem:[%s21839_s12 + $0x140] sm:$0xf] }
0x108a   : > { %6236 = vmatpush.bf16.msra.mxu1 %v16440_v38  ;;  %v16404_v38 = vld [vmem:[%s21839_s12 + $0x144] sm:$0xf] }
0x108e   : > { %6237 = vmatpush.bf16.msra.mxu1 %v16439_v55  ;;  %v13262_v55 = vor.u32 %v16405_v25, %v13261_v21  ;;  %v16481_v21 = vld [vmem:[%s21866_s0 + $0x3e8] sm:$0xff]  ;;  %v16472_v25 = vld [vmem:[%s21866_s0 + $0x3a0] sm:$0xff] }
0x1090   : > { %5838 = vmatpush.bf16.msra.mxu2 %v13262_v55  ;;  %v16479_v55 = vld [vmem:[%s21866_s0 + $0x3d8] sm:$0xff] }
0x1092   : > { %6238 = vmatpush.bf16.msra.mxu1 %v16438_v11  ;;  %v13266_v11 = vor.u32 %v16404_v38, %v13263_v52  ;;  %v16480_v38 = vld [vmem:[%s21866_s0 + $0x3e0] sm:$0xff]  ;;  %v16471_v52 = vld [vmem:[%s21866_s0 + $0x398] sm:$0xff] }
0x1096   : > { %6239 = vmatpush.bf16.msra.mxu1 %v16437_v47  ;;  %v16418_v47 = vld [vmem:[%s21866_s0 + $0x330] sm:$0xff] }
0x109a   : > { %6240 = vmatpush.bf16.msra.mxu1 %v16436_v37 }
0x10ca   : > { %v5209_v16 = vpop.f32.mrf.mxu1 }
0x10cb   : > { %v5212_v34 = vpack.c.bf16 %v5209_v16, %v5209_v16  ;;  %v16417_v16 = vld [vmem:[%s21866_s0 + $0x328] sm:$0xff] }
0x10cd   : > { %13325 = vmatmul.msk.bf16.vlgmr.msrb.gmra.mxu0 %vm937_vm1, %v5212_v34  ;;  %13326 = vmatmul.msk.bf16.vlgmr.msrb.gmra.mxu1 %vm937_vm1, %v5212_v34 }
0x10d2   : > { %v5378_v56 = vpop.f32.mrf.mxu1 }
0x10d3   : > { %v5379_v57 = vadd.f32 %v5378_v56, %v5366_v9 }
0x10d5   : > { %13248 = vmatmul.msk.f32.vlgmr.msrb.gmra.mxu2 %vm937_vm1, %v5379_v57  ;;  %v16416_v57 = vld [vmem:[%s21866_s0 + $0x320] sm:$0xff] }
0x10d6   : > { %6060 = vmatpush.bf16.msrb.mxu2 %v16419_v45  ;;  %v16469_v45 = vld [vmem:[%s21866_s0 + $0x388] sm:$0xff] }
0x10da   : > { %v5380_v58 = vpop.f32.mrf.mxu1  ;;  %6061 = vmatpush.bf16.msrb.mxu2 %v16418_v47  ;;  %v16477_v47 = vld [vmem:[%s21866_s0 + $0x3c8] sm:$0xff] }
0x10dd   : > { %6228 = vmatmul.bf16.vlgmr.msra.gmra.mxu0 %v19245_v36  ;;  %6241 = vmatmul.bf16.vlgmr.msra.gmra.mxu1 %v19249_v4 }
0x10de   : > { %6062 = vmatpush.bf16.msrb.mxu2 %v16417_v16  ;;  %v16507_v16 = vld [vmem:[%s21837_s10 + $0x3b8] sm:$0xff] }
0x10e2   : > { %6063 = vmatpush.bf16.msrb.mxu2 %v16416_v57  ;;  %v16513_v57 = vld [vmem:[%s21837_s10 + $0x3e8] sm:$0xff] }
0x10ea   : > { %v5698_v5 = vpop.f32.mrf.mxu1 }
0x10eb   : > { %v5699_v7 = vadd.f32 %v5698_v5, %v5686_v3  ;;  %v16415_v5 = vld [vmem:[%s21866_s0 + $0x318] sm:$0xff] }
0x10ec   : > { %6064 = vmatpush.bf16.msrb.mxu2 %v16415_v5  ;;  %v16511_v5 = vld [vmem:[%s21837_s10 + $0x3d8] sm:$0xff] }
0x10ed   : > { %13249 = vmatpush.msk.msrb.mxu3 %vm2020_vm2, %v5699_v7 }
0x10ef   : > { %5848 = vmatpush.bf16.msra.mxu3 %v13290_v10  ;;  %v16446_v10 = vld [vmem:[%s21837_s10 + $0x310] sm:$0xff] }
0x10f2   : > { %v5700_v27 = vpop.f32.mrf.mxu1 }
0x10f3   : > { %5849 = vmatpush.bf16.msra.mxu3 %v13282_v31  ;;  %v16427_v27 = vld [vmem:[%s21866_s0 + $0x378] sm:$0xff]  ;;  %v16444_v31 = vld [vmem:[%s21837_s10 + $0x300] sm:$0xff] }
0x10f7   : > { %5850 = vmatpush.bf16.msra.mxu3 %v13274_v35  ;;  %v16473_v35 = vld [vmem:[%s21866_s0 + $0x3a8] sm:$0xff] }
0x10fb   : > { %5851 = vmatpush.bf16.msra.mxu3 %v13266_v11  ;;  %v16478_v11 = vld [vmem:[%s21866_s0 + $0x3d0] sm:$0xff] }
0x114a   : > { %v19540_v14 = vpop.f32.mrf.mxu0  ;;  %v19542_v22 = vpop.f32.mrf.mxu1 }
0x1152   : > { %v5911_v26 = vpop.f32.mrf.mxu0  ;;  %v5924_v40 = vpop.f32.mrf.mxu1 }
0x1153   : > { %v16414_v40 = vld [vmem:[%s21866_s0 + $0x310] sm:$0xff] }
0x1154   : > { %6065 = vmatpush.bf16.msrb.mxu2 %v16414_v40  ;;  %v16509_v40 = vld [vmem:[%s21837_s10 + $0x3c8] sm:$0xff] }
0x1158   : > { %v5725_v60 = vpop.f32.mrf.mxu2 }
0x1159   : > { %v5728_v61 = vsel %vm1991_vm3, %v5725_v60, -inf }
0x115a   : > { %5729 = vmax.xlane.f32.xlu2 %v5728_v61  ;;  %v6229_v33 = vpop.f32.mrf.mxu0  ;;  %v6242_v0 = vpop.f32.mrf.mxu1  ;;  %v16425_v61 = vld [vmem:[%s21866_s0 + $0x368] sm:$0xff] }
0x115b   : > { %v6230_v12 = vadd.f32 %v17027_v46, %v6229_v33  ;;  %v16426_v46 = vld [vmem:[%s21866_s0 + $0x370] sm:$0xff]  ;;  %v16424_v33 = vld [vmem:[%s21866_s0 + $0x360] sm:$0xff] }
0x115d   : > { %v6243_v17 = vadd.f32 %v6242_v0, %v6230_v12  ;;  %v16423_v0 = vld [vmem:[%s21866_s0 + $0x358] sm:$0xff]  ;;  %v16422_v12 = vld [vmem:[%s21866_s0 + $0x350] sm:$0xff] }
0x115f   : > { %13618 = vmatpush.xpose.msk.msrb.mxu0 %vm937_vm1, %v6243_v17  ;;  %v16421_v17 = vld [vmem:[%s21866_s0 + $0x348] sm:$0xff] }
0x1162   : > { %v6231_v20 = vpop.f32.mrf.mxu0  ;;  %v6244_v24 = vpop.f32.mrf.mxu1 }
0x1163   : > { %v16412_v20 = vld [vmem:[%s21866_s0 + $0x300] sm:$0xff] }
0x1164   : > { %v16420_v24 = vld [vmem:[%s21866_s0 + $0x340] sm:$0xff] }
0x11cd   : > { %v5730_v44 = vpop.xlane.xlu2 %5729 }
0x11ce   : > { %v5731_v49 = vsub.f32 %v5725_v60, %v5730_v44  ;;  %v16413_v60 = vld [vmem:[%s21866_s0 + $0x308] sm:$0xff] }
0x11cf   : > { %6066 = vmatpush.bf16.msrb.mxu2 %v16413_v60  ;;  %v16508_v60 = vld [vmem:[%s21837_s10 + $0x3c0] sm:$0xff] }
0x11d0   : > { %v5732_v6 = vmul.f32 1.442695, %v5731_v49  ;;  %v16451_v49 = vld [vmem:[%s21837_s10 + $0x338] sm:$0xff] }
0x11d2   : > { %17071 = vpow2.f32 %v5732_v6  ;;  %v16459_v6 = vld [vmem:[%s21837_s10 + $0x378] sm:$0xff] }
0x11d3   : > { %6067 = vmatpush.bf16.msrb.mxu2 %v16412_v20 }
0x11d8   : > { %v17072_v54 = vpop.eup %17071 }
0x11d9   : > { %v5734_v28 = vsel %vm1991_vm3, %v17072_v54, 0.0 }
0x11da   : > { %5735 = vadd.xlane.f32.xlu0 %v5734_v28  ;;  %v16450_v28 = vld [vmem:[%s21837_s10 + $0x330] sm:$0xff] }
0x124d   : > { %v5736_v39 = vpop.xlane.xlu0 %5735 }
0x124e   : > { %17073 = vrcp.f32 %v5736_v39  ;;  %v5748_v41 = vand.u32 2147483648, %v5736_v39  ;;  %v5746_v56 = vand.u32 2147483647, %v5736_v39  ;;  %vm5742_vm9 = vweird.f32 %v5736_v39 }
0x1250   : > { %v5749_v2 = vor.u32 1.1754944e-38, %v5748_v41  ;;  %vm5747_vm11 = vcmp.eq.f32.partialorder %v5746_v56, 8.507059e+37  ;;  %v16506_v41 = vld [vmem:[%s21837_s10 + $0x3b0] sm:$0xff]  ;;  %v16505_v56 = vld [vmem:[%s21837_s10 + $0x3a8] sm:$0xff] }
0x1254   : > { %v17074_v51 = vpop.eup %17073 }
0x1255   : > { %v5738_v37 = vmul.f32 %v17074_v51, %v5736_v39  ;;  %vm5743_vm7 = vweird.f32 %v17074_v51  ;;  %v16470_v39 = vld [vmem:[%s21866_s0 + $0x390] sm:$0xff] }
0x1256   : > { %vm5744_vm10 = vmor %vm5742_vm9, %vm5743_vm7 }
0x1257   : > { %v5739_v34 = vsub.f32 1.0, %v5738_v37  ;;  %v16476_v37 = vld [vmem:[%s21866_s0 + $0x3c0] sm:$0xff] }
0x1259   : > { %v5740_v9 = vmul.f32 %v17074_v51, %v5739_v34  ;;  %v16515_v34 = vld [vmem:[%s21837_s10 + $0x3f8] sm:$0xff] }
0x125b   : > { %v5741_v58 = vadd.f32 %v17074_v51, %v5740_v9  ;;  %v16514_v9 = vld [vmem:[%s21837_s10 + $0x3f0] sm:$0xff] }
0x125d   : > { %v5745_v3 = vsel %vm5744_vm10, %v17074_v51, %v5741_v58  ;;  %v16468_v51 = vld [vmem:[%s21866_s0 + $0x380] sm:$0xff] }
0x125e   : > { %v5750_v7 = vsel %vm5747_vm11, %v5749_v2, %v5745_v3  ;;  %v16504_v58 = vld [vmem:[%s21837_s10 + $0x3a0] sm:$0xff]  ;;  %v16503_v3 = vld [vmem:[%s21837_s10 + $0x398] sm:$0xff] }
0x125f   : > { %v5751_v26 = vmul.f32 %v17072_v54, %v5750_v7  ;;  %v16512_v2 = vld [vmem:[%s21837_s10 + $0x3e0] sm:$0xff]  ;;  %v16502_v7 = vld [vmem:[%s21837_s10 + $0x390] sm:$0xff] }
0x1261   : > { %13250 = vmatmul.msk.f32.vlgmr.msrb.gmra.mxu3 %vm2016_vm8, %v5751_v26  ;;  %v16501_v26 = vld [vmem:[%s21837_s10 + $0x388] sm:$0xff] }
0x1262   : > { %6073 = vmatpush.bf16.msrb.mxu3 %v16427_v27  ;;  %v16510_v27 = vld [vmem:[%s21837_s10 + $0x3d0] sm:$0xff] }
0x1266   : > { %6074 = vmatpush.bf16.msrb.mxu3 %v16426_v46  ;;  %v16500_v46 = vld [vmem:[%s21837_s10 + $0x380] sm:$0xff] }
0x126a   : > { %6075 = vmatpush.bf16.msrb.mxu3 %v16425_v61 }
0x126e   : > { %6076 = vmatpush.bf16.msrb.mxu3 %v16424_v33 }
0x1272   : > { %6077 = vmatpush.bf16.msrb.mxu3 %v16423_v0 }
0x1276   : > { %6078 = vmatpush.bf16.msrb.mxu3 %v16422_v12 }
0x127a   : > { %6079 = vmatpush.bf16.msrb.mxu3 %v16421_v17  ;;  %v17028_v17 = vld [vmem:[%s21834_s7 + $0x6] ss:$0 sm:$0xff] }
0x127e   : > { %6080 = vmatpush.bf16.msrb.mxu3 %v16420_v24 }
0x12e4   : > { %v5775_v44 = vpop.f32.mrf.mxu3 }
0x12e5   : > { %v5778_v54 = vpack.c.bf16 %v5775_v44, %v5775_v44 }
0x12e7   : > { %13291 = vmatmul.msk.bf16.vlgmr.msra.gmra.mxu2 %vm937_vm1, %v5778_v54  ;;  %13292 = vmatmul.msk.bf16.vlgmr.msra.gmra.mxu3 %vm937_vm1, %v5778_v54 }
0x12e8   : > { %6380 = vmatpush.bf16.msra.mxu2 %v16451_v49  ;;  %6393 = vmatpush.bf16.msra.mxu3 %v16459_v6 }
0x12ec   : > { %6381 = vmatpush.bf16.msra.mxu2 %v16450_v28  ;;  %6394 = vmatpush.bf16.msra.mxu3 %v16458_v59  ;;  %v17029_v28 = vld [vmem:[%s21838_s11 + $0x6] ss:$0 sm:$0xff] }
0x12f0   : > { %6382 = vmatpush.bf16.msra.mxu2 %v16449_v13  ;;  %6395 = vmatpush.bf16.msra.mxu3 %v16457_v1 }
0x12f4   : > { %6383 = vmatpush.bf16.msra.mxu2 %v16448_v53  ;;  %6396 = vmatpush.bf16.msra.mxu3 %v16456_v62 }
0x12f7   : > { %6068 = vmatmul.bf16.vlgmr.msrb.gmra.mxu2 %v19245_v36  ;;  %6081 = vmatmul.bf16.vlgmr.msrb.gmra.mxu3 %v19249_v4 }
0x12f8   : > { %6384 = vmatpush.bf16.msra.mxu2 %v16447_v63  ;;  %6397 = vmatpush.bf16.msra.mxu3 %v16455_v18 }
0x12fc   : > { %6385 = vmatpush.bf16.msra.mxu2 %v16446_v10  ;;  %6398 = vmatpush.bf16.msra.mxu3 %v16454_v29 }
0x1300   : > { %6386 = vmatpush.bf16.msra.mxu2 %v16445_v19  ;;  %6399 = vmatpush.bf16.msra.mxu3 %v16453_v23 }
0x1304   : > { %6387 = vmatpush.bf16.msra.mxu2 %v16444_v31  ;;  %6400 = vmatpush.bf16.msra.mxu3 %v16452_v42 }
0x1307   : > { %6388 = vmatmul.bf16.vlgmr.msra.gmra.mxu2 %v19245_v36  ;;  %6401 = vmatmul.bf16.vlgmr.msra.gmra.mxu3 %v19249_v4 }
0x1308   : > { %6697 = vmatpush.bf16.msrb.mxu2 %v16475_v48  ;;  %6710 = vmatpush.bf16.msrb.mxu3 %v16483_v50 }
0x130c   : > { %6698 = vmatpush.bf16.msrb.mxu2 %v16474_v8  ;;  %6711 = vmatpush.bf16.msrb.mxu3 %v16482_v32 }
0x1310   : > { %6699 = vmatpush.bf16.msrb.mxu2 %v16473_v35  ;;  %6712 = vmatpush.bf16.msrb.mxu3 %v16481_v21 }
0x1314   : > { %6700 = vmatpush.bf16.msrb.mxu2 %v16472_v25  ;;  %6713 = vmatpush.bf16.msrb.mxu3 %v16480_v38 }
0x1318   : > { %6701 = vmatpush.bf16.msrb.mxu2 %v16471_v52  ;;  %6714 = vmatpush.bf16.msrb.mxu3 %v16479_v55  ;;  %v16466_v52 = vld [vmem:[%s21839_s12 + $0x1b4] sm:$0xf]  ;;  %v13658_v55 = vld [vmem:[%s21839_s12 + $0x1b8] sm:$0xf0] }
0x131c   : > { %6702 = vmatpush.bf16.msrb.mxu2 %v16470_v39  ;;  %6715 = vmatpush.bf16.msrb.mxu3 %v16478_v11  ;;  %v16464_v39 = vld [vmem:[%s21839_s12 + $0x1a4] sm:$0xf]  ;;  %v13661_v11 = vor.u32 %v16466_v52, %v13658_v55 }
0x131d   : > { %v16484_v52 = vld [vmem:[%s21835_s8 + $0x380] sm:$0xff] }
0x131e   : > { %v17031_v55 = vld [vmem:[%s21838_s11 + $0x7] ss:$0 sm:$0xff] }
0x1320   : > { %6703 = vmatpush.bf16.msrb.mxu2 %v16469_v45  ;;  %6716 = vmatpush.bf16.msrb.mxu3 %v16477_v47  ;;  %v13650_v45 = vld [vmem:[%s21839_s12 + $0x1a8] sm:$0xf0] }
0x1321   : > { %v13653_v47 = vor.u32 %v16464_v39, %v13650_v45 }
0x1324   : > { %6704 = vmatpush.bf16.msrb.mxu2 %v16468_v51  ;;  %6717 = vmatpush.bf16.msrb.mxu3 %v16476_v37  ;;  %v13656_v51 = vld [vmem:[%s21839_s12 + $0x1b0] sm:$0xf]  ;;  %v16467_v37 = vld [vmem:[%s21839_s12 + $0x1b4] sm:$0xf0] }
0x1327   : > { %6705 = vmatmul.bf16.vlgmr.msrb.gmra.mxu2 %v19245_v36  ;;  %6718 = vmatmul.bf16.vlgmr.msrb.gmra.mxu3 %v19249_v4 }
0x1328   : > { %7017 = vmatpush.bf16.msra.mxu2 %v16507_v16  ;;  %7030 = vmatpush.bf16.msra.mxu3 %v16515_v34  ;;  %v16462_v16 = vld [vmem:[%s21839_s12 + $0x194] sm:$0xf]  ;;  %v13642_v34 = vld [vmem:[%s21839_s12 + $0x198] sm:$0xf0] }
0x132c   : > { %7018 = vmatpush.bf16.msra.mxu2 %v16506_v41  ;;  %7031 = vmatpush.bf16.msra.mxu3 %v16514_v9  ;;  %v13657_v41 = vor.u32 %v16467_v37, %v13656_v51  ;;  %v13648_v9 = vld [vmem:[%s21839_s12 + $0x1a0] sm:$0xf] }
0x132e   : > { %6539 = vmatpush.bf16.msra.mxu0 %v13657_v41 }
0x1330   : > { %7019 = vmatpush.bf16.msra.mxu2 %v16505_v56  ;;  %7032 = vmatpush.bf16.msra.mxu3 %v16513_v57  ;;  %v16465_v56 = vld [vmem:[%s21839_s12 + $0x1a4] sm:$0xf0] }
0x1331   : > { %v13649_v57 = vor.u32 %v16465_v56, %v13648_v9 }
0x1333   : > { %6540 = vmatpush.bf16.msra.mxu0 %v13649_v57 }
0x1334   : > { %7020 = vmatpush.bf16.msra.mxu2 %v16504_v58  ;;  %7033 = vmatpush.bf16.msra.mxu3 %v16512_v2  ;;  %v13645_v58 = vor.u32 %v16462_v16, %v13642_v34  ;;  %v16460_v2 = vld [vmem:[%s21839_s12 + $0x184] sm:$0xf] }
0x1335   : > { %v17030_v34 = vld [vmem:[%s21834_s7 + $0x7] ss:$0 sm:$0xff] }
0x1338   : > { %7021 = vmatpush.bf16.msra.mxu2 %v16503_v3  ;;  %7034 = vmatpush.bf16.msra.mxu3 %v16511_v5  ;;  %v13634_v3 = vld [vmem:[%s21839_s12 + $0x188] sm:$0xf0]  ;;  %v13640_v5 = vld [vmem:[%s21839_s12 + $0x190] sm:$0xf] }
0x133c   : > { %7022 = vmatpush.bf16.msra.mxu2 %v16502_v7  ;;  %7035 = vmatpush.bf16.msra.mxu3 %v16510_v27  ;;  %v16463_v7 = vld [vmem:[%s21839_s12 + $0x194] sm:$0xf0] }
0x133d   : > { %v13641_v27 = vor.u32 %v16463_v7, %v13640_v5 }
0x133f   : > { %6541 = vmatpush.bf16.msra.mxu0 %v13641_v27 }
0x1340   : > { %7023 = vmatpush.bf16.msra.mxu2 %v16501_v26  ;;  %7036 = vmatpush.bf16.msra.mxu3 %v16509_v40  ;;  %v13637_v26 = vor.u32 %v16460_v2, %v13634_v3 }
0x1344   : > { %7024 = vmatpush.bf16.msra.mxu2 %v16500_v46  ;;  %7037 = vmatpush.bf16.msra.mxu3 %v16508_v60  ;;  %v13632_v46 = vld [vmem:[%s21839_s12 + $0x180] sm:$0xf]  ;;  %v16461_v60 = vld [vmem:[%s21839_s12 + $0x184] sm:$0xf0] }
0x1347   : > { %7025 = vmatmul.bf16.vlgmr.msra.gmra.mxu2 %v19245_v36  ;;  %7038 = vmatmul.bf16.vlgmr.msra.gmra.mxu3 %v19249_v4 }
0x136a   : > { %v19801_v61 = vpop.f32.mrf.mxu2  ;;  %v19803_v33 = vpop.f32.mrf.mxu3 }
0x1372   : > { %v5842_v0 = vpop.f32.mrf.mxu2  ;;  %v5855_v12 = vpop.f32.mrf.mxu3 }
0x1373   : > { %v13633_v0 = vor.u32 %v16461_v60, %v13632_v46  ;;  %v16491_v12 = vld [vmem:[%s21835_s8 + $0x3b8] sm:$0xff]  ;;  %v16522_v60 = vld [vmem:[%s21839_s12 + $0x1f4] sm:$0xf] }
0x1374   : > { %v16523_v46 = vld [vmem:[%s21839_s12 + $0x1f4] sm:$0xf0] }
0x1375   : > { %6542 = vmatpush.bf16.msra.mxu0 %v13633_v0 }
0x137a   : > { %v6069_v20 = vpop.f32.mrf.mxu2  ;;  %v6082_v24 = vpop.f32.mrf.mxu3 }
0x137b   : > { %v6070_v44 = vadd.f32 %v17028_v17, %v6069_v20  ;;  %v16490_v20 = vld [vmem:[%s21835_s8 + $0x3b0] sm:$0xff] }
0x137d   : > { %v6083_v49 = vadd.f32 %v6082_v24, %v6070_v44 }
0x137f   : > { %13619 = vmatmul.msk.f32.vlgmr.msrb.gmra.mxu0 %vm937_vm1, %v6083_v49 }
0x1380   : > { %6857 = vmatpush.bf16.msrb.mxu0 %v16491_v12  ;;  %v13995_v12 = vld [vmem:[%s21839_s12 + $0x1f8] sm:$0xf0] }
0x1382   : > { %v6071_v6 = vpop.f32.mrf.mxu2  ;;  %v6084_v54 = vpop.f32.mrf.mxu3 }
0x1383   : > { %v16489_v6 = vld [vmem:[%s21835_s8 + $0x3a8] sm:$0xff] }
0x1384   : > { %6858 = vmatpush.bf16.msrb.mxu0 %v16490_v20  ;;  %v16521_v20 = vld [vmem:[%s21839_s12 + $0x1e4] sm:$0xf0] }
0x1388   : > { %6859 = vmatpush.bf16.msrb.mxu0 %v16489_v6 }
0x138a   : > { %v6389_v59 = vpop.f32.mrf.mxu2  ;;  %v6402_v13 = vpop.f32.mrf.mxu3 }
0x138b   : > { %v6390_v1 = vadd.f32 %v17029_v28, %v6389_v59 }
0x138d   : > { %v6403_v53 = vadd.f32 %v6402_v13, %v6390_v1 }
0x138f   : > { %13620 = vmatpush.msk.msrb.mxu1 %vm2020_vm2, %v6403_v53 }
0x1391   : > { %6552 = vmatpush.bf16.msra.mxu1 %v13661_v11 }
0x1392   : > { %v6391_v62 = vpop.f32.mrf.mxu2  ;;  %v6404_v63 = vpop.f32.mrf.mxu3 }
0x1393   : > { %v16499_v62 = vld [vmem:[%s21835_s8 + $0x3f8] sm:$0xff] }
0x1395   : > { %6553 = vmatpush.bf16.msra.mxu1 %v13653_v47 }
0x1399   : > { %6554 = vmatpush.bf16.msra.mxu1 %v13645_v58 }
0x139d   : > { %6555 = vmatpush.bf16.msra.mxu1 %v13637_v26 }
0x13aa   : > { %v19813_v18 = vpop.f32.mrf.mxu2  ;;  %v19815_v10 = vpop.f32.mrf.mxu3 }
0x13b2   : > { %v6708_v29 = vpop.f32.mrf.mxu2  ;;  %v6721_v19 = vpop.f32.mrf.mxu3 }
0x13b3   : > { %v16498_v29 = vld [vmem:[%s21835_s8 + $0x3f0] sm:$0xff]  ;;  %v16497_v19 = vld [vmem:[%s21835_s8 + $0x3e8] sm:$0xff] }
0x13ca   : > { %v19817_v23 = vpop.f32.mrf.mxu2  ;;  %v19819_v31 = vpop.f32.mrf.mxu3 }
0x13cb   : > { %v7027_v39 = vadd.f32 %v17031_v55, %v19817_v23  ;;  %v16517_v55 = vld [vmem:[%s21839_s12 + $0x1c4] sm:$0xf0] }
0x13cd   : > { %v7040_v47 = vadd.f32 %v19819_v31, %v7027_v39  ;;  %v17032_v31 = vld [vmem:[%s21836_s9 + $0x7] ss:$0 sm:$0xff] }
0x13ce   : > { %v16516_v39 = vld [vmem:[%s21839_s12 + $0x1c4] sm:$0xf] }
0x13d2   : > { %v7028_v42 = vpop.f32.mrf.mxu2  ;;  %v7041_v48 = vpop.f32.mrf.mxu3 }
0x13d3   : > { %v16496_v42 = vld [vmem:[%s21835_s8 + $0x3e0] sm:$0xff]  ;;  %v16495_v48 = vld [vmem:[%s21835_s8 + $0x3d8] sm:$0xff] }
0x13fc   : > { %v6429_v50 = vpop.f32.mrf.mxu0 }
0x13fd   : > { %v6432_v8 = vsel %vm1991_vm3, %v6429_v50, -inf }
0x13fe   : > { %6433 = vmax.xlane.f32.xlu1 %v6432_v8  ;;  %v16493_v8 = vld [vmem:[%s21835_s8 + $0x3c8] sm:$0xff] }
0x1471   : > { %v6434_v32 = vpop.xlane.xlu1 %6433 }
0x1472   : > { %v6435_v35 = vsub.f32 %v6429_v50, %v6434_v32  ;;  %v16494_v50 = vld [vmem:[%s21835_s8 + $0x3d0] sm:$0xff]  ;;  %v16488_v32 = vld [vmem:[%s21835_s8 + $0x3a0] sm:$0xff] }
0x1473   : > { %6860 = vmatpush.bf16.msrb.mxu0 %v16488_v32 }
0x1474   : > { %v6436_v21 = vmul.f32 1.442695, %v6435_v35  ;;  %v16492_v35 = vld [vmem:[%s21835_s8 + $0x3c0] sm:$0xff] }
0x1476   : > { %17075 = vpow2.f32 %v6436_v21  ;;  %v16487_v21 = vld [vmem:[%s21835_s8 + $0x398] sm:$0xff] }
0x1477   : > { %6861 = vmatpush.bf16.msrb.mxu0 %v16487_v21 }
0x147c   : > { %v17076_v25 = vpop.eup %17075 }
0x147d   : > { %v6438_v38 = vsel %vm1991_vm3, %v17076_v25, 0.0 }
0x147e   : > { %6439 = vadd.xlane.f32.xlu2 %v6438_v38  ;;  %v16485_v38 = vld [vmem:[%s21835_s8 + $0x388] sm:$0xff] }
0x14f1   : > { %v6440_v40 = vpop.xlane.xlu2 %6439 }
0x14f2   : > { %17077 = vrcp.f32 %v6440_v40  ;;  %v6452_v49 = vand.u32 2147483648, %v6440_v40  ;;  %v6450_v28 = vand.u32 2147483647, %v6440_v40  ;;  %vm6446_vm13 = vweird.f32 %v6440_v40 }
0x14f4   : > { %v6453_v13 = vor.u32 1.1754944e-38, %v6452_v49  ;;  %vm6451_vm15 = vcmp.eq.f32.partialorder %v6450_v28, 8.507059e+37  ;;  %v13987_v49 = vld [vmem:[%s21839_s12 + $0x1e8] sm:$0xf0]  ;;  %v13977_v28 = vld [vmem:[%s21839_s12 + $0x1d0] sm:$0xf] }
0x14f8   : > { %v17078_v17 = vpop.eup %17077 }
0x14f9   : > { %v6442_v24 = vmul.f32 %v17078_v17, %v6440_v40  ;;  %vm6447_vm12 = vweird.f32 %v17078_v17 }
0x14fa   : > { %vm6448_vm14 = vmor %vm6446_vm13, %vm6447_vm12 }
0x14fb   : > { %v6443_v44 = vsub.f32 1.0, %v6442_v24  ;;  %v13998_v24 = vor.u32 %v16522_v60, %v13995_v12  ;;  %v14158_v60 = vld [vmem:[%s21842_s15 + $0x1f0] sm:$0xf]  ;;  %v16555_v12 = vld [vmem:[%s21842_s15 + $0x1f4] sm:$0xf0] }
0x14fd   : > { %v6444_v54 = vmul.f32 %v17078_v17, %v6443_v44  ;;  %v16520_v44 = vld [vmem:[%s21839_s12 + $0x1e4] sm:$0xf] }
0x14ff   : > { %v6445_v59 = vadd.f32 %v17078_v17, %v6444_v54  ;;  %v13990_v54 = vor.u32 %v16520_v44, %v13987_v49  ;;  %v16554_v44 = vld [vmem:[%s21842_s15 + $0x1f4] sm:$0xf] }
0x1501   : > { %v6449_v1 = vsel %vm6448_vm14, %v17078_v17, %v6445_v59  ;;  %v13985_v17 = vld [vmem:[%s21839_s12 + $0x1e0] sm:$0xf]  ;;  %v16519_v59 = vld [vmem:[%s21839_s12 + $0x1d4] sm:$0xf0] }
0x1502   : > { %v6454_v53 = vsel %vm6451_vm15, %v6453_v13, %v6449_v1  ;;  %v13986_v6 = vor.u32 %v16521_v20, %v13985_v17  ;;  %v16518_v13 = vld [vmem:[%s21839_s12 + $0x1d4] sm:$0xf]  ;;  %v13979_v1 = vld [vmem:[%s21839_s12 + $0x1d8] sm:$0xf0]  ;;  %v14159_v20 = vor.u32 %v16555_v12, %v14158_v60  ;;  %v16528_v12 = vld [vmem:[%s21842_s15 + $0x124] sm:$0xf] }
0x1503   : > { %v6455_v63 = vmul.f32 %v17076_v25, %v6454_v53  ;;  %v16486_v25 = vld [vmem:[%s21835_s8 + $0x390] sm:$0xff]  ;;  %v13978_v53 = vor.u32 %v16519_v59, %v13977_v28  ;;  %v14086_v28 = vld [vmem:[%s21842_s15 + $0x160] sm:$0xf]  ;;  %v16537_v59 = vld [vmem:[%s21842_s15 + $0x164] sm:$0xf0] }
0x1504   : > { %6862 = vmatpush.bf16.msrb.mxu0 %v16486_v25  ;;  %v16538_v17 = vld [vmem:[%s21842_s15 + $0x174] sm:$0xf]  ;;  %7476 = vmatpush.bf16.msrb.mxu3 %v14159_v20 }
0x1505   : > { %13621 = vmatmul.msk.f32.vlgmr.msrb.gmra.mxu1 %vm2016_vm8, %v6455_v63 }
0x1506   : > { %6870 = vmatpush.bf16.msrb.mxu1 %v16499_v62  ;;  %v13982_v62 = vor.u32 %v16518_v13, %v13979_v1  ;;  %v14087_v13 = vor.u32 %v16537_v59, %v14086_v28  ;;  %v14150_v1 = vld [vmem:[%s21842_s15 + $0x1e0] sm:$0xf]  ;;  %v16527_v28 = vld [vmem:[%s21842_s15 + $0x114] sm:$0xf0]  ;;  %v14110_v59 = vld [vmem:[%s21842_s15 + $0x190] sm:$0xf] }
0x1508   : > { %6863 = vmatpush.bf16.msrb.mxu0 %v16485_v38 }
0x150a   : > { %6871 = vmatpush.bf16.msrb.mxu1 %v16498_v29 }
0x150c   : > { %6864 = vmatpush.bf16.msrb.mxu0 %v16484_v52  ;;  %v13969_v52 = vld [vmem:[%s21839_s12 + $0x1c0] sm:$0xf] }
0x150e   : > { %6872 = vmatpush.bf16.msrb.mxu1 %v16497_v19 }
0x1512   : > { %6873 = vmatpush.bf16.msrb.mxu1 %v16496_v42 }
0x1516   : > { %6874 = vmatpush.bf16.msrb.mxu1 %v16495_v48 }
0x151a   : > { %6875 = vmatpush.bf16.msrb.mxu1 %v16494_v50 }
0x151e   : > { %6876 = vmatpush.bf16.msrb.mxu1 %v16493_v8 }
0x1522   : > { %6877 = vmatpush.bf16.msrb.mxu1 %v16492_v35 }
0x1582   : > { %v6479_v11 = vpop.f32.mrf.mxu1 }
0x1583   : > { %v6482_v45 = vpack.c.bf16 %v6479_v11, %v6479_v11  ;;  %v13970_v11 = vor.u32 %v16517_v55, %v13969_v52  ;;  %v14080_v52 = vld [vmem:[%s21842_s15 + $0x158] sm:$0xf0] }
0x1585   : > { %13662 = vmatmul.msk.bf16.vlgmr.msra.gmra.mxu0 %vm937_vm1, %v6482_v45  ;;  %13663 = vmatmul.msk.bf16.vlgmr.msra.gmra.mxu1 %vm937_vm1, %v6482_v45  ;;  %v13971_v45 = vld [vmem:[%s21839_s12 + $0x1c8] sm:$0xf0] }
0x1586   : > { %13957 = vmatpush.msk.msra.mxu1 %vm2020_vm2, %v7040_v47  ;;  %v13974_v47 = vor.u32 %v16516_v39, %v13971_v45  ;;  %v14144_v45 = vld [vmem:[%s21842_s15 + $0x1d8] sm:$0xf0] }
0x1595   : > { %6865 = vmatmul.bf16.vlgmr.msrb.gmra.mxu0 %v19245_v36  ;;  %6878 = vmatmul.bf16.vlgmr.msrb.gmra.mxu1 %v19249_v4  ;;  %v6707_v36 = vadd.f32 %v17030_v34, %v19813_v18  ;;  %v5910_v34 = vadd.f32 %v19540_v14, %v19801_v61 }
0x1596   : > { %7189 = vmatpush.bf16.msrb.mxu1 %v13998_v24  ;;  %v14096_v24 = vld [vmem:[%s21842_s15 + $0x178] sm:$0xf0] }
0x1597   : > { %v6720_v57 = vadd.f32 %v19815_v10, %v6707_v36  ;;  %v13993_v10 = vld [vmem:[%s21839_s12 + $0x1f0] sm:$0xf]  ;;  %v14099_v49 = vor.u32 %v16538_v17, %v14096_v24  ;;  %v14056_v17 = vld [vmem:[%s21842_s15 + $0x128] sm:$0xf0] }
0x1598   : > { %v13994_v0 = vor.u32 %v16523_v46, %v13993_v10  ;;  %v14094_v10 = vld [vmem:[%s21842_s15 + $0x170] sm:$0xf]  ;;  %v16539_v46 = vld [vmem:[%s21842_s15 + $0x174] sm:$0xf0]  ;;  %v14059_v24 = vor.u32 %v16528_v12, %v14056_v17  ;;  %v16569_v12 = vld [vmem:[%s21844_s17 + $0x164] sm:$0xf0] }
0x1599   : > { %v16568_v17 = vld [vmem:[%s21844_s17 + $0x164] sm:$0xf] }
0x159a   : > { %7190 = vmatpush.bf16.msrb.mxu1 %v13990_v54 }
0x159e   : > { %7191 = vmatpush.bf16.msrb.mxu1 %v13982_v62  ;;  %v16536_v62 = vld [vmem:[%s21842_s15 + $0x164] sm:$0xf] }
0x15a2   : > { %7192 = vmatpush.bf16.msrb.mxu1 %v13974_v47 }
0x1602   : > { %v19930_v51 = vpop.f32.mrf.mxu0  ;;  %v19932_v37 = vpop.f32.mrf.mxu1 }
0x160a   : > { %v6546_v16 = vpop.f32.mrf.mxu0  ;;  %v6559_v23 = vpop.f32.mrf.mxu1 }
0x1612   : > { %v6866_v41 = vpop.f32.mrf.mxu0  ;;  %v6879_v9 = vpop.f32.mrf.mxu1 }
0x1613   : > { %v6867_v56 = vadd.f32 %v17032_v31, %v6866_v41  ;;  %v14001_v31 = vld [vmem:[%s21840_s13 + $0x2] sm:$0x3]  ;;  %v5923_v41 = vadd.f32 %v19542_v22, %v19803_v33 }
0x1614   : > { %v7203_v36 = vperm.slane %v14001_v31, 0 }
0x1615   : > { %v6880_v4 = vadd.f32 %v6879_v9, %v6867_v56  ;;  %v6561_v9 = vadd.f32 %v19930_v51, %v5910_v34  ;;  %v6562_v56 = vadd.f32 %v19932_v37, %v5923_v41  ;;  %v16549_v41 = vld [vmem:[%s21842_s15 + $0x1c4] sm:$0xf0] }
0x1617   : > { %13955 = vmatpush.xpose.msk.msra.mxu0 %vm937_vm1, %v6880_v4  ;;  %v7204_v4 = vperm.slane %v14001_v31, 1  ;;  %v14134_v31 = vld [vmem:[%s21842_s15 + $0x1c0] sm:$0xf] }
0x161a   : > { %v6868_v58 = vpop.f32.mrf.mxu0  ;;  %v6881_v2 = vpop.f32.mrf.mxu1  ;;  %13956 = vmatmul.msk.f32.vlgmr.msra.gmra.mxu0 %vm937_vm1, %v6720_v57 }
0x161b   : > { %7176 = vmatpush.bf16.msrb.mxu0 %v13994_v0  ;;  %v14095_v0 = vor.u32 %v16539_v46, %v14094_v10  ;;  %v16529_v10 = vld [vmem:[%s21842_s15 + $0x124] sm:$0xf0]  ;;  %v14118_v46 = vld [vmem:[%s21842_s15 + $0x1a0] sm:$0xf] }
0x161d   : > { %7463 = vmatpush.bf16.msrb.mxu2 %v14095_v0  ;;  %v16545_v0 = vld [vmem:[%s21842_s15 + $0x1a4] sm:$0xf0] }
0x161e   : > { %v14119_v20 = vor.u32 %v16545_v0, %v14118_v46  ;;  %v16582_v46 = vld [vmem:[%s21844_s17 + $0x1d4] sm:$0xf]  ;;  %v14247_v0 = vld [vmem:[%s21844_s17 + $0x160] sm:$0xf] }
0x161f   : > { %7177 = vmatpush.bf16.msrb.mxu0 %v13986_v6  ;;  %v14160_v6 = vld [vmem:[%s21842_s15 + $0x1f8] sm:$0xf0] }
0x1620   : > { %v14163_v54 = vor.u32 %v16554_v44, %v14160_v6  ;;  %v16544_v44 = vld [vmem:[%s21842_s15 + $0x1a4] sm:$0xf] }
0x1621   : > { %7464 = vmatpush.bf16.msrb.mxu2 %v14087_v13 }
0x1623   : > { %7178 = vmatpush.bf16.msrb.mxu0 %v13978_v53  ;;  %v16553_v53 = vld [vmem:[%s21842_s15 + $0x1e4] sm:$0xf0] }
0x1627   : > { %7179 = vmatpush.bf16.msrb.mxu0 %v13970_v11  ;;  %v16550_v11 = vld [vmem:[%s21842_s15 + $0x1d4] sm:$0xf] }
0x1628   : > { %v14147_v47 = vor.u32 %v16550_v11, %v14144_v45  ;;  %v14104_v11 = vld [vmem:[%s21842_s15 + $0x188] sm:$0xf0] }
0x162b   : > { %7489 = vmatpush.bf16.msra.mxu0 %v14099_v49  ;;  %v14120_v49 = vld [vmem:[%s21842_s15 + $0x1a8] sm:$0xf0] }
0x162c   : > { %v14123_v6 = vor.u32 %v16544_v44, %v14120_v49  ;;  %v14248_v44 = vor.u32 %v16569_v12, %v14247_v0 }
0x1697   : > { %v7066_v3 = vpop.f32.mrf.mxu0 }
0x1698   : > { %v7069_v5 = vsel %vm1991_vm3, %v7066_v3, -inf }
0x1699   : > { %7070 = vmax.xlane.f32.xlu0 %v7069_v5 }
0x170c   : > { %v7071_v7 = vpop.xlane.xlu0 %7070 }
0x170d   : > { %v7072_v27 = vsub.f32 %v7066_v3, %v7071_v7 }
0x170f   : > { %v7073_v26 = vmul.f32 1.442695, %v7072_v27 }
0x1711   : > { %17079 = vpow2.f32 %v7073_v26 }
0x1717   : > { %v17080_v40 = vpop.eup %17079 }
0x1718   : > { %v7075_v18 = vsel %vm1991_vm3, %v17080_v40, 0.0 }
0x1719   : > { %7076 = vadd.xlane.f32.xlu1 %v7075_v18 }
0x178c   : > { %v7077_v63 = vpop.xlane.xlu1 %7076 }
0x178d   : > { %17081 = vrcp.f32 %v7077_v63  ;;  %v7089_v48 = vand.u32 2147483648, %v7077_v63  ;;  %v7087_v8 = vand.u32 2147483647, %v7077_v63  ;;  %vm7083_vm4 = vweird.f32 %v7077_v63 }
0x178f   : > { %v7090_v35 = vor.u32 1.1754944e-38, %v7089_v48  ;;  %vm7088_vm6 = vcmp.eq.f32.partialorder %v7087_v8, 8.507059e+37  ;;  %v14078_v8 = vld [vmem:[%s21842_s15 + $0x150] sm:$0xf] }
0x1793   : > { %v17082_v29 = vpop.eup %17081 }
0x1794   : > { %v7079_v19 = vmul.f32 %v17082_v29, %v7077_v63  ;;  %vm7084_vm0 = vweird.f32 %v17082_v29  ;;  %v14151_v63 = vor.u32 %v16553_v53, %v14150_v1  ;;  %v16543_v1 = vld [vmem:[%s21842_s15 + $0x194] sm:$0xf0]  ;;  %v16526_v53 = vld [vmem:[%s21842_s15 + $0x114] sm:$0xf] }
0x1795   : > { %vm7085_vm5 = vmor %vm7083_vm4, %vm7084_vm0 }
0x1796   : > { %v7080_v42 = vsub.f32 1.0, %v7079_v19  ;;  %v16552_v19 = vld [vmem:[%s21842_s15 + $0x1e4] sm:$0xf]  ;;  %7477 = vmatpush.bf16.msrb.mxu3 %v14151_v63  ;;  %v14111_v63 = vor.u32 %v16543_v1, %v14110_v59  ;;  %v16567_v1 = vld [vmem:[%s21844_s17 + $0x154] sm:$0xf0] }
0x1797   : > { %v16580_v59 = vld [vmem:[%s21844_s17 + $0x1c4] sm:$0xf] }
0x1798   : > { %v7081_v50 = vmul.f32 %v17082_v29, %v7080_v42  ;;  %v14152_v42 = vld [vmem:[%s21842_s15 + $0x1e8] sm:$0xf0] }
0x179a   : > { %v7082_v32 = vadd.f32 %v17082_v29, %v7081_v50  ;;  %v14155_v50 = vor.u32 %v16552_v19, %v14152_v42  ;;  %v16542_v19 = vld [vmem:[%s21842_s15 + $0x194] sm:$0xf]  ;;  %v14112_v42 = vld [vmem:[%s21842_s15 + $0x198] sm:$0xf0] }
0x179c   : > { %v7086_v21 = vsel %vm7085_vm5, %v17082_v29, %v7082_v32  ;;  %v14088_v29 = vld [vmem:[%s21842_s15 + $0x168] sm:$0xf0]  ;;  %v16535_v32 = vld [vmem:[%s21842_s15 + $0x154] sm:$0xf0] }
0x179d   : > { %v7091_v25 = vsel %vm7088_vm6, %v7090_v35, %v7086_v21  ;;  %v14091_v48 = vor.u32 %v16536_v62, %v14088_v29  ;;  %v14142_v35 = vld [vmem:[%s21842_s15 + $0x1d0] sm:$0xf]  ;;  %v14079_v21 = vor.u32 %v16535_v32, %v14078_v8  ;;  %v14048_v62 = vld [vmem:[%s21842_s15 + $0x118] sm:$0xf0]  ;;  %v16525_v8 = vld [vmem:[%s21842_s15 + $0x104] sm:$0xf0] }
0x179e   : > { %v7092_v38 = vmul.f32 %v17080_v40, %v7091_v25  ;;  %v16551_v25 = vld [vmem:[%s21842_s15 + $0x1d4] sm:$0xf0]  ;;  %v14051_v29 = vor.u32 %v16526_v53, %v14048_v62  ;;  %v14102_v32 = vld [vmem:[%s21842_s15 + $0x180] sm:$0xf]  ;;  %v14297_v53 = vld [vmem:[%s21844_s17 + $0x1c8] sm:$0xf0] }
0x179f   : > { %7490 = vmatpush.bf16.msra.mxu0 %v14091_v48  ;;  %v14143_v55 = vor.u32 %v16551_v25, %v14142_v35  ;;  %7465 = vmatpush.bf16.msrb.mxu2 %v14079_v21  ;;  %v14115_v48 = vor.u32 %v16542_v19, %v14112_v42  ;;  %v16541_v21 = vld [vmem:[%s21842_s15 + $0x184] sm:$0xf0]  ;;  %v16524_v25 = vld [vmem:[%s21842_s15 + $0x104] sm:$0xf]  ;;  %v16566_v62 = vld [vmem:[%s21844_s17 + $0x154] sm:$0xf] }
0x17a0   : > { %13958 = vmatmul.msk.f32.vlgmr.msra.gmra.mxu1 %vm2016_vm8, %v7092_v38  ;;  %v16534_v38 = vld [vmem:[%s21842_s15 + $0x154] sm:$0xf] }
0x17a1   : > { %7502 = vmatpush.bf16.msra.mxu1 %v14163_v54  ;;  %v14083_v39 = vor.u32 %v16534_v38, %v14080_v52  ;;  %7478 = vmatpush.bf16.msrb.mxu3 %v14143_v55  ;;  %v14046_v54 = vld [vmem:[%s21842_s15 + $0x110] sm:$0xf]  ;;  %v14040_v38 = vld [vmem:[%s21842_s15 + $0x108] sm:$0xf0]  ;;  %v14103_v52 = vor.u32 %v16541_v21, %v14102_v32  ;;  %v16565_v32 = vld [vmem:[%s21844_s17 + $0x144] sm:$0xf0]  ;;  %v14300_v21 = vor.u32 %v16580_v59, %v14297_v53 }
0x17a2   : > { %v14047_v13 = vor.u32 %v16527_v28, %v14046_v54  ;;  %v14043_v55 = vor.u32 %v16524_v25, %v14040_v38  ;;  %v16581_v54 = vld [vmem:[%s21844_s17 + $0x1c4] sm:$0xf0]  ;;  %v16579_v25 = vld [vmem:[%s21844_s17 + $0x1b4] sm:$0xf0]  ;;  %v16564_v38 = vld [vmem:[%s21844_s17 + $0x144] sm:$0xf] }
0x17a3   : > { %7491 = vmatpush.bf16.msra.mxu0 %v14083_v39  ;;  %v16540_v39 = vld [vmem:[%s21842_s15 + $0x184] sm:$0xf]  ;;  %v14215_v53 = vld [vmem:[%s21844_s17 + $0x120] sm:$0xf] }
0x17a5   : > { %7503 = vmatpush.bf16.msra.mxu1 %v14155_v50  ;;  %v14038_v50 = vld [vmem:[%s21842_s15 + $0x100] sm:$0xf] }
0x17a6   : > { %v14039_v35 = vor.u32 %v16525_v8, %v14038_v50  ;;  %v14287_v50 = vld [vmem:[%s21844_s17 + $0x1b0] sm:$0xf]  ;;  %v14231_v8 = vld [vmem:[%s21844_s17 + $0x140] sm:$0xf] }
0x17a9   : > { %7504 = vmatpush.bf16.msra.mxu1 %v14147_v47  ;;  %v14107_v47 = vor.u32 %v16540_v39, %v14104_v11  ;;  %v14289_v39 = vld [vmem:[%s21844_s17 + $0x1b8] sm:$0xf0]  ;;  %v14002_v11 = vld [vmem:[%s21841_s14 + $0x4] sm:$0xf] }
0x181d   : > { %v7116_v16 = vpop.f32.mrf.mxu1 }
0x181e   : > { %v7119_v23 = vpack.c.bf16 %v7116_v16, %v7116_v16  ;;  %v14070_v16 = vld [vmem:[%s21842_s15 + $0x140] sm:$0xf] }
0x1820   : > { %13999 = vmatmul.msk.bf16.vlgmr.msrb.gmra.mxu0 %vm937_vm1, %v7119_v23  ;;  %14000 = vmatmul.msk.bf16.vlgmr.msrb.gmra.mxu1 %vm937_vm1, %v7119_v23  ;;  %v16533_v23 = vld [vmem:[%s21842_s15 + $0x144] sm:$0xf0] }
0x1821   : > { %v14071_v34 = vor.u32 %v16533_v23, %v14070_v16 }
0x1823   : > { %7466 = vmatpush.bf16.msrb.mxu2 %v14071_v34 }
0x189d   : > { %v7181_v57 = vpop.f32.mrf.mxu0  ;;  %v7194_v58 = vpop.f32.mrf.mxu1 }
0x189e   : > { %v7198_v2 = vadd.f32 %v7181_v57, %v6561_v9  ;;  %v7199_v3 = vadd.f32 %v7194_v58, %v6562_v56  ;;  %v16532_v9 = vld [vmem:[%s21842_s15 + $0x144] sm:$0xf]  ;;  %v14072_v56 = vld [vmem:[%s21842_s15 + $0x148] sm:$0xf0] }
0x189f   : > { %v16548_v57 = vld [vmem:[%s21842_s15 + $0x1c4] sm:$0xf]  ;;  %v14136_v58 = vld [vmem:[%s21842_s15 + $0x1c8] sm:$0xf0] }
0x18a0   : > { %v7207_v5 = vadd.f32 %v7203_v36, %v7198_v2  ;;  %v7208_v7 = vadd.f32 %v7204_v4, %v7199_v3  ;;  %v14135_v36 = vor.u32 %v16549_v41, %v14134_v31  ;;  %v14075_v4 = vor.u32 %v16532_v9, %v14072_v56  ;;  %v14062_v3 = vld [vmem:[%s21842_s15 + $0x130] sm:$0xf]  ;;  %v16587_v9 = vld [vmem:[%s21844_s17 + $0x1f4] sm:$0xf0]  ;;  %v16586_v56 = vld [vmem:[%s21844_s17 + $0x1f4] sm:$0xf] }
0x18a1   : > { %v14139_v2 = vor.u32 %v16548_v57, %v14136_v58  ;;  %v14319_v41 = vld [vmem:[%s21844_s17 + $0x1f0] sm:$0xf]  ;;  %v14321_v57 = vld [vmem:[%s21844_s17 + $0x1f8] sm:$0xf0]  ;;  %v14311_v58 = vld [vmem:[%s21844_s17 + $0x1e0] sm:$0xf] }
0x18a2   : > { %v20007_v27 = vadd.f32 %v7207_v5, %v19239_v15  ;;  %v20010_v14 = vadd.f32 %v7208_v7, %v19241_v30  ;;  %7479 = vmatpush.bf16.msrb.mxu3 %v14135_v36  ;;  %v16531_v5 = vld [vmem:[%s21842_s15 + $0x134] sm:$0xf0]  ;;  %v14126_v7 = vld [vmem:[%s21842_s15 + $0x1b0] sm:$0xf]  ;;  %7492 = vmatpush.bf16.msra.mxu0 %v14075_v4  ;;  %v14320_v4 = vor.u32 %v16587_v9, %v14319_v41  ;;  %v14279_v9 = vld [vmem:[%s21844_s17 + $0x1a0] sm:$0xf] }
0x18a3   : > { %7505 = vmatpush.bf16.msra.mxu1 %v14139_v2  ;;  %v16585_v2 = vld [vmem:[%s21844_s17 + $0x1e4] sm:$0xf0] }
0x18a4   : > { %v7213_v22 = vsel %vm2020_vm2, %v20007_v27, 0.0  ;;  %v7214_v61 = vsel %vm2020_vm2, %v20010_v14, 0.0  ;;  %v7219_v33 = vmul.f32 %v20007_v27, %v20007_v27  ;;  %v7220_v51 = vmul.f32 %v20010_v14, %v20010_v14 }
0x18a5   : > { %v7183_v37 = vpop.f32.mrf.mxu0  ;;  %v7196_v26 = vpop.f32.mrf.mxu1  ;;  %v7215_v40 = vadd.f32 %v7214_v61, %v7213_v22  ;;  %v14063_v22 = vor.u32 %v16531_v5, %v14062_v3  ;;  %v16547_v61 = vld [vmem:[%s21842_s15 + $0x1b4] sm:$0xf0]  ;;  %v14324_v3 = vor.u32 %v16586_v56, %v14321_v57  ;;  %v16584_v5 = vld [vmem:[%s21844_s17 + $0x1e4] sm:$0xf]  ;;  %v16577_v56 = vld [vmem:[%s21844_s17 + $0x1a4] sm:$0xf0] }
0x18a6   : > { %v7221_v15 = vsel %vm2020_vm2, %v7219_v33, 0.0  ;;  %v7222_v30 = vsel %vm2020_vm2, %v7220_v51, 0.0  ;;  %v16530_v33 = vld [vmem:[%s21842_s15 + $0x134] sm:$0xf]  ;;  %v14064_v51 = vld [vmem:[%s21842_s15 + $0x138] sm:$0xf0]  ;;  %v14127_v37 = vor.u32 %v16547_v61, %v14126_v7 }
0x18a7   : > { %7216 = vadd.xlane.f32.xlu2 %v7215_v40  ;;  %v7223_v18 = vadd.f32 %v7222_v30, %v7221_v15  ;;  %v14067_v26 = vor.u32 %v16530_v33, %v14064_v51  ;;  %v16546_v40 = vld [vmem:[%s21842_s15 + $0x1b4] sm:$0xf]  ;;  %v14128_v15 = vld [vmem:[%s21842_s15 + $0x1b8] sm:$0xf0]  ;;  %7467 = vmatpush.bf16.msrb.mxu2 %v14063_v22  ;;  %v14313_v7 = vld [vmem:[%s21844_s17 + $0x1e8] sm:$0xf0]  ;;  %v14312_v33 = vor.u32 %v16585_v2, %v14311_v58 }
0x18a8   : > { %v14131_v30 = vor.u32 %v16546_v40, %v14128_v15  ;;  %7480 = vmatpush.bf16.msrb.mxu3 %v14127_v37  ;;  %v14255_v22 = vld [vmem:[%s21844_s17 + $0x170] sm:$0xf]  ;;  %v16571_v51 = vld [vmem:[%s21844_s17 + $0x174] sm:$0xf0]  ;;  %v16570_v37 = vld [vmem:[%s21844_s17 + $0x174] sm:$0xf] }
0x18a9   : > { %7224 = vadd.xlane.f32.xlu0 %v7223_v18  ;;  %v14054_v18 = vld [vmem:[%s21842_s15 + $0x120] sm:$0xf]  ;;  %7493 = vmatpush.bf16.msra.mxu0 %v14067_v26  ;;  %v14316_v26 = vor.u32 %v16584_v5, %v14313_v7  ;;  %v14256_v40 = vor.u32 %v16571_v51, %v14255_v22  ;;  %v14257_v15 = vld [vmem:[%s21844_s17 + $0x178] sm:$0xf0]  ;;  %v16576_v57 = vld [vmem:[%s21844_s17 + $0x1a4] sm:$0xf]  ;;  %v14280_v7 = vor.u32 %v16577_v56, %v14279_v9 }
0x18aa   : > { %v14055_v60 = vor.u32 %v16529_v10, %v14054_v18  ;;  %7506 = vmatpush.bf16.msra.mxu1 %v14131_v30  ;;  %v14303_v30 = vld [vmem:[%s21844_s17 + $0x1d0] sm:$0xf]  ;;  %v16583_v18 = vld [vmem:[%s21844_s17 + $0x1d4] sm:$0xf0]  ;;  %v14260_v10 = vor.u32 %v16570_v37, %v14257_v15  ;;  %v14281_v58 = vld [vmem:[%s21844_s17 + $0x1a8] sm:$0xf0] }
0x18ab   : > { %v7254_v5 = vperm.slane %v14002_v11, 3  ;;  %v14035_v9 = vld [vmem:[%s21843_s16 + $0x2] sm:$0x3] }
0x18ac   : > { %7468 = vmatpush.bf16.msrb.mxu2 %v14055_v60  ;;  %7481 = vmatpush.bf16.msrb.mxu3 %v14119_v20  ;;  %v14305_v60 = vld [vmem:[%s21844_s17 + $0x1d8] sm:$0xf0]  ;;  %v14249_v20 = vld [vmem:[%s21844_s17 + $0x168] sm:$0xf0]  ;;  %v7300_v56 = vperm.slane %v14035_v9, 1 }
0x18ad   : > { %7494 = vmatpush.bf16.msra.mxu0 %v14059_v24  ;;  %v14304_v24 = vor.u32 %v16583_v18, %v14303_v30  ;;  %v14252_v49 = vor.u32 %v16568_v17, %v14249_v20  ;;  %v14308_v28 = vor.u32 %v16582_v46, %v14305_v60  ;;  %v7258_v46 = vperm.slane %v7254_v5, 1  ;;  %v16563_v17 = vld [vmem:[%s21844_s17 + $0x134] sm:$0xf0]  ;;  %v16562_v20 = vld [vmem:[%s21844_s17 + $0x134] sm:$0xf] }
0x18ae   : > { %7507 = vmatpush.bf16.msra.mxu1 %v14123_v6  ;;  %v14295_v6 = vld [vmem:[%s21844_s17 + $0x1c0] sm:$0xf] }
0x18af   : > { %v14296_v42 = vor.u32 %v16581_v54, %v14295_v6  ;;  %v14271_v6 = vld [vmem:[%s21844_s17 + $0x190] sm:$0xf]  ;;  %v16575_v54 = vld [vmem:[%s21844_s17 + $0x194] sm:$0xf0] }
0x18b0   : > { %7469 = vmatpush.bf16.msrb.mxu2 %v14047_v13  ;;  %7482 = vmatpush.bf16.msrb.mxu3 %v14111_v63  ;;  %v14239_v13 = vld [vmem:[%s21844_s17 + $0x150] sm:$0xf]  ;;  %v14241_v63 = vld [vmem:[%s21844_s17 + $0x158] sm:$0xf0]  ;;  %v14272_v59 = vor.u32 %v16575_v54, %v14271_v6 }
0x18b1   : > { %7495 = vmatpush.bf16.msra.mxu0 %v14051_v29  ;;  %v14240_v29 = vor.u32 %v16567_v1, %v14239_v13  ;;  %v14273_v13 = vld [vmem:[%s21844_s17 + $0x198] sm:$0xf0] }
0x18b2   : > { %7508 = vmatpush.bf16.msra.mxu1 %v14115_v48  ;;  %v14244_v48 = vor.u32 %v16566_v62, %v14241_v63  ;;  %v16561_v62 = vld [vmem:[%s21844_s17 + $0x124] sm:$0xf0]  ;;  %v16560_v63 = vld [vmem:[%s21844_s17 + $0x124] sm:$0xf]  ;;  %v16591_v6 = vld [vmem:[%s21866_s0 + $0x418] sm:$0xff] }
0x18b3   : > { %v16599_v54 = vld [vmem:[%s21866_s0 + $0x458] sm:$0xff] }
0x18b4   : > { %7470 = vmatpush.bf16.msrb.mxu2 %v14039_v35  ;;  %7483 = vmatpush.bf16.msrb.mxu3 %v14103_v52  ;;  %v14233_v52 = vld [vmem:[%s21844_s17 + $0x148] sm:$0xf0] }
0x18b5   : > { %7496 = vmatpush.bf16.msra.mxu0 %v14043_v55  ;;  %v16578_v55 = vld [vmem:[%s21844_s17 + $0x1b4] sm:$0xf] }
0x18b6   : > { %7509 = vmatpush.bf16.msra.mxu1 %v14107_v47  ;;  %v14232_v47 = vor.u32 %v16565_v32, %v14231_v8  ;;  %v14292_v41 = vor.u32 %v16578_v55, %v14289_v39  ;;  %v16572_v8 = vld [vmem:[%s21844_s17 + $0x184] sm:$0xf]  ;;  %v16558_v55 = vld [vmem:[%s21844_s17 + $0x114] sm:$0xf]  ;;  %v14209_v39 = vld [vmem:[%s21844_s17 + $0x118] sm:$0xf0] }
0x18b8   : > { %7732 = vmatpush.bf16.msra.mxu3 %v14320_v4  ;;  %7719 = vmatpush.bf16.msra.mxu2 %v14256_v40  ;;  %v7246_v4 = vperm.slane %v14002_v11, 2 }
0x18b9   : > { %7745 = vmatpush.bf16.msrb.mxu0 %v14260_v10 }
0x18ba   : > { %7758 = vmatpush.bf16.msrb.mxu1 %v14324_v3  ;;  %v7253_v3 = vperm.slane %v14002_v11, 1  ;;  %v7250_v40 = vperm.slane %v7246_v4, 0 }
0x18bc   : > { %7733 = vmatpush.bf16.msra.mxu3 %v14312_v33  ;;  %7720 = vmatpush.bf16.msra.mxu2 %v14248_v44  ;;  %v14284_v33 = vor.u32 %v16576_v57, %v14281_v58  ;;  %v7257_v10 = vperm.slane %v7253_v3, 1  ;;  %v14225_v44 = vld [vmem:[%s21844_s17 + $0x138] sm:$0xf0]  ;;  %v7299_v58 = vperm.slane %v14035_v9, 0 }
0x18bd   : > { %7746 = vmatpush.bf16.msrb.mxu0 %v14252_v49  ;;  %v14228_v49 = vor.u32 %v16562_v20, %v14225_v44  ;;  %v16592_v20 = vld [vmem:[%s21866_s0 + $0x420] sm:$0xff]  ;;  %v16635_v9 = vld [vmem:[%s21837_s10 + $0x478] sm:$0xff] }
0x18be   : > { %7759 = vmatpush.bf16.msrb.mxu1 %v14316_v26 }
0x18c0   : > { %7734 = vmatpush.bf16.msra.mxu3 %v14304_v24  ;;  %7721 = vmatpush.bf16.msra.mxu2 %v14240_v29  ;;  %v14216_v29 = vor.u32 %v16561_v62, %v14215_v53  ;;  %v16590_v62 = vld [vmem:[%s21866_s0 + $0x410] sm:$0xff] }
0x18c1   : > { %7747 = vmatpush.bf16.msrb.mxu0 %v14244_v48  ;;  %v14263_v48 = vld [vmem:[%s21844_s17 + $0x180] sm:$0xf] }
0x18c2   : > { %7760 = vmatpush.bf16.msrb.mxu1 %v14308_v28  ;;  %v16574_v28 = vld [vmem:[%s21844_s17 + $0x194] sm:$0xf] }
0x18c3   : > { %v14276_v1 = vor.u32 %v16574_v28, %v14273_v13 }
0x18c4   : > { %7735 = vmatpush.bf16.msra.mxu3 %v14296_v42  ;;  %7722 = vmatpush.bf16.msra.mxu2 %v14232_v47  ;;  %v16557_v47 = vld [vmem:[%s21844_s17 + $0x104] sm:$0xf0] }
0x18c6   : > { %7761 = vmatpush.bf16.msrb.mxu1 %v14300_v21 }
0x18ca   : > { %7762 = vmatpush.bf16.msrb.mxu1 %v14292_v41 }
0x18ce   : > { %7763 = vmatpush.bf16.msrb.mxu1 %v14284_v33 }
0x18d2   : > { %7764 = vmatpush.bf16.msrb.mxu1 %v14276_v1 }
0x191a   : > { %v7217_v45 = vpop.xlane.xlu2 %7216 }
0x191b   : > { %v20215_v16 = vmul.f32 %v7217_v45, %v18830_v43 }
0x191c   : > { %v7225_v23 = vpop.xlane.xlu0 %7224 }
0x191d   : > { %v7226_v31 = vmul.f32 %v7225_v23, %v18830_v43  ;;  %v7227_v34 = vmul.f32 %v20215_v16, %v20215_v16  ;;  %v14288_v23 = vor.u32 %v16579_v25, %v14287_v50  ;;  %v7240_v51 = vsub.f32 %v20007_v27, %v20215_v16  ;;  %v16573_v50 = vld [vmem:[%s21844_s17 + $0x184] sm:$0xf0]  ;;  %v14207_v25 = vld [vmem:[%s21844_s17 + $0x110] sm:$0xf] }
0x191e   : > { %v7241_v37 = vsub.f32 %v20010_v14, %v20215_v16  ;;  %v14223_v16 = vld [vmem:[%s21844_s17 + $0x130] sm:$0xf]  ;;  %v14264_v32 = vor.u32 %v16573_v50, %v14263_v48 }
0x191f   : > { %v7228_v36 = vsub.f32 %v7226_v31, %v7227_v34  ;;  %v14236_v31 = vor.u32 %v16564_v38, %v14233_v52  ;;  %7736 = vmatpush.bf16.msra.mxu3 %v14288_v23  ;;  %v14224_v24 = vor.u32 %v16563_v17, %v14223_v16  ;;  %v16559_v38 = vld [vmem:[%s21844_s17 + $0x114] sm:$0xf0]  ;;  %v16556_v23 = vld [vmem:[%s21844_s17 + $0x104] sm:$0xf]  ;;  %v14196_v16 = vld [vmem:[%s21845_s18 + $0x2] sm:$0x3] }
0x1920   : > { %v14208_v52 = vor.u32 %v16559_v38, %v14207_v25  ;;  %v7556_v44 = vperm.slane %v14196_v16, 1  ;;  %v7555_v53 = vperm.slane %v14196_v16, 0  ;;  %v16604_v16 = vld [vmem:[%s21835_s8 + $0x400] sm:$0xff] }
0x1921   : > { %v20247_v61 = vadd.f32 1e-05, %v7228_v36  ;;  %v7245_v36 = vperm.slane %v14002_v11, 0  ;;  %7748 = vmatpush.bf16.msrb.mxu0 %v14236_v31  ;;  %7723 = vmatpush.bf16.msra.mxu2 %v14224_v24  ;;  %v14212_v11 = vor.u32 %v16558_v55, %v14209_v39  ;;  %v16600_v24 = vld [vmem:[%s21866_s0 + $0x460] sm:$0xff] }
0x1923   : > { %17083 = vrsqrt.f32 %v20247_v61  ;;  %vm7236_vm9 = vweird.f32 %v20247_v61  ;;  %v7249_v26 = vperm.slane %v7245_v36, 0  ;;  %7737 = vmatpush.bf16.msra.mxu3 %v14280_v7 }
0x1925   : > { %7749 = vmatpush.bf16.msrb.mxu0 %v14228_v49  ;;  %7724 = vmatpush.bf16.msra.mxu2 %v14216_v29 }
0x1927   : > { %7738 = vmatpush.bf16.msra.mxu3 %v14272_v59 }
0x1929   : > { %v17084_v19 = vpop.eup %17083  ;;  %7725 = vmatpush.bf16.msra.mxu2 %v14208_v52 }
0x192a   : > { %v7231_v35 = vmul.f32 %v17084_v19, %v20247_v61  ;;  %vm7237_vm7 = vweird.f32 %v17084_v19 }
0x192b   : > { %vm7238_vm10 = vmor %vm7236_vm9, %vm7237_vm7  ;;  %7739 = vmatpush.bf16.msra.mxu3 %v14264_v32 }
0x192c   : > { %v7232_v45 = vmul.f32 %v17084_v19, %v7231_v35  ;;  %v14265_v35 = vld [vmem:[%s21844_s17 + $0x188] sm:$0xf0] }
0x192d   : > { %v14268_v21 = vor.u32 %v16572_v8, %v14265_v35 }
0x192e   : > { %v7233_v34 = vmul.f32 0.5, %v7232_v45  ;;  %v14199_v45 = vld [vmem:[%s21844_s17 + $0x100] sm:$0xf] }
0x192f   : > { %7765 = vmatpush.bf16.msrb.mxu1 %v14268_v21  ;;  %v14200_v31 = vor.u32 %v16557_v47, %v14199_v45  ;;  %v16597_v45 = vld [vmem:[%s21866_s0 + $0x448] sm:$0xff]  ;;  %v16611_v47 = vld [vmem:[%s21835_s8 + $0x438] sm:$0xff] }
0x1930   : > { %v7234_v2 = vsub.f32 1.5, %v7233_v34  ;;  %v14201_v34 = vld [vmem:[%s21844_s17 + $0x108] sm:$0xf0] }
0x1931   : > { %v14204_v41 = vor.u32 %v16556_v23, %v14201_v34  ;;  %7726 = vmatpush.bf16.msra.mxu2 %v14200_v31  ;;  %v16619_v23 = vld [vmem:[%s21835_s8 + $0x478] sm:$0xff]  ;;  %v16588_v31 = vld [vmem:[%s21866_s0 + $0x400] sm:$0xff] }
0x1932   : > { %v7235_v22 = vmul.f32 %v17084_v19, %v7234_v2  ;;  %v16596_v34 = vld [vmem:[%s21866_s0 + $0x440] sm:$0xff] }
0x1934   : > { %v7239_v15 = vsel %vm7238_vm10, %v17084_v19, %v7235_v22  ;;  %v14217_v19 = vld [vmem:[%s21844_s17 + $0x128] sm:$0xf0] }
0x1935   : > { %v7242_v30 = vmul.f32 %v7240_v51, %v7239_v15  ;;  %v7243_v18 = vmul.f32 %v7241_v37, %v7239_v15  ;;  %v14220_v42 = vor.u32 %v16560_v63, %v14217_v19  ;;  %v16598_v63 = vld [vmem:[%s21866_s0 + $0x450] sm:$0xff] }
0x1937   : > { %v7251_v61 = vmul.f32 %v7249_v26, %v7242_v30  ;;  %v7252_v60 = vmul.f32 %v7250_v40, %v7243_v18  ;;  %7750 = vmatpush.bf16.msrb.mxu0 %v14220_v42 }
0x1939   : > { %v20353_v0 = vadd.f32 %v7257_v10, %v7251_v61  ;;  %v20355_v12 = vadd.f32 %v7258_v46, %v7252_v60  ;;  %v16595_v10 = vld [vmem:[%s21866_s0 + $0x438] sm:$0xff]  ;;  %v16594_v61 = vld [vmem:[%s21866_s0 + $0x430] sm:$0xff] }
0x193a   : > { %v16603_v46 = vld [vmem:[%s21866_s0 + $0x478] sm:$0xff]  ;;  %v16602_v60 = vld [vmem:[%s21866_s0 + $0x470] sm:$0xff] }
0x193b   : > { %v7261_v27 = vpack.c.bf16 %v20353_v0, %v20353_v0  ;;  %v7262_v14 = vpack.c.bf16 %v20355_v12, %v20355_v12  ;;  %7751 = vmatpush.bf16.msrb.mxu0 %v14212_v11  ;;  %v16589_v11 = vld [vmem:[%s21866_s0 + $0x408] sm:$0xff] }
0x193d   : > { %7471 = vmatmul.bf16.vlgmr.msrb.gmra.mxu2 %v7261_v27  ;;  %7484 = vmatmul.bf16.vlgmr.msrb.gmra.mxu3 %v7262_v14 }
0x193e   : > { %7497 = vmatmul.bf16.vlgmr.msra.gmra.mxu0 %v7261_v27  ;;  %7510 = vmatmul.bf16.vlgmr.msra.gmra.mxu1 %v7262_v14  ;;  %v16593_v27 = vld [vmem:[%s21866_s0 + $0x428] sm:$0xff] }
0x193f   : > { %7752 = vmatpush.bf16.msrb.mxu0 %v14204_v41  ;;  %7959 = vmatpush.bf16.msrb.mxu2 %v16595_v10  ;;  %v16601_v14 = vld [vmem:[%s21866_s0 + $0x468] sm:$0xff]  ;;  %v16627_v41 = vld [vmem:[%s21837_s10 + $0x438] sm:$0xff]  ;;  %v16622_v10 = vld [vmem:[%s21837_s10 + $0x410] sm:$0xff] }
0x1940   : > { %7972 = vmatpush.bf16.msrb.mxu3 %v16603_v46  ;;  %8132 = vmatpush.bf16.msra.mxu1 %v16619_v23  ;;  %v16630_v46 = vld [vmem:[%s21837_s10 + $0x450] sm:$0xff] }
0x1943   : > { %7960 = vmatpush.bf16.msrb.mxu2 %v16594_v61  ;;  %8119 = vmatpush.bf16.msra.mxu0 %v16611_v47  ;;  %v16605_v61 = vld [vmem:[%s21835_s8 + $0x408] sm:$0xff] }
0x1944   : > { %7973 = vmatpush.bf16.msrb.mxu3 %v16602_v60  ;;  %v16613_v60 = vld [vmem:[%s21835_s8 + $0x448] sm:$0xff] }
0x1947   : > { %7961 = vmatpush.bf16.msrb.mxu2 %v16593_v27  ;;  %v16621_v27 = vld [vmem:[%s21837_s10 + $0x408] sm:$0xff] }
0x1948   : > { %7974 = vmatpush.bf16.msrb.mxu3 %v16601_v14  ;;  %v16629_v14 = vld [vmem:[%s21837_s10 + $0x448] sm:$0xff] }
0x194b   : > { %7962 = vmatpush.bf16.msrb.mxu2 %v16592_v20 }
0x194c   : > { %7975 = vmatpush.bf16.msrb.mxu3 %v16600_v24 }
0x194f   : > { %7963 = vmatpush.bf16.msrb.mxu2 %v16591_v6  ;;  %v16628_v6 = vld [vmem:[%s21837_s10 + $0x440] sm:$0xff] }
0x1950   : > { %7976 = vmatpush.bf16.msrb.mxu3 %v16599_v54 }
0x1953   : > { %7964 = vmatpush.bf16.msrb.mxu2 %v16590_v62  ;;  %v14325_v62 = vld [vmem:[%s21846_s19 + $0x4] sm:$0xf] }
0x1954   : > { %7977 = vmatpush.bf16.msrb.mxu3 %v16598_v63 }
0x1957   : > { %7965 = vmatpush.bf16.msrb.mxu2 %v16589_v11 }
0x1958   : > { %7978 = vmatpush.bf16.msrb.mxu3 %v16597_v45 }
0x195b   : > { %7966 = vmatpush.bf16.msrb.mxu2 %v16588_v31 }
0x195c   : > { %7979 = vmatpush.bf16.msrb.mxu3 %v16596_v34 }
0x19bb   : > { %v7498_v36 = vpop.f32.mrf.mxu0  ;;  %v7511_v4 = vpop.f32.mrf.mxu1 }
0x19bc   : > { %v7499_v57 = vadd.f32 %v7498_v36, %v7300_v56  ;;  %v16610_v56 = vld [vmem:[%s21835_s8 + $0x430] sm:$0xff] }
0x19bd   : > { %v16618_v36 = vld [vmem:[%s21835_s8 + $0x470] sm:$0xff]  ;;  %8120 = vmatpush.bf16.msra.mxu0 %v16610_v56 }
0x19be   : > { %v7512_v2 = vadd.f32 %v7511_v4, %v7499_v57  ;;  %8133 = vmatpush.bf16.msra.mxu1 %v16618_v36  ;;  %v16626_v4 = vld [vmem:[%s21837_s10 + $0x430] sm:$0xff] }
0x19bf   : > { %v16634_v57 = vld [vmem:[%s21837_s10 + $0x470] sm:$0xff] }
0x19c0   : > { %v7516_v3 = vmax.f32 %v7512_v2, 0.0  ;;  %v7472_v5 = vpop.f32.mrf.mxu2  ;;  %v7485_v7 = vpop.f32.mrf.mxu3  ;;  %v16617_v2 = vld [vmem:[%s21835_s8 + $0x468] sm:$0xff]  ;;  %v16666_v56 = vld [vmem:[%s21835_s8 + $0x4b0] sm:$0xff] }
0x19c1   : > { %v7473_v22 = vadd.f32 %v7472_v5, %v7299_v58  ;;  %v16609_v58 = vld [vmem:[%s21835_s8 + $0x428] sm:$0xff]  ;;  %v16674_v36 = vld [vmem:[%s21835_s8 + $0x4f0] sm:$0xff] }
0x19c2   : > { %v7518_v33 = vpack.c.bf16 %v7516_v3, %v7516_v3  ;;  %8121 = vmatpush.bf16.msra.mxu0 %v16609_v58  ;;  %8134 = vmatpush.bf16.msra.mxu1 %v16617_v2  ;;  %v16625_v3 = vld [vmem:[%s21837_s10 + $0x428] sm:$0xff]  ;;  %v16664_v58 = vld [vmem:[%s21835_s8 + $0x4a0] sm:$0xff] }
0x19c3   : > { %v7486_v51 = vadd.f32 %v7485_v7, %v7473_v22  ;;  %v7500_v37 = vpop.f32.mrf.mxu0  ;;  %v7513_v26 = vpop.f32.mrf.mxu1  ;;  %v16633_v5 = vld [vmem:[%s21837_s10 + $0x468] sm:$0xff]  ;;  %v16608_v7 = vld [vmem:[%s21835_s8 + $0x420] sm:$0xff] }
0x19c4   : > { %7740 = vmatmul.bf16.vlgmr.msra.gmra.mxu3 %v7518_v33  ;;  %7766 = vmatmul.bf16.vlgmr.msrb.gmra.mxu1 %v7518_v33  ;;  %v16616_v22 = vld [vmem:[%s21835_s8 + $0x460] sm:$0xff]  ;;  %v16607_v37 = vld [vmem:[%s21835_s8 + $0x418] sm:$0xff] }
0x19c5   : > { %v7515_v40 = vmax.f32 %v7486_v51, 0.0  ;;  %8292 = vmatpush.bf16.msra.mxu3 %v16635_v9  ;;  %v16624_v33 = vld [vmem:[%s21837_s10 + $0x420] sm:$0xff]  ;;  %v16615_v26 = vld [vmem:[%s21835_s8 + $0x458] sm:$0xff] }
0x19c6   : > { %8122 = vmatpush.bf16.msra.mxu0 %v16608_v7  ;;  %8135 = vmatpush.bf16.msra.mxu1 %v16616_v22  ;;  %v16632_v51 = vld [vmem:[%s21837_s10 + $0x460] sm:$0xff]  ;;  %v16675_v9 = vld [vmem:[%s21835_s8 + $0x4f8] sm:$0xff]  ;;  %v16662_v7 = vld [vmem:[%s21835_s8 + $0x490] sm:$0xff] }
0x19c7   : > { %v7517_v15 = vpack.c.bf16 %v7515_v40, %v7515_v40  ;;  %v16623_v40 = vld [vmem:[%s21837_s10 + $0x418] sm:$0xff]  ;;  %v16672_v2 = vld [vmem:[%s21835_s8 + $0x4e0] sm:$0xff]  ;;  %v16670_v22 = vld [vmem:[%s21835_s8 + $0x4d0] sm:$0xff] }
0x19c8   : > { %v7474_v30 = vpop.f32.mrf.mxu2  ;;  %v7487_v18 = vpop.f32.mrf.mxu3 }
0x19c9   : > { %7727 = vmatmul.bf16.vlgmr.msra.gmra.mxu2 %v7517_v15  ;;  %7753 = vmatmul.bf16.vlgmr.msrb.gmra.mxu0 %v7517_v15  ;;  %v16631_v15 = vld [vmem:[%s21837_s10 + $0x458] sm:$0xff]  ;;  %v16606_v30 = vld [vmem:[%s21835_s8 + $0x410] sm:$0xff] }
0x19ca   : > { %8279 = vmatpush.bf16.msra.mxu2 %v16627_v41  ;;  %8293 = vmatpush.bf16.msra.mxu3 %v16634_v57  ;;  %v16614_v18 = vld [vmem:[%s21835_s8 + $0x450] sm:$0xff]  ;;  %v16673_v57 = vld [vmem:[%s21835_s8 + $0x4e8] sm:$0xff] }
0x19cb   : > { %8123 = vmatpush.bf16.msra.mxu0 %v16607_v37  ;;  %8136 = vmatpush.bf16.msra.mxu1 %v16615_v26  ;;  %v16660_v37 = vld [vmem:[%s21835_s8 + $0x480] sm:$0xff] }
0x19cc   : > { %v16668_v26 = vld [vmem:[%s21835_s8 + $0x4c0] sm:$0xff] }
0x19ce   : > { %8280 = vmatpush.bf16.msra.mxu2 %v16626_v4  ;;  %8294 = vmatpush.bf16.msra.mxu3 %v16633_v5  ;;  %v16665_v4 = vld [vmem:[%s21835_s8 + $0x4a8] sm:$0xff]  ;;  %v16671_v5 = vld [vmem:[%s21835_s8 + $0x4d8] sm:$0xff] }
0x19cf   : > { %8124 = vmatpush.bf16.msra.mxu0 %v16606_v30  ;;  %8137 = vmatpush.bf16.msra.mxu1 %v16614_v18 }
0x19d2   : > { %8281 = vmatpush.bf16.msra.mxu2 %v16625_v3  ;;  %8295 = vmatpush.bf16.msra.mxu3 %v16632_v51  ;;  %v16663_v3 = vld [vmem:[%s21835_s8 + $0x498] sm:$0xff]  ;;  %v16669_v51 = vld [vmem:[%s21835_s8 + $0x4c8] sm:$0xff] }
0x19d3   : > { %8125 = vmatpush.bf16.msra.mxu0 %v16605_v61  ;;  %8138 = vmatpush.bf16.msra.mxu1 %v16613_v60 }
0x19d6   : > { %8282 = vmatpush.bf16.msra.mxu2 %v16624_v33  ;;  %8296 = vmatpush.bf16.msra.mxu3 %v16631_v15  ;;  %v16661_v33 = vld [vmem:[%s21835_s8 + $0x488] sm:$0xff] }
0x19d7   : > { %8126 = vmatpush.bf16.msra.mxu0 %v16604_v16  ;;  %v16650_v16 = vld [vmem:[%s21866_s0 + $0x4b0] sm:$0xff] }
0x19da   : > { %8283 = vmatpush.bf16.msra.mxu2 %v16623_v40  ;;  %8297 = vmatpush.bf16.msra.mxu3 %v16630_v46  ;;  %v17033_v40 = vld [vmem:[%s21836_s9 + $0x8] ss:$0 sm:$0xff]  ;;  %v16651_v46 = vld [vmem:[%s21866_s0 + $0x4b8] sm:$0xff] }
0x19de   : > { %8284 = vmatpush.bf16.msra.mxu2 %v16622_v10  ;;  %8298 = vmatpush.bf16.msra.mxu3 %v16629_v14  ;;  %v17034_v10 = vld [vmem:[%s21834_s7 + $0x8] ss:$0 sm:$0xff] }
0x19e2   : > { %8285 = vmatpush.bf16.msra.mxu2 %v16621_v27  ;;  %8299 = vmatpush.bf16.msra.mxu3 %v16628_v6 }
0x1a41   : > { %v7767_v17 = vpop.f32.mrf.mxu1 }
0x1a46   : > { %v7754_v49 = vpop.f32.mrf.mxu0 }
0x1a47   : > { %v7741_v28 = vpop.f32.mrf.mxu3  ;;  %v7755_v59 = vadd.f32 %v7754_v49, %v7556_v44  ;;  %v16620_v49 = vld [vmem:[%s21837_s10 + $0x400] sm:$0xff] }
0x1a48   : > { %8286 = vmatpush.bf16.msra.mxu2 %v16620_v49 }
0x1a49   : > { %v7768_v13 = vadd.f32 %v7767_v17, %v7755_v59  ;;  %v7769_v1 = vpop.f32.mrf.mxu1  ;;  %v16612_v17 = vld [vmem:[%s21835_s8 + $0x440] sm:$0xff] }
0x1a4a   : > { %8139 = vmatpush.bf16.msra.mxu1 %v16612_v17 }
0x1a4b   : > { %v20476_v19 = vadd.f32 %v7768_v13, %v20355_v12 }
0x1a4c   : > { %v7728_v29 = vpop.f32.mrf.mxu2 }
0x1a4d   : > { %v7729_v42 = vadd.f32 %v7728_v29, %v7555_v53  ;;  %v7782_v35 = vmul.f32 %v20476_v19, %v20476_v19  ;;  %v7776_v25 = vsel %vm2020_vm2, %v20476_v19, 0.0 }
0x1a4e   : > { %v7756_v48 = vpop.f32.mrf.mxu0 }
0x1a4f   : > { %v7742_v50 = vadd.f32 %v7741_v28, %v7729_v42  ;;  %v7743_v8 = vpop.f32.mrf.mxu3  ;;  %v7784_v39 = vsel %vm2020_vm2, %v7782_v35, 0.0  ;;  %v7807_v42 = vperm.slane %v14325_v62, 0  ;;  %v7808_v48 = vperm.slane %v14325_v62, 2 }
0x1a50   : > { %v7815_v8 = vperm.slane %v14325_v62, 1  ;;  %v7816_v35 = vperm.slane %v14325_v62, 3  ;;  %v16646_v62 = vld [vmem:[%s21866_s0 + $0x490] sm:$0xff] }
0x1a51   : > { %v20479_v32 = vadd.f32 %v7742_v50, %v20353_v0 }
0x1a53   : > { %v7775_v21 = vsel %vm2020_vm2, %v20479_v32, 0.0  ;;  %v7781_v12 = vmul.f32 %v20479_v32, %v20479_v32 }
0x1a54   : > { %v7730_v38 = vpop.f32.mrf.mxu2  ;;  %v7777_v52 = vadd.f32 %v7776_v25, %v7775_v21 }
0x1a55   : > { %v7783_v55 = vsel %vm2020_vm2, %v7781_v12, 0.0  ;;  %v7811_v38 = vperm.slane %v7807_v42, 0 }
0x1a56   : > { %7778 = vadd.xlane.f32.xlu1 %v7777_v52  ;;  %v7785_v0 = vadd.f32 %v7784_v39, %v7783_v55  ;;  %v7812_v52 = vperm.slane %v7808_v48, 0  ;;  %v7819_v39 = vperm.slane %v7815_v8, 1  ;;  %v16683_v8 = vld [vmem:[%s21837_s10 + $0x4b8] sm:$0xff] }
0x1a58   : > { %7786 = vadd.xlane.f32.xlu2 %v7785_v0  ;;  %v7820_v0 = vperm.slane %v7816_v35, 1  ;;  %v17036_v35 = vld [vmem:[%s21836_s9 + $0x9] ss:$0 sm:$0xff] }
0x1ac9   : > { %v7779_v20 = vpop.xlane.xlu1 %7778 }
0x1aca   : > { %v7780_v24 = vmul.f32 %v7779_v20, %v18830_v43 }
0x1acb   : > { %v7787_v44 = vpop.xlane.xlu2 %7786 }
0x1acc   : > { %v7788_v54 = vmul.f32 %v7787_v44, %v18830_v43  ;;  %v7789_v28 = vmul.f32 %v7780_v24, %v7780_v24  ;;  %v7802_v25 = vsub.f32 %v20479_v32, %v7780_v24  ;;  %v7803_v12 = vsub.f32 %v20476_v19, %v7780_v24  ;;  %v16667_v32 = vld [vmem:[%s21835_s8 + $0x4b8] sm:$0xff]  ;;  %v16649_v44 = vld [vmem:[%s21866_s0 + $0x4a8] sm:$0xff] }
0x1ace   : > { %v7790_v59 = vsub.f32 %v7788_v54, %v7789_v28  ;;  %v16648_v54 = vld [vmem:[%s21866_s0 + $0x4a0] sm:$0xff]  ;;  %v17035_v28 = vld [vmem:[%s21838_s11 + $0x8] ss:$0 sm:$0xff] }
0x1ad0   : > { %v7791_v13 = vadd.f32 1e-05, %v7790_v59  ;;  %v16647_v59 = vld [vmem:[%s21866_s0 + $0x498] sm:$0xff] }
0x1ad2   : > { %17085 = vrsqrt.f32 %v7791_v13  ;;  %vm7798_vm12 = vweird.f32 %v7791_v13 }
0x1ad8   : > { %v17086_v1 = vpop.eup %17085 }
0x1ad9   : > { %v7793_v53 = vmul.f32 %v17086_v1, %v7791_v13  ;;  %vm7799_vm11 = vweird.f32 %v17086_v1 }
0x1ada   : > { %vm7800_vm13 = vmor %vm7798_vm12, %vm7799_vm11 }
0x1adb   : > { %v7794_v63 = vmul.f32 %v17086_v1, %v7793_v53 }
0x1add   : > { %v7795_v29 = vmul.f32 0.5, %v7794_v63 }
0x1adf   : > { %v7796_v50 = vsub.f32 1.5, %v7795_v29  ;;  %v16645_v29 = vld [vmem:[%s21866_s0 + $0x488] sm:$0xff] }
0x1ae1   : > { %v7797_v21 = vmul.f32 %v17086_v1, %v7796_v50  ;;  %v16644_v50 = vld [vmem:[%s21866_s0 + $0x480] sm:$0xff] }
0x1ae3   : > { %v7801_v55 = vsel %vm7800_vm13, %v17086_v1, %v7797_v21  ;;  %v16682_v21 = vld [vmem:[%s21837_s10 + $0x4b0] sm:$0xff] }
0x1ae4   : > { %v7804_v11 = vmul.f32 %v7802_v25, %v7801_v55  ;;  %v7805_v45 = vmul.f32 %v7803_v12, %v7801_v55 }
0x1ae6   : > { %v7813_v47 = vmul.f32 %v7811_v38, %v7804_v11  ;;  %v7814_v23 = vmul.f32 %v7812_v52, %v7805_v45  ;;  %v16681_v52 = vld [vmem:[%s21837_s10 + $0x4a8] sm:$0xff]  ;;  %v16679_v45 = vld [vmem:[%s21837_s10 + $0x498] sm:$0xff] }
0x1ae8   : > { %v20606_v31 = vadd.f32 %v7819_v39, %v7813_v47  ;;  %v20608_v34 = vadd.f32 %v7820_v0, %v7814_v23  ;;  %v16680_v39 = vld [vmem:[%s21837_s10 + $0x4a0] sm:$0xff]  ;;  %v16678_v47 = vld [vmem:[%s21837_s10 + $0x490] sm:$0xff]  ;;  %v16677_v23 = vld [vmem:[%s21837_s10 + $0x488] sm:$0xff] }
0x1aea   : > { %v20612_v41 = vpack.c.bf16 %v20606_v31, %v20606_v31  ;;  %v20616_v19 = vpack.c.bf16 %v20608_v34, %v20608_v34 }
0x1aec   : > { %7967 = vmatmul.bf16.vlgmr.msrb.gmra.mxu2 %v20612_v41  ;;  %7980 = vmatmul.bf16.vlgmr.msrb.gmra.mxu3 %v20616_v19 }
0x1aed   : > { %8127 = vmatmul.bf16.vlgmr.msra.gmra.mxu0 %v20612_v41  ;;  %8140 = vmatmul.bf16.vlgmr.msra.gmra.mxu1 %v20616_v19 }
0x1aee   : > { %8685 = vmatpush.bf16.msrb.mxu2 %v16667_v32  ;;  %8698 = vmatpush.bf16.msrb.mxu3 %v16675_v9  ;;  %v16676_v32 = vld [vmem:[%s21837_s10 + $0x480] sm:$0xff] }
0x1af2   : > { %8686 = vmatpush.bf16.msrb.mxu2 %v16666_v56  ;;  %8699 = vmatpush.bf16.msrb.mxu3 %v16674_v36 }
0x1af6   : > { %8687 = vmatpush.bf16.msrb.mxu2 %v16665_v4  ;;  %8700 = vmatpush.bf16.msrb.mxu3 %v16673_v57 }
0x1afa   : > { %8688 = vmatpush.bf16.msrb.mxu2 %v16664_v58  ;;  %8701 = vmatpush.bf16.msrb.mxu3 %v16672_v2  ;;  %v16659_v2 = vld [vmem:[%s21866_s0 + $0x4f8] sm:$0xff] }
0x1afc   : > { %8287 = vmatmul.bf16.vlgmr.msra.gmra.mxu2 %v20612_v41  ;;  %8300 = vmatmul.bf16.vlgmr.msra.gmra.mxu3 %v20616_v19 }
0x1afe   : > { %8689 = vmatpush.bf16.msrb.mxu2 %v16663_v3  ;;  %8702 = vmatpush.bf16.msrb.mxu3 %v16671_v5  ;;  %v16658_v3 = vld [vmem:[%s21866_s0 + $0x4f0] sm:$0xff]  ;;  %v16657_v5 = vld [vmem:[%s21866_s0 + $0x4e8] sm:$0xff] }
0x1b02   : > { %8690 = vmatpush.bf16.msrb.mxu2 %v16662_v7  ;;  %8703 = vmatpush.bf16.msrb.mxu3 %v16670_v22 }
0x1b06   : > { %8691 = vmatpush.bf16.msrb.mxu2 %v16661_v33  ;;  %8704 = vmatpush.bf16.msrb.mxu3 %v16669_v51 }
0x1b0a   : > { %8692 = vmatpush.bf16.msrb.mxu2 %v16660_v37  ;;  %8705 = vmatpush.bf16.msrb.mxu3 %v16668_v26  ;;  %v16656_v26 = vld [vmem:[%s21866_s0 + $0x4e0] sm:$0xff] }
0x1b0d   : > { %8693 = vmatmul.bf16.vlgmr.msrb.gmra.mxu2 %v20612_v41  ;;  %8706 = vmatmul.bf16.vlgmr.msrb.gmra.mxu3 %v20616_v19 }
0x1b6a   : > { %v8128_v15 = vpop.f32.mrf.mxu0  ;;  %v8141_v30 = vpop.f32.mrf.mxu1 }
0x1b6b   : > { %v8129_v18 = vadd.f32 %v17033_v40, %v8128_v15  ;;  %v16655_v40 = vld [vmem:[%s21866_s0 + $0x4d8] sm:$0xff]  ;;  %v16654_v15 = vld [vmem:[%s21866_s0 + $0x4d0] sm:$0xff] }
0x1b6d   : > { %v8142_v61 = vadd.f32 %v8141_v30, %v8129_v18  ;;  %v16653_v30 = vld [vmem:[%s21866_s0 + $0x4c8] sm:$0xff]  ;;  %v16652_v18 = vld [vmem:[%s21866_s0 + $0x4c0] sm:$0xff] }
0x1b6f   : > { %14617 = vmatpush.xpose.msk.msrb.mxu0 %vm937_vm1, %v8142_v61  ;;  %v7968_v60 = vpop.f32.mrf.mxu2  ;;  %v7981_v27 = vpop.f32.mrf.mxu3 }
0x1b70   : > { %v7969_v14 = vadd.f32 %v17034_v10, %v7968_v60 }
0x1b72   : > { %v7982_v17 = vadd.f32 %v7981_v27, %v7969_v14  ;;  %v8130_v20 = vpop.f32.mrf.mxu0  ;;  %v8143_v24 = vpop.f32.mrf.mxu1 }
0x1b73   : > { %8525 = vmatpush.bf16.msra.mxu0 %v16651_v46 }
0x1b74   : > { %14618 = vmatmul.msk.f32.vlgmr.msrb.gmra.mxu0 %vm937_vm1, %v7982_v17 }
0x1b77   : > { %8526 = vmatpush.bf16.msra.mxu0 %v16650_v16  ;;  %v7970_v49 = vpop.f32.mrf.mxu2  ;;  %v7983_v6 = vpop.f32.mrf.mxu3 }
0x1b78   : > { %v16691_v49 = vld [vmem:[%s21837_s10 + $0x4f8] sm:$0xff] }
0x1b7b   : > { %8527 = vmatpush.bf16.msra.mxu0 %v16649_v44 }
0x1b7f   : > { %8528 = vmatpush.bf16.msra.mxu0 %v16648_v54  ;;  %v8288_v13 = vpop.f32.mrf.mxu2  ;;  %v8301_v1 = vpop.f32.mrf.mxu3  ;;  %v14992_v54 = vld [vmem:[%s21839_s12 + $0x230] sm:$0xf] }
0x1b80   : > { %v8289_v53 = vadd.f32 %v17035_v28, %v8288_v13  ;;  %v16643_v28 = vld [vmem:[%s21839_s12 + $0x234] sm:$0xf0] }
0x1b81   : > { %v14993_v13 = vor.u32 %v16643_v28, %v14992_v54 }
0x1b82   : > { %v8302_v63 = vadd.f32 %v8301_v1, %v8289_v53  ;;  %v14984_v1 = vld [vmem:[%s21839_s12 + $0x220] sm:$0xf]  ;;  %v16641_v53 = vld [vmem:[%s21839_s12 + $0x224] sm:$0xf0] }
0x1b83   : > { %8529 = vmatpush.bf16.msra.mxu0 %v16647_v59  ;;  %v16690_v59 = vld [vmem:[%s21837_s10 + $0x4f0] sm:$0xff] }
0x1b84   : > { %14619 = vmatpush.msk.msrb.mxu1 %vm2020_vm2, %v8302_v63  ;;  %v14976_v63 = vld [vmem:[%s21839_s12 + $0x210] sm:$0xf] }
0x1b86   : > { %8538 = vmatpush.bf16.msra.mxu1 %v16659_v2  ;;  %v16636_v2 = vld [vmem:[%s21839_s12 + $0x204] sm:$0xf] }
0x1b87   : > { %8530 = vmatpush.bf16.msra.mxu0 %v16646_v62  ;;  %v8290_v42 = vpop.f32.mrf.mxu2  ;;  %v8303_v48 = vpop.f32.mrf.mxu3  ;;  %v14985_v62 = vor.u32 %v16641_v53, %v14984_v1  ;;  %v17039_v53 = vld [vmem:[%s21836_s9 + $0xa] ss:$0 sm:$0xff] }
0x1b88   : > { %v16689_v42 = vld [vmem:[%s21837_s10 + $0x4e8] sm:$0xff] }
0x1b8a   : > { %8539 = vmatpush.bf16.msra.mxu1 %v16658_v3  ;;  %v14970_v3 = vld [vmem:[%s21839_s12 + $0x208] sm:$0xf0] }
0x1b8b   : > { %8531 = vmatpush.bf16.msra.mxu0 %v16645_v29  ;;  %v16639_v29 = vld [vmem:[%s21839_s12 + $0x214] sm:$0xf0] }
0x1b8c   : > { %v14977_v48 = vor.u32 %v16639_v29, %v14976_v63 }
0x1b8e   : > { %8540 = vmatpush.bf16.msra.mxu1 %v16657_v5  ;;  %v14973_v5 = vor.u32 %v16636_v2, %v14970_v3  ;;  %v16695_v2 = vld [vmem:[%s21839_s12 + $0x254] sm:$0xf0]  ;;  %v16694_v3 = vld [vmem:[%s21839_s12 + $0x254] sm:$0xf] }
0x1b8f   : > { %8532 = vmatpush.bf16.msra.mxu0 %v16644_v50  ;;  %v14968_v50 = vld [vmem:[%s21839_s12 + $0x200] sm:$0xf] }
0x1b90   : > { %v8694_v25 = vpop.f32.mrf.mxu2  ;;  %v8707_v12 = vpop.f32.mrf.mxu3 }
0x1b91   : > { %v8695_v38 = vadd.f32 %v17036_v35, %v8694_v25  ;;  %v16688_v35 = vld [vmem:[%s21837_s10 + $0x4e0] sm:$0xff]  ;;  %v16723_v25 = vld [vmem:[%s21835_s8 + $0x538] sm:$0xff] }
0x1b92   : > { %8533 = vmatmul.bf16.vlgmr.msra.gmra.mxu0 %v20612_v41  ;;  %8541 = vmatpush.bf16.msra.mxu1 %v16656_v26  ;;  %v16719_v26 = vld [vmem:[%s21835_s8 + $0x518] sm:$0xff] }
0x1b93   : > { %8845 = vmatpush.bf16.msrb.mxu0 %v16683_v8  ;;  %v8708_v55 = vadd.f32 %v8707_v12, %v8695_v38  ;;  %v16637_v8 = vld [vmem:[%s21839_s12 + $0x204] sm:$0xf0]  ;;  %v16687_v12 = vld [vmem:[%s21837_s10 + $0x4d8] sm:$0xff]  ;;  %v16722_v38 = vld [vmem:[%s21835_s8 + $0x530] sm:$0xff] }
0x1b95   : > { %14920 = vmatpush.xpose.msk.msra.mxu2 %vm937_vm1, %v8708_v55  ;;  %v16721_v55 = vld [vmem:[%s21835_s8 + $0x528] sm:$0xff] }
0x1b96   : > { %8542 = vmatpush.bf16.msra.mxu1 %v16655_v40  ;;  %v16727_v40 = vld [vmem:[%s21835_s8 + $0x558] sm:$0xff] }
0x1b97   : > { %8846 = vmatpush.bf16.msrb.mxu0 %v16682_v21  ;;  %v14969_v21 = vor.u32 %v16637_v8, %v14968_v50 }
0x1b98   : > { %v8696_v0 = vpop.f32.mrf.mxu2  ;;  %v8709_v11 = vpop.f32.mrf.mxu3 }
0x1b99   : > { %v16642_v0 = vld [vmem:[%s21839_s12 + $0x234] sm:$0xf]  ;;  %v14994_v11 = vld [vmem:[%s21839_s12 + $0x238] sm:$0xf0] }
0x1b9a   : > { %8543 = vmatpush.bf16.msra.mxu1 %v16654_v15  ;;  %v16718_v15 = vld [vmem:[%s21835_s8 + $0x510] sm:$0xff] }
0x1b9b   : > { %8847 = vmatpush.bf16.msrb.mxu0 %v16681_v52  ;;  %v16686_v52 = vld [vmem:[%s21837_s10 + $0x4d0] sm:$0xff] }
0x1b9e   : > { %8544 = vmatpush.bf16.msra.mxu1 %v16653_v30  ;;  %v16726_v30 = vld [vmem:[%s21835_s8 + $0x550] sm:$0xff] }
0x1b9f   : > { %8848 = vmatpush.bf16.msrb.mxu0 %v16680_v39  ;;  %v16685_v39 = vld [vmem:[%s21837_s10 + $0x4c8] sm:$0xff] }
0x1ba2   : > { %8545 = vmatpush.bf16.msra.mxu1 %v16652_v18  ;;  %v16717_v18 = vld [vmem:[%s21835_s8 + $0x508] sm:$0xff] }
0x1ba3   : > { %8849 = vmatpush.bf16.msrb.mxu0 %v16679_v45  ;;  %v16684_v45 = vld [vmem:[%s21837_s10 + $0x4c0] sm:$0xff] }
0x1ba7   : > { %8850 = vmatpush.bf16.msrb.mxu0 %v16678_v47  ;;  %v14997_v47 = vor.u32 %v16642_v0, %v14994_v11  ;;  %v14960_v11 = vld [vmem:[%s21839_s12 + $0x278] sm:$0xf0] }
0x1bab   : > { %8851 = vmatpush.bf16.msrb.mxu0 %v16677_v23  ;;  %v16640_v23 = vld [vmem:[%s21839_s12 + $0x224] sm:$0xf] }
0x1baf   : > { %8852 = vmatpush.bf16.msrb.mxu0 %v16676_v32  ;;  %v14986_v32 = vld [vmem:[%s21839_s12 + $0x228] sm:$0xf0] }
0x1bb2   : > { %8853 = vmatmul.bf16.vlgmr.msrb.gmra.mxu0 %v20612_v41 }
0x1bb3   : > { %9073 = vmatpush.bf16.msra.mxu0 %v14993_v13 }
0x1bb7   : > { %9074 = vmatpush.bf16.msra.mxu0 %v14985_v62 }
0x1bbb   : > { %9075 = vmatpush.bf16.msra.mxu0 %v14977_v48 }
0x1bbf   : > { %9076 = vmatpush.bf16.msra.mxu0 %v14969_v21 }
0x1bc3   : > { %9389 = vmatpush.bf16.msrb.mxu0 %v16723_v25 }
0x1bc7   : > { %9390 = vmatpush.bf16.msrb.mxu0 %v16722_v38 }
0x1bcb   : > { %9391 = vmatpush.bf16.msrb.mxu0 %v16721_v55  ;;  %v16699_v55 = vld [vmem:[%s21839_s12 + $0x274] sm:$0xf0] }
0x1bf1   : > { %v8328_v9 = vpop.f32.mrf.mxu0 }
0x1bf2   : > { %v8331_v56 = vsel %vm1991_vm3, %v8328_v9, -inf }
0x1bf3   : > { %8332 = vmax.xlane.f32.xlu0 %v8331_v56  ;;  %v16638_v56 = vld [vmem:[%s21839_s12 + $0x214] sm:$0xf] }
0x1c0f   : > { %v20741_v36 = vpop.f32.mrf.mxu0 }
0x1c17   : > { %v8536_v4 = vpop.f32.mrf.mxu0 }
0x1c18   : > { %v14978_v4 = vld [vmem:[%s21839_s12 + $0x218] sm:$0xf0] }
0x1c2f   : > { %v20743_v57 = vpop.f32.mrf.mxu0 }
0x1c37   : > { %v8856_v58 = vpop.f32.mrf.mxu0 }
0x1c38   : > { %v14981_v58 = vor.u32 %v16638_v56, %v14978_v4 }
0x1c66   : > { %v8333_v7 = vpop.xlane.xlu0 %8332 }
0x1c67   : > { %v8334_v22 = vsub.f32 %v8328_v9, %v8333_v7  ;;  %v14989_v9 = vor.u32 %v16640_v23, %v14986_v32  ;;  %v16731_v7 = vld [vmem:[%s21835_s8 + $0x578] sm:$0xff]  ;;  %v16696_v32 = vld [vmem:[%s21839_s12 + $0x264] sm:$0xf] }
0x1c69   : > { %v8335_v33 = vmul.f32 1.442695, %v8334_v22  ;;  %v16730_v22 = vld [vmem:[%s21835_s8 + $0x570] sm:$0xff] }
0x1c6b   : > { %17087 = vpow2.f32 %v8335_v33  ;;  %v16729_v33 = vld [vmem:[%s21835_s8 + $0x568] sm:$0xff] }
0x1c71   : > { %v17088_v51 = vpop.eup %17087 }
0x1c72   : > { %v8337_v37 = vsel %vm1991_vm3, %v17088_v51, 0.0 }
0x1c73   : > { %8338 = vadd.xlane.f32.xlu1 %v8337_v37  ;;  %v16728_v37 = vld [vmem:[%s21835_s8 + $0x560] sm:$0xff] }
0x1ce6   : > { %v8339_v10 = vpop.xlane.xlu1 %8338 }
0x1ce7   : > { %17089 = vrcp.f32 %v8339_v10  ;;  %v8351_v27 = vand.u32 2147483648, %v8339_v10  ;;  %v8349_v16 = vand.u32 2147483647, %v8339_v10  ;;  %vm8345_vm15 = vweird.f32 %v8339_v10 }
0x1ce9   : > { %v8352_v20 = vor.u32 1.1754944e-38, %v8351_v27  ;;  %vm8350_vm4 = vcmp.eq.f32.partialorder %v8349_v16, 8.507059e+37 }
0x1ced   : > { %v17090_v46 = vpop.eup %17089 }
0x1cee   : > { %v8341_v61 = vmul.f32 %v17090_v46, %v8339_v10  ;;  %vm8346_vm14 = vweird.f32 %v17090_v46  ;;  %v16725_v10 = vld [vmem:[%s21835_s8 + $0x548] sm:$0xff] }
0x1cef   : > { %vm8347_vm0 = vmor %vm8345_vm15, %vm8346_vm14 }
0x1cf0   : > { %v8342_v60 = vsub.f32 1.0, %v8341_v61  ;;  %v16724_v61 = vld [vmem:[%s21835_s8 + $0x540] sm:$0xff] }
0x1cf2   : > { %v8343_v14 = vmul.f32 %v17090_v46, %v8342_v60 }
0x1cf4   : > { %v8344_v17 = vadd.f32 %v17090_v46, %v8343_v14  ;;  %v17037_v14 = vld [vmem:[%s21834_s7 + $0x9] ss:$0 sm:$0xff] }
0x1cf5   : > { %v8535_v16 = vadd.f32 %v17037_v14, %v20741_v36 }
0x1cf6   : > { %v8348_v24 = vsel %vm8347_vm0, %v17090_v46, %v8344_v17  ;;  %v16716_v46 = vld [vmem:[%s21835_s8 + $0x500] sm:$0xff] }
0x1cf7   : > { %v8353_v44 = vsel %vm8350_vm4, %v8352_v20, %v8348_v24 }
0x1cf8   : > { %v8354_v6 = vmul.f32 %v17088_v51, %v8353_v44  ;;  %v16720_v51 = vld [vmem:[%s21835_s8 + $0x520] sm:$0xff]  ;;  %v17038_v44 = vld [vmem:[%s21838_s11 + $0x9] ss:$0 sm:$0xff] }
0x1cf9   : > { %9392 = vmatpush.bf16.msrb.mxu0 %v16720_v51  ;;  %v16693_v51 = vld [vmem:[%s21839_s12 + $0x244] sm:$0xf0] }
0x1cfa   : > { %14620 = vmatmul.msk.f32.vlgmr.msrb.gmra.mxu1 %vm2016_vm8, %v8354_v6 }
0x1cfb   : > { %8858 = vmatpush.bf16.msrb.mxu1 %v16691_v49  ;;  %v8855_v49 = vadd.f32 %v17038_v44, %v20743_v57 }
0x1cfd   : > { %9393 = vmatpush.bf16.msrb.mxu0 %v16719_v26  ;;  %v14936_v26 = vld [vmem:[%s21839_s12 + $0x248] sm:$0xf0] }
0x1cff   : > { %8859 = vmatpush.bf16.msrb.mxu1 %v16690_v59 }
0x1d01   : > { %9394 = vmatpush.bf16.msrb.mxu0 %v16718_v15 }
0x1d02   : > { %8546 = vmatmul.bf16.vlgmr.msra.gmra.mxu1 %v20616_v19 }
0x1d03   : > { %8860 = vmatpush.bf16.msrb.mxu1 %v16689_v42 }
0x1d05   : > { %9395 = vmatpush.bf16.msrb.mxu0 %v16717_v18  ;;  %v16707_v18 = vld [vmem:[%s21866_s0 + $0x538] sm:$0xff] }
0x1d07   : > { %8861 = vmatpush.bf16.msrb.mxu1 %v16688_v35 }
0x1d09   : > { %9396 = vmatpush.bf16.msrb.mxu0 %v16716_v46 }
0x1d0b   : > { %8862 = vmatpush.bf16.msrb.mxu1 %v16687_v12 }
0x1d0f   : > { %8863 = vmatpush.bf16.msrb.mxu1 %v16686_v52  ;;  %v14958_v52 = vld [vmem:[%s21839_s12 + $0x270] sm:$0xf] }
0x1d10   : > { %v14959_v0 = vor.u32 %v16699_v55, %v14958_v52  ;;  %v16746_v52 = vld [vmem:[%s21837_s10 + $0x570] sm:$0xff]  ;;  %v16737_v55 = vld [vmem:[%s21837_s10 + $0x528] sm:$0xff] }
0x1d12   : > { %9004 = vmatpush.bf16.msrb.mxu2 %v14959_v0  ;;  %v16736_v0 = vld [vmem:[%s21837_s10 + $0x520] sm:$0xff] }
0x1d13   : > { %8864 = vmatpush.bf16.msrb.mxu1 %v16685_v39  ;;  %v16698_v39 = vld [vmem:[%s21839_s12 + $0x274] sm:$0xf] }
0x1d14   : > { %v14963_v23 = vor.u32 %v16698_v39, %v14960_v11  ;;  %v16745_v39 = vld [vmem:[%s21837_s10 + $0x568] sm:$0xff]  ;;  %v16744_v11 = vld [vmem:[%s21837_s10 + $0x560] sm:$0xff] }
0x1d17   : > { %8865 = vmatpush.bf16.msrb.mxu1 %v16684_v45  ;;  %v14950_v45 = vld [vmem:[%s21839_s12 + $0x260] sm:$0xf] }
0x1d1a   : > { %8866 = vmatmul.bf16.vlgmr.msrb.gmra.mxu1 %v20616_v19 }
0x1d1b   : > { %9086 = vmatpush.bf16.msra.mxu1 %v14997_v47  ;;  %v16697_v47 = vld [vmem:[%s21839_s12 + $0x264] sm:$0xf0] }
0x1d1c   : > { %v14951_v56 = vor.u32 %v16697_v47, %v14950_v45  ;;  %v16735_v45 = vld [vmem:[%s21837_s10 + $0x518] sm:$0xff] }
0x1d1d   : > { %v16743_v47 = vld [vmem:[%s21837_s10 + $0x558] sm:$0xff] }
0x1d1e   : > { %9005 = vmatpush.bf16.msrb.mxu2 %v14951_v56  ;;  %v16741_v56 = vld [vmem:[%s21837_s10 + $0x548] sm:$0xff] }
0x1d1f   : > { %9087 = vmatpush.bf16.msra.mxu1 %v14989_v9  ;;  %v14952_v9 = vld [vmem:[%s21839_s12 + $0x268] sm:$0xf0] }
0x1d20   : > { %v14955_v4 = vor.u32 %v16696_v32, %v14952_v9  ;;  %v16742_v32 = vld [vmem:[%s21837_s10 + $0x550] sm:$0xff]  ;;  %v16733_v9 = vld [vmem:[%s21837_s10 + $0x508] sm:$0xff] }
0x1d23   : > { %9088 = vmatpush.bf16.msra.mxu1 %v14981_v58  ;;  %v14942_v58 = vld [vmem:[%s21839_s12 + $0x250] sm:$0xf] }
0x1d27   : > { %9089 = vmatpush.bf16.msra.mxu1 %v14973_v5  ;;  %v14944_v5 = vld [vmem:[%s21839_s12 + $0x258] sm:$0xf0] }
0x1d2b   : > { %9402 = vmatpush.bf16.msrb.mxu1 %v16731_v7  ;;  %v14943_v7 = vor.u32 %v16695_v2, %v14942_v58  ;;  %v16740_v58 = vld [vmem:[%s21837_s10 + $0x540] sm:$0xff]  ;;  %v16763_v2 = vld [vmem:[%s21866_s0 + $0x5b8] sm:$0xff] }
0x1d2d   : > { %9006 = vmatpush.bf16.msrb.mxu2 %v14943_v7  ;;  %v16770_v7 = vld [vmem:[%s21866_s0 + $0x5f0] sm:$0xff] }
0x1d2f   : > { %9403 = vmatpush.bf16.msrb.mxu1 %v16730_v22  ;;  %v14947_v22 = vor.u32 %v16694_v3, %v14944_v5  ;;  %v16771_v3 = vld [vmem:[%s21866_s0 + $0x5f8] sm:$0xff]  ;;  %v16762_v5 = vld [vmem:[%s21866_s0 + $0x5b0] sm:$0xff] }
0x1d33   : > { %9404 = vmatpush.bf16.msrb.mxu1 %v16729_v33  ;;  %v14934_v33 = vld [vmem:[%s21839_s12 + $0x240] sm:$0xf] }
0x1d37   : > { %9405 = vmatpush.bf16.msrb.mxu1 %v16728_v37  ;;  %v16692_v37 = vld [vmem:[%s21839_s12 + $0x244] sm:$0xf] }
0x1d3b   : > { %9406 = vmatpush.bf16.msrb.mxu1 %v16727_v40  ;;  %v14935_v40 = vor.u32 %v16693_v51, %v14934_v33  ;;  %v16769_v33 = vld [vmem:[%s21866_s0 + $0x5e8] sm:$0xff]  ;;  %v16760_v51 = vld [vmem:[%s21866_s0 + $0x5a0] sm:$0xff] }
0x1d3d   : > { %9007 = vmatpush.bf16.msrb.mxu2 %v14935_v40  ;;  %v16767_v40 = vld [vmem:[%s21866_s0 + $0x5d8] sm:$0xff] }
0x1d3f   : > { %9407 = vmatpush.bf16.msrb.mxu1 %v16726_v30  ;;  %v14939_v30 = vor.u32 %v16692_v37, %v14936_v26  ;;  %v16768_v37 = vld [vmem:[%s21866_s0 + $0x5e0] sm:$0xff]  ;;  %v16759_v26 = vld [vmem:[%s21866_s0 + $0x598] sm:$0xff] }
0x1d43   : > { %9408 = vmatpush.bf16.msrb.mxu1 %v16725_v10  ;;  %v16706_v10 = vld [vmem:[%s21866_s0 + $0x530] sm:$0xff] }
0x1d47   : > { %9409 = vmatpush.bf16.msrb.mxu1 %v16724_v61 }
0x1d77   : > { %v8378_v60 = vpop.f32.mrf.mxu1 }
0x1d78   : > { %v8381_v27 = vpack.c.bf16 %v8378_v60, %v8378_v60  ;;  %v16705_v60 = vld [vmem:[%s21866_s0 + $0x528] sm:$0xff] }
0x1d7a   : > { %14998 = vmatmul.msk.bf16.vlgmr.msra.gmra.mxu0 %vm937_vm1, %v8381_v27  ;;  %14999 = vmatmul.msk.bf16.vlgmr.msra.gmra.mxu1 %vm937_vm1, %v8381_v27 }
0x1d7f   : > { %v8547_v17 = vpop.f32.mrf.mxu1 }
0x1d80   : > { %v8548_v20 = vadd.f32 %v8547_v17, %v8535_v16 }
0x1d82   : > { %14921 = vmatmul.msk.f32.vlgmr.msra.gmra.mxu2 %vm937_vm1, %v8548_v20  ;;  %v16704_v20 = vld [vmem:[%s21866_s0 + $0x520] sm:$0xff] }
0x1d83   : > { %9229 = vmatpush.bf16.msra.mxu2 %v16707_v18  ;;  %v16757_v18 = vld [vmem:[%s21866_s0 + $0x588] sm:$0xff] }
0x1d87   : > { %v8549_v24 = vpop.f32.mrf.mxu1  ;;  %9230 = vmatpush.bf16.msra.mxu2 %v16706_v10  ;;  %v16765_v10 = vld [vmem:[%s21866_s0 + $0x5c8] sm:$0xff] }
0x1d8a   : > { %9397 = vmatmul.bf16.vlgmr.msrb.gmra.mxu0 %v20612_v41  ;;  %9410 = vmatmul.bf16.vlgmr.msrb.gmra.mxu1 %v20616_v19 }
0x1d8b   : > { %9231 = vmatpush.bf16.msra.mxu2 %v16705_v60  ;;  %v16795_v60 = vld [vmem:[%s21837_s10 + $0x5b8] sm:$0xff] }
0x1d8f   : > { %9232 = vmatpush.bf16.msra.mxu2 %v16704_v20  ;;  %v16801_v20 = vld [vmem:[%s21837_s10 + $0x5e8] sm:$0xff] }
0x1d97   : > { %v8867_v6 = vpop.f32.mrf.mxu1 }
0x1d98   : > { %v8868_v54 = vadd.f32 %v8867_v6, %v8855_v49  ;;  %v16703_v6 = vld [vmem:[%s21866_s0 + $0x518] sm:$0xff] }
0x1d99   : > { %9233 = vmatpush.bf16.msra.mxu2 %v16703_v6  ;;  %v16799_v6 = vld [vmem:[%s21837_s10 + $0x5d8] sm:$0xff] }
0x1d9a   : > { %14922 = vmatpush.msk.msra.mxu3 %vm2020_vm2, %v8868_v54 }
0x1d9c   : > { %9017 = vmatpush.bf16.msrb.mxu3 %v14963_v23  ;;  %v16734_v23 = vld [vmem:[%s21837_s10 + $0x510] sm:$0xff] }
0x1d9f   : > { %v8869_v36 = vpop.f32.mrf.mxu1 }
0x1da0   : > { %9018 = vmatpush.bf16.msrb.mxu3 %v14955_v4  ;;  %v16715_v36 = vld [vmem:[%s21866_s0 + $0x578] sm:$0xff]  ;;  %v16732_v4 = vld [vmem:[%s21837_s10 + $0x500] sm:$0xff] }
0x1da4   : > { %9019 = vmatpush.bf16.msrb.mxu3 %v14947_v22  ;;  %v16761_v22 = vld [vmem:[%s21866_s0 + $0x5a8] sm:$0xff] }
0x1da8   : > { %9020 = vmatpush.bf16.msrb.mxu3 %v14939_v30  ;;  %v16766_v30 = vld [vmem:[%s21866_s0 + $0x5d0] sm:$0xff] }
0x1df7   : > { %v20907_v28 = vpop.f32.mrf.mxu0  ;;  %v20909_v59 = vpop.f32.mrf.mxu1 }
0x1dff   : > { %v9080_v13 = vpop.f32.mrf.mxu0  ;;  %v9093_v1 = vpop.f32.mrf.mxu1 }
0x1e00   : > { %v16702_v1 = vld [vmem:[%s21866_s0 + $0x510] sm:$0xff] }
0x1e01   : > { %9234 = vmatpush.bf16.msra.mxu2 %v16702_v1  ;;  %v16797_v1 = vld [vmem:[%s21837_s10 + $0x5c8] sm:$0xff] }
0x1e05   : > { %v8894_v62 = vpop.f32.mrf.mxu2 }
0x1e06   : > { %v8897_v63 = vsel %vm1991_vm3, %v8894_v62, -inf }
0x1e07   : > { %8898 = vmax.xlane.f32.xlu2 %v8897_v63  ;;  %v9398_v57 = vpop.f32.mrf.mxu0  ;;  %v9411_v29 = vpop.f32.mrf.mxu1  ;;  %v16713_v63 = vld [vmem:[%s21866_s0 + $0x568] sm:$0xff] }
0x1e08   : > { %v9399_v42 = vadd.f32 %v17039_v53, %v9398_v57  ;;  %v16714_v53 = vld [vmem:[%s21866_s0 + $0x570] sm:$0xff]  ;;  %v16712_v57 = vld [vmem:[%s21866_s0 + $0x560] sm:$0xff] }
0x1e0a   : > { %v9412_v48 = vadd.f32 %v9411_v29, %v9399_v42  ;;  %v16711_v29 = vld [vmem:[%s21866_s0 + $0x558] sm:$0xff]  ;;  %v16710_v42 = vld [vmem:[%s21866_s0 + $0x550] sm:$0xff] }
0x1e0c   : > { %15291 = vmatpush.xpose.msk.msra.mxu0 %vm937_vm1, %v9412_v48  ;;  %v16709_v48 = vld [vmem:[%s21866_s0 + $0x548] sm:$0xff] }
0x1e0f   : > { %v9400_v50 = vpop.f32.mrf.mxu0  ;;  %v9413_v8 = vpop.f32.mrf.mxu1 }
0x1e10   : > { %v16700_v50 = vld [vmem:[%s21866_s0 + $0x500] sm:$0xff] }
0x1e11   : > { %v16708_v8 = vld [vmem:[%s21866_s0 + $0x540] sm:$0xff] }
0x1e7a   : > { %v8899_v35 = vpop.xlane.xlu2 %8898 }
0x1e7b   : > { %v8900_v21 = vsub.f32 %v8894_v62, %v8899_v35  ;;  %v16701_v62 = vld [vmem:[%s21866_s0 + $0x508] sm:$0xff] }
0x1e7c   : > { %9235 = vmatpush.bf16.msra.mxu2 %v16701_v62  ;;  %v16796_v62 = vld [vmem:[%s21837_s10 + $0x5c0] sm:$0xff] }
0x1e7d   : > { %v8901_v25 = vmul.f32 1.442695, %v8900_v21  ;;  %v16739_v21 = vld [vmem:[%s21837_s10 + $0x538] sm:$0xff] }
0x1e7f   : > { %17091 = vpow2.f32 %v8901_v25  ;;  %v16747_v25 = vld [vmem:[%s21837_s10 + $0x578] sm:$0xff] }
0x1e80   : > { %9236 = vmatpush.bf16.msra.mxu2 %v16700_v50 }
0x1e85   : > { %v17092_v12 = vpop.eup %17091 }
0x1e86   : > { %v8903_v38 = vsel %vm1991_vm3, %v17092_v12, 0.0 }
0x1e87   : > { %8904 = vadd.xlane.f32.xlu0 %v8903_v38  ;;  %v16738_v38 = vld [vmem:[%s21837_s10 + $0x530] sm:$0xff] }
0x1efa   : > { %v8905_v15 = vpop.xlane.xlu0 %8904 }
0x1efb   : > { %17093 = vrcp.f32 %v8905_v15  ;;  %v8917_v14 = vand.u32 2147483648, %v8905_v15  ;;  %v8915_v17 = vand.u32 2147483647, %v8905_v15  ;;  %vm8911_vm6 = vweird.f32 %v8905_v15 }
0x1efd   : > { %v8918_v44 = vor.u32 1.1754944e-38, %v8917_v14  ;;  %vm8916_vm9 = vcmp.eq.f32.partialorder %v8915_v17, 8.507059e+37  ;;  %v16794_v14 = vld [vmem:[%s21837_s10 + $0x5b0] sm:$0xff]  ;;  %v16793_v17 = vld [vmem:[%s21837_s10 + $0x5a8] sm:$0xff] }
0x1f01   : > { %v17094_v46 = vpop.eup %17093 }
0x1f02   : > { %v8907_v61 = vmul.f32 %v17094_v46, %v8905_v15  ;;  %vm8912_vm5 = vweird.f32 %v17094_v46  ;;  %v16758_v15 = vld [vmem:[%s21866_s0 + $0x590] sm:$0xff] }
0x1f03   : > { %vm8913_vm7 = vmor %vm8911_vm6, %vm8912_vm5 }
0x1f04   : > { %v8908_v27 = vsub.f32 1.0, %v8907_v61  ;;  %v16764_v61 = vld [vmem:[%s21866_s0 + $0x5c0] sm:$0xff] }
0x1f06   : > { %v8909_v16 = vmul.f32 %v17094_v46, %v8908_v27  ;;  %v16803_v27 = vld [vmem:[%s21837_s10 + $0x5f8] sm:$0xff] }
0x1f08   : > { %v8910_v24 = vadd.f32 %v17094_v46, %v8909_v16  ;;  %v16802_v16 = vld [vmem:[%s21837_s10 + $0x5f0] sm:$0xff] }
0x1f0a   : > { %v8914_v49 = vsel %vm8913_vm7, %v17094_v46, %v8910_v24  ;;  %v16756_v46 = vld [vmem:[%s21866_s0 + $0x580] sm:$0xff] }
0x1f0b   : > { %v8919_v54 = vsel %vm8916_vm9, %v8918_v44, %v8914_v49  ;;  %v16792_v24 = vld [vmem:[%s21837_s10 + $0x5a0] sm:$0xff]  ;;  %v16791_v49 = vld [vmem:[%s21837_s10 + $0x598] sm:$0xff] }
0x1f0c   : > { %v8920_v13 = vmul.f32 %v17092_v12, %v8919_v54  ;;  %v16800_v44 = vld [vmem:[%s21837_s10 + $0x5e0] sm:$0xff]  ;;  %v16790_v54 = vld [vmem:[%s21837_s10 + $0x590] sm:$0xff] }
0x1f0e   : > { %14923 = vmatmul.msk.f32.vlgmr.msra.gmra.mxu3 %vm2016_vm8, %v8920_v13  ;;  %v16789_v13 = vld [vmem:[%s21837_s10 + $0x588] sm:$0xff] }
0x1f0f   : > { %9242 = vmatpush.bf16.msra.mxu3 %v16715_v36  ;;  %v16798_v36 = vld [vmem:[%s21837_s10 + $0x5d0] sm:$0xff] }
0x1f13   : > { %9243 = vmatpush.bf16.msra.mxu3 %v16714_v53  ;;  %v16788_v53 = vld [vmem:[%s21837_s10 + $0x580] sm:$0xff] }
0x1f17   : > { %9244 = vmatpush.bf16.msra.mxu3 %v16713_v63 }
0x1f1b   : > { %9245 = vmatpush.bf16.msra.mxu3 %v16712_v57 }
0x1f1f   : > { %9246 = vmatpush.bf16.msra.mxu3 %v16711_v29 }
0x1f23   : > { %9247 = vmatpush.bf16.msra.mxu3 %v16710_v42 }
0x1f27   : > { %9248 = vmatpush.bf16.msra.mxu3 %v16709_v48  ;;  %v17040_v48 = vld [vmem:[%s21834_s7 + $0xa] ss:$0 sm:$0xff] }
0x1f2b   : > { %9249 = vmatpush.bf16.msra.mxu3 %v16708_v8 }
0x1f91   : > { %v8944_v35 = vpop.f32.mrf.mxu3 }
0x1f92   : > { %v8947_v12 = vpack.c.bf16 %v8944_v35, %v8944_v35 }
0x1f94   : > { %14964 = vmatmul.msk.bf16.vlgmr.msrb.gmra.mxu2 %vm937_vm1, %v8947_v12  ;;  %14965 = vmatmul.msk.bf16.vlgmr.msrb.gmra.mxu3 %vm937_vm1, %v8947_v12 }
0x1f95   : > { %9549 = vmatpush.bf16.msrb.mxu2 %v16739_v21  ;;  %9562 = vmatpush.bf16.msrb.mxu3 %v16747_v25 }
0x1f99   : > { %9550 = vmatpush.bf16.msrb.mxu2 %v16738_v38  ;;  %9563 = vmatpush.bf16.msrb.mxu3 %v16746_v52  ;;  %v17041_v38 = vld [vmem:[%s21838_s11 + $0xa] ss:$0 sm:$0xff] }
0x1f9d   : > { %9551 = vmatpush.bf16.msrb.mxu2 %v16737_v55  ;;  %9564 = vmatpush.bf16.msrb.mxu3 %v16745_v39 }
0x1fa1   : > { %9552 = vmatpush.bf16.msrb.mxu2 %v16736_v0  ;;  %9565 = vmatpush.bf16.msrb.mxu3 %v16744_v11 }
0x1fa4   : > { %9237 = vmatmul.bf16.vlgmr.msra.gmra.mxu2 %v20612_v41  ;;  %9250 = vmatmul.bf16.vlgmr.msra.gmra.mxu3 %v20616_v19 }
0x1fa5   : > { %9553 = vmatpush.bf16.msrb.mxu2 %v16735_v45  ;;  %9566 = vmatpush.bf16.msrb.mxu3 %v16743_v47  ;;  %v17042_v47 = vld [vmem:[%s21834_s7 + $0xb] ss:$0 sm:$0xff] }
0x1fa9   : > { %9554 = vmatpush.bf16.msrb.mxu2 %v16734_v23  ;;  %9567 = vmatpush.bf16.msrb.mxu3 %v16742_v32 }
0x1fad   : > { %9555 = vmatpush.bf16.msrb.mxu2 %v16733_v9  ;;  %9568 = vmatpush.bf16.msrb.mxu3 %v16741_v56 }
0x1fb1   : > { %9556 = vmatpush.bf16.msrb.mxu2 %v16732_v4  ;;  %9569 = vmatpush.bf16.msrb.mxu3 %v16740_v58 }
0x1fb4   : > { %9557 = vmatmul.bf16.vlgmr.msrb.gmra.mxu2 %v20612_v41  ;;  %9570 = vmatmul.bf16.vlgmr.msrb.gmra.mxu3 %v20616_v19 }
0x1fb5   : > { %9866 = vmatpush.bf16.msra.mxu2 %v16763_v2  ;;  %9879 = vmatpush.bf16.msra.mxu3 %v16771_v3  ;;  %v17043_v2 = vld [vmem:[%s21838_s11 + $0xb] ss:$0 sm:$0xff] }
0x1fb9   : > { %9867 = vmatpush.bf16.msra.mxu2 %v16762_v5  ;;  %9880 = vmatpush.bf16.msra.mxu3 %v16770_v7 }
0x1fbd   : > { %9868 = vmatpush.bf16.msra.mxu2 %v16761_v22  ;;  %9881 = vmatpush.bf16.msra.mxu3 %v16769_v33 }
0x1fc1   : > { %9869 = vmatpush.bf16.msra.mxu2 %v16760_v51  ;;  %9882 = vmatpush.bf16.msra.mxu3 %v16768_v37 }
0x1fc5   : > { %9870 = vmatpush.bf16.msra.mxu2 %v16759_v26  ;;  %9883 = vmatpush.bf16.msra.mxu3 %v16767_v40 }
0x1fc9   : > { %9871 = vmatpush.bf16.msra.mxu2 %v16758_v15  ;;  %9884 = vmatpush.bf16.msra.mxu3 %v16766_v30 }
0x1fcd   : > { %9872 = vmatpush.bf16.msra.mxu2 %v16757_v18  ;;  %9885 = vmatpush.bf16.msra.mxu3 %v16765_v10 }
0x1fd1   : > { %9873 = vmatpush.bf16.msra.mxu2 %v16756_v46  ;;  %9886 = vmatpush.bf16.msra.mxu3 %v16764_v61  ;;  %v16754_v46 = vld [vmem:[%s21839_s12 + $0x2b4] sm:$0xf]  ;;  %v15331_v61 = vld [vmem:[%s21839_s12 + $0x2b8] sm:$0xf0] }
0x1fd4   : > { %9874 = vmatmul.bf16.vlgmr.msra.gmra.mxu2 %v20612_v41  ;;  %9887 = vmatmul.bf16.vlgmr.msra.gmra.mxu3 %v20616_v19 }
0x1fd5   : > { %10186 = vmatpush.bf16.msrb.mxu2 %v16795_v60  ;;  %10199 = vmatpush.bf16.msrb.mxu3 %v16803_v27  ;;  %v16752_v60 = vld [vmem:[%s21839_s12 + $0x2a4] sm:$0xf]  ;;  %v15334_v27 = vor.u32 %v16754_v46, %v15331_v61 }
0x1fd9   : > { %10187 = vmatpush.bf16.msrb.mxu2 %v16794_v14  ;;  %10200 = vmatpush.bf16.msrb.mxu3 %v16802_v16  ;;  %v15323_v14 = vld [vmem:[%s21839_s12 + $0x2a8] sm:$0xf0] }
0x1fda   : > { %v15326_v16 = vor.u32 %v16752_v60, %v15323_v14 }
0x1fdd   : > { %10188 = vmatpush.bf16.msrb.mxu2 %v16793_v17  ;;  %10201 = vmatpush.bf16.msrb.mxu3 %v16801_v20  ;;  %v15329_v17 = vld [vmem:[%s21839_s12 + $0x2b0] sm:$0xf]  ;;  %v16755_v20 = vld [vmem:[%s21839_s12 + $0x2b4] sm:$0xf0] }
0x1fe1   : > { %10189 = vmatpush.bf16.msrb.mxu2 %v16792_v24  ;;  %10202 = vmatpush.bf16.msrb.mxu3 %v16800_v44  ;;  %v16750_v24 = vld [vmem:[%s21839_s12 + $0x294] sm:$0xf]  ;;  %v15315_v44 = vld [vmem:[%s21839_s12 + $0x298] sm:$0xf0] }
0x1fe5   : > { %10190 = vmatpush.bf16.msrb.mxu2 %v16791_v49  ;;  %10203 = vmatpush.bf16.msrb.mxu3 %v16799_v6  ;;  %v15330_v49 = vor.u32 %v16755_v20, %v15329_v17  ;;  %v15321_v6 = vld [vmem:[%s21839_s12 + $0x2a0] sm:$0xf] }
0x1fe7   : > { %9708 = vmatpush.bf16.msrb.mxu0 %v15330_v49 }
0x1fe9   : > { %10191 = vmatpush.bf16.msrb.mxu2 %v16790_v54  ;;  %10204 = vmatpush.bf16.msrb.mxu3 %v16798_v36  ;;  %v16753_v54 = vld [vmem:[%s21839_s12 + $0x2a4] sm:$0xf0] }
0x1fea   : > { %v15322_v36 = vor.u32 %v16753_v54, %v15321_v6 }
0x1fec   : > { %9709 = vmatpush.bf16.msrb.mxu0 %v15322_v36 }
0x1fed   : > { %10192 = vmatpush.bf16.msrb.mxu2 %v16789_v13  ;;  %10205 = vmatpush.bf16.msrb.mxu3 %v16797_v1  ;;  %v15318_v13 = vor.u32 %v16750_v24, %v15315_v44  ;;  %v16748_v1 = vld [vmem:[%s21839_s12 + $0x284] sm:$0xf] }
0x1ff1   : > { %10193 = vmatpush.bf16.msrb.mxu2 %v16788_v53  ;;  %10206 = vmatpush.bf16.msrb.mxu3 %v16796_v62  ;;  %v15307_v53 = vld [vmem:[%s21839_s12 + $0x288] sm:$0xf0]  ;;  %v15313_v62 = vld [vmem:[%s21839_s12 + $0x290] sm:$0xf] }
0x1ff4   : > { %10194 = vmatmul.bf16.vlgmr.msrb.gmra.mxu2 %v20612_v41  ;;  %10207 = vmatmul.bf16.vlgmr.msrb.gmra.mxu3 %v20616_v19 }
0x2017   : > { %v21168_v63 = vpop.f32.mrf.mxu2  ;;  %v21170_v57 = vpop.f32.mrf.mxu3 }
0x2018   : > { %v9079_v61 = vadd.f32 %v20907_v28, %v21168_v63  ;;  %v9092_v60 = vadd.f32 %v20909_v59, %v21170_v57 }
0x201f   : > { %v9011_v29 = vpop.f32.mrf.mxu2  ;;  %v9024_v42 = vpop.f32.mrf.mxu3 }
0x2020   : > { %v16751_v29 = vld [vmem:[%s21839_s12 + $0x294] sm:$0xf0] }
0x2021   : > { %v15314_v42 = vor.u32 %v16751_v29, %v15313_v62  ;;  %v16810_v62 = vld [vmem:[%s21839_s12 + $0x2f4] sm:$0xf] }
0x2023   : > { %9710 = vmatpush.bf16.msrb.mxu0 %v15314_v42  ;;  %v15668_v42 = vld [vmem:[%s21839_s12 + $0x2f8] sm:$0xf0] }
0x2027   : > { %v9238_v50 = vpop.f32.mrf.mxu2  ;;  %v9251_v8 = vpop.f32.mrf.mxu3 }
0x2028   : > { %v9239_v35 = vadd.f32 %v17040_v48, %v9238_v50  ;;  %v15310_v48 = vor.u32 %v16748_v1, %v15307_v53  ;;  %v15666_v53 = vld [vmem:[%s21839_s12 + $0x2f0] sm:$0xf] }
0x202a   : > { %v9252_v21 = vadd.f32 %v9251_v8, %v9239_v35  ;;  %v15305_v8 = vld [vmem:[%s21839_s12 + $0x280] sm:$0xf]  ;;  %v16749_v35 = vld [vmem:[%s21839_s12 + $0x284] sm:$0xf0] }
0x202c   : > { %15292 = vmatmul.msk.f32.vlgmr.msra.gmra.mxu0 %vm937_vm1, %v9252_v21  ;;  %v15306_v21 = vor.u32 %v16749_v35, %v15305_v8  ;;  %v15671_v8 = vor.u32 %v16810_v62, %v15668_v42  ;;  %v16808_v35 = vld [vmem:[%s21839_s12 + $0x2e4] sm:$0xf]  ;;  %v16842_v42 = vld [vmem:[%s21842_s15 + $0x2f4] sm:$0xf] }
0x202e   : > { %9711 = vmatpush.bf16.msrb.mxu0 %v15306_v21  ;;  %v15660_v21 = vld [vmem:[%s21839_s12 + $0x2e8] sm:$0xf0] }
0x202f   : > { %v9240_v25 = vpop.f32.mrf.mxu2  ;;  %v9253_v12 = vpop.f32.mrf.mxu3 }
0x2030   : > { %v16779_v25 = vld [vmem:[%s21835_s8 + $0x5b8] sm:$0xff] }
0x2032   : > { %10026 = vmatpush.bf16.msra.mxu0 %v16779_v25 }
0x2037   : > { %v9558_v52 = vpop.f32.mrf.mxu2  ;;  %v9571_v55 = vpop.f32.mrf.mxu3 }
0x2038   : > { %v9559_v39 = vadd.f32 %v17041_v38, %v9558_v52  ;;  %v16778_v38 = vld [vmem:[%s21835_s8 + $0x5b0] sm:$0xff] }
0x2039   : > { %10027 = vmatpush.bf16.msra.mxu0 %v16778_v38  ;;  %v15650_v38 = vld [vmem:[%s21839_s12 + $0x2d0] sm:$0xf] }
0x203a   : > { %v9572_v0 = vadd.f32 %v9571_v55, %v9559_v39 }
0x203c   : > { %15293 = vmatpush.msk.msra.mxu1 %vm2020_vm2, %v9572_v0  ;;  %v16777_v0 = vld [vmem:[%s21835_s8 + $0x5a8] sm:$0xff] }
0x203d   : > { %10028 = vmatpush.bf16.msra.mxu0 %v16777_v0 }
0x203e   : > { %9721 = vmatpush.bf16.msrb.mxu1 %v15334_v27 }
0x203f   : > { %v9560_v11 = vpop.f32.mrf.mxu2  ;;  %v9573_v45 = vpop.f32.mrf.mxu3 }
0x2042   : > { %9722 = vmatpush.bf16.msrb.mxu1 %v15326_v16 }
0x2046   : > { %9723 = vmatpush.bf16.msrb.mxu1 %v15318_v13 }
0x204a   : > { %9724 = vmatpush.bf16.msrb.mxu1 %v15310_v48  ;;  %v15658_v48 = vld [vmem:[%s21839_s12 + $0x2e0] sm:$0xf] }
0x2057   : > { %v9875_v23 = vpop.f32.mrf.mxu2  ;;  %v9888_v32 = vpop.f32.mrf.mxu3 }
0x2058   : > { %v9876_v9 = vadd.f32 %v17042_v47, %v9875_v23 }
0x205a   : > { %v21183_v56 = vadd.f32 %v9888_v32, %v9876_v9 }
0x205f   : > { %v9877_v4 = vpop.f32.mrf.mxu2  ;;  %v9890_v58 = vpop.f32.mrf.mxu3 }
0x2060   : > { %v16787_v4 = vld [vmem:[%s21835_s8 + $0x5f8] sm:$0xff] }
0x2077   : > { %v10195_v3 = vpop.f32.mrf.mxu2  ;;  %v10208_v5 = vpop.f32.mrf.mxu3 }
0x2078   : > { %v10196_v7 = vadd.f32 %v17043_v2, %v10195_v3  ;;  %v16786_v2 = vld [vmem:[%s21835_s8 + $0x5f0] sm:$0xff]  ;;  %v16785_v3 = vld [vmem:[%s21835_s8 + $0x5e8] sm:$0xff] }
0x207a   : > { %v21188_v22 = vadd.f32 %v10208_v5, %v10196_v7  ;;  %v16784_v5 = vld [vmem:[%s21835_s8 + $0x5e0] sm:$0xff]  ;;  %v16783_v7 = vld [vmem:[%s21835_s8 + $0x5d8] sm:$0xff] }
0x207f   : > { %v10197_v33 = vpop.f32.mrf.mxu2  ;;  %v10210_v51 = vpop.f32.mrf.mxu3 }
0x2080   : > { %v16782_v33 = vld [vmem:[%s21835_s8 + $0x5d0] sm:$0xff]  ;;  %v16781_v51 = vld [vmem:[%s21835_s8 + $0x5c8] sm:$0xff] }
0x20a9   : > { %v9598_v37 = vpop.f32.mrf.mxu0 }
0x20aa   : > { %v9601_v26 = vsel %vm1991_vm3, %v9598_v37, -inf }
0x20ab   : > { %9602 = vmax.xlane.f32.xlu1 %v9601_v26  ;;  %v16780_v26 = vld [vmem:[%s21835_s8 + $0x5c0] sm:$0xff] }
0x211e   : > { %v9603_v40 = vpop.xlane.xlu1 %9602 }
0x211f   : > { %v9604_v15 = vsub.f32 %v9598_v37, %v9603_v40  ;;  %v16776_v37 = vld [vmem:[%s21835_s8 + $0x5a0] sm:$0xff]  ;;  %v16775_v40 = vld [vmem:[%s21835_s8 + $0x598] sm:$0xff] }
0x2120   : > { %10029 = vmatpush.bf16.msra.mxu0 %v16776_v37  ;;  %v16805_v37 = vld [vmem:[%s21839_s12 + $0x2c4] sm:$0xf0] }
0x2121   : > { %v9605_v30 = vmul.f32 1.442695, %v9604_v15  ;;  %v16774_v15 = vld [vmem:[%s21835_s8 + $0x590] sm:$0xff] }
0x2123   : > { %17095 = vpow2.f32 %v9605_v30  ;;  %v16773_v30 = vld [vmem:[%s21835_s8 + $0x588] sm:$0xff] }
0x2124   : > { %10030 = vmatpush.bf16.msra.mxu0 %v16775_v40 }
0x2128   : > { %10031 = vmatpush.bf16.msra.mxu0 %v16774_v15  ;;  %v15644_v15 = vld [vmem:[%s21839_s12 + $0x2c8] sm:$0xf0] }
0x2129   : > { %v17096_v18 = vpop.eup %17095 }
0x212a   : > { %v9607_v10 = vsel %vm1991_vm3, %v17096_v18, 0.0 }
0x212b   : > { %9608 = vadd.xlane.f32.xlu2 %v9607_v10 }
0x212c   : > { %10032 = vmatpush.bf16.msra.mxu0 %v16773_v30 }
0x219e   : > { %v9609_v50 = vpop.xlane.xlu2 %9608 }
0x219f   : > { %17097 = vrcp.f32 %v9609_v50  ;;  %v9621_v39 = vand.u32 2147483648, %v9609_v50  ;;  %v9619_v45 = vand.u32 2147483647, %v9609_v50  ;;  %vm9615_vm11 = vweird.f32 %v9609_v50 }
0x21a1   : > { %v9622_v23 = vor.u32 1.1754944e-38, %v9621_v39  ;;  %vm9620_vm13 = vcmp.eq.f32.partialorder %v9619_v45, 8.507059e+37  ;;  %v15652_v39 = vld [vmem:[%s21839_s12 + $0x2d8] sm:$0xf0] }
0x21a5   : > { %v17098_v12 = vpop.eup %17097 }
0x21a6   : > { %v9611_v52 = vmul.f32 %v17098_v12, %v9609_v50  ;;  %vm9616_vm10 = vweird.f32 %v17098_v12  ;;  %v16809_v50 = vld [vmem:[%s21839_s12 + $0x2e4] sm:$0xf0] }
0x21a7   : > { %vm9617_vm12 = vmor %vm9615_vm11, %vm9616_vm10  ;;  %v15659_v25 = vor.u32 %v16809_v50, %v15658_v48  ;;  %v15833_v50 = vld [vmem:[%s21842_s15 + $0x2f8] sm:$0xf0] }
0x21a8   : > { %v9612_v55 = vsub.f32 1.0, %v9611_v52  ;;  %v16807_v52 = vld [vmem:[%s21839_s12 + $0x2d4] sm:$0xf0] }
0x21a9   : > { %v15651_v0 = vor.u32 %v16807_v52, %v15650_v38  ;;  %v16841_v38 = vld [vmem:[%s21842_s15 + $0x2e4] sm:$0xf0]  ;;  %v16824_v52 = vld [vmem:[%s21842_s15 + $0x264] sm:$0xf] }
0x21aa   : > { %v9613_v11 = vmul.f32 %v17098_v12, %v9612_v55  ;;  %v16806_v55 = vld [vmem:[%s21839_s12 + $0x2d4] sm:$0xf] }
0x21ac   : > { %v9614_v47 = vadd.f32 %v17098_v12, %v9613_v11  ;;  %v15655_v11 = vor.u32 %v16806_v55, %v15652_v39  ;;  %v15761_v39 = vld [vmem:[%s21842_s15 + $0x268] sm:$0xf0] }
0x21ae   : > { %v9618_v32 = vsel %vm9617_vm12, %v17098_v12, %v9614_v47  ;;  %v15663_v12 = vor.u32 %v16808_v35, %v15660_v21  ;;  %v15759_v35 = vld [vmem:[%s21842_s15 + $0x260] sm:$0xf]  ;;  %v16825_v21 = vld [vmem:[%s21842_s15 + $0x264] sm:$0xf0] }
0x21af   : > { %v9623_v9 = vsel %vm9620_vm13, %v9622_v23, %v9618_v32 }
0x21b0   : > { %v9624_v58 = vmul.f32 %v17096_v18, %v9623_v9  ;;  %v16772_v18 = vld [vmem:[%s21835_s8 + $0x580] sm:$0xff] }
0x21b1   : > { %10033 = vmatpush.bf16.msra.mxu0 %v16772_v18 }
0x21b2   : > { %15294 = vmatmul.msk.f32.vlgmr.msra.gmra.mxu1 %vm2016_vm8, %v9624_v58 }
0x21b3   : > { %10039 = vmatpush.bf16.msra.mxu1 %v16787_v4 }
0x21b7   : > { %10040 = vmatpush.bf16.msra.mxu1 %v16786_v2 }
0x21bb   : > { %10041 = vmatpush.bf16.msra.mxu1 %v16785_v3 }
0x21bf   : > { %10042 = vmatpush.bf16.msra.mxu1 %v16784_v5 }
0x21c3   : > { %10043 = vmatpush.bf16.msra.mxu1 %v16783_v7 }
0x21c7   : > { %10044 = vmatpush.bf16.msra.mxu1 %v16782_v33 }
0x21cb   : > { %10045 = vmatpush.bf16.msra.mxu1 %v16781_v51  ;;  %v15642_v51 = vld [vmem:[%s21839_s12 + $0x2c0] sm:$0xf] }
0x21cc   : > { %v15643_v40 = vor.u32 %v16805_v37, %v15642_v51  ;;  %v15817_v51 = vld [vmem:[%s21842_s15 + $0x2d8] sm:$0xf0] }
0x21cf   : > { %10046 = vmatpush.bf16.msra.mxu1 %v16780_v26  ;;  %v16804_v26 = vld [vmem:[%s21839_s12 + $0x2c4] sm:$0xf] }
0x21d0   : > { %v15647_v30 = vor.u32 %v16804_v26, %v15644_v15  ;;  %v15743_v26 = vld [vmem:[%s21842_s15 + $0x240] sm:$0xf] }
0x21d1   : > { %v15807_v15 = vld [vmem:[%s21842_s15 + $0x2c0] sm:$0xf] }
0x222f   : > { %v9648_v10 = vpop.f32.mrf.mxu1 }
0x2230   : > { %v9651_v46 = vpack.c.bf16 %v9648_v10, %v9648_v10 }
0x2232   : > { %15335 = vmatmul.msk.bf16.vlgmr.msrb.gmra.mxu0 %vm937_vm1, %v9651_v46  ;;  %15336 = vmatmul.msk.bf16.vlgmr.msrb.gmra.mxu1 %vm937_vm1, %v9651_v46  ;;  %v15674_v46 = vld [vmem:[%s21840_s13 + $0x4] sm:$0x3] }
0x2233   : > { %15630 = vmatpush.msk.msrb.mxu1 %vm2020_vm2, %v21188_v22 }
0x2242   : > { %10034 = vmatmul.bf16.vlgmr.msra.gmra.mxu0 %v20612_v41  ;;  %10047 = vmatmul.bf16.vlgmr.msra.gmra.mxu1 %v20616_v19  ;;  %v17044_v41 = vld [vmem:[%s21836_s9 + $0xb] ss:$0 sm:$0xff] }
0x2243   : > { %10358 = vmatpush.bf16.msra.mxu1 %v15671_v8  ;;  %v15836_v8 = vor.u32 %v16842_v42, %v15833_v50  ;;  %v16832_v42 = vld [vmem:[%s21842_s15 + $0x2a4] sm:$0xf] }
0x2247   : > { %10359 = vmatpush.bf16.msra.mxu1 %v15663_v12  ;;  %v15823_v12 = vld [vmem:[%s21842_s15 + $0x2e0] sm:$0xf] }
0x2248   : > { %v15824_v55 = vor.u32 %v16841_v38, %v15823_v12  ;;  %v16831_v12 = vld [vmem:[%s21842_s15 + $0x294] sm:$0xf0]  ;;  %v16814_v38 = vld [vmem:[%s21842_s15 + $0x214] sm:$0xf] }
0x224b   : > { %10360 = vmatpush.bf16.msra.mxu1 %v15655_v11  ;;  %v15825_v11 = vld [vmem:[%s21842_s15 + $0x2e8] sm:$0xf0] }
0x224f   : > { %10361 = vmatpush.bf16.msra.mxu1 %v15647_v30 }
0x22af   : > { %v9713_v27 = vpop.f32.mrf.mxu0  ;;  %v9726_v14 = vpop.f32.mrf.mxu1 }
0x22b0   : > { %v21299_v16 = vadd.f32 %v9713_v27, %v9079_v61  ;;  %v21301_v17 = vadd.f32 %v9726_v14, %v9092_v60  ;;  %v10372_v61 = vperm.slane %v15674_v46, 0  ;;  %v10373_v60 = vperm.slane %v15674_v46, 1  ;;  %v15745_v46 = vld [vmem:[%s21842_s15 + $0x248] sm:$0xf0] }
0x22b7   : > { %v9715_v20 = vpop.f32.mrf.mxu0  ;;  %v9728_v24 = vpop.f32.mrf.mxu1 }
0x22bf   : > { %v10035_v22 = vpop.f32.mrf.mxu0  ;;  %v10048_v19 = vpop.f32.mrf.mxu1 }
0x22c0   : > { %v10036_v44 = vadd.f32 %v17044_v41, %v10035_v22 }
0x22c2   : > { %v10049_v49 = vadd.f32 %v10048_v19, %v10036_v44 }
0x22c4   : > { %15628 = vmatpush.xpose.msk.msrb.mxu0 %vm937_vm1, %v10049_v49 }
0x22c7   : > { %v10037_v28 = vpop.f32.mrf.mxu0  ;;  %v10050_v59 = vpop.f32.mrf.mxu1  ;;  %15629 = vmatmul.msk.f32.vlgmr.msrb.gmra.mxu0 %vm937_vm1, %v21183_v56  ;;  %v16811_v56 = vld [vmem:[%s21839_s12 + $0x2f4] sm:$0xf0] }
0x22c8   : > { %v15667_v29 = vor.u32 %v16811_v56, %v15666_v53  ;;  %v16843_v53 = vld [vmem:[%s21842_s15 + $0x2f4] sm:$0xf0]  ;;  %v16826_v56 = vld [vmem:[%s21842_s15 + $0x274] sm:$0xf] }
0x22ca   : > { %10345 = vmatpush.bf16.msra.mxu0 %v15667_v29  ;;  %v15769_v29 = vld [vmem:[%s21842_s15 + $0x278] sm:$0xf0] }
0x22cb   : > { %v15772_v48 = vor.u32 %v16826_v56, %v15769_v29  ;;  %v15729_v56 = vld [vmem:[%s21842_s15 + $0x228] sm:$0xf0] }
0x22ce   : > { %10346 = vmatpush.bf16.msra.mxu0 %v15659_v25  ;;  %v15760_v25 = vor.u32 %v16825_v21, %v15759_v35  ;;  %v16815_v35 = vld [vmem:[%s21842_s15 + $0x214] sm:$0xf0]  ;;  %v15783_v21 = vld [vmem:[%s21842_s15 + $0x290] sm:$0xf] }
0x22d2   : > { %10347 = vmatpush.bf16.msra.mxu0 %v15651_v0  ;;  %v16840_v0 = vld [vmem:[%s21842_s15 + $0x2e4] sm:$0xf] }
0x22d6   : > { %10348 = vmatpush.bf16.msra.mxu0 %v15643_v40  ;;  %v16821_v40 = vld [vmem:[%s21842_s15 + $0x244] sm:$0xf0] }
0x22d7   : > { %v15744_v30 = vor.u32 %v16821_v40, %v15743_v26 }
0x22da   : > { %10658 = vmatpush.bf16.msrb.mxu0 %v15772_v48  ;;  %v15793_v48 = vld [vmem:[%s21842_s15 + $0x2a8] sm:$0xf0] }
0x22db   : > { %v15796_v50 = vor.u32 %v16832_v42, %v15793_v48 }
0x2344   : > { %v10235_v63 = vpop.f32.mrf.mxu0 }
0x2345   : > { %v10238_v57 = vsel %vm1991_vm3, %v10235_v63, -inf }
0x2346   : > { %10239 = vmax.xlane.f32.xlu0 %v10238_v57 }
0x23b9   : > { %v10240_v6 = vpop.xlane.xlu0 %10239 }
0x23ba   : > { %v10241_v54 = vsub.f32 %v10235_v63, %v10240_v6 }
0x23bc   : > { %v10242_v36 = vmul.f32 1.442695, %v10241_v54  ;;  %v15767_v54 = vld [vmem:[%s21842_s15 + $0x270] sm:$0xf] }
0x23be   : > { %17099 = vpow2.f32 %v10242_v36  ;;  %v16827_v36 = vld [vmem:[%s21842_s15 + $0x274] sm:$0xf0] }
0x23c4   : > { %v17100_v13 = vpop.eup %17099 }
0x23c5   : > { %v10244_v1 = vsel %vm1991_vm3, %v17100_v13, 0.0 }
0x23c6   : > { %10245 = vadd.xlane.f32.xlu1 %v10244_v1  ;;  %v15768_v1 = vor.u32 %v16827_v36, %v15767_v54  ;;  %v16817_v54 = vld [vmem:[%s21842_s15 + $0x224] sm:$0xf0]  ;;  %v15791_v36 = vld [vmem:[%s21842_s15 + $0x2a0] sm:$0xf] }
0x23c8   : > { %10632 = vmatpush.bf16.msra.mxu2 %v15768_v1  ;;  %v16833_v1 = vld [vmem:[%s21842_s15 + $0x2a4] sm:$0xf0] }
0x23cc   : > { %10633 = vmatpush.bf16.msra.mxu2 %v15760_v25 }
0x2439   : > { %v10246_v45 = vpop.xlane.xlu1 %10245 }
0x243a   : > { %17101 = vrcp.f32 %v10246_v45  ;;  %v10258_v9 = vand.u32 2147483648, %v10246_v45  ;;  %v10256_v58 = vand.u32 2147483647, %v10246_v45  ;;  %vm10252_vm14 = vweird.f32 %v10246_v45 }
0x243c   : > { %v10259_v3 = vor.u32 1.1754944e-38, %v10258_v9  ;;  %vm10257_vm0 = vcmp.eq.f32.partialorder %v10256_v58, 8.507059e+37  ;;  %v15815_v9 = vld [vmem:[%s21842_s15 + $0x2d0] sm:$0xf]  ;;  %v16839_v58 = vld [vmem:[%s21842_s15 + $0x2d4] sm:$0xf0] }
0x2440   : > { %v17102_v47 = vpop.eup %17101 }
0x2441   : > { %v10248_v23 = vmul.f32 %v17102_v47, %v10246_v45  ;;  %vm10253_vm3 = vweird.f32 %v17102_v47  ;;  %v15764_v45 = vor.u32 %v16824_v52, %v15761_v39  ;;  %v15721_v52 = vld [vmem:[%s21842_s15 + $0x218] sm:$0xf0] }
0x2442   : > { %vm10254_vm15 = vmor %vm10252_vm14, %vm10253_vm3  ;;  %v15724_v39 = vor.u32 %v16814_v38, %v15721_v52  ;;  %v15970_v38 = vld [vmem:[%s21844_s17 + $0x2c8] sm:$0xf0]  ;;  %v16854_v52 = vld [vmem:[%s21844_s17 + $0x254] sm:$0xf] }
0x2443   : > { %v10249_v32 = vsub.f32 1.0, %v10248_v23  ;;  %v15751_v23 = vld [vmem:[%s21842_s15 + $0x250] sm:$0xf]  ;;  %10659 = vmatpush.bf16.msrb.mxu0 %v15764_v45 }
0x2445   : > { %v10250_v4 = vmul.f32 %v17102_v47, %v10249_v32  ;;  %v16823_v32 = vld [vmem:[%s21842_s15 + $0x254] sm:$0xf0] }
0x2447   : > { %v10251_v2 = vadd.f32 %v17102_v47, %v10250_v4  ;;  %v15752_v4 = vor.u32 %v16823_v32, %v15751_v23  ;;  %v16813_v23 = vld [vmem:[%s21842_s15 + $0x204] sm:$0xf0]  ;;  %v15775_v32 = vld [vmem:[%s21842_s15 + $0x280] sm:$0xf] }
0x2449   : > { %v10255_v5 = vsel %vm10254_vm15, %v17102_v47, %v10251_v2  ;;  %v15828_v47 = vor.u32 %v16840_v0, %v15825_v11  ;;  %v16822_v2 = vld [vmem:[%s21842_s15 + $0x254] sm:$0xf]  ;;  %10634 = vmatpush.bf16.msra.mxu2 %v15752_v4  ;;  %v15785_v11 = vld [vmem:[%s21842_s15 + $0x298] sm:$0xf0]  ;;  %v16829_v4 = vld [vmem:[%s21842_s15 + $0x284] sm:$0xf0] }
0x244a   : > { %v10260_v7 = vsel %vm10257_vm0, %v10259_v3, %v10255_v5  ;;  %v15753_v3 = vld [vmem:[%s21842_s15 + $0x258] sm:$0xf0]  ;;  %v15816_v5 = vor.u32 %v16839_v58, %v15815_v9  ;;  %v16830_v0 = vld [vmem:[%s21842_s15 + $0x294] sm:$0xf]  ;;  %v16812_v58 = vld [vmem:[%s21842_s15 + $0x204] sm:$0xf] }
0x244b   : > { %v10261_v33 = vmul.f32 %v17100_v13, %v10260_v7  ;;  %v15831_v13 = vld [vmem:[%s21842_s15 + $0x2f0] sm:$0xf]  ;;  %v15756_v7 = vor.u32 %v16822_v2, %v15753_v3  ;;  %v15788_v45 = vor.u32 %v16830_v0, %v15785_v11  ;;  %v15713_v2 = vld [vmem:[%s21842_s15 + $0x208] sm:$0xf0]  ;;  %v15776_v3 = vor.u32 %v16829_v4, %v15775_v32  ;;  %v16853_v32 = vld [vmem:[%s21844_s17 + $0x244] sm:$0xf0] }
0x244c   : > { %v15832_v62 = vor.u32 %v16843_v53, %v15831_v13  ;;  %v16816_v53 = vld [vmem:[%s21842_s15 + $0x224] sm:$0xf] }
0x244d   : > { %15631 = vmatmul.msk.f32.vlgmr.msrb.gmra.mxu1 %vm2016_vm8, %v10261_v33  ;;  %v16838_v33 = vld [vmem:[%s21842_s15 + $0x2d4] sm:$0xf]  ;;  %10660 = vmatpush.bf16.msrb.mxu0 %v15756_v7  ;;  %v15732_v29 = vor.u32 %v16816_v53, %v15729_v56  ;;  %v16828_v7 = vld [vmem:[%s21842_s15 + $0x284] sm:$0xf]  ;;  %v16857_v53 = vld [vmem:[%s21844_s17 + $0x264] sm:$0xf0] }
0x244e   : > { %10645 = vmatpush.bf16.msra.mxu3 %v15832_v62  ;;  %10671 = vmatpush.bf16.msrb.mxu1 %v15836_v8  ;;  %v15820_v37 = vor.u32 %v16838_v33, %v15817_v51  ;;  %v15792_v62 = vor.u32 %v16833_v1, %v15791_v36  ;;  %v15719_v8 = vld [vmem:[%s21842_s15 + $0x210] sm:$0xf]  ;;  %v15777_v33 = vld [vmem:[%s21842_s15 + $0x288] sm:$0xf0]  ;;  %v16870_v36 = vld [vmem:[%s21844_s17 + $0x2d4] sm:$0xf] }
0x244f   : > { %10635 = vmatpush.bf16.msra.mxu2 %v15744_v30  ;;  %v15720_v25 = vor.u32 %v16815_v35, %v15719_v8  ;;  %v15920_v1 = vld [vmem:[%s21844_s17 + $0x260] sm:$0xf]  ;;  %v16856_v56 = vld [vmem:[%s21844_s17 + $0x264] sm:$0xf]  ;;  %v16869_v8 = vld [vmem:[%s21844_s17 + $0x2c4] sm:$0xf0] }
0x2450   : > { %v15921_v42 = vor.u32 %v16857_v53, %v15920_v1 }
0x2452   : > { %10646 = vmatpush.bf16.msra.mxu3 %v15824_v55  ;;  %10672 = vmatpush.bf16.msrb.mxu1 %v15828_v47  ;;  %v15784_v55 = vor.u32 %v16831_v12, %v15783_v21  ;;  %v15711_v47 = vld [vmem:[%s21842_s15 + $0x200] sm:$0xf]  ;;  %v16868_v21 = vld [vmem:[%s21844_s17 + $0x2c4] sm:$0xf]  ;;  %v16855_v12 = vld [vmem:[%s21844_s17 + $0x254] sm:$0xf0] }
0x2453   : > { %v15712_v9 = vor.u32 %v16813_v23, %v15711_v47  ;;  %v15960_v47 = vld [vmem:[%s21844_s17 + $0x2b0] sm:$0xf]  ;;  %v15904_v23 = vld [vmem:[%s21844_s17 + $0x240] sm:$0xf]  ;;  %v15973_v4 = vor.u32 %v16868_v21, %v15970_v38 }
0x2454   : > { %v15888_v38 = vld [vmem:[%s21844_s17 + $0x220] sm:$0xf] }
0x2456   : > { %10647 = vmatpush.bf16.msra.mxu3 %v15816_v5  ;;  %10673 = vmatpush.bf16.msrb.mxu1 %v15820_v37  ;;  %v15716_v5 = vor.u32 %v16812_v58, %v15713_v2  ;;  %v15780_v37 = vor.u32 %v16828_v7, %v15777_v33  ;;  %v16867_v58 = vld [vmem:[%s21844_s17 + $0x2b4] sm:$0xf0]  ;;  %v16852_v2 = vld [vmem:[%s21844_s17 + $0x244] sm:$0xf]  ;;  %v15962_v7 = vld [vmem:[%s21844_s17 + $0x2b8] sm:$0xf0] }
0x2457   : > { %v15675_v33 = vld [vmem:[%s21841_s14 + $0x8] sm:$0xf] }
0x24ca   : > { %v10285_v18 = vpop.f32.mrf.mxu1 }
0x24cb   : > { %v10288_v10 = vpack.c.bf16 %v10285_v18, %v10285_v18  ;;  %v16837_v18 = vld [vmem:[%s21842_s15 + $0x2c4] sm:$0xf0] }
0x24cd   : > { %15672 = vmatmul.msk.bf16.vlgmr.msra.gmra.mxu0 %vm937_vm1, %v10288_v10  ;;  %15673 = vmatmul.msk.bf16.vlgmr.msra.gmra.mxu1 %vm937_vm1, %v10288_v10  ;;  %v16820_v10 = vld [vmem:[%s21842_s15 + $0x244] sm:$0xf] }
0x254a   : > { %v10350_v27 = vpop.f32.mrf.mxu0  ;;  %v10363_v14 = vpop.f32.mrf.mxu1 }
0x254b   : > { %v10367_v20 = vadd.f32 %v10350_v27, %v21299_v16  ;;  %v10368_v24 = vadd.f32 %v10363_v14, %v21301_v17  ;;  %v16836_v27 = vld [vmem:[%s21842_s15 + $0x2c4] sm:$0xf]  ;;  %v15809_v14 = vld [vmem:[%s21842_s15 + $0x2c8] sm:$0xf0] }
0x254d   : > { %v10376_v41 = vadd.f32 %v10372_v61, %v10367_v20  ;;  %v10377_v22 = vadd.f32 %v10373_v60, %v10368_v24  ;;  %v15808_v61 = vor.u32 %v16837_v18, %v15807_v15  ;;  %v15748_v60 = vor.u32 %v16820_v10, %v15745_v46  ;;  %v15735_v24 = vld [vmem:[%s21842_s15 + $0x230] sm:$0xf]  ;;  %v16875_v10 = vld [vmem:[%s21844_s17 + $0x2f4] sm:$0xf0]  ;;  %v16874_v46 = vld [vmem:[%s21844_s17 + $0x2f4] sm:$0xf] }
0x254e   : > { %v15812_v20 = vor.u32 %v16836_v27, %v15809_v14  ;;  %v15992_v18 = vld [vmem:[%s21844_s17 + $0x2f0] sm:$0xf]  ;;  %v15994_v27 = vld [vmem:[%s21844_s17 + $0x2f8] sm:$0xf0]  ;;  %v15984_v14 = vld [vmem:[%s21844_s17 + $0x2e0] sm:$0xf] }
0x254f   : > { %v21368_v19 = vadd.f32 %v10376_v41, %v20606_v31  ;;  %v21371_v44 = vadd.f32 %v10377_v22, %v20608_v34  ;;  %10648 = vmatpush.bf16.msra.mxu3 %v15808_v61  ;;  %v16819_v41 = vld [vmem:[%s21842_s15 + $0x234] sm:$0xf0]  ;;  %v15799_v22 = vld [vmem:[%s21842_s15 + $0x2b0] sm:$0xf]  ;;  %10661 = vmatpush.bf16.msrb.mxu0 %v15748_v60  ;;  %v15993_v60 = vor.u32 %v16875_v10, %v15992_v18  ;;  %v15952_v10 = vld [vmem:[%s21844_s17 + $0x2a0] sm:$0xf] }
0x2550   : > { %10674 = vmatpush.bf16.msrb.mxu1 %v15812_v20  ;;  %v16873_v20 = vld [vmem:[%s21844_s17 + $0x2e4] sm:$0xf0] }
0x2551   : > { %v10382_v49 = vsel %vm2020_vm2, %v21368_v19, 0.0  ;;  %v10383_v28 = vsel %vm2020_vm2, %v21371_v44, 0.0  ;;  %v10388_v59 = vmul.f32 %v21368_v19, %v21368_v19  ;;  %v10389_v16 = vmul.f32 %v21371_v44, %v21371_v44 }
0x2552   : > { %v10352_v17 = vpop.f32.mrf.mxu0  ;;  %v10365_v63 = vpop.f32.mrf.mxu1  ;;  %v10384_v57 = vadd.f32 %v10383_v28, %v10382_v49  ;;  %v15736_v49 = vor.u32 %v16819_v41, %v15735_v24  ;;  %v16835_v28 = vld [vmem:[%s21842_s15 + $0x2b4] sm:$0xf0]  ;;  %v15997_v24 = vor.u32 %v16874_v46, %v15994_v27  ;;  %v16872_v41 = vld [vmem:[%s21844_s17 + $0x2e4] sm:$0xf]  ;;  %v16865_v46 = vld [vmem:[%s21844_s17 + $0x2a4] sm:$0xf0] }
0x2553   : > { %v10390_v31 = vsel %vm2020_vm2, %v10388_v59, 0.0  ;;  %v10391_v34 = vsel %vm2020_vm2, %v10389_v16, 0.0  ;;  %v16818_v59 = vld [vmem:[%s21842_s15 + $0x234] sm:$0xf]  ;;  %v15737_v16 = vld [vmem:[%s21842_s15 + $0x238] sm:$0xf0]  ;;  %v15800_v17 = vor.u32 %v16835_v28, %v15799_v22 }
0x2554   : > { %10385 = vadd.xlane.f32.xlu2 %v10384_v57  ;;  %v10392_v6 = vadd.f32 %v10391_v34, %v10390_v31  ;;  %v15740_v63 = vor.u32 %v16818_v59, %v15737_v16  ;;  %v16834_v57 = vld [vmem:[%s21842_s15 + $0x2b4] sm:$0xf]  ;;  %v15801_v31 = vld [vmem:[%s21842_s15 + $0x2b8] sm:$0xf0]  ;;  %10636 = vmatpush.bf16.msra.mxu2 %v15736_v49  ;;  %v15986_v22 = vld [vmem:[%s21844_s17 + $0x2e8] sm:$0xf0]  ;;  %v15985_v59 = vor.u32 %v16873_v20, %v15984_v14 }
0x2555   : > { %v15804_v34 = vor.u32 %v16834_v57, %v15801_v31  ;;  %10649 = vmatpush.bf16.msra.mxu3 %v15800_v17  ;;  %v15928_v49 = vld [vmem:[%s21844_s17 + $0x270] sm:$0xf]  ;;  %v16859_v16 = vld [vmem:[%s21844_s17 + $0x274] sm:$0xf0]  ;;  %v16858_v17 = vld [vmem:[%s21844_s17 + $0x274] sm:$0xf] }
0x2556   : > { %10393 = vadd.xlane.f32.xlu0 %v10392_v6  ;;  %v15727_v6 = vld [vmem:[%s21842_s15 + $0x220] sm:$0xf]  ;;  %10662 = vmatpush.bf16.msrb.mxu0 %v15740_v63  ;;  %v15989_v63 = vor.u32 %v16872_v41, %v15986_v22  ;;  %v15929_v57 = vor.u32 %v16859_v16, %v15928_v49  ;;  %v15930_v31 = vld [vmem:[%s21844_s17 + $0x278] sm:$0xf0]  ;;  %v16864_v27 = vld [vmem:[%s21844_s17 + $0x2a4] sm:$0xf]  ;;  %v15953_v22 = vor.u32 %v16865_v46, %v15952_v10 }
0x2557   : > { %v15728_v13 = vor.u32 %v16817_v54, %v15727_v6  ;;  %10675 = vmatpush.bf16.msrb.mxu1 %v15804_v34  ;;  %v15976_v34 = vld [vmem:[%s21844_s17 + $0x2d0] sm:$0xf]  ;;  %v16871_v6 = vld [vmem:[%s21844_s17 + $0x2d4] sm:$0xf0]  ;;  %v15933_v54 = vor.u32 %v16858_v17, %v15930_v31  ;;  %v15954_v14 = vld [vmem:[%s21844_s17 + $0x2a8] sm:$0xf0] }
0x2558   : > { %v10423_v41 = vperm.slane %v15675_v33, 3  ;;  %v15708_v10 = vld [vmem:[%s21843_s16 + $0x4] sm:$0x3] }
0x2559   : > { %10637 = vmatpush.bf16.msra.mxu2 %v15728_v13  ;;  %10650 = vmatpush.bf16.msra.mxu3 %v15792_v62  ;;  %v15978_v13 = vld [vmem:[%s21844_s17 + $0x2d8] sm:$0xf0]  ;;  %v15922_v62 = vld [vmem:[%s21844_s17 + $0x268] sm:$0xf0]  ;;  %v10469_v46 = vperm.slane %v15708_v10, 1 }
0x255a   : > { %10663 = vmatpush.bf16.msrb.mxu0 %v15732_v29  ;;  %v15977_v29 = vor.u32 %v16871_v6, %v15976_v34  ;;  %v15925_v48 = vor.u32 %v16856_v56, %v15922_v62  ;;  %v15981_v35 = vor.u32 %v16870_v36, %v15978_v13  ;;  %v10427_v36 = vperm.slane %v10423_v41, 1  ;;  %v16851_v56 = vld [vmem:[%s21844_s17 + $0x234] sm:$0xf0]  ;;  %v16850_v62 = vld [vmem:[%s21844_s17 + $0x234] sm:$0xf] }
0x255b   : > { %10676 = vmatpush.bf16.msrb.mxu1 %v15796_v50  ;;  %v15968_v50 = vld [vmem:[%s21844_s17 + $0x2c0] sm:$0xf] }
0x255c   : > { %v15969_v11 = vor.u32 %v16869_v8, %v15968_v50  ;;  %v15944_v50 = vld [vmem:[%s21844_s17 + $0x290] sm:$0xf]  ;;  %v16863_v8 = vld [vmem:[%s21844_s17 + $0x294] sm:$0xf0] }
0x255d   : > { %10638 = vmatpush.bf16.msra.mxu2 %v15720_v25  ;;  %10651 = vmatpush.bf16.msra.mxu3 %v15784_v55  ;;  %v15912_v25 = vld [vmem:[%s21844_s17 + $0x250] sm:$0xf]  ;;  %v15914_v55 = vld [vmem:[%s21844_s17 + $0x258] sm:$0xf0]  ;;  %v15945_v21 = vor.u32 %v16863_v8, %v15944_v50 }
0x255e   : > { %10664 = vmatpush.bf16.msrb.mxu0 %v15724_v39  ;;  %v15913_v39 = vor.u32 %v16855_v12, %v15912_v25  ;;  %v15946_v25 = vld [vmem:[%s21844_s17 + $0x298] sm:$0xf0] }
0x255f   : > { %10677 = vmatpush.bf16.msrb.mxu1 %v15788_v45  ;;  %v15917_v45 = vor.u32 %v16854_v52, %v15914_v55  ;;  %v16849_v52 = vld [vmem:[%s21844_s17 + $0x224] sm:$0xf0]  ;;  %v16848_v55 = vld [vmem:[%s21844_s17 + $0x224] sm:$0xf] }
0x2561   : > { %10639 = vmatpush.bf16.msra.mxu2 %v15712_v9  ;;  %10652 = vmatpush.bf16.msra.mxu3 %v15776_v3  ;;  %v15906_v3 = vld [vmem:[%s21844_s17 + $0x248] sm:$0xf0] }
0x2562   : > { %10665 = vmatpush.bf16.msrb.mxu0 %v15716_v5  ;;  %v16866_v5 = vld [vmem:[%s21844_s17 + $0x2b4] sm:$0xf] }
0x2563   : > { %10678 = vmatpush.bf16.msrb.mxu1 %v15780_v37  ;;  %v15905_v37 = vor.u32 %v16853_v32, %v15904_v23  ;;  %v15965_v18 = vor.u32 %v16866_v5, %v15962_v7  ;;  %v16860_v23 = vld [vmem:[%s21844_s17 + $0x284] sm:$0xf]  ;;  %v16846_v5 = vld [vmem:[%s21844_s17 + $0x214] sm:$0xf]  ;;  %v15882_v7 = vld [vmem:[%s21844_s17 + $0x218] sm:$0xf0] }
0x2565   : > { %10901 = vmatpush.bf16.msrb.mxu3 %v15993_v60  ;;  %10888 = vmatpush.bf16.msrb.mxu2 %v15929_v57  ;;  %v10415_v60 = vperm.slane %v15675_v33, 2 }
0x2566   : > { %10914 = vmatpush.bf16.msra.mxu0 %v15933_v54 }
0x2567   : > { %10927 = vmatpush.bf16.msra.mxu1 %v15997_v24  ;;  %v10422_v24 = vperm.slane %v15675_v33, 1  ;;  %v10419_v57 = vperm.slane %v10415_v60, 0 }
0x2569   : > { %10902 = vmatpush.bf16.msrb.mxu3 %v15985_v59  ;;  %10889 = vmatpush.bf16.msrb.mxu2 %v15921_v42  ;;  %v15957_v59 = vor.u32 %v16864_v27, %v15954_v14  ;;  %v10426_v54 = vperm.slane %v10422_v24, 1  ;;  %v15898_v42 = vld [vmem:[%s21844_s17 + $0x238] sm:$0xf0]  ;;  %v10468_v14 = vperm.slane %v15708_v10, 0 }
0x256a   : > { %10915 = vmatpush.bf16.msra.mxu0 %v15925_v48  ;;  %v15901_v48 = vor.u32 %v16850_v62, %v15898_v42 }
0x256b   : > { %10928 = vmatpush.bf16.msra.mxu1 %v15989_v63 }
0x256d   : > { %10903 = vmatpush.bf16.msrb.mxu3 %v15977_v29  ;;  %10890 = vmatpush.bf16.msrb.mxu2 %v15913_v39  ;;  %v15889_v39 = vor.u32 %v16849_v52, %v15888_v38 }
0x256e   : > { %10916 = vmatpush.bf16.msra.mxu0 %v15917_v45  ;;  %v15936_v45 = vld [vmem:[%s21844_s17 + $0x280] sm:$0xf] }
0x256f   : > { %10929 = vmatpush.bf16.msra.mxu1 %v15981_v35  ;;  %v16862_v35 = vld [vmem:[%s21844_s17 + $0x294] sm:$0xf] }
0x2570   : > { %v15949_v12 = vor.u32 %v16862_v35, %v15946_v25 }
0x2571   : > { %10904 = vmatpush.bf16.msrb.mxu3 %v15969_v11  ;;  %10891 = vmatpush.bf16.msrb.mxu2 %v15905_v37  ;;  %v16845_v37 = vld [vmem:[%s21844_s17 + $0x204] sm:$0xf0] }
0x2573   : > { %10930 = vmatpush.bf16.msra.mxu1 %v15973_v4 }
0x2577   : > { %10931 = vmatpush.bf16.msra.mxu1 %v15965_v18 }
0x257b   : > { %10932 = vmatpush.bf16.msra.mxu1 %v15957_v59 }
0x257f   : > { %10933 = vmatpush.bf16.msra.mxu1 %v15949_v12 }
0x25c7   : > { %v10386_v51 = vpop.xlane.xlu2 %10385 }
0x25c8   : > { %v21576_v26 = vmul.f32 %v10386_v51, %v18830_v43 }
0x25c9   : > { %v10394_v40 = vpop.xlane.xlu0 %10393 }
0x25ca   : > { %v10395_v15 = vmul.f32 %v10394_v40, %v18830_v43  ;;  %v10396_v30 = vmul.f32 %v21576_v26, %v21576_v26  ;;  %v15961_v40 = vor.u32 %v16867_v58, %v15960_v47  ;;  %v10409_v16 = vsub.f32 %v21368_v19, %v21576_v26  ;;  %v16861_v47 = vld [vmem:[%s21844_s17 + $0x284] sm:$0xf0]  ;;  %v15880_v58 = vld [vmem:[%s21844_s17 + $0x210] sm:$0xf] }
0x25cb   : > { %v10410_v17 = vsub.f32 %v21371_v44, %v21576_v26  ;;  %v15896_v26 = vld [vmem:[%s21844_s17 + $0x230] sm:$0xf]  ;;  %v15937_v32 = vor.u32 %v16861_v47, %v15936_v45 }
0x25cc   : > { %v10397_v61 = vsub.f32 %v10395_v15, %v10396_v30  ;;  %v15909_v15 = vor.u32 %v16852_v2, %v15906_v3  ;;  %10905 = vmatpush.bf16.msrb.mxu3 %v15961_v40  ;;  %v15897_v29 = vor.u32 %v16851_v56, %v15896_v26  ;;  %v16847_v2 = vld [vmem:[%s21844_s17 + $0x214] sm:$0xf0]  ;;  %v16844_v40 = vld [vmem:[%s21844_s17 + $0x204] sm:$0xf] }
0x25cd   : > { %v15881_v3 = vor.u32 %v16847_v2, %v15880_v58 }
0x25ce   : > { %v21608_v28 = vadd.f32 1e-05, %v10397_v61  ;;  %v10414_v61 = vperm.slane %v15675_v33, 0  ;;  %10917 = vmatpush.bf16.msra.mxu0 %v15909_v15  ;;  %10892 = vmatpush.bf16.msrb.mxu2 %v15897_v29  ;;  %v15885_v33 = vor.u32 %v16846_v5, %v15882_v7  ;;  %v15998_v5 = vld [vmem:[%s21846_s19 + $0x8] sm:$0xf] }
0x25d0   : > { %17103 = vrsqrt.f32 %v21608_v28  ;;  %vm10405_vm8 = vweird.f32 %v21608_v28  ;;  %v10418_v63 = vperm.slane %v10414_v61, 0  ;;  %10906 = vmatpush.bf16.msrb.mxu3 %v15953_v22 }
0x25d2   : > { %10918 = vmatpush.bf16.msra.mxu0 %v15901_v48  ;;  %10893 = vmatpush.bf16.msrb.mxu2 %v15889_v39 }
0x25d4   : > { %10907 = vmatpush.bf16.msrb.mxu3 %v15945_v21 }
0x25d6   : > { %v17104_v0 = vpop.eup %17103  ;;  %10894 = vmatpush.bf16.msrb.mxu2 %v15881_v3 }
0x25d7   : > { %v10400_v9 = vmul.f32 %v17104_v0, %v21608_v28  ;;  %vm10406_vm1 = vweird.f32 %v17104_v0 }
0x25d8   : > { %vm10407_vm4 = vmor %vm10405_vm8, %vm10406_vm1  ;;  %10908 = vmatpush.bf16.msrb.mxu3 %v15937_v32 }
0x25d9   : > { %v10401_v51 = vmul.f32 %v17104_v0, %v10400_v9  ;;  %v15938_v9 = vld [vmem:[%s21844_s17 + $0x288] sm:$0xf0] }
0x25da   : > { %v15941_v4 = vor.u32 %v16860_v23, %v15938_v9 }
0x25db   : > { %v10402_v30 = vmul.f32 0.5, %v10401_v51  ;;  %v15872_v51 = vld [vmem:[%s21844_s17 + $0x200] sm:$0xf] }
0x25dc   : > { %10934 = vmatpush.bf16.msra.mxu1 %v15941_v4  ;;  %v15873_v15 = vor.u32 %v16845_v37, %v15872_v51  ;;  %v10977_v51 = vperm.slane %v15998_v5, 2 }
0x25dd   : > { %v10403_v20 = vsub.f32 1.5, %v10402_v30  ;;  %v15874_v30 = vld [vmem:[%s21844_s17 + $0x208] sm:$0xf0] }
0x25de   : > { %v15877_v18 = vor.u32 %v16844_v40, %v15874_v30  ;;  %10895 = vmatpush.bf16.msrb.mxu2 %v15873_v15  ;;  %v10984_v40 = vperm.slane %v15998_v5, 1  ;;  %v10985_v15 = vperm.slane %v15998_v5, 3 }
0x25df   : > { %v10404_v49 = vmul.f32 %v17104_v0, %v10403_v20 }
0x25e1   : > { %v10408_v31 = vsel %vm10407_vm4, %v17104_v0, %v10404_v49  ;;  %v15890_v0 = vld [vmem:[%s21844_s17 + $0x228] sm:$0xf0] }
0x25e2   : > { %v10411_v34 = vmul.f32 %v10409_v16, %v10408_v31  ;;  %v10412_v6 = vmul.f32 %v10410_v17, %v10408_v31  ;;  %v15893_v11 = vor.u32 %v16848_v55, %v15890_v0 }
0x25e4   : > { %v10420_v28 = vmul.f32 %v10418_v63, %v10411_v34  ;;  %v10421_v13 = vmul.f32 %v10419_v57, %v10412_v6  ;;  %10919 = vmatpush.bf16.msra.mxu0 %v15893_v11 }
0x25e6   : > { %v21714_v1 = vadd.f32 %v10426_v54, %v10420_v28  ;;  %v21716_v53 = vadd.f32 %v10427_v36, %v10421_v13  ;;  %v15869_v54 = vld [vmem:[%s21845_s18 + $0x4] sm:$0x3] }
0x25e7   : > { %v10725_v28 = vperm.slane %v15869_v54, 1  ;;  %v10724_v62 = vperm.slane %v15869_v54, 0 }
0x25e8   : > { %v10430_v19 = vpack.c.bf16 %v21714_v1, %v21714_v1  ;;  %v10431_v44 = vpack.c.bf16 %v21716_v53, %v21716_v53  ;;  %10920 = vmatpush.bf16.msra.mxu0 %v15885_v33  ;;  %v10976_v33 = vperm.slane %v15998_v5, 0 }
0x25ea   : > { %10640 = vmatmul.bf16.vlgmr.msra.gmra.mxu2 %v10430_v19  ;;  %10653 = vmatmul.bf16.vlgmr.msra.gmra.mxu3 %v10431_v44  ;;  %v10980_v10 = vperm.slane %v10976_v33, 0 }
0x25eb   : > { %10666 = vmatmul.bf16.vlgmr.msrb.gmra.mxu0 %v10430_v19  ;;  %10679 = vmatmul.bf16.vlgmr.msrb.gmra.mxu1 %v10431_v44 }
0x25ec   : > { %10921 = vmatpush.bf16.msra.mxu0 %v15877_v18 }
0x2668   : > { %v10667_v61 = vpop.f32.mrf.mxu0  ;;  %v10680_v60 = vpop.f32.mrf.mxu1 }
0x2669   : > { %v10668_v27 = vadd.f32 %v10667_v61, %v10469_v46  ;;  %v10981_v46 = vperm.slane %v10977_v51, 0 }
0x266b   : > { %v10681_v20 = vadd.f32 %v10680_v60, %v10668_v27 }
0x266d   : > { %v10685_v24 = vmax.f32 %v10681_v20, 0.0  ;;  %v10641_v41 = vpop.f32.mrf.mxu2  ;;  %v10654_v22 = vpop.f32.mrf.mxu3  ;;  %v10989_v20 = vperm.slane %v10985_v15, 1 }
0x266e   : > { %v10642_v49 = vadd.f32 %v10641_v41, %v10468_v14  ;;  %v10988_v14 = vperm.slane %v10984_v40, 1 }
0x266f   : > { %v10687_v59 = vpack.c.bf16 %v10685_v24, %v10685_v24 }
0x2670   : > { %v10655_v16 = vadd.f32 %v10654_v22, %v10642_v49  ;;  %v10669_v17 = vpop.f32.mrf.mxu0  ;;  %v10682_v63 = vpop.f32.mrf.mxu1  ;;  %v10992_v22 = vld [vmem:[%s21847_s20] sm:$0x1f]  ;;  %v10993_v49 = vld [vmem:[%s21847_s20 + $0x8] sm:$0x1f] }
0x2671   : > { %10909 = vmatmul.bf16.vlgmr.msrb.gmra.mxu3 %v10687_v59  ;;  %10935 = vmatmul.bf16.vlgmr.msra.gmra.mxu1 %v10687_v59 }
0x2672   : > { %v10684_v57 = vmax.f32 %v10655_v16, 0.0 }
0x2674   : > { %v10686_v31 = vpack.c.bf16 %v10684_v57, %v10684_v57 }
0x2675   : > { %v10643_v34 = vpop.f32.mrf.mxu2  ;;  %v10656_v6 = vpop.f32.mrf.mxu3 }
0x2676   : > { %10896 = vmatmul.bf16.vlgmr.msrb.gmra.mxu2 %v10686_v31  ;;  %10922 = vmatmul.bf16.vlgmr.msra.gmra.mxu0 %v10686_v31  ;;  %v17116_v6 = vmov 0  }
0x2677   : > { %17005 = vset.pattern.permute.xlu1 %v17116_v6  ;;  %17006 = vset.pattern.permute.xlu0 %v17116_v6 }
0x26ee   : > { %v10936_v36 = vpop.f32.mrf.mxu1 }
0x26f3   : > { %v10923_v13 = vpop.f32.mrf.mxu0 }
0x26f4   : > { %v10910_v19 = vpop.f32.mrf.mxu3  ;;  %v10924_v44 = vadd.f32 %v10923_v13, %v10725_v28 }
0x26f6   : > { %v10937_v26 = vadd.f32 %v10936_v36, %v10924_v44  ;;  %v10938_v56 = vpop.f32.mrf.mxu1 }
0x26f7   : > { %v11008_v56 = vld [vmem:[#allocation2] sm:$0x1] }
0x26f8   : > { %v10941_v42 = vadd.f32 %v10937_v26, %v21716_v53 }
0x26f9   : > { %v10897_v29 = vpop.f32.mrf.mxu2 }
0x26fa   : > { %v10898_v48 = vadd.f32 %v10897_v29, %v10724_v62  ;;  %v10951_v25 = vmul.f32 %v10941_v42, %v10941_v42  ;;  %v10945_v38 = vsel %vm2020_vm2, %v10941_v42, 0.0 }
0x26fb   : > { %v10925_v50 = vpop.f32.mrf.mxu0 }
0x26fc   : > { %v10911_v8 = vadd.f32 %v10910_v19, %v10898_v48  ;;  %v10912_v35 = vpop.f32.mrf.mxu3  ;;  %v10953_v11 = vsel %vm2020_vm2, %v10951_v25, 0.0 }
0x26fe   : > { %v10940_v21 = vadd.f32 %v10911_v8, %v21714_v1 }
0x2700   : > { %v10944_v12 = vsel %vm2020_vm2, %v10940_v21, 0.0  ;;  %v10950_v52 = vmul.f32 %v10940_v21, %v10940_v21 }
0x2701   : > { %v10899_v55 = vpop.f32.mrf.mxu2  ;;  %v10946_v39 = vadd.f32 %v10945_v38, %v10944_v12 }
0x2702   : > { %v10952_v0 = vsel %vm2020_vm2, %v10950_v52, 0.0 }
0x2703   : > { %10947 = vadd.xlane.f32.xlu1 %v10946_v39  ;;  %v10954_v53 = vadd.f32 %v10953_v11, %v10952_v0 }
0x2705   : > { %10955 = vadd.xlane.f32.xlu2 %v10954_v53 }
0x2776   : > { %v10948_v45 = vpop.xlane.xlu1 %10947 }
0x2777   : > { %v10949_v47 = vmul.f32 %v10948_v45, %v18830_v43 }
0x2778   : > { %v10956_v23 = vpop.xlane.xlu2 %10955 }
0x2779   : > { %v10957_v1 = vmul.f32 %v10956_v23, %v18830_v43  ;;  %v10958_v32 = vmul.f32 %v10949_v47, %v10949_v47  ;;  %v10971_v43 = vsub.f32 %v10940_v21, %v10949_v47  ;;  %v10972_v18 = vsub.f32 %v10941_v42, %v10949_v47 }
0x277b   : > { %v10959_v9 = vsub.f32 %v10957_v1, %v10958_v32 }
0x277d   : > { %v10960_v4 = vadd.f32 1e-05, %v10959_v9 }
0x277f   : > { %17105 = vrsqrt.f32 %v10960_v4  ;;  %vm10967_vm6 = vweird.f32 %v10960_v4 }
0x2785   : > { %v17106_v58 = vpop.eup %17105 }
0x2786   : > { %v10962_v2 = vmul.f32 %v17106_v58, %v10960_v4  ;;  %vm10968_vm5 = vweird.f32 %v17106_v58 }
0x2787   : > { %vm10969_vm7 = vmor %vm10967_vm6, %vm10968_vm5 }
0x2788   : > { %v10963_v3 = vmul.f32 %v17106_v58, %v10962_v2 }
0x278a   : > { %v10964_v7 = vmul.f32 0.5, %v10963_v3 }
0x278c   : > { %v10965_v37 = vsub.f32 1.5, %v10964_v7 }
0x278e   : > { %v10966_v30 = vmul.f32 %v17106_v58, %v10965_v37 }
0x2790   : > { %v10970_v61 = vsel %vm10969_vm7, %v17106_v58, %v10966_v30 }
0x2791   : > { %v10973_v60 = vmul.f32 %v10971_v43, %v10970_v61  ;;  %v10974_v27 = vmul.f32 %v10972_v18, %v10970_v61 }
0x2793   : > { %v10982_v24 = vmul.f32 %v10980_v10, %v10973_v60  ;;  %v10983_v41 = vmul.f32 %v10981_v46, %v10974_v27 }
0x2795   : > { %v10990_v59 = vadd.f32 %v10988_v14, %v10982_v24  ;;  %v10991_v16 = vadd.f32 %v10989_v20, %v10983_v41 }
0x2797   : > { %v10994_v17 = vmul.f32 %v10992_v22, %v10990_v59  ;;  %v10995_v63 = vmul.f32 %v10993_v49, %v10991_v16 }
0x2799   : > { %v10996_v57 = vsel %vm2020_vm2, %v10994_v17, 0.0  ;;  %v10997_v31 = vsel %vm2020_vm2, %v10995_v63, 0.0 }
0x279a   : > { %v10998_v34 = vadd.f32 %v10997_v31, %v10996_v57 }
0x279c   : > { %10999 = vadd.xlane.f32.xlu0 %v10998_v34 }
0x280f   : > { %v11000_v54 = vpop.xlane.xlu0 %10999 }
0x2810   : > { %v11001_v36 = vsel %vm2020_vm2, %v11000_v54, 0.0 }
0x2811   : > { %v11002_v28 = vrot.slane %v11001_v36, 4 }
0x2813   : > { %v11003_v13 = vadd.f32 %v11002_v28, %v11001_v36 }
0x2815   : > { %v11004_v19 = vrot.slane %v11003_v13, 2 }
0x2817   : > { %v11005_v44 = vadd.f32 %v11004_v19, %v11003_v13 }
0x2819   : > { %v11006_v26 = vrot.slane %v11005_v44, 1 }
0x281b   : > { %v11007_v62 = vadd.f32 %v11006_v26, %v11005_v44 }
0x281d   : > { %v11009_v29 = vadd.f32 %v11008_v56, %v11007_v62 }
0x281f   : > { %v11011_v42 = vperm.slane %v11009_v29, 0 }
0x2821   : > { %11013 = vperm.xlu1 %17005, %v11011_v42  }
0x2893   : > { %v11014_v48 = vpop.permute.xlu1 %11013 }
0x2894   : > { %11016 = vst [vmem:[%s703_s24] sm:$0xff] %v11014_v48 }
0x2895 PF: > { %s34_s29 = sadd.s32 1, %s17113_s29  }
0x2896   : > { %p31_p4 = scmp.ge.s32.totalorder %s34_s29, 4  }
0x2898   :  { %33 = sbr.rel (!%p31_p4) target bundleno = 8 (0x8), region = 232 }

</bundles_post_ra>
